<compile_context>
chip_gen: v6e
topology: v6e:2x2x1
jax: 0.10.0
libtpu: 0.0.40
codegen_flags: <defaults>
</compile_context>

<pallas_src>
import numpy as np
import jax
import jax.numpy as jnp
from jax.experimental import pallas as pl
from jax.experimental.pallas import tpu as pltpu


def _round_up(x, m):
    return (x + m - 1) // m * m


# ---------------------------------------------------------------------------
# Fused SexPred forward kernel (factory: B, Tv, Tp, L are static).
# ---------------------------------------------------------------------------
def _make_sexpred_kernel(B, Tv, Tp, L):

    def kernel(v_ids_ref, p_ids_ref, emb_ref, *rest):
        # rest = 2L x (W_i, W_h, b_i, b_hn) + (out_w, out_b) + logits + y_scr
        y_scr = rest[-1]               # VMEM scratch [max(Tv,Tp)*B, H]
        logits_ref = rest[-2]          # [Tp*B, VP]  (t-major rows, lane-dense)
        out_b_ref = rest[-3]           # [1, VP]
        out_w_ref = rest[-4]           # [H, VP]
        layer_refs = rest[:-4]
        enc = [layer_refs[4 * i:4 * (i + 1)] for i in range(L)]
        dec = [layer_refs[4 * (L + i):4 * (L + i + 1)] for i in range(L)]

        H = enc[0][1].shape[0]         # W_h: [H, GP]
        emb = emb_ref[...]             # [V, E]
        V = emb.shape[0]

        def gather(ids_ref, T):
            # Exact embedding gather as a one-hot matmul on the MXU (no
            # per-row dynamic loads, no HBM round trip of [B,T,E]).
            ids = ids_ref[...]                                        # [T*B, 1]
            iota = jax.lax.broadcasted_iota(jnp.int32, (T * B, V), 1)
            onehot = (ids == iota).astype(jnp.float32)                # [T*B, V]
            return jnp.dot(onehot, emb, preferred_element_type=jnp.float32)

        def run_stack(X, T, layers, h0_list):
            """Multi-layer GRU.  X: [T*B, D_in], row index = t*B + b.
            Returns (Y [T*B, H] of last layer, [h_T per layer])."""
            h_finals = []
            for (wi_ref, wh_ref, bi_ref, bhn_ref), h0 in zip(layers, h0_list):
                # Hoisted input projection for ALL timesteps (one matmul);
                # b_i already folds b_hr/b_hz into the r/z columns.
                I = (jnp.dot(X, wi_ref[...],
                             preferred_element_type=jnp.float32)
                     + bi_ref[...])                                   # [T*B, GP]
                wh = wh_ref[...]                                      # [H, GP]
                bhn = jnp.broadcast_to(bhn_ref[...], (B, H))          # hoisted
                h = h0
                for t in range(T):                                    # unrolled
                    It = I[t * B:(t + 1) * B, :]                      # [B, GP]
                    G = jnp.dot(h, wh, preferred_element_type=jnp.float32)
                    r = jax.nn.sigmoid(It[:, 0:H] + G[:, 0:H])
                    z = jax.nn.sigmoid(It[:, H:2 * H] + G[:, H:2 * H])
                    n = jnp.tanh(It[:, 2 * H:3 * H]
                                 + r * (G[:, 2 * H:3 * H] + bhn))
                    h = (1.0 - z) * n + z * h
                    y_scr[t * B:(t + 1) * B, :] = h
                h_finals.append(h)
                X = y_scr[0:T * B, :]      # layer output -> next layer input
            return X, h_finals

        # Encoder: embed -> 3-layer GRU, h0 = zeros (Encoder.initHidden).
        zeros = jnp.zeros((B, H), jnp.float32)
        _, h_enc = run_stack(gather(v_ids_ref, Tv), Tv, enc, [zeros] * L)

        # Decoder: relu(embed) -> 3-layer GRU (h0 = encoder h) -> Linear.
        Xp = jnp.maximum(gather(p_ids_ref, Tp), 0.0)
        Y, _ = run_stack(Xp, Tp, dec, h_enc)

        logits_ref[...] = (jnp.dot(Y, out_w_ref[...],
                                   preferred_element_type=jnp.float32)
                           + out_b_ref[...])

    return kernel


# ---------------------------------------------------------------------------
# Parameter packing: PyTorch-style per-gate tensors -> concatenated + padded
# kernel layout.  Done once, outside the forward pass.
# ---------------------------------------------------------------------------
def _pack_gru_layer(layer, GP):
    wir, wiz, win, whr, whz, whn, bih, bhh = layer
    D, H = wir.shape
    wi = jnp.zeros((D, GP), jnp.float32)
    wi = wi.at[:, 0:H].set(wir).at[:, H:2 * H].set(wiz).at[:, 2 * H:3 * H].set(win)
    wh = jnp.zeros((H, GP), jnp.float32)
    wh = wh.at[:, 0:H].set(whr).at[:, H:2 * H].set(whz).at[:, 2 * H:3 * H].set(whn)
    bi = jnp.zeros((1, GP), jnp.float32)
    bi = (bi.at[0, 0:H].set(bih[0] + bhh[0])        # r: b_ir + b_hr
            .at[0, H:2 * H].set(bih[1] + bhh[1])    # z: b_iz + b_hz
            .at[0, 2 * H:3 * H].set(bih[2]))        # n: b_in only
    bhn = bhh[2:3, :]                               # [1, H]
    return [wi, wh, bi, bhn]


def pack_params(params):
    emb = params["embedding"].astype(jnp.float32)
    V = emb.shape[0]
    H = params["enc_gru"][0][3].shape[0]            # W_hr is [H, H]
    GP = _round_up(3 * H, 128)
    VP = _round_up(V, 128)
    flat = [emb]
    for layer in params["enc_gru"] + params["dec_gru"]:
        flat += _pack_gru_layer(layer, GP)
    out_w = jnp.zeros((H, VP), jnp.float32).at[:, 0:V].set(params["out_w"])
    out_b = jnp.zeros((1, VP), jnp.float32).at[:, 0:V].set(params["out_b"])
    flat += [out_w, out_b]
    return flat, V


# ---------------------------------------------------------------------------
# Forward wrapper (tiny glue: id reordering in, logits un-padding out).
# ---------------------------------------------------------------------------
def sexpred_forward(packed_flat, V, v_tokens, p_tokens):
    B, Tv = v_tokens.shape
    _, Tp = p_tokens.shape
    L = (len(packed_flat) - 3) // 8
    out_w = packed_flat[-2]
    H, VP = out_w.shape

    # Time-major flattened token ids (row = t*B + b) for the in-kernel gather.
    v_ids = jnp.transpose(v_tokens).reshape(Tv * B, 1).astype(jnp.int32)
    p_ids = jnp.transpose(p_tokens).reshape(Tp * B, 1).astype(jnp.int32)

    vmem = pl.BlockSpec(memory_space=pltpu.MemorySpace.VMEM)
    logits_p = pl.pallas_call(
        _make_sexpred_kernel(B, Tv, Tp, L),
        out_shape=jax.ShapeDtypeStruct((Tp * B, VP), jnp.float32),
        in_specs=[vmem] * (2 + len(packed_flat)),
        out_specs=vmem,
        scratch_shapes=[pltpu.VMEM((max(Tv, Tp) * B, H), jnp.float32)],
    )(v_ids, p_ids, *packed_flat)

    # [Tp*B, VP] t-major -> [B, Tp, vocab]
    return logits_p.reshape(Tp, B, VP).transpose(1, 0, 2)[:, :, 0:V]


# ---------------------------------------------------------------------------
# Pure-JAX reference (sanity check, uses unpacked PyTorch-style params).
# ---------------------------------------------------------------------------
def _gru_layer_ref(x, h0, params):
    wir, wiz, win, whr, whz, whn, bih, bhh = params

    def step(h, x_t):
        r = jax.nn.sigmoid(x_t @ wir + bih[0] + h @ whr + bhh[0])
        z = jax.nn.sigmoid(x_t @ wiz + bih[1] + h @ whz + bhh[1])
        n = jnp.tanh(x_t @ win + bih[2] + r * (h @ whn + bhh[2]))
        h_new = (1.0 - z) * n + z * h
        return h_new, h_new

    hT, ys = jax.lax.scan(step, h0, x)
    return ys, hT


def sexpred_forward_ref(params, v_tokens, p_tokens):
    emb = params["embedding"]
    B = v_tokens.shape[0]
    H = params["enc_gru"][0][3].shape[0]
    L = len(params["enc_gru"])

    h = jnp.zeros((L, B, H), jnp.float32)
    x = jnp.transpose(jnp.take(emb, v_tokens, axis=0), (1, 0, 2))
    hs = []
    for l in range(L):
        x, hT = _gru_layer_ref(x, h[l], params["enc_gru"][l])
        hs.append(hT)
    h_enc = jnp.stack(hs, 0)

    x = jnp.transpose(jax.nn.relu(jnp.take(emb, p_tokens, axis=0)), (1, 0, 2))
    for l in range(L):
        x, _ = _gru_layer_ref(x, h_enc[l], params["dec_gru"][l])

    Tp = x.shape[0]
    y2d = jnp.transpose(x, (1, 0, 2)).reshape(B * Tp, H)
    logits = y2d @ params["out_w"] + params["out_b"]
    return logits.reshape(B, Tp, -1)


# ---------------------------------------------------------------------------
# Deterministic parameter init (shapes per the module's __init__).
# ---------------------------------------------------------------------------
def init_params(key, vocab, E, H, L=3):
    keys = iter(jax.random.split(key, 128))

    def u(shape, scale):
        return jax.random.uniform(next(keys), shape, jnp.float32, -scale, scale)

    def gru_layers():
        layers = []
        for l in range(L):
            d_in = E if l == 0 else H
            s = 1.0 / np.sqrt(H)
            layers.append((
                u((d_in, H), s), u((d_in, H), s), u((d_in, H), s),   # W_ir/iz/in
                u((H, H), s), u((H, H), s), u((H, H), s),            # W_hr/hz/hn
                u((3, H), s),                                        # b_ih (r,z,n)
                u((3, H), s),                                        # b_hh (r,z,n)
            ))
        return layers

    return dict(
        embedding=jax.random.normal(next(keys), (vocab, E), jnp.float32),
        enc_gru=gru_layers(),
        dec_gru=gru_layers(),
        out_w=u((H, vocab), 1.0 / np.sqrt(H)),   # Linear(H, vocab), transposed
        out_b=u((1, vocab), 1.0 / np.sqrt(H)),
    )


if __name__ == "__main__":
    VOCAB, EMB, HIDDEN = 64, 32, 32
    B, T_V, T_P = 2, 8, 8

    root = jax.random.PRNGKey(0)
    k_par, k_v, k_p = jax.random.split(root, 3)

    params = init_params(k_par, VOCAB, EMB, HIDDEN, L=3)
    v_tokens = jax.random.randint(k_v, (B, T_V), 0, VOCAB, dtype=jnp.int32)
    p_tokens = jax.random.randint(k_p, (B, T_P), 0, VOCAB, dtype=jnp.int32)

    packed, V = pack_params(params)
    fwd = jax.jit(lambda flat, v, p: sexpred_forward(flat, V, v, p))
    out = jax.block_until_ready(fwd(packed, v_tokens, p_tokens))
    assert out.shape == (B, T_P, VOCAB), out.shape

    ref = jax.block_until_ready(sexpred_forward_ref(params, v_tokens, p_tokens))
    np.testing.assert_allclose(np.asarray(out), np.asarray(ref),
                               rtol=5e-2, atol=5e-2)

    print("KERNEL_OK")
</pallas_src>

<mosaic_0001>
module attributes {stable_mosaic.version = 11 : i64} {
  func.func @kernel(%arg0: memref<16x1xi32, #tpu.memory_space<vmem>>, %arg1: memref<16x1xi32, #tpu.memory_space<vmem>>, %arg2: memref<64x32xf32, #tpu.memory_space<vmem>>, %arg3: memref<32x128xf32, #tpu.memory_space<vmem>>, %arg4: memref<32x128xf32, #tpu.memory_space<vmem>>, %arg5: memref<1x128xf32, #tpu.memory_space<vmem>>, %arg6: memref<1x32xf32, #tpu.memory_space<vmem>>, %arg7: memref<32x128xf32, #tpu.memory_space<vmem>>, %arg8: memref<32x128xf32, #tpu.memory_space<vmem>>, %arg9: memref<1x128xf32, #tpu.memory_space<vmem>>, %arg10: memref<1x32xf32, #tpu.memory_space<vmem>>, %arg11: memref<32x128xf32, #tpu.memory_space<vmem>>, %arg12: memref<32x128xf32, #tpu.memory_space<vmem>>, %arg13: memref<1x128xf32, #tpu.memory_space<vmem>>, %arg14: memref<1x32xf32, #tpu.memory_space<vmem>>, %arg15: memref<32x128xf32, #tpu.memory_space<vmem>>, %arg16: memref<32x128xf32, #tpu.memory_space<vmem>>, %arg17: memref<1x128xf32, #tpu.memory_space<vmem>>, %arg18: memref<1x32xf32, #tpu.memory_space<vmem>>, %arg19: memref<32x128xf32, #tpu.memory_space<vmem>>, %arg20: memref<32x128xf32, #tpu.memory_space<vmem>>, %arg21: memref<1x128xf32, #tpu.memory_space<vmem>>, %arg22: memref<1x32xf32, #tpu.memory_space<vmem>>, %arg23: memref<32x128xf32, #tpu.memory_space<vmem>>, %arg24: memref<32x128xf32, #tpu.memory_space<vmem>>, %arg25: memref<1x128xf32, #tpu.memory_space<vmem>>, %arg26: memref<1x32xf32, #tpu.memory_space<vmem>>, %arg27: memref<32x128xf32, #tpu.memory_space<vmem>>, %arg28: memref<1x128xf32, #tpu.memory_space<vmem>>, %arg29: memref<16x128xf32, #tpu.memory_space<vmem>>, %arg30: memref<16x32xf32, #tpu.memory_space<vmem>>) attributes {dimension_semantics = [], scalar_prefetch = 0 : i64, scratch_operands = 1 : i64, tpu.core_type = #tpu.core_type<tc>} {
    %c0 = arith.constant 0 : index
    %c0_0 = arith.constant 0 : index
    %0 = vector.load %arg2[%c0, %c0_0] : memref<64x32xf32, #tpu.memory_space<vmem>>, vector<64x32xf32>
    %cst = arith.constant 0.000000e+00 : f32
    %1 = vector.broadcast %cst : f32 to vector<2x32xf32>
    %c0_1 = arith.constant 0 : index
    %c0_2 = arith.constant 0 : index
    %2 = vector.load %arg0[%c0_1, %c0_2] : memref<16x1xi32, #tpu.memory_space<vmem>>, vector<16x1xi32>
    %3 = tpu.iota {dimensions = array<i32: 1>} : vector<16x64xi32>
    %4 = vector.broadcast %2 : vector<16x1xi32> to vector<16x64xi32>
    %5 = arith.cmpi eq, %4, %3 : vector<16x64xi32>
    %6 = arith.extui %5 : vector<16x64xi1> to vector<16x64xi32>
    %7 = arith.sitofp %6 : vector<16x64xi32> to vector<16x64xf32>
    %cst_3 = arith.constant dense<0.000000e+00> : vector<16x32xf32>
    %8 = tpu.matmul %7, %0, %cst_3 {dimension_numbers = #tpu.dot_dimension_numbers<[1], [0], [0], [1], [0, 0, 1, 1], [], []>} : vector<16x64xf32>, vector<64x32xf32>, vector<16x32xf32> -> vector<16x32xf32>
    %c0_4 = arith.constant 0 : index
    %c0_5 = arith.constant 0 : index
    %9 = vector.load %arg3[%c0_4, %c0_5] : memref<32x128xf32, #tpu.memory_space<vmem>>, vector<32x128xf32>
    %cst_6 = arith.constant dense<0.000000e+00> : vector<16x128xf32>
    %10 = tpu.matmul %8, %9, %cst_6 {dimension_numbers = #tpu.dot_dimension_numbers<[1], [0], [0], [1], [0, 0, 1, 1], [], []>} : vector<16x32xf32>, vector<32x128xf32>, vector<16x128xf32> -> vector<16x128xf32>
    %c0_7 = arith.constant 0 : index
    %c0_8 = arith.constant 0 : index
    %11 = vector.load %arg5[%c0_7, %c0_8] : memref<1x128xf32, #tpu.memory_space<vmem>>, vector<1x128xf32>
    %12 = vector.broadcast %11 : vector<1x128xf32> to vector<16x128xf32>
    %13 = arith.addf %10, %12 : vector<16x128xf32>
    %c0_9 = arith.constant 0 : index
    %c0_10 = arith.constant 0 : index
    %14 = vector.load %arg4[%c0_9, %c0_10] : memref<32x128xf32, #tpu.memory_space<vmem>>, vector<32x128xf32>
    %c0_11 = arith.constant 0 : index
    %c0_12 = arith.constant 0 : index
    %15 = vector.load %arg6[%c0_11, %c0_12] : memref<1x32xf32, #tpu.memory_space<vmem>>, vector<1x32xf32>
    %16 = vector.shape_cast %15 : vector<1x32xf32> to vector<1x32xf32>
    %17 = vector.broadcast %16 : vector<1x32xf32> to vector<2x32xf32>
    %18 = vector.extract_strided_slice %13 {offsets = [0, 0], sizes = [2, 128], strides = [1, 1]} : vector<16x128xf32> to vector<2x128xf32>
    %cst_13 = arith.constant dense<0.000000e+00> : vector<2x128xf32>
    %19 = tpu.matmul %1, %14, %cst_13 {dimension_numbers = #tpu.dot_dimension_numbers<[1], [0], [0], [1], [0, 0, 1, 1], [], []>} : vector<2x32xf32>, vector<32x128xf32>, vector<2x128xf32> -> vector<2x128xf32>
    %20 = vector.extract_strided_slice %18 {offsets = [0, 0], sizes = [2, 32], strides = [1, 1]} : vector<2x128xf32> to vector<2x32xf32>
    %21 = vector.extract_strided_slice %19 {offsets = [0, 0], sizes = [2, 32], strides = [1, 1]} : vector<2x128xf32> to vector<2x32xf32>
    %22 = arith.addf %20, %21 : vector<2x32xf32>
    %23 = arith.negf %22 : vector<2x32xf32>
    %24 = math.exp %23 : vector<2x32xf32>
    %cst_14 = arith.constant 1.000000e+00 : f32
    %25 = vector.broadcast %cst_14 : f32 to vector<2x32xf32>
    %26 = arith.addf %25, %24 : vector<2x32xf32>
    %27 = arith.divf %25, %26 : vector<2x32xf32>
    %28 = vector.extract_strided_slice %18 {offsets = [0, 32], sizes = [2, 32], strides = [1, 1]} : vector<2x128xf32> to vector<2x32xf32>
    %29 = vector.extract_strided_slice %19 {offsets = [0, 32], sizes = [2, 32], strides = [1, 1]} : vector<2x128xf32> to vector<2x32xf32>
    %30 = arith.addf %28, %29 : vector<2x32xf32>
    %31 = arith.negf %30 : vector<2x32xf32>
    %32 = math.exp %31 : vector<2x32xf32>
    %cst_15 = arith.constant 1.000000e+00 : f32
    %33 = vector.broadcast %cst_15 : f32 to vector<2x32xf32>
    %34 = arith.addf %33, %32 : vector<2x32xf32>
    %35 = arith.divf %33, %34 : vector<2x32xf32>
    %36 = vector.extract_strided_slice %18 {offsets = [0, 64], sizes = [2, 32], strides = [1, 1]} : vector<2x128xf32> to vector<2x32xf32>
    %37 = vector.extract_strided_slice %19 {offsets = [0, 64], sizes = [2, 32], strides = [1, 1]} : vector<2x128xf32> to vector<2x32xf32>
    %38 = arith.addf %37, %17 : vector<2x32xf32>
    %39 = arith.mulf %27, %38 : vector<2x32xf32>
    %40 = arith.addf %36, %39 : vector<2x32xf32>
    %41 = math.tanh %40 : vector<2x32xf32>
    %cst_16 = arith.constant 1.000000e+00 : f32
    %42 = vector.broadcast %cst_16 : f32 to vector<2x32xf32>
    %43 = arith.subf %42, %35 : vector<2x32xf32>
    %44 = arith.mulf %43, %41 : vector<2x32xf32>
    %45 = arith.mulf %35, %1 : vector<2x32xf32>
    %46 = arith.addf %44, %45 : vector<2x32xf32>
    %c0_17 = arith.constant 0 : index
    %c0_18 = arith.constant 0 : index
    %47 = vector.load %arg30[%c0_17, %c0_18] : memref<16x32xf32, #tpu.memory_space<vmem>>, vector<2x32xf32>
    tpu.vector_store %arg30[%c0_17, %c0_18], %46 {strides = array<i32>} : memref<16x32xf32, #tpu.memory_space<vmem>>, vector<2x32xf32>,
    %48 = vector.extract_strided_slice %13 {offsets = [2, 0], sizes = [2, 128], strides = [1, 1]} : vector<16x128xf32> to vector<2x128xf32>
    %cst_19 = arith.constant dense<0.000000e+00> : vector<2x128xf32>
    %49 = tpu.matmul %46, %14, %cst_19 {dimension_numbers = #tpu.dot_dimension_numbers<[1], [0], [0], [1], [0, 0, 1, 1], [], []>} : vector<2x32xf32>, vector<32x128xf32>, vector<2x128xf32> -> vector<2x128xf32>
    %50 = vector.extract_strided_slice %48 {offsets = [0, 0], sizes = [2, 32], strides = [1, 1]} : vector<2x128xf32> to vector<2x32xf32>
    %51 = vector.extract_strided_slice %49 {offsets = [0, 0], sizes = [2, 32], strides = [1, 1]} : vector<2x128xf32> to vector<2x32xf32>
    %52 = arith.addf %50, %51 : vector<2x32xf32>
    %53 = arith.negf %52 : vector<2x32xf32>
    %54 = math.exp %53 : vector<2x32xf32>
    %cst_20 = arith.constant 1.000000e+00 : f32
    %55 = vector.broadcast %cst_20 : f32 to vector<2x32xf32>
    %56 = arith.addf %55, %54 : vector<2x32xf32>
    %57 = arith.divf %55, %56 : vector<2x32xf32>
    %58 = vector.extract_strided_slice %48 {offsets = [0, 32], sizes = [2, 32], strides = [1, 1]} : vector<2x128xf32> to vector<2x32xf32>
    %59 = vector.extract_strided_slice %49 {offsets = [0, 32], sizes = [2, 32], strides = [1, 1]} : vector<2x128xf32> to vector<2x32xf32>
    %60 = arith.addf %58, %59 : vector<2x32xf32>
    %61 = arith.negf %60 : vector<2x32xf32>
    %62 = math.exp %61 : vector<2x32xf32>
    %cst_21 = arith.constant 1.000000e+00 : f32
    %63 = vector.broadcast %cst_21 : f32 to vector<2x32xf32>
    %64 = arith.addf %63, %62 : vector<2x32xf32>
    %65 = arith.divf %63, %64 : vector<2x32xf32>
    %66 = vector.extract_strided_slice %48 {offsets = [0, 64], sizes = [2, 32], strides = [1, 1]} : vector<2x128xf32> to vector<2x32xf32>
    %67 = vector.extract_strided_slice %49 {offsets = [0, 64], sizes = [2, 32], strides = [1, 1]} : vector<2x128xf32> to vector<2x32xf32>
    %68 = arith.addf %67, %17 : vector<2x32xf32>
    %69 = arith.mulf %57, %68 : vector<2x32xf32>
    %70 = arith.addf %66, %69 : vector<2x32xf32>
    %71 = math.tanh %70 : vector<2x32xf32>
    %cst_22 = arith.constant 1.000000e+00 : f32
    %72 = vector.broadcast %cst_22 : f32 to vector<2x32xf32>
    %73 = arith.subf %72, %65 : vector<2x32xf32>
    %74 = arith.mulf %73, %71 : vector<2x32xf32>
    %75 = arith.mulf %65, %46 : vector<2x32xf32>
    %76 = arith.addf %74, %75 : vector<2x32xf32>
    %c2 = arith.constant 2 : index
    %c0_23 = arith.constant 0 : index
    %77 = vector.load %arg30[%c2, %c0_23] : memref<16x32xf32, #tpu.memory_space<vmem>>, vector<2x32xf32>
    tpu.vector_store %arg30[%c2, %c0_23], %76 {strides = array<i32>} : memref<16x32xf32, #tpu.memory_space<vmem>>, vector<2x32xf32>,
    %78 = vector.extract_strided_slice %13 {offsets = [4, 0], sizes = [2, 128], strides = [1, 1]} : vector<16x128xf32> to vector<2x128xf32>
    %cst_24 = arith.constant dense<0.000000e+00> : vector<2x128xf32>
    %79 = tpu.matmul %76, %14, %cst_24 {dimension_numbers = #tpu.dot_dimension_numbers<[1], [0], [0], [1], [0, 0, 1, 1], [], []>} : vector<2x32xf32>, vector<32x128xf32>, vector<2x128xf32> -> vector<2x128xf32>
    %80 = vector.extract_strided_slice %78 {offsets = [0, 0], sizes = [2, 32], strides = [1, 1]} : vector<2x128xf32> to vector<2x32xf32>
    %81 = vector.extract_strided_slice %79 {offsets = [0, 0], sizes = [2, 32], strides = [1, 1]} : vector<2x128xf32> to vector<2x32xf32>
    %82 = arith.addf %80, %81 : vector<2x32xf32>
    %83 = arith.negf %82 : vector<2x32xf32>
    %84 = math.exp %83 : vector<2x32xf32>
    %cst_25 = arith.constant 1.000000e+00 : f32
    %85 = vector.broadcast %cst_25 : f32 to vector<2x32xf32>
    %86 = arith.addf %85, %84 : vector<2x32xf32>
    %87 = arith.divf %85, %86 : vector<2x32xf32>
    %88 = vector.extract_strided_slice %78 {offsets = [0, 32], sizes = [2, 32], strides = [1, 1]} : vector<2x128xf32> to vector<2x32xf32>
    %89 = vector.extract_strided_slice %79 {offsets = [0, 32], sizes = [2, 32], strides = [1, 1]} : vector<2x128xf32> to vector<2x32xf32>
    %90 = arith.addf %88, %89 : vector<2x32xf32>
    %91 = arith.negf %90 : vector<2x32xf32>
    %92 = math.exp %91 : vector<2x32xf32>
    %cst_26 = arith.constant 1.000000e+00 : f32
    %93 = vector.broadcast %cst_26 : f32 to vector<2x32xf32>
    %94 = arith.addf %93, %92 : vector<2x32xf32>
    %95 = arith.divf %93, %94 : vector<2x32xf32>
    %96 = vector.extract_strided_slice %78 {offsets = [0, 64], sizes = [2, 32], strides = [1, 1]} : vector<2x128xf32> to vector<2x32xf32>
    %97 = vector.extract_strided_slice %79 {offsets = [0, 64], sizes = [2, 32], strides = [1, 1]} : vector<2x128xf32> to vector<2x32xf32>
    %98 = arith.addf %97, %17 : vector<2x32xf32>
    %99 = arith.mulf %87, %98 : vector<2x32xf32>
    %100 = arith.addf %96, %99 : vector<2x32xf32>
    %101 = math.tanh %100 : vector<2x32xf32>
    %cst_27 = arith.constant 1.000000e+00 : f32
    %102 = vector.broadcast %cst_27 : f32 to vector<2x32xf32>
    %103 = arith.subf %102, %95 : vector<2x32xf32>
    %104 = arith.mulf %103, %101 : vector<2x32xf32>
    %105 = arith.mulf %95, %76 : vector<2x32xf32>
    %106 = arith.addf %104, %105 : vector<2x32xf32>
    %c4 = arith.constant 4 : index
    %c0_28 = arith.constant 0 : index
    %107 = vector.load %arg30[%c4, %c0_28] : memref<16x32xf32, #tpu.memory_space<vmem>>, vector<2x32xf32>
    tpu.vector_store %arg30[%c4, %c0_28], %106 {strides = array<i32>} : memref<16x32xf32, #tpu.memory_space<vmem>>, vector<2x32xf32>,
    %108 = vector.extract_strided_slice %13 {offsets = [6, 0], sizes = [2, 128], strides = [1, 1]} : vector<16x128xf32> to vector<2x128xf32>
    %cst_29 = arith.constant dense<0.000000e+00> : vector<2x128xf32>
    %109 = tpu.matmul %106, %14, %cst_29 {dimension_numbers = #tpu.dot_dimension_numbers<[1], [0], [0], [1], [0, 0, 1, 1], [], []>} : vector<2x32xf32>, vector<32x128xf32>, vector<2x128xf32> -> vector<2x128xf32>
    %110 = vector.extract_strided_slice %108 {offsets = [0, 0], sizes = [2, 32], strides = [1, 1]} : vector<2x128xf32> to vector<2x32xf32>
    %111 = vector.extract_strided_slice %109 {offsets = [0, 0], sizes = [2, 32], strides = [1, 1]} : vector<2x128xf32> to vector<2x32xf32>
    %112 = arith.addf %110, %111 : vector<2x32xf32>
    %113 = arith.negf %112 : vector<2x32xf32>
    %114 = math.exp %113 : vector<2x32xf32>
    %cst_30 = arith.constant 1.000000e+00 : f32
    %115 = vector.broadcast %cst_30 : f32 to vector<2x32xf32>
    %116 = arith.addf %115, %114 : vector<2x32xf32>
    %117 = arith.divf %115, %116 : vector<2x32xf32>
    %118 = vector.extract_strided_slice %108 {offsets = [0, 32], sizes = [2, 32], strides = [1, 1]} : vector<2x128xf32> to vector<2x32xf32>
    %119 = vector.extract_strided_slice %109 {offsets = [0, 32], sizes = [2, 32], strides = [1, 1]} : vector<2x128xf32> to vector<2x32xf32>
    %120 = arith.addf %118, %119 : vector<2x32xf32>
    %121 = arith.negf %120 : vector<2x32xf32>
    %122 = math.exp %121 : vector<2x32xf32>
    %cst_31 = arith.constant 1.000000e+00 : f32
    %123 = vector.broadcast %cst_31 : f32 to vector<2x32xf32>
    %124 = arith.addf %123, %122 : vector<2x32xf32>
    %125 = arith.divf %123, %124 : vector<2x32xf32>
    %126 = vector.extract_strided_slice %108 {offsets = [0, 64], sizes = [2, 32], strides = [1, 1]} : vector<2x128xf32> to vector<2x32xf32>
    %127 = vector.extract_strided_slice %109 {offsets = [0, 64], sizes = [2, 32], strides = [1, 1]} : vector<2x128xf32> to vector<2x32xf32>
    %128 = arith.addf %127, %17 : vector<2x32xf32>
    %129 = arith.mulf %117, %128 : vector<2x32xf32>
    %130 = arith.addf %126, %129 : vector<2x32xf32>
    %131 = math.tanh %130 : vector<2x32xf32>
    %cst_32 = arith.constant 1.000000e+00 : f32
    %132 = vector.broadcast %cst_32 : f32 to vector<2x32xf32>
    %133 = arith.subf %132, %125 : vector<2x32xf32>
    %134 = arith.mulf %133, %131 : vector<2x32xf32>
    %135 = arith.mulf %125, %106 : vector<2x32xf32>
    %136 = arith.addf %134, %135 : vector<2x32xf32>
    %c6 = arith.constant 6 : index
    %c0_33 = arith.constant 0 : index
    %137 = vector.load %arg30[%c6, %c0_33] : memref<16x32xf32, #tpu.memory_space<vmem>>, vector<2x32xf32>
    tpu.vector_store %arg30[%c6, %c0_33], %136 {strides = array<i32>} : memref<16x32xf32, #tpu.memory_space<vmem>>, vector<2x32xf32>,
    %138 = vector.extract_strided_slice %13 {offsets = [8, 0], sizes = [2, 128], strides = [1, 1]} : vector<16x128xf32> to vector<2x128xf32>
    %cst_34 = arith.constant dense<0.000000e+00> : vector<2x128xf32>
    %139 = tpu.matmul %136, %14, %cst_34 {dimension_numbers = #tpu.dot_dimension_numbers<[1], [0], [0], [1], [0, 0, 1, 1], [], []>} : vector<2x32xf32>, vector<32x128xf32>, vector<2x128xf32> -> vector<2x128xf32>
    %140 = vector.extract_strided_slice %138 {offsets = [0, 0], sizes = [2, 32], strides = [1, 1]} : vector<2x128xf32> to vector<2x32xf32>
    %141 = vector.extract_strided_slice %139 {offsets = [0, 0], sizes = [2, 32], strides = [1, 1]} : vector<2x128xf32> to vector<2x32xf32>
    %142 = arith.addf %140, %141 : vector<2x32xf32>
    %143 = arith.negf %142 : vector<2x32xf32>
    %144 = math.exp %143 : vector<2x32xf32>
    %cst_35 = arith.constant 1.000000e+00 : f32
    %145 = vector.broadcast %cst_35 : f32 to vector<2x32xf32>
    %146 = arith.addf %145, %144 : vector<2x32xf32>
    %147 = arith.divf %145, %146 : vector<2x32xf32>
    %148 = vector.extract_strided_slice %138 {offsets = [0, 32], sizes = [2, 32], strides = [1, 1]} : vector<2x128xf32> to vector<2x32xf32>
    %149 = vector.extract_strided_slice %139 {offsets = [0, 32], sizes = [2, 32], strides = [1, 1]} : vector<2x128xf32> to vector<2x32xf32>
    %150 = arith.addf %148, %149 : vector<2x32xf32>
    %151 = arith.negf %150 : vector<2x32xf32>
    %152 = math.exp %151 : vector<2x32xf32>
    %cst_36 = arith.constant 1.000000e+00 : f32
    %153 = vector.broadcast %cst_36 : f32 to vector<2x32xf32>
    %154 = arith.addf %153, %152 : vector<2x32xf32>
    %155 = arith.divf %153, %154 : vector<2x32xf32>
    %156 = vector.extract_strided_slice %138 {offsets = [0, 64], sizes = [2, 32], strides = [1, 1]} : vector<2x128xf32> to vector<2x32xf32>
    %157 = vector.extract_strided_slice %139 {offsets = [0, 64], sizes = [2, 32], strides = [1, 1]} : vector<2x128xf32> to vector<2x32xf32>
    %158 = arith.addf %157, %17 : vector<2x32xf32>
    %159 = arith.mulf %147, %158 : vector<2x32xf32>
    %160 = arith.addf %156, %159 : vector<2x32xf32>
    %161 = math.tanh %160 : vector<2x32xf32>
    %cst_37 = arith.constant 1.000000e+00 : f32
    %162 = vector.broadcast %cst_37 : f32 to vector<2x32xf32>
    %163 = arith.subf %162, %155 : vector<2x32xf32>
    %164 = arith.mulf %163, %161 : vector<2x32xf32>
    %165 = arith.mulf %155, %136 : vector<2x32xf32>
    %166 = arith.addf %164, %165 : vector<2x32xf32>
    %c8 = arith.constant 8 : index
    %c0_38 = arith.constant 0 : index
    %167 = vector.load %arg30[%c8, %c0_38] : memref<16x32xf32, #tpu.memory_space<vmem>>, vector<2x32xf32>
    tpu.vector_store %arg30[%c8, %c0_38], %166 {strides = array<i32>} : memref<16x32xf32, #tpu.memory_space<vmem>>, vector<2x32xf32>,
    %168 = vector.extract_strided_slice %13 {offsets = [10, 0], sizes = [2, 128], strides = [1, 1]} : vector<16x128xf32> to vector<2x128xf32>
    %cst_39 = arith.constant dense<0.000000e+00> : vector<2x128xf32>
    %169 = tpu.matmul %166, %14, %cst_39 {dimension_numbers = #tpu.dot_dimension_numbers<[1], [0], [0], [1], [0, 0, 1, 1], [], []>} : vector<2x32xf32>, vector<32x128xf32>, vector<2x128xf32> -> vector<2x128xf32>
    %170 = vector.extract_strided_slice %168 {offsets = [0, 0], sizes = [2, 32], strides = [1, 1]} : vector<2x128xf32> to vector<2x32xf32>
    %171 = vector.extract_strided_slice %169 {offsets = [0, 0], sizes = [2, 32], strides = [1, 1]} : vector<2x128xf32> to vector<2x32xf32>
    %172 = arith.addf %170, %171 : vector<2x32xf32>
    %173 = arith.negf %172 : vector<2x32xf32>
    %174 = math.exp %173 : vector<2x32xf32>
    %cst_40 = arith.constant 1.000000e+00 : f32
    %175 = vector.broadcast %cst_40 : f32 to vector<2x32xf32>
    %176 = arith.addf %175, %174 : vector<2x32xf32>
    %177 = arith.divf %175, %176 : vector<2x32xf32>
    %178 = vector.extract_strided_slice %168 {offsets = [0, 32], sizes = [2, 32], strides = [1, 1]} : vector<2x128xf32> to vector<2x32xf32>
    %179 = vector.extract_strided_slice %169 {offsets = [0, 32], sizes = [2, 32], strides = [1, 1]} : vector<2x128xf32> to vector<2x32xf32>
    %180 = arith.addf %178, %179 : vector<2x32xf32>
    %181 = arith.negf %180 : vector<2x32xf32>
    %182 = math.exp %181 : vector<2x32xf32>
    %cst_41 = arith.constant 1.000000e+00 : f32
    %183 = vector.broadcast %cst_41 : f32 to vector<2x32xf32>
    %184 = arith.addf %183, %182 : vector<2x32xf32>
    %185 = arith.divf %183, %184 : vector<2x32xf32>
    %186 = vector.extract_strided_slice %168 {offsets = [0, 64], sizes = [2, 32], strides = [1, 1]} : vector<2x128xf32> to vector<2x32xf32>
    %187 = vector.extract_strided_slice %169 {offsets = [0, 64], sizes = [2, 32], strides = [1, 1]} : vector<2x128xf32> to vector<2x32xf32>
    %188 = arith.addf %187, %17 : vector<2x32xf32>
    %189 = arith.mulf %177, %188 : vector<2x32xf32>
    %190 = arith.addf %186, %189 : vector<2x32xf32>
    %191 = math.tanh %190 : vector<2x32xf32>
    %cst_42 = arith.constant 1.000000e+00 : f32
    %192 = vector.broadcast %cst_42 : f32 to vector<2x32xf32>
    %193 = arith.subf %192, %185 : vector<2x32xf32>
    %194 = arith.mulf %193, %191 : vector<2x32xf32>
    %195 = arith.mulf %185, %166 : vector<2x32xf32>
    %196 = arith.addf %194, %195 : vector<2x32xf32>
    %c10 = arith.constant 10 : index
    %c0_43 = arith.constant 0 : index
    %197 = vector.load %arg30[%c10, %c0_43] : memref<16x32xf32, #tpu.memory_space<vmem>>, vector<2x32xf32>
    tpu.vector_store %arg30[%c10, %c0_43], %196 {strides = array<i32>} : memref<16x32xf32, #tpu.memory_space<vmem>>, vector<2x32xf32>,
    %198 = vector.extract_strided_slice %13 {offsets = [12, 0], sizes = [2, 128], strides = [1, 1]} : vector<16x128xf32> to vector<2x128xf32>
    %cst_44 = arith.constant dense<0.000000e+00> : vector<2x128xf32>
    %199 = tpu.matmul %196, %14, %cst_44 {dimension_numbers = #tpu.dot_dimension_numbers<[1], [0], [0], [1], [0, 0, 1, 1], [], []>} : vector<2x32xf32>, vector<32x128xf32>, vector<2x128xf32> -> vector<2x128xf32>
    %200 = vector.extract_strided_slice %198 {offsets = [0, 0], sizes = [2, 32], strides = [1, 1]} : vector<2x128xf32> to vector<2x32xf32>
    %201 = vector.extract_strided_slice %199 {offsets = [0, 0], sizes = [2, 32], strides = [1, 1]} : vector<2x128xf32> to vector<2x32xf32>
    %202 = arith.addf %200, %201 : vector<2x32xf32>
    %203 = arith.negf %202 : vector<2x32xf32>
    %204 = math.exp %203 : vector<2x32xf32>
    %cst_45 = arith.constant 1.000000e+00 : f32
    %205 = vector.broadcast %cst_45 : f32 to vector<2x32xf32>
    %206 = arith.addf %205, %204 : vector<2x32xf32>
    %207 = arith.divf %205, %206 : vector<2x32xf32>
    %208 = vector.extract_strided_slice %198 {offsets = [0, 32], sizes = [2, 32], strides = [1, 1]} : vector<2x128xf32> to vector<2x32xf32>
    %209 = vector.extract_strided_slice %199 {offsets = [0, 32], sizes = [2, 32], strides = [1, 1]} : vector<2x128xf32> to vector<2x32xf32>
    %210 = arith.addf %208, %209 : vector<2x32xf32>
    %211 = arith.negf %210 : vector<2x32xf32>
    %212 = math.exp %211 : vector<2x32xf32>
    %cst_46 = arith.constant 1.000000e+00 : f32
    %213 = vector.broadcast %cst_46 : f32 to vector<2x32xf32>
    %214 = arith.addf %213, %212 : vector<2x32xf32>
    %215 = arith.divf %213, %214 : vector<2x32xf32>
    %216 = vector.extract_strided_slice %198 {offsets = [0, 64], sizes = [2, 32], strides = [1, 1]} : vector<2x128xf32> to vector<2x32xf32>
    %217 = vector.extract_strided_slice %199 {offsets = [0, 64], sizes = [2, 32], strides = [1, 1]} : vector<2x128xf32> to vector<2x32xf32>
    %218 = arith.addf %217, %17 : vector<2x32xf32>
    %219 = arith.mulf %207, %218 : vector<2x32xf32>
    %220 = arith.addf %216, %219 : vector<2x32xf32>
    %221 = math.tanh %220 : vector<2x32xf32>
    %cst_47 = arith.constant 1.000000e+00 : f32
    %222 = vector.broadcast %cst_47 : f32 to vector<2x32xf32>
    %223 = arith.subf %222, %215 : vector<2x32xf32>
    %224 = arith.mulf %223, %221 : vector<2x32xf32>
    %225 = arith.mulf %215, %196 : vector<2x32xf32>
    %226 = arith.addf %224, %225 : vector<2x32xf32>
    %c12 = arith.constant 12 : index
    %c0_48 = arith.constant 0 : index
    %227 = vector.load %arg30[%c12, %c0_48] : memref<16x32xf32, #tpu.memory_space<vmem>>, vector<2x32xf32>
    tpu.vector_store %arg30[%c12, %c0_48], %226 {strides = array<i32>} : memref<16x32xf32, #tpu.memory_space<vmem>>, vector<2x32xf32>,
    %228 = vector.extract_strided_slice %13 {offsets = [14, 0], sizes = [2, 128], strides = [1, 1]} : vector<16x128xf32> to vector<2x128xf32>
    %cst_49 = arith.constant dense<0.000000e+00> : vector<2x128xf32>
    %229 = tpu.matmul %226, %14, %cst_49 {dimension_numbers = #tpu.dot_dimension_numbers<[1], [0], [0], [1], [0, 0, 1, 1], [], []>} : vector<2x32xf32>, vector<32x128xf32>, vector<2x128xf32> -> vector<2x128xf32>
    %230 = vector.extract_strided_slice %228 {offsets = [0, 0], sizes = [2, 32], strides = [1, 1]} : vector<2x128xf32> to vector<2x32xf32>
    %231 = vector.extract_strided_slice %229 {offsets = [0, 0], sizes = [2, 32], strides = [1, 1]} : vector<2x128xf32> to vector<2x32xf32>
    %232 = arith.addf %230, %231 : vector<2x32xf32>
    %233 = arith.negf %232 : vector<2x32xf32>
    %234 = math.exp %233 : vector<2x32xf32>
    %cst_50 = arith.constant 1.000000e+00 : f32
    %235 = vector.broadcast %cst_50 : f32 to vector<2x32xf32>
    %236 = arith.addf %235, %234 : vector<2x32xf32>
    %237 = arith.divf %235, %236 : vector<2x32xf32>
    %238 = vector.extract_strided_slice %228 {offsets = [0, 32], sizes = [2, 32], strides = [1, 1]} : vector<2x128xf32> to vector<2x32xf32>
    %239 = vector.extract_strided_slice %229 {offsets = [0, 32], sizes = [2, 32], strides = [1, 1]} : vector<2x128xf32> to vector<2x32xf32>
    %240 = arith.addf %238, %239 : vector<2x32xf32>
    %241 = arith.negf %240 : vector<2x32xf32>
    %242 = math.exp %241 : vector<2x32xf32>
    %cst_51 = arith.constant 1.000000e+00 : f32
    %243 = vector.broadcast %cst_51 : f32 to vector<2x32xf32>
    %244 = arith.addf %243, %242 : vector<2x32xf32>
    %245 = arith.divf %243, %244 : vector<2x32xf32>
    %246 = vector.extract_strided_slice %228 {offsets = [0, 64], sizes = [2, 32], strides = [1, 1]} : vector<2x128xf32> to vector<2x32xf32>
    %247 = vector.extract_strided_slice %229 {offsets = [0, 64], sizes = [2, 32], strides = [1, 1]} : vector<2x128xf32> to vector<2x32xf32>
    %248 = arith.addf %247, %17 : vector<2x32xf32>
    %249 = arith.mulf %237, %248 : vector<2x32xf32>
    %250 = arith.addf %246, %249 : vector<2x32xf32>
    %251 = math.tanh %250 : vector<2x32xf32>
    %cst_52 = arith.constant 1.000000e+00 : f32
    %252 = vector.broadcast %cst_52 : f32 to vector<2x32xf32>
    %253 = arith.subf %252, %245 : vector<2x32xf32>
    %254 = arith.mulf %253, %251 : vector<2x32xf32>
    %255 = arith.mulf %245, %226 : vector<2x32xf32>
    %256 = arith.addf %254, %255 : vector<2x32xf32>
    %c14 = arith.constant 14 : index
    %c0_53 = arith.constant 0 : index
    %257 = vector.load %arg30[%c14, %c0_53] : memref<16x32xf32, #tpu.memory_space<vmem>>, vector<2x32xf32>
    tpu.vector_store %arg30[%c14, %c0_53], %256 {strides = array<i32>} : memref<16x32xf32, #tpu.memory_space<vmem>>, vector<2x32xf32>,
    %c0_54 = arith.constant 0 : index
    %c0_55 = arith.constant 0 : index
    %258 = vector.load %arg30[%c0_54, %c0_55] : memref<16x32xf32, #tpu.memory_space<vmem>>, vector<16x32xf32>
    %c0_56 = arith.constant 0 : index
    %c0_57 = arith.constant 0 : index
    %259 = vector.load %arg7[%c0_56, %c0_57] : memref<32x128xf32, #tpu.memory_space<vmem>>, vector<32x128xf32>
    %cst_58 = arith.constant dense<0.000000e+00> : vector<16x128xf32>
    %260 = tpu.matmul %258, %259, %cst_58 {dimension_numbers = #tpu.dot_dimension_numbers<[1], [0], [0], [1], [0, 0, 1, 1], [], []>} : vector<16x32xf32>, vector<32x128xf32>, vector<16x128xf32> -> vector<16x128xf32>
    %c0_59 = arith.constant 0 : index
    %c0_60 = arith.constant 0 : index
    %261 = vector.load %arg9[%c0_59, %c0_60] : memref<1x128xf32, #tpu.memory_space<vmem>>, vector<1x128xf32>
    %262 = vector.broadcast %261 : vector<1x128xf32> to vector<16x128xf32>
    %263 = arith.addf %260, %262 : vector<16x128xf32>
    %c0_61 = arith.constant 0 : index
    %c0_62 = arith.constant 0 : index
    %264 = vector.load %arg8[%c0_61, %c0_62] : memref<32x128xf32, #tpu.memory_space<vmem>>, vector<32x128xf32>
    %c0_63 = arith.constant 0 : index
    %c0_64 = arith.constant 0 : index
    %265 = vector.load %arg10[%c0_63, %c0_64] : memref<1x32xf32, #tpu.memory_space<vmem>>, vector<1x32xf32>
    %266 = vector.shape_cast %265 : vector<1x32xf32> to vector<1x32xf32>
    %267 = vector.broadcast %266 : vector<1x32xf32> to vector<2x32xf32>
    %268 = vector.extract_strided_slice %263 {offsets = [0, 0], sizes = [2, 128], strides = [1, 1]} : vector<16x128xf32> to vector<2x128xf32>
    %cst_65 = arith.constant dense<0.000000e+00> : vector<2x128xf32>
    %269 = tpu.matmul %1, %264, %cst_65 {dimension_numbers = #tpu.dot_dimension_numbers<[1], [0], [0], [1], [0, 0, 1, 1], [], []>} : vector<2x32xf32>, vector<32x128xf32>, vector<2x128xf32> -> vector<2x128xf32>
    %270 = vector.extract_strided_slice %268 {offsets = [0, 0], sizes = [2, 32], strides = [1, 1]} : vector<2x128xf32> to vector<2x32xf32>
    %271 = vector.extract_strided_slice %269 {offsets = [0, 0], sizes = [2, 32], strides = [1, 1]} : vector<2x128xf32> to vector<2x32xf32>
    %272 = arith.addf %270, %271 : vector<2x32xf32>
    %273 = arith.negf %272 : vector<2x32xf32>
    %274 = math.exp %273 : vector<2x32xf32>
    %cst_66 = arith.constant 1.000000e+00 : f32
    %275 = vector.broadcast %cst_66 : f32 to vector<2x32xf32>
    %276 = arith.addf %275, %274 : vector<2x32xf32>
    %277 = arith.divf %275, %276 : vector<2x32xf32>
    %278 = vector.extract_strided_slice %268 {offsets = [0, 32], sizes = [2, 32], strides = [1, 1]} : vector<2x128xf32> to vector<2x32xf32>
    %279 = vector.extract_strided_slice %269 {offsets = [0, 32], sizes = [2, 32], strides = [1, 1]} : vector<2x128xf32> to vector<2x32xf32>
    %280 = arith.addf %278, %279 : vector<2x32xf32>
    %281 = arith.negf %280 : vector<2x32xf32>
    %282 = math.exp %281 : vector<2x32xf32>
    %cst_67 = arith.constant 1.000000e+00 : f32
    %283 = vector.broadcast %cst_67 : f32 to vector<2x32xf32>
    %284 = arith.addf %283, %282 : vector<2x32xf32>
    %285 = arith.divf %283, %284 : vector<2x32xf32>
    %286 = vector.extract_strided_slice %268 {offsets = [0, 64], sizes = [2, 32], strides = [1, 1]} : vector<2x128xf32> to vector<2x32xf32>
    %287 = vector.extract_strided_slice %269 {offsets = [0, 64], sizes = [2, 32], strides = [1, 1]} : vector<2x128xf32> to vector<2x32xf32>
    %288 = arith.addf %287, %267 : vector<2x32xf32>
    %289 = arith.mulf %277, %288 : vector<2x32xf32>
    %290 = arith.addf %286, %289 : vector<2x32xf32>
    %291 = math.tanh %290 : vector<2x32xf32>
    %cst_68 = arith.constant 1.000000e+00 : f32
    %292 = vector.broadcast %cst_68 : f32 to vector<2x32xf32>
    %293 = arith.subf %292, %285 : vector<2x32xf32>
    %294 = arith.mulf %293, %291 : vector<2x32xf32>
    %295 = arith.mulf %285, %1 : vector<2x32xf32>
    %296 = arith.addf %294, %295 : vector<2x32xf32>
    %c0_69 = arith.constant 0 : index
    %c0_70 = arith.constant 0 : index
    %297 = vector.load %arg30[%c0_69, %c0_70] : memref<16x32xf32, #tpu.memory_space<vmem>>, vector<2x32xf32>
    tpu.vector_store %arg30[%c0_69, %c0_70], %296 {strides = array<i32>} : memref<16x32xf32, #tpu.memory_space<vmem>>, vector<2x32xf32>,
    %298 = vector.extract_strided_slice %263 {offsets = [2, 0], sizes = [2, 128], strides = [1, 1]} : vector<16x128xf32> to vector<2x128xf32>
    %cst_71 = arith.constant dense<0.000000e+00> : vector<2x128xf32>
    %299 = tpu.matmul %296, %264, %cst_71 {dimension_numbers = #tpu.dot_dimension_numbers<[1], [0], [0], [1], [0, 0, 1, 1], [], []>} : vector<2x32xf32>, vector<32x128xf32>, vector<2x128xf32> -> vector<2x128xf32>
    %300 = vector.extract_strided_slice %298 {offsets = [0, 0], sizes = [2, 32], strides = [1, 1]} : vector<2x128xf32> to vector<2x32xf32>
    %301 = vector.extract_strided_slice %299 {offsets = [0, 0], sizes = [2, 32], strides = [1, 1]} : vector<2x128xf32> to vector<2x32xf32>
    %302 = arith.addf %300, %301 : vector<2x32xf32>
    %303 = arith.negf %302 : vector<2x32xf32>
    %304 = math.exp %303 : vector<2x32xf32>
    %cst_72 = arith.constant 1.000000e+00 : f32
    %305 = vector.broadcast %cst_72 : f32 to vector<2x32xf32>
    %306 = arith.addf %305, %304 : vector<2x32xf32>
    %307 = arith.divf %305, %306 : vector<2x32xf32>
    %308 = vector.extract_strided_slice %298 {offsets = [0, 32], sizes = [2, 32], strides = [1, 1]} : vector<2x128xf32> to vector<2x32xf32>
    %309 = vector.extract_strided_slice %299 {offsets = [0, 32], sizes = [2, 32], strides = [1, 1]} : vector<2x128xf32> to vector<2x32xf32>
    %310 = arith.addf %308, %309 : vector<2x32xf32>
    %311 = arith.negf %310 : vector<2x32xf32>
    %312 = math.exp %311 : vector<2x32xf32>
    %cst_73 = arith.constant 1.000000e+00 : f32
    %313 = vector.broadcast %cst_73 : f32 to vector<2x32xf32>
    %314 = arith.addf %313, %312 : vector<2x32xf32>
    %315 = arith.divf %313, %314 : vector<2x32xf32>
    %316 = vector.extract_strided_slice %298 {offsets = [0, 64], sizes = [2, 32], strides = [1, 1]} : vector<2x128xf32> to vector<2x32xf32>
    %317 = vector.extract_strided_slice %299 {offsets = [0, 64], sizes = [2, 32], strides = [1, 1]} : vector<2x128xf32> to vector<2x32xf32>
    %318 = arith.addf %317, %267 : vector<2x32xf32>
    %319 = arith.mulf %307, %318 : vector<2x32xf32>
    %320 = arith.addf %316, %319 : vector<2x32xf32>
    %321 = math.tanh %320 : vector<2x32xf32>
    %cst_74 = arith.constant 1.000000e+00 : f32
    %322 = vector.broadcast %cst_74 : f32 to vector<2x32xf32>
    %323 = arith.subf %322, %315 : vector<2x32xf32>
    %324 = arith.mulf %323, %321 : vector<2x32xf32>
    %325 = arith.mulf %315, %296 : vector<2x32xf32>
    %326 = arith.addf %324, %325 : vector<2x32xf32>
    %c2_75 = arith.constant 2 : index
    %c0_76 = arith.constant 0 : index
    %327 = vector.load %arg30[%c2_75, %c0_76] : memref<16x32xf32, #tpu.memory_space<vmem>>, vector<2x32xf32>
    tpu.vector_store %arg30[%c2_75, %c0_76], %326 {strides = array<i32>} : memref<16x32xf32, #tpu.memory_space<vmem>>, vector<2x32xf32>,
    %328 = vector.extract_strided_slice %263 {offsets = [4, 0], sizes = [2, 128], strides = [1, 1]} : vector<16x128xf32> to vector<2x128xf32>
    %cst_77 = arith.constant dense<0.000000e+00> : vector<2x128xf32>
    %329 = tpu.matmul %326, %264, %cst_77 {dimension_numbers = #tpu.dot_dimension_numbers<[1], [0], [0], [1], [0, 0, 1, 1], [], []>} : vector<2x32xf32>, vector<32x128xf32>, vector<2x128xf32> -> vector<2x128xf32>
    %330 = vector.extract_strided_slice %328 {offsets = [0, 0], sizes = [2, 32], strides = [1, 1]} : vector<2x128xf32> to vector<2x32xf32>
    %331 = vector.extract_strided_slice %329 {offsets = [0, 0], sizes = [2, 32], strides = [1, 1]} : vector<2x128xf32> to vector<2x32xf32>
    %332 = arith.addf %330, %331 : vector<2x32xf32>
    %333 = arith.negf %332 : vector<2x32xf32>
    %334 = math.exp %333 : vector<2x32xf32>
    %cst_78 = arith.constant 1.000000e+00 : f32
    %335 = vector.broadcast %cst_78 : f32 to vector<2x32xf32>
    %336 = arith.addf %335, %334 : vector<2x32xf32>
    %337 = arith.divf %335, %336 : vector<2x32xf32>
    %338 = vector.extract_strided_slice %328 {offsets = [0, 32], sizes = [2, 32], strides = [1, 1]} : vector<2x128xf32> to vector<2x32xf32>
    %339 = vector.extract_strided_slice %329 {offsets = [0, 32], sizes = [2, 32], strides = [1, 1]} : vector<2x128xf32> to vector<2x32xf32>
    %340 = arith.addf %338, %339 : vector<2x32xf32>
    %341 = arith.negf %340 : vector<2x32xf32>
    %342 = math.exp %341 : vector<2x32xf32>
    %cst_79 = arith.constant 1.000000e+00 : f32
    %343 = vector.broadcast %cst_79 : f32 to vector<2x32xf32>
    %344 = arith.addf %343, %342 : vector<2x32xf32>
    %345 = arith.divf %343, %344 : vector<2x32xf32>
    %346 = vector.extract_strided_slice %328 {offsets = [0, 64], sizes = [2, 32], strides = [1, 1]} : vector<2x128xf32> to vector<2x32xf32>
    %347 = vector.extract_strided_slice %329 {offsets = [0, 64], sizes = [2, 32], strides = [1, 1]} : vector<2x128xf32> to vector<2x32xf32>
    %348 = arith.addf %347, %267 : vector<2x32xf32>
    %349 = arith.mulf %337, %348 : vector<2x32xf32>
    %350 = arith.addf %346, %349 : vector<2x32xf32>
    %351 = math.tanh %350 : vector<2x32xf32>
    %cst_80 = arith.constant 1.000000e+00 : f32
    %352 = vector.broadcast %cst_80 : f32 to vector<2x32xf32>
    %353 = arith.subf %352, %345 : vector<2x32xf32>
    %354 = arith.mulf %353, %351 : vector<2x32xf32>
    %355 = arith.mulf %345, %326 : vector<2x32xf32>
    %356 = arith.addf %354, %355 : vector<2x32xf32>
    %c4_81 = arith.constant 4 : index
    %c0_82 = arith.constant 0 : index
    %357 = vector.load %arg30[%c4_81, %c0_82] : memref<16x32xf32, #tpu.memory_space<vmem>>, vector<2x32xf32>
    tpu.vector_store %arg30[%c4_81, %c0_82], %356 {strides = array<i32>} : memref<16x32xf32, #tpu.memory_space<vmem>>, vector<2x32xf32>,
    %358 = vector.extract_strided_slice %263 {offsets = [6, 0], sizes = [2, 128], strides = [1, 1]} : vector<16x128xf32> to vector<2x128xf32>
    %cst_83 = arith.constant dense<0.000000e+00> : vector<2x128xf32>
    %359 = tpu.matmul %356, %264, %cst_83 {dimension_numbers = #tpu.dot_dimension_numbers<[1], [0], [0], [1], [0, 0, 1, 1], [], []>} : vector<2x32xf32>, vector<32x128xf32>, vector<2x128xf32> -> vector<2x128xf32>
    %360 = vector.extract_strided_slice %358 {offsets = [0, 0], sizes = [2, 32], strides = [1, 1]} : vector<2x128xf32> to vector<2x32xf32>
    %361 = vector.extract_strided_slice %359 {offsets = [0, 0], sizes = [2, 32], strides = [1, 1]} : vector<2x128xf32> to vector<2x32xf32>
    %362 = arith.addf %360, %361 : vector<2x32xf32>
    %363 = arith.negf %362 : vector<2x32xf32>
    %364 = math.exp %363 : vector<2x32xf32>
    %cst_84 = arith.constant 1.000000e+00 : f32
    %365 = vector.broadcast %cst_84 : f32 to vector<2x32xf32>
    %366 = arith.addf %365, %364 : vector<2x32xf32>
    %367 = arith.divf %365, %366 : vector<2x32xf32>
    %368 = vector.extract_strided_slice %358 {offsets = [0, 32], sizes = [2, 32], strides = [1, 1]} : vector<2x128xf32> to vector<2x32xf32>
    %369 = vector.extract_strided_slice %359 {offsets = [0, 32], sizes = [2, 32], strides = [1, 1]} : vector<2x128xf32> to vector<2x32xf32>
    %370 = arith.addf %368, %369 : vector<2x32xf32>
    %371 = arith.negf %370 : vector<2x32xf32>
    %372 = math.exp %371 : vector<2x32xf32>
    %cst_85 = arith.constant 1.000000e+00 : f32
    %373 = vector.broadcast %cst_85 : f32 to vector<2x32xf32>
    %374 = arith.addf %373, %372 : vector<2x32xf32>
    %375 = arith.divf %373, %374 : vector<2x32xf32>
    %376 = vector.extract_strided_slice %358 {offsets = [0, 64], sizes = [2, 32], strides = [1, 1]} : vector<2x128xf32> to vector<2x32xf32>
    %377 = vector.extract_strided_slice %359 {offsets = [0, 64], sizes = [2, 32], strides = [1, 1]} : vector<2x128xf32> to vector<2x32xf32>
    %378 = arith.addf %377, %267 : vector<2x32xf32>
    %379 = arith.mulf %367, %378 : vector<2x32xf32>
    %380 = arith.addf %376, %379 : vector<2x32xf32>
    %381 = math.tanh %380 : vector<2x32xf32>
    %cst_86 = arith.constant 1.000000e+00 : f32
    %382 = vector.broadcast %cst_86 : f32 to vector<2x32xf32>
    %383 = arith.subf %382, %375 : vector<2x32xf32>
    %384 = arith.mulf %383, %381 : vector<2x32xf32>
    %385 = arith.mulf %375, %356 : vector<2x32xf32>
    %386 = arith.addf %384, %385 : vector<2x32xf32>
    %c6_87 = arith.constant 6 : index
    %c0_88 = arith.constant 0 : index
    %387 = vector.load %arg30[%c6_87, %c0_88] : memref<16x32xf32, #tpu.memory_space<vmem>>, vector<2x32xf32>
    tpu.vector_store %arg30[%c6_87, %c0_88], %386 {strides = array<i32>} : memref<16x32xf32, #tpu.memory_space<vmem>>, vector<2x32xf32>,
    %388 = vector.extract_strided_slice %263 {offsets = [8, 0], sizes = [2, 128], strides = [1, 1]} : vector<16x128xf32> to vector<2x128xf32>
    %cst_89 = arith.constant dense<0.000000e+00> : vector<2x128xf32>
    %389 = tpu.matmul %386, %264, %cst_89 {dimension_numbers = #tpu.dot_dimension_numbers<[1], [0], [0], [1], [0, 0, 1, 1], [], []>} : vector<2x32xf32>, vector<32x128xf32>, vector<2x128xf32> -> vector<2x128xf32>
    %390 = vector.extract_strided_slice %388 {offsets = [0, 0], sizes = [2, 32], strides = [1, 1]} : vector<2x128xf32> to vector<2x32xf32>
    %391 = vector.extract_strided_slice %389 {offsets = [0, 0], sizes = [2, 32], strides = [1, 1]} : vector<2x128xf32> to vector<2x32xf32>
    %392 = arith.addf %390, %391 : vector<2x32xf32>
    %393 = arith.negf %392 : vector<2x32xf32>
    %394 = math.exp %393 : vector<2x32xf32>
    %cst_90 = arith.constant 1.000000e+00 : f32
    %395 = vector.broadcast %cst_90 : f32 to vector<2x32xf32>
    %396 = arith.addf %395, %394 : vector<2x32xf32>
    %397 = arith.divf %395, %396 : vector<2x32xf32>
    %398 = vector.extract_strided_slice %388 {offsets = [0, 32], sizes = [2, 32], strides = [1, 1]} : vector<2x128xf32> to vector<2x32xf32>
    %399 = vector.extract_strided_slice %389 {offsets = [0, 32], sizes = [2, 32], strides = [1, 1]} : vector<2x128xf32> to vector<2x32xf32>
    %400 = arith.addf %398, %399 : vector<2x32xf32>
    %401 = arith.negf %400 : vector<2x32xf32>
    %402 = math.exp %401 : vector<2x32xf32>
    %cst_91 = arith.constant 1.000000e+00 : f32
    %403 = vector.broadcast %cst_91 : f32 to vector<2x32xf32>
    %404 = arith.addf %403, %402 : vector<2x32xf32>
    %405 = arith.divf %403, %404 : vector<2x32xf32>
    %406 = vector.extract_strided_slice %388 {offsets = [0, 64], sizes = [2, 32], strides = [1, 1]} : vector<2x128xf32> to vector<2x32xf32>
    %407 = vector.extract_strided_slice %389 {offsets = [0, 64], sizes = [2, 32], strides = [1, 1]} : vector<2x128xf32> to vector<2x32xf32>
    %408 = arith.addf %407, %267 : vector<2x32xf32>
    %409 = arith.mulf %397, %408 : vector<2x32xf32>
    %410 = arith.addf %406, %409 : vector<2x32xf32>
    %411 = math.tanh %410 : vector<2x32xf32>
    %cst_92 = arith.constant 1.000000e+00 : f32
    %412 = vector.broadcast %cst_92 : f32 to vector<2x32xf32>
    %413 = arith.subf %412, %405 : vector<2x32xf32>
    %414 = arith.mulf %413, %411 : vector<2x32xf32>
    %415 = arith.mulf %405, %386 : vector<2x32xf32>
    %416 = arith.addf %414, %415 : vector<2x32xf32>
    %c8_93 = arith.constant 8 : index
    %c0_94 = arith.constant 0 : index
    %417 = vector.load %arg30[%c8_93, %c0_94] : memref<16x32xf32, #tpu.memory_space<vmem>>, vector<2x32xf32>
    tpu.vector_store %arg30[%c8_93, %c0_94], %416 {strides = array<i32>} : memref<16x32xf32, #tpu.memory_space<vmem>>, vector<2x32xf32>,
    %418 = vector.extract_strided_slice %263 {offsets = [10, 0], sizes = [2, 128], strides = [1, 1]} : vector<16x128xf32> to vector<2x128xf32>
    %cst_95 = arith.constant dense<0.000000e+00> : vector<2x128xf32>
    %419 = tpu.matmul %416, %264, %cst_95 {dimension_numbers = #tpu.dot_dimension_numbers<[1], [0], [0], [1], [0, 0, 1, 1], [], []>} : vector<2x32xf32>, vector<32x128xf32>, vector<2x128xf32> -> vector<2x128xf32>
    %420 = vector.extract_strided_slice %418 {offsets = [0, 0], sizes = [2, 32], strides = [1, 1]} : vector<2x128xf32> to vector<2x32xf32>
    %421 = vector.extract_strided_slice %419 {offsets = [0, 0], sizes = [2, 32], strides = [1, 1]} : vector<2x128xf32> to vector<2x32xf32>
    %422 = arith.addf %420, %421 : vector<2x32xf32>
    %423 = arith.negf %422 : vector<2x32xf32>
    %424 = math.exp %423 : vector<2x32xf32>
    %cst_96 = arith.constant 1.000000e+00 : f32
    %425 = vector.broadcast %cst_96 : f32 to vector<2x32xf32>
    %426 = arith.addf %425, %424 : vector<2x32xf32>
    %427 = arith.divf %425, %426 : vector<2x32xf32>
    %428 = vector.extract_strided_slice %418 {offsets = [0, 32], sizes = [2, 32], strides = [1, 1]} : vector<2x128xf32> to vector<2x32xf32>
    %429 = vector.extract_strided_slice %419 {offsets = [0, 32], sizes = [2, 32], strides = [1, 1]} : vector<2x128xf32> to vector<2x32xf32>
    %430 = arith.addf %428, %429 : vector<2x32xf32>
    %431 = arith.negf %430 : vector<2x32xf32>
    %432 = math.exp %431 : vector<2x32xf32>
    %cst_97 = arith.constant 1.000000e+00 : f32
    %433 = vector.broadcast %cst_97 : f32 to vector<2x32xf32>
    %434 = arith.addf %433, %432 : vector<2x32xf32>
    %435 = arith.divf %433, %434 : vector<2x32xf32>
    %436 = vector.extract_strided_slice %418 {offsets = [0, 64], sizes = [2, 32], strides = [1, 1]} : vector<2x128xf32> to vector<2x32xf32>
    %437 = vector.extract_strided_slice %419 {offsets = [0, 64], sizes = [2, 32], strides = [1, 1]} : vector<2x128xf32> to vector<2x32xf32>
    %438 = arith.addf %437, %267 : vector<2x32xf32>
    %439 = arith.mulf %427, %438 : vector<2x32xf32>
    %440 = arith.addf %436, %439 : vector<2x32xf32>
    %441 = math.tanh %440 : vector<2x32xf32>
    %cst_98 = arith.constant 1.000000e+00 : f32
    %442 = vector.broadcast %cst_98 : f32 to vector<2x32xf32>
    %443 = arith.subf %442, %435 : vector<2x32xf32>
    %444 = arith.mulf %443, %441 : vector<2x32xf32>
    %445 = arith.mulf %435, %416 : vector<2x32xf32>
    %446 = arith.addf %444, %445 : vector<2x32xf32>
    %c10_99 = arith.constant 10 : index
    %c0_100 = arith.constant 0 : index
    %447 = vector.load %arg30[%c10_99, %c0_100] : memref<16x32xf32, #tpu.memory_space<vmem>>, vector<2x32xf32>
    tpu.vector_store %arg30[%c10_99, %c0_100], %446 {strides = array<i32>} : memref<16x32xf32, #tpu.memory_space<vmem>>, vector<2x32xf32>,
    %448 = vector.extract_strided_slice %263 {offsets = [12, 0], sizes = [2, 128], strides = [1, 1]} : vector<16x128xf32> to vector<2x128xf32>
    %cst_101 = arith.constant dense<0.000000e+00> : vector<2x128xf32>
    %449 = tpu.matmul %446, %264, %cst_101 {dimension_numbers = #tpu.dot_dimension_numbers<[1], [0], [0], [1], [0, 0, 1, 1], [], []>} : vector<2x32xf32>, vector<32x128xf32>, vector<2x128xf32> -> vector<2x128xf32>
    %450 = vector.extract_strided_slice %448 {offsets = [0, 0], sizes = [2, 32], strides = [1, 1]} : vector<2x128xf32> to vector<2x32xf32>
    %451 = vector.extract_strided_slice %449 {offsets = [0, 0], sizes = [2, 32], strides = [1, 1]} : vector<2x128xf32> to vector<2x32xf32>
    %452 = arith.addf %450, %451 : vector<2x32xf32>
    %453 = arith.negf %452 : vector<2x32xf32>
    %454 = math.exp %453 : vector<2x32xf32>
    %cst_102 = arith.constant 1.000000e+00 : f32
    %455 = vector.broadcast %cst_102 : f32 to vector<2x32xf32>
    %456 = arith.addf %455, %454 : vector<2x32xf32>
    %457 = arith.divf %455, %456 : vector<2x32xf32>
    %458 = vector.extract_strided_slice %448 {offsets = [0, 32], sizes = [2, 32], strides = [1, 1]} : vector<2x128xf32> to vector<2x32xf32>
    %459 = vector.extract_strided_slice %449 {offsets = [0, 32], sizes = [2, 32], strides = [1, 1]} : vector<2x128xf32> to vector<2x32xf32>
    %460 = arith.addf %458, %459 : vector<2x32xf32>
    %461 = arith.negf %460 : vector<2x32xf32>
    %462 = math.exp %461 : vector<2x32xf32>
    %cst_103 = arith.constant 1.000000e+00 : f32
    %463 = vector.broadcast %cst_103 : f32 to vector<2x32xf32>
    %464 = arith.addf %463, %462 : vector<2x32xf32>
    %465 = arith.divf %463, %464 : vector<2x32xf32>
    %466 = vector.extract_strided_slice %448 {offsets = [0, 64], sizes = [2, 32], strides = [1, 1]} : vector<2x128xf32> to vector<2x32xf32>
    %467 = vector.extract_strided_slice %449 {offsets = [0, 64], sizes = [2, 32], strides = [1, 1]} : vector<2x128xf32> to vector<2x32xf32>
    %468 = arith.addf %467, %267 : vector<2x32xf32>
    %469 = arith.mulf %457, %468 : vector<2x32xf32>
    %470 = arith.addf %466, %469 : vector<2x32xf32>
    %471 = math.tanh %470 : vector<2x32xf32>
    %cst_104 = arith.constant 1.000000e+00 : f32
    %472 = vector.broadcast %cst_104 : f32 to vector<2x32xf32>
    %473 = arith.subf %472, %465 : vector<2x32xf32>
    %474 = arith.mulf %473, %471 : vector<2x32xf32>
    %475 = arith.mulf %465, %446 : vector<2x32xf32>
    %476 = arith.addf %474, %475 : vector<2x32xf32>
    %c12_105 = arith.constant 12 : index
    %c0_106 = arith.constant 0 : index
    %477 = vector.load %arg30[%c12_105, %c0_106] : memref<16x32xf32, #tpu.memory_space<vmem>>, vector<2x32xf32>
    tpu.vector_store %arg30[%c12_105, %c0_106], %476 {strides = array<i32>} : memref<16x32xf32, #tpu.memory_space<vmem>>, vector<2x32xf32>,
    %478 = vector.extract_strided_slice %263 {offsets = [14, 0], sizes = [2, 128], strides = [1, 1]} : vector<16x128xf32> to vector<2x128xf32>
    %cst_107 = arith.constant dense<0.000000e+00> : vector<2x128xf32>
    %479 = tpu.matmul %476, %264, %cst_107 {dimension_numbers = #tpu.dot_dimension_numbers<[1], [0], [0], [1], [0, 0, 1, 1], [], []>} : vector<2x32xf32>, vector<32x128xf32>, vector<2x128xf32> -> vector<2x128xf32>
    %480 = vector.extract_strided_slice %478 {offsets = [0, 0], sizes = [2, 32], strides = [1, 1]} : vector<2x128xf32> to vector<2x32xf32>
    %481 = vector.extract_strided_slice %479 {offsets = [0, 0], sizes = [2, 32], strides = [1, 1]} : vector<2x128xf32> to vector<2x32xf32>
    %482 = arith.addf %480, %481 : vector<2x32xf32>
    %483 = arith.negf %482 : vector<2x32xf32>
    %484 = math.exp %483 : vector<2x32xf32>
    %cst_108 = arith.constant 1.000000e+00 : f32
    %485 = vector.broadcast %cst_108 : f32 to vector<2x32xf32>
    %486 = arith.addf %485, %484 : vector<2x32xf32>
    %487 = arith.divf %485, %486 : vector<2x32xf32>
    %488 = vector.extract_strided_slice %478 {offsets = [0, 32], sizes = [2, 32], strides = [1, 1]} : vector<2x128xf32> to vector<2x32xf32>
    %489 = vector.extract_strided_slice %479 {offsets = [0, 32], sizes = [2, 32], strides = [1, 1]} : vector<2x128xf32> to vector<2x32xf32>
    %490 = arith.addf %488, %489 : vector<2x32xf32>
    %491 = arith.negf %490 : vector<2x32xf32>
    %492 = math.exp %491 : vector<2x32xf32>
    %cst_109 = arith.constant 1.000000e+00 : f32
    %493 = vector.broadcast %cst_109 : f32 to vector<2x32xf32>
    %494 = arith.addf %493, %492 : vector<2x32xf32>
    %495 = arith.divf %493, %494 : vector<2x32xf32>
    %496 = vector.extract_strided_slice %478 {offsets = [0, 64], sizes = [2, 32], strides = [1, 1]} : vector<2x128xf32> to vector<2x32xf32>
    %497 = vector.extract_strided_slice %479 {offsets = [0, 64], sizes = [2, 32], strides = [1, 1]} : vector<2x128xf32> to vector<2x32xf32>
    %498 = arith.addf %497, %267 : vector<2x32xf32>
    %499 = arith.mulf %487, %498 : vector<2x32xf32>
    %500 = arith.addf %496, %499 : vector<2x32xf32>
    %501 = math.tanh %500 : vector<2x32xf32>
    %cst_110 = arith.constant 1.000000e+00 : f32
    %502 = vector.broadcast %cst_110 : f32 to vector<2x32xf32>
    %503 = arith.subf %502, %495 : vector<2x32xf32>
    %504 = arith.mulf %503, %501 : vector<2x32xf32>
    %505 = arith.mulf %495, %476 : vector<2x32xf32>
    %506 = arith.addf %504, %505 : vector<2x32xf32>
    %c14_111 = arith.constant 14 : index
    %c0_112 = arith.constant 0 : index
    %507 = vector.load %arg30[%c14_111, %c0_112] : memref<16x32xf32, #tpu.memory_space<vmem>>, vector<2x32xf32>
    tpu.vector_store %arg30[%c14_111, %c0_112], %506 {strides = array<i32>} : memref<16x32xf32, #tpu.memory_space<vmem>>, vector<2x32xf32>,
    %c0_113 = arith.constant 0 : index
    %c0_114 = arith.constant 0 : index
    %508 = vector.load %arg30[%c0_113, %c0_114] : memref<16x32xf32, #tpu.memory_space<vmem>>, vector<16x32xf32>
    %c0_115 = arith.constant 0 : index
    %c0_116 = arith.constant 0 : index
    %509 = vector.load %arg11[%c0_115, %c0_116] : memref<32x128xf32, #tpu.memory_space<vmem>>, vector<32x128xf32>
    %cst_117 = arith.constant dense<0.000000e+00> : vector<16x128xf32>
    %510 = tpu.matmul %508, %509, %cst_117 {dimension_numbers = #tpu.dot_dimension_numbers<[1], [0], [0], [1], [0, 0, 1, 1], [], []>} : vector<16x32xf32>, vector<32x128xf32>, vector<16x128xf32> -> vector<16x128xf32>
    %c0_118 = arith.constant 0 : index
    %c0_119 = arith.constant 0 : index
    %511 = vector.load %arg13[%c0_118, %c0_119] : memref<1x128xf32, #tpu.memory_space<vmem>>, vector<1x128xf32>
    %512 = vector.broadcast %511 : vector<1x128xf32> to vector<16x128xf32>
    %513 = arith.addf %510, %512 : vector<16x128xf32>
    %c0_120 = arith.constant 0 : index
    %c0_121 = arith.constant 0 : index
    %514 = vector.load %arg12[%c0_120, %c0_121] : memref<32x128xf32, #tpu.memory_space<vmem>>, vector<32x128xf32>
    %c0_122 = arith.constant 0 : index
    %c0_123 = arith.constant 0 : index
    %515 = vector.load %arg14[%c0_122, %c0_123] : memref<1x32xf32, #tpu.memory_space<vmem>>, vector<1x32xf32>
    %516 = vector.shape_cast %515 : vector<1x32xf32> to vector<1x32xf32>
    %517 = vector.broadcast %516 : vector<1x32xf32> to vector<2x32xf32>
    %518 = vector.extract_strided_slice %513 {offsets = [0, 0], sizes = [2, 128], strides = [1, 1]} : vector<16x128xf32> to vector<2x128xf32>
    %cst_124 = arith.constant dense<0.000000e+00> : vector<2x128xf32>
    %519 = tpu.matmul %1, %514, %cst_124 {dimension_numbers = #tpu.dot_dimension_numbers<[1], [0], [0], [1], [0, 0, 1, 1], [], []>} : vector<2x32xf32>, vector<32x128xf32>, vector<2x128xf32> -> vector<2x128xf32>
    %520 = vector.extract_strided_slice %518 {offsets = [0, 0], sizes = [2, 32], strides = [1, 1]} : vector<2x128xf32> to vector<2x32xf32>
    %521 = vector.extract_strided_slice %519 {offsets = [0, 0], sizes = [2, 32], strides = [1, 1]} : vector<2x128xf32> to vector<2x32xf32>
    %522 = arith.addf %520, %521 : vector<2x32xf32>
    %523 = arith.negf %522 : vector<2x32xf32>
    %524 = math.exp %523 : vector<2x32xf32>
    %cst_125 = arith.constant 1.000000e+00 : f32
    %525 = vector.broadcast %cst_125 : f32 to vector<2x32xf32>
    %526 = arith.addf %525, %524 : vector<2x32xf32>
    %527 = arith.divf %525, %526 : vector<2x32xf32>
    %528 = vector.extract_strided_slice %518 {offsets = [0, 32], sizes = [2, 32], strides = [1, 1]} : vector<2x128xf32> to vector<2x32xf32>
    %529 = vector.extract_strided_slice %519 {offsets = [0, 32], sizes = [2, 32], strides = [1, 1]} : vector<2x128xf32> to vector<2x32xf32>
    %530 = arith.addf %528, %529 : vector<2x32xf32>
    %531 = arith.negf %530 : vector<2x32xf32>
    %532 = math.exp %531 : vector<2x32xf32>
    %cst_126 = arith.constant 1.000000e+00 : f32
    %533 = vector.broadcast %cst_126 : f32 to vector<2x32xf32>
    %534 = arith.addf %533, %532 : vector<2x32xf32>
    %535 = arith.divf %533, %534 : vector<2x32xf32>
    %536 = vector.extract_strided_slice %518 {offsets = [0, 64], sizes = [2, 32], strides = [1, 1]} : vector<2x128xf32> to vector<2x32xf32>
    %537 = vector.extract_strided_slice %519 {offsets = [0, 64], sizes = [2, 32], strides = [1, 1]} : vector<2x128xf32> to vector<2x32xf32>
    %538 = arith.addf %537, %517 : vector<2x32xf32>
    %539 = arith.mulf %527, %538 : vector<2x32xf32>
    %540 = arith.addf %536, %539 : vector<2x32xf32>
    %541 = math.tanh %540 : vector<2x32xf32>
    %cst_127 = arith.constant 1.000000e+00 : f32
    %542 = vector.broadcast %cst_127 : f32 to vector<2x32xf32>
    %543 = arith.subf %542, %535 : vector<2x32xf32>
    %544 = arith.mulf %543, %541 : vector<2x32xf32>
    %545 = arith.mulf %535, %1 : vector<2x32xf32>
    %546 = arith.addf %544, %545 : vector<2x32xf32>
    %c0_128 = arith.constant 0 : index
    %c0_129 = arith.constant 0 : index
    %547 = vector.load %arg30[%c0_128, %c0_129] : memref<16x32xf32, #tpu.memory_space<vmem>>, vector<2x32xf32>
    tpu.vector_store %arg30[%c0_128, %c0_129], %546 {strides = array<i32>} : memref<16x32xf32, #tpu.memory_space<vmem>>, vector<2x32xf32>,
    %548 = vector.extract_strided_slice %513 {offsets = [2, 0], sizes = [2, 128], strides = [1, 1]} : vector<16x128xf32> to vector<2x128xf32>
    %cst_130 = arith.constant dense<0.000000e+00> : vector<2x128xf32>
    %549 = tpu.matmul %546, %514, %cst_130 {dimension_numbers = #tpu.dot_dimension_numbers<[1], [0], [0], [1], [0, 0, 1, 1], [], []>} : vector<2x32xf32>, vector<32x128xf32>, vector<2x128xf32> -> vector<2x128xf32>
    %550 = vector.extract_strided_slice %548 {offsets = [0, 0], sizes = [2, 32], strides = [1, 1]} : vector<2x128xf32> to vector<2x32xf32>
    %551 = vector.extract_strided_slice %549 {offsets = [0, 0], sizes = [2, 32], strides = [1, 1]} : vector<2x128xf32> to vector<2x32xf32>
    %552 = arith.addf %550, %551 : vector<2x32xf32>
    %553 = arith.negf %552 : vector<2x32xf32>
    %554 = math.exp %553 : vector<2x32xf32>
    %cst_131 = arith.constant 1.000000e+00 : f32
    %555 = vector.broadcast %cst_131 : f32 to vector<2x32xf32>
    %556 = arith.addf %555, %554 : vector<2x32xf32>
    %557 = arith.divf %555, %556 : vector<2x32xf32>
    %558 = vector.extract_strided_slice %548 {offsets = [0, 32], sizes = [2, 32], strides = [1, 1]} : vector<2x128xf32> to vector<2x32xf32>
    %559 = vector.extract_strided_slice %549 {offsets = [0, 32], sizes = [2, 32], strides = [1, 1]} : vector<2x128xf32> to vector<2x32xf32>
    %560 = arith.addf %558, %559 : vector<2x32xf32>
    %561 = arith.negf %560 : vector<2x32xf32>
    %562 = math.exp %561 : vector<2x32xf32>
    %cst_132 = arith.constant 1.000000e+00 : f32
    %563 = vector.broadcast %cst_132 : f32 to vector<2x32xf32>
    %564 = arith.addf %563, %562 : vector<2x32xf32>
    %565 = arith.divf %563, %564 : vector<2x32xf32>
    %566 = vector.extract_strided_slice %548 {offsets = [0, 64], sizes = [2, 32], strides = [1, 1]} : vector<2x128xf32> to vector<2x32xf32>
    %567 = vector.extract_strided_slice %549 {offsets = [0, 64], sizes = [2, 32], strides = [1, 1]} : vector<2x128xf32> to vector<2x32xf32>
    %568 = arith.addf %567, %517 : vector<2x32xf32>
    %569 = arith.mulf %557, %568 : vector<2x32xf32>
    %570 = arith.addf %566, %569 : vector<2x32xf32>
    %571 = math.tanh %570 : vector<2x32xf32>
    %cst_133 = arith.constant 1.000000e+00 : f32
    %572 = vector.broadcast %cst_133 : f32 to vector<2x32xf32>
    %573 = arith.subf %572, %565 : vector<2x32xf32>
    %574 = arith.mulf %573, %571 : vector<2x32xf32>
    %575 = arith.mulf %565, %546 : vector<2x32xf32>
    %576 = arith.addf %574, %575 : vector<2x32xf32>
    %c2_134 = arith.constant 2 : index
    %c0_135 = arith.constant 0 : index
    %577 = vector.load %arg30[%c2_134, %c0_135] : memref<16x32xf32, #tpu.memory_space<vmem>>, vector<2x32xf32>
    tpu.vector_store %arg30[%c2_134, %c0_135], %576 {strides = array<i32>} : memref<16x32xf32, #tpu.memory_space<vmem>>, vector<2x32xf32>,
    %578 = vector.extract_strided_slice %513 {offsets = [4, 0], sizes = [2, 128], strides = [1, 1]} : vector<16x128xf32> to vector<2x128xf32>
    %cst_136 = arith.constant dense<0.000000e+00> : vector<2x128xf32>
    %579 = tpu.matmul %576, %514, %cst_136 {dimension_numbers = #tpu.dot_dimension_numbers<[1], [0], [0], [1], [0, 0, 1, 1], [], []>} : vector<2x32xf32>, vector<32x128xf32>, vector<2x128xf32> -> vector<2x128xf32>
    %580 = vector.extract_strided_slice %578 {offsets = [0, 0], sizes = [2, 32], strides = [1, 1]} : vector<2x128xf32> to vector<2x32xf32>
    %581 = vector.extract_strided_slice %579 {offsets = [0, 0], sizes = [2, 32], strides = [1, 1]} : vector<2x128xf32> to vector<2x32xf32>
    %582 = arith.addf %580, %581 : vector<2x32xf32>
    %583 = arith.negf %582 : vector<2x32xf32>
    %584 = math.exp %583 : vector<2x32xf32>
    %cst_137 = arith.constant 1.000000e+00 : f32
    %585 = vector.broadcast %cst_137 : f32 to vector<2x32xf32>
    %586 = arith.addf %585, %584 : vector<2x32xf32>
    %587 = arith.divf %585, %586 : vector<2x32xf32>
    %588 = vector.extract_strided_slice %578 {offsets = [0, 32], sizes = [2, 32], strides = [1, 1]} : vector<2x128xf32> to vector<2x32xf32>
    %589 = vector.extract_strided_slice %579 {offsets = [0, 32], sizes = [2, 32], strides = [1, 1]} : vector<2x128xf32> to vector<2x32xf32>
    %590 = arith.addf %588, %589 : vector<2x32xf32>
    %591 = arith.negf %590 : vector<2x32xf32>
    %592 = math.exp %591 : vector<2x32xf32>
    %cst_138 = arith.constant 1.000000e+00 : f32
    %593 = vector.broadcast %cst_138 : f32 to vector<2x32xf32>
    %594 = arith.addf %593, %592 : vector<2x32xf32>
    %595 = arith.divf %593, %594 : vector<2x32xf32>
    %596 = vector.extract_strided_slice %578 {offsets = [0, 64], sizes = [2, 32], strides = [1, 1]} : vector<2x128xf32> to vector<2x32xf32>
    %597 = vector.extract_strided_slice %579 {offsets = [0, 64], sizes = [2, 32], strides = [1, 1]} : vector<2x128xf32> to vector<2x32xf32>
    %598 = arith.addf %597, %517 : vector<2x32xf32>
    %599 = arith.mulf %587, %598 : vector<2x32xf32>
    %600 = arith.addf %596, %599 : vector<2x32xf32>
    %601 = math.tanh %600 : vector<2x32xf32>
    %cst_139 = arith.constant 1.000000e+00 : f32
    %602 = vector.broadcast %cst_139 : f32 to vector<2x32xf32>
    %603 = arith.subf %602, %595 : vector<2x32xf32>
    %604 = arith.mulf %603, %601 : vector<2x32xf32>
    %605 = arith.mulf %595, %576 : vector<2x32xf32>
    %606 = arith.addf %604, %605 : vector<2x32xf32>
    %c4_140 = arith.constant 4 : index
    %c0_141 = arith.constant 0 : index
    %607 = vector.load %arg30[%c4_140, %c0_141] : memref<16x32xf32, #tpu.memory_space<vmem>>, vector<2x32xf32>
    tpu.vector_store %arg30[%c4_140, %c0_141], %606 {strides = array<i32>} : memref<16x32xf32, #tpu.memory_space<vmem>>, vector<2x32xf32>,
    %608 = vector.extract_strided_slice %513 {offsets = [6, 0], sizes = [2, 128], strides = [1, 1]} : vector<16x128xf32> to vector<2x128xf32>
    %cst_142 = arith.constant dense<0.000000e+00> : vector<2x128xf32>
    %609 = tpu.matmul %606, %514, %cst_142 {dimension_numbers = #tpu.dot_dimension_numbers<[1], [0], [0], [1], [0, 0, 1, 1], [], []>} : vector<2x32xf32>, vector<32x128xf32>, vector<2x128xf32> -> vector<2x128xf32>
    %610 = vector.extract_strided_slice %608 {offsets = [0, 0], sizes = [2, 32], strides = [1, 1]} : vector<2x128xf32> to vector<2x32xf32>
    %611 = vector.extract_strided_slice %609 {offsets = [0, 0], sizes = [2, 32], strides = [1, 1]} : vector<2x128xf32> to vector<2x32xf32>
    %612 = arith.addf %610, %611 : vector<2x32xf32>
    %613 = arith.negf %612 : vector<2x32xf32>
    %614 = math.exp %613 : vector<2x32xf32>
    %cst_143 = arith.constant 1.000000e+00 : f32
    %615 = vector.broadcast %cst_143 : f32 to vector<2x32xf32>
    %616 = arith.addf %615, %614 : vector<2x32xf32>
    %617 = arith.divf %615, %616 : vector<2x32xf32>
    %618 = vector.extract_strided_slice %608 {offsets = [0, 32], sizes = [2, 32], strides = [1, 1]} : vector<2x128xf32> to vector<2x32xf32>
    %619 = vector.extract_strided_slice %609 {offsets = [0, 32], sizes = [2, 32], strides = [1, 1]} : vector<2x128xf32> to vector<2x32xf32>
    %620 = arith.addf %618, %619 : vector<2x32xf32>
    %621 = arith.negf %620 : vector<2x32xf32>
    %622 = math.exp %621 : vector<2x32xf32>
    %cst_144 = arith.constant 1.000000e+00 : f32
    %623 = vector.broadcast %cst_144 : f32 to vector<2x32xf32>
    %624 = arith.addf %623, %622 : vector<2x32xf32>
    %625 = arith.divf %623, %624 : vector<2x32xf32>
    %626 = vector.extract_strided_slice %608 {offsets = [0, 64], sizes = [2, 32], strides = [1, 1]} : vector<2x128xf32> to vector<2x32xf32>
    %627 = vector.extract_strided_slice %609 {offsets = [0, 64], sizes = [2, 32], strides = [1, 1]} : vector<2x128xf32> to vector<2x32xf32>
    %628 = arith.addf %627, %517 : vector<2x32xf32>
    %629 = arith.mulf %617, %628 : vector<2x32xf32>
    %630 = arith.addf %626, %629 : vector<2x32xf32>
    %631 = math.tanh %630 : vector<2x32xf32>
    %cst_145 = arith.constant 1.000000e+00 : f32
    %632 = vector.broadcast %cst_145 : f32 to vector<2x32xf32>
    %633 = arith.subf %632, %625 : vector<2x32xf32>
    %634 = arith.mulf %633, %631 : vector<2x32xf32>
    %635 = arith.mulf %625, %606 : vector<2x32xf32>
    %636 = arith.addf %634, %635 : vector<2x32xf32>
    %c6_146 = arith.constant 6 : index
    %c0_147 = arith.constant 0 : index
    %637 = vector.load %arg30[%c6_146, %c0_147] : memref<16x32xf32, #tpu.memory_space<vmem>>, vector<2x32xf32>
    tpu.vector_store %arg30[%c6_146, %c0_147], %636 {strides = array<i32>} : memref<16x32xf32, #tpu.memory_space<vmem>>, vector<2x32xf32>,
    %638 = vector.extract_strided_slice %513 {offsets = [8, 0], sizes = [2, 128], strides = [1, 1]} : vector<16x128xf32> to vector<2x128xf32>
    %cst_148 = arith.constant dense<0.000000e+00> : vector<2x128xf32>
    %639 = tpu.matmul %636, %514, %cst_148 {dimension_numbers = #tpu.dot_dimension_numbers<[1], [0], [0], [1], [0, 0, 1, 1], [], []>} : vector<2x32xf32>, vector<32x128xf32>, vector<2x128xf32> -> vector<2x128xf32>
    %640 = vector.extract_strided_slice %638 {offsets = [0, 0], sizes = [2, 32], strides = [1, 1]} : vector<2x128xf32> to vector<2x32xf32>
    %641 = vector.extract_strided_slice %639 {offsets = [0, 0], sizes = [2, 32], strides = [1, 1]} : vector<2x128xf32> to vector<2x32xf32>
    %642 = arith.addf %640, %641 : vector<2x32xf32>
    %643 = arith.negf %642 : vector<2x32xf32>
    %644 = math.exp %643 : vector<2x32xf32>
    %cst_149 = arith.constant 1.000000e+00 : f32
    %645 = vector.broadcast %cst_149 : f32 to vector<2x32xf32>
    %646 = arith.addf %645, %644 : vector<2x32xf32>
    %647 = arith.divf %645, %646 : vector<2x32xf32>
    %648 = vector.extract_strided_slice %638 {offsets = [0, 32], sizes = [2, 32], strides = [1, 1]} : vector<2x128xf32> to vector<2x32xf32>
    %649 = vector.extract_strided_slice %639 {offsets = [0, 32], sizes = [2, 32], strides = [1, 1]} : vector<2x128xf32> to vector<2x32xf32>
    %650 = arith.addf %648, %649 : vector<2x32xf32>
    %651 = arith.negf %650 : vector<2x32xf32>
    %652 = math.exp %651 : vector<2x32xf32>
    %cst_150 = arith.constant 1.000000e+00 : f32
    %653 = vector.broadcast %cst_150 : f32 to vector<2x32xf32>
    %654 = arith.addf %653, %652 : vector<2x32xf32>
    %655 = arith.divf %653, %654 : vector<2x32xf32>
    %656 = vector.extract_strided_slice %638 {offsets = [0, 64], sizes = [2, 32], strides = [1, 1]} : vector<2x128xf32> to vector<2x32xf32>
    %657 = vector.extract_strided_slice %639 {offsets = [0, 64], sizes = [2, 32], strides = [1, 1]} : vector<2x128xf32> to vector<2x32xf32>
    %658 = arith.addf %657, %517 : vector<2x32xf32>
    %659 = arith.mulf %647, %658 : vector<2x32xf32>
    %660 = arith.addf %656, %659 : vector<2x32xf32>
    %661 = math.tanh %660 : vector<2x32xf32>
    %cst_151 = arith.constant 1.000000e+00 : f32
    %662 = vector.broadcast %cst_151 : f32 to vector<2x32xf32>
    %663 = arith.subf %662, %655 : vector<2x32xf32>
    %664 = arith.mulf %663, %661 : vector<2x32xf32>
    %665 = arith.mulf %655, %636 : vector<2x32xf32>
    %666 = arith.addf %664, %665 : vector<2x32xf32>
    %c8_152 = arith.constant 8 : index
    %c0_153 = arith.constant 0 : index
    %667 = vector.load %arg30[%c8_152, %c0_153] : memref<16x32xf32, #tpu.memory_space<vmem>>, vector<2x32xf32>
    tpu.vector_store %arg30[%c8_152, %c0_153], %666 {strides = array<i32>} : memref<16x32xf32, #tpu.memory_space<vmem>>, vector<2x32xf32>,
    %668 = vector.extract_strided_slice %513 {offsets = [10, 0], sizes = [2, 128], strides = [1, 1]} : vector<16x128xf32> to vector<2x128xf32>
    %cst_154 = arith.constant dense<0.000000e+00> : vector<2x128xf32>
    %669 = tpu.matmul %666, %514, %cst_154 {dimension_numbers = #tpu.dot_dimension_numbers<[1], [0], [0], [1], [0, 0, 1, 1], [], []>} : vector<2x32xf32>, vector<32x128xf32>, vector<2x128xf32> -> vector<2x128xf32>
    %670 = vector.extract_strided_slice %668 {offsets = [0, 0], sizes = [2, 32], strides = [1, 1]} : vector<2x128xf32> to vector<2x32xf32>
    %671 = vector.extract_strided_slice %669 {offsets = [0, 0], sizes = [2, 32], strides = [1, 1]} : vector<2x128xf32> to vector<2x32xf32>
    %672 = arith.addf %670, %671 : vector<2x32xf32>
    %673 = arith.negf %672 : vector<2x32xf32>
    %674 = math.exp %673 : vector<2x32xf32>
    %cst_155 = arith.constant 1.000000e+00 : f32
    %675 = vector.broadcast %cst_155 : f32 to vector<2x32xf32>
    %676 = arith.addf %675, %674 : vector<2x32xf32>
    %677 = arith.divf %675, %676 : vector<2x32xf32>
    %678 = vector.extract_strided_slice %668 {offsets = [0, 32], sizes = [2, 32], strides = [1, 1]} : vector<2x128xf32> to vector<2x32xf32>
    %679 = vector.extract_strided_slice %669 {offsets = [0, 32], sizes = [2, 32], strides = [1, 1]} : vector<2x128xf32> to vector<2x32xf32>
    %680 = arith.addf %678, %679 : vector<2x32xf32>
    %681 = arith.negf %680 : vector<2x32xf32>
    %682 = math.exp %681 : vector<2x32xf32>
    %cst_156 = arith.constant 1.000000e+00 : f32
    %683 = vector.broadcast %cst_156 : f32 to vector<2x32xf32>
    %684 = arith.addf %683, %682 : vector<2x32xf32>
    %685 = arith.divf %683, %684 : vector<2x32xf32>
    %686 = vector.extract_strided_slice %668 {offsets = [0, 64], sizes = [2, 32], strides = [1, 1]} : vector<2x128xf32> to vector<2x32xf32>
    %687 = vector.extract_strided_slice %669 {offsets = [0, 64], sizes = [2, 32], strides = [1, 1]} : vector<2x128xf32> to vector<2x32xf32>
    %688 = arith.addf %687, %517 : vector<2x32xf32>
    %689 = arith.mulf %677, %688 : vector<2x32xf32>
    %690 = arith.addf %686, %689 : vector<2x32xf32>
    %691 = math.tanh %690 : vector<2x32xf32>
    %cst_157 = arith.constant 1.000000e+00 : f32
    %692 = vector.broadcast %cst_157 : f32 to vector<2x32xf32>
    %693 = arith.subf %692, %685 : vector<2x32xf32>
    %694 = arith.mulf %693, %691 : vector<2x32xf32>
    %695 = arith.mulf %685, %666 : vector<2x32xf32>
    %696 = arith.addf %694, %695 : vector<2x32xf32>
    %c10_158 = arith.constant 10 : index
    %c0_159 = arith.constant 0 : index
    %697 = vector.load %arg30[%c10_158, %c0_159] : memref<16x32xf32, #tpu.memory_space<vmem>>, vector<2x32xf32>
    tpu.vector_store %arg30[%c10_158, %c0_159], %696 {strides = array<i32>} : memref<16x32xf32, #tpu.memory_space<vmem>>, vector<2x32xf32>,
    %698 = vector.extract_strided_slice %513 {offsets = [12, 0], sizes = [2, 128], strides = [1, 1]} : vector<16x128xf32> to vector<2x128xf32>
    %cst_160 = arith.constant dense<0.000000e+00> : vector<2x128xf32>
    %699 = tpu.matmul %696, %514, %cst_160 {dimension_numbers = #tpu.dot_dimension_numbers<[1], [0], [0], [1], [0, 0, 1, 1], [], []>} : vector<2x32xf32>, vector<32x128xf32>, vector<2x128xf32> -> vector<2x128xf32>
    %700 = vector.extract_strided_slice %698 {offsets = [0, 0], sizes = [2, 32], strides = [1, 1]} : vector<2x128xf32> to vector<2x32xf32>
    %701 = vector.extract_strided_slice %699 {offsets = [0, 0], sizes = [2, 32], strides = [1, 1]} : vector<2x128xf32> to vector<2x32xf32>
    %702 = arith.addf %700, %701 : vector<2x32xf32>
    %703 = arith.negf %702 : vector<2x32xf32>
    %704 = math.exp %703 : vector<2x32xf32>
    %cst_161 = arith.constant 1.000000e+00 : f32
    %705 = vector.broadcast %cst_161 : f32 to vector<2x32xf32>
    %706 = arith.addf %705, %704 : vector<2x32xf32>
    %707 = arith.divf %705, %706 : vector<2x32xf32>
    %708 = vector.extract_strided_slice %698 {offsets = [0, 32], sizes = [2, 32], strides = [1, 1]} : vector<2x128xf32> to vector<2x32xf32>
    %709 = vector.extract_strided_slice %699 {offsets = [0, 32], sizes = [2, 32], strides = [1, 1]} : vector<2x128xf32> to vector<2x32xf32>
    %710 = arith.addf %708, %709 : vector<2x32xf32>
    %711 = arith.negf %710 : vector<2x32xf32>
    %712 = math.exp %711 : vector<2x32xf32>
    %cst_162 = arith.constant 1.000000e+00 : f32
    %713 = vector.broadcast %cst_162 : f32 to vector<2x32xf32>
    %714 = arith.addf %713, %712 : vector<2x32xf32>
    %715 = arith.divf %713, %714 : vector<2x32xf32>
    %716 = vector.extract_strided_slice %698 {offsets = [0, 64], sizes = [2, 32], strides = [1, 1]} : vector<2x128xf32> to vector<2x32xf32>
    %717 = vector.extract_strided_slice %699 {offsets = [0, 64], sizes = [2, 32], strides = [1, 1]} : vector<2x128xf32> to vector<2x32xf32>
    %718 = arith.addf %717, %517 : vector<2x32xf32>
    %719 = arith.mulf %707, %718 : vector<2x32xf32>
    %720 = arith.addf %716, %719 : vector<2x32xf32>
    %721 = math.tanh %720 : vector<2x32xf32>
    %cst_163 = arith.constant 1.000000e+00 : f32
    %722 = vector.broadcast %cst_163 : f32 to vector<2x32xf32>
    %723 = arith.subf %722, %715 : vector<2x32xf32>
    %724 = arith.mulf %723, %721 : vector<2x32xf32>
    %725 = arith.mulf %715, %696 : vector<2x32xf32>
    %726 = arith.addf %724, %725 : vector<2x32xf32>
    %c12_164 = arith.constant 12 : index
    %c0_165 = arith.constant 0 : index
    %727 = vector.load %arg30[%c12_164, %c0_165] : memref<16x32xf32, #tpu.memory_space<vmem>>, vector<2x32xf32>
    tpu.vector_store %arg30[%c12_164, %c0_165], %726 {strides = array<i32>} : memref<16x32xf32, #tpu.memory_space<vmem>>, vector<2x32xf32>,
    %728 = vector.extract_strided_slice %513 {offsets = [14, 0], sizes = [2, 128], strides = [1, 1]} : vector<16x128xf32> to vector<2x128xf32>
    %cst_166 = arith.constant dense<0.000000e+00> : vector<2x128xf32>
    %729 = tpu.matmul %726, %514, %cst_166 {dimension_numbers = #tpu.dot_dimension_numbers<[1], [0], [0], [1], [0, 0, 1, 1], [], []>} : vector<2x32xf32>, vector<32x128xf32>, vector<2x128xf32> -> vector<2x128xf32>
    %730 = vector.extract_strided_slice %728 {offsets = [0, 0], sizes = [2, 32], strides = [1, 1]} : vector<2x128xf32> to vector<2x32xf32>
    %731 = vector.extract_strided_slice %729 {offsets = [0, 0], sizes = [2, 32], strides = [1, 1]} : vector<2x128xf32> to vector<2x32xf32>
    %732 = arith.addf %730, %731 : vector<2x32xf32>
    %733 = arith.negf %732 : vector<2x32xf32>
    %734 = math.exp %733 : vector<2x32xf32>
    %cst_167 = arith.constant 1.000000e+00 : f32
    %735 = vector.broadcast %cst_167 : f32 to vector<2x32xf32>
    %736 = arith.addf %735, %734 : vector<2x32xf32>
    %737 = arith.divf %735, %736 : vector<2x32xf32>
    %738 = vector.extract_strided_slice %728 {offsets = [0, 32], sizes = [2, 32], strides = [1, 1]} : vector<2x128xf32> to vector<2x32xf32>
    %739 = vector.extract_strided_slice %729 {offsets = [0, 32], sizes = [2, 32], strides = [1, 1]} : vector<2x128xf32> to vector<2x32xf32>
    %740 = arith.addf %738, %739 : vector<2x32xf32>
    %741 = arith.negf %740 : vector<2x32xf32>
    %742 = math.exp %741 : vector<2x32xf32>
    %cst_168 = arith.constant 1.000000e+00 : f32
    %743 = vector.broadcast %cst_168 : f32 to vector<2x32xf32>
    %744 = arith.addf %743, %742 : vector<2x32xf32>
    %745 = arith.divf %743, %744 : vector<2x32xf32>
    %746 = vector.extract_strided_slice %728 {offsets = [0, 64], sizes = [2, 32], strides = [1, 1]} : vector<2x128xf32> to vector<2x32xf32>
    %747 = vector.extract_strided_slice %729 {offsets = [0, 64], sizes = [2, 32], strides = [1, 1]} : vector<2x128xf32> to vector<2x32xf32>
    %748 = arith.addf %747, %517 : vector<2x32xf32>
    %749 = arith.mulf %737, %748 : vector<2x32xf32>
    %750 = arith.addf %746, %749 : vector<2x32xf32>
    %751 = math.tanh %750 : vector<2x32xf32>
    %cst_169 = arith.constant 1.000000e+00 : f32
    %752 = vector.broadcast %cst_169 : f32 to vector<2x32xf32>
    %753 = arith.subf %752, %745 : vector<2x32xf32>
    %754 = arith.mulf %753, %751 : vector<2x32xf32>
    %755 = arith.mulf %745, %726 : vector<2x32xf32>
    %756 = arith.addf %754, %755 : vector<2x32xf32>
    %c14_170 = arith.constant 14 : index
    %c0_171 = arith.constant 0 : index
    %757 = vector.load %arg30[%c14_170, %c0_171] : memref<16x32xf32, #tpu.memory_space<vmem>>, vector<2x32xf32>
    tpu.vector_store %arg30[%c14_170, %c0_171], %756 {strides = array<i32>} : memref<16x32xf32, #tpu.memory_space<vmem>>, vector<2x32xf32>,
    %c0_172 = arith.constant 0 : index
    %c0_173 = arith.constant 0 : index
    %758 = vector.load %arg1[%c0_172, %c0_173] : memref<16x1xi32, #tpu.memory_space<vmem>>, vector<16x1xi32>
    %759 = tpu.iota {dimensions = array<i32: 1>} : vector<16x64xi32>
    %760 = vector.broadcast %758 : vector<16x1xi32> to vector<16x64xi32>
    %761 = arith.cmpi eq, %760, %759 : vector<16x64xi32>
    %762 = arith.extui %761 : vector<16x64xi1> to vector<16x64xi32>
    %763 = arith.sitofp %762 : vector<16x64xi32> to vector<16x64xf32>
    %cst_174 = arith.constant dense<0.000000e+00> : vector<16x32xf32>
    %764 = tpu.matmul %763, %0, %cst_174 {dimension_numbers = #tpu.dot_dimension_numbers<[1], [0], [0], [1], [0, 0, 1, 1], [], []>} : vector<16x64xf32>, vector<64x32xf32>, vector<16x32xf32> -> vector<16x32xf32>
    %cst_175 = arith.constant 0.000000e+00 : f32
    %765 = vector.broadcast %cst_175 : f32 to vector<16x32xf32>
    %766 = arith.maximumf %764, %765 : vector<16x32xf32>
    %c0_176 = arith.constant 0 : index
    %c0_177 = arith.constant 0 : index
    %767 = vector.load %arg15[%c0_176, %c0_177] : memref<32x128xf32, #tpu.memory_space<vmem>>, vector<32x128xf32>
    %cst_178 = arith.constant dense<0.000000e+00> : vector<16x128xf32>
    %768 = tpu.matmul %766, %767, %cst_178 {dimension_numbers = #tpu.dot_dimension_numbers<[1], [0], [0], [1], [0, 0, 1, 1], [], []>} : vector<16x32xf32>, vector<32x128xf32>, vector<16x128xf32> -> vector<16x128xf32>
    %c0_179 = arith.constant 0 : index
    %c0_180 = arith.constant 0 : index
    %769 = vector.load %arg17[%c0_179, %c0_180] : memref<1x128xf32, #tpu.memory_space<vmem>>, vector<1x128xf32>
    %770 = vector.broadcast %769 : vector<1x128xf32> to vector<16x128xf32>
    %771 = arith.addf %768, %770 : vector<16x128xf32>
    %c0_181 = arith.constant 0 : index
    %c0_182 = arith.constant 0 : index
    %772 = vector.load %arg16[%c0_181, %c0_182] : memref<32x128xf32, #tpu.memory_space<vmem>>, vector<32x128xf32>
    %c0_183 = arith.constant 0 : index
    %c0_184 = arith.constant 0 : index
    %773 = vector.load %arg18[%c0_183, %c0_184] : memref<1x32xf32, #tpu.memory_space<vmem>>, vector<1x32xf32>
    %774 = vector.shape_cast %773 : vector<1x32xf32> to vector<1x32xf32>
    %775 = vector.broadcast %774 : vector<1x32xf32> to vector<2x32xf32>
    %776 = vector.extract_strided_slice %771 {offsets = [0, 0], sizes = [2, 128], strides = [1, 1]} : vector<16x128xf32> to vector<2x128xf32>
    %cst_185 = arith.constant dense<0.000000e+00> : vector<2x128xf32>
    %777 = tpu.matmul %256, %772, %cst_185 {dimension_numbers = #tpu.dot_dimension_numbers<[1], [0], [0], [1], [0, 0, 1, 1], [], []>} : vector<2x32xf32>, vector<32x128xf32>, vector<2x128xf32> -> vector<2x128xf32>
    %778 = vector.extract_strided_slice %776 {offsets = [0, 0], sizes = [2, 32], strides = [1, 1]} : vector<2x128xf32> to vector<2x32xf32>
    %779 = vector.extract_strided_slice %777 {offsets = [0, 0], sizes = [2, 32], strides = [1, 1]} : vector<2x128xf32> to vector<2x32xf32>
    %780 = arith.addf %778, %779 : vector<2x32xf32>
    %781 = arith.negf %780 : vector<2x32xf32>
    %782 = math.exp %781 : vector<2x32xf32>
    %cst_186 = arith.constant 1.000000e+00 : f32
    %783 = vector.broadcast %cst_186 : f32 to vector<2x32xf32>
    %784 = arith.addf %783, %782 : vector<2x32xf32>
    %785 = arith.divf %783, %784 : vector<2x32xf32>
    %786 = vector.extract_strided_slice %776 {offsets = [0, 32], sizes = [2, 32], strides = [1, 1]} : vector<2x128xf32> to vector<2x32xf32>
    %787 = vector.extract_strided_slice %777 {offsets = [0, 32], sizes = [2, 32], strides = [1, 1]} : vector<2x128xf32> to vector<2x32xf32>
    %788 = arith.addf %786, %787 : vector<2x32xf32>
    %789 = arith.negf %788 : vector<2x32xf32>
    %790 = math.exp %789 : vector<2x32xf32>
    %cst_187 = arith.constant 1.000000e+00 : f32
    %791 = vector.broadcast %cst_187 : f32 to vector<2x32xf32>
    %792 = arith.addf %791, %790 : vector<2x32xf32>
    %793 = arith.divf %791, %792 : vector<2x32xf32>
    %794 = vector.extract_strided_slice %776 {offsets = [0, 64], sizes = [2, 32], strides = [1, 1]} : vector<2x128xf32> to vector<2x32xf32>
    %795 = vector.extract_strided_slice %777 {offsets = [0, 64], sizes = [2, 32], strides = [1, 1]} : vector<2x128xf32> to vector<2x32xf32>
    %796 = arith.addf %795, %775 : vector<2x32xf32>
    %797 = arith.mulf %785, %796 : vector<2x32xf32>
    %798 = arith.addf %794, %797 : vector<2x32xf32>
    %799 = math.tanh %798 : vector<2x32xf32>
    %cst_188 = arith.constant 1.000000e+00 : f32
    %800 = vector.broadcast %cst_188 : f32 to vector<2x32xf32>
    %801 = arith.subf %800, %793 : vector<2x32xf32>
    %802 = arith.mulf %801, %799 : vector<2x32xf32>
    %803 = arith.mulf %793, %256 : vector<2x32xf32>
    %804 = arith.addf %802, %803 : vector<2x32xf32>
    %c0_189 = arith.constant 0 : index
    %c0_190 = arith.constant 0 : index
    %805 = vector.load %arg30[%c0_189, %c0_190] : memref<16x32xf32, #tpu.memory_space<vmem>>, vector<2x32xf32>
    tpu.vector_store %arg30[%c0_189, %c0_190], %804 {strides = array<i32>} : memref<16x32xf32, #tpu.memory_space<vmem>>, vector<2x32xf32>,
    %806 = vector.extract_strided_slice %771 {offsets = [2, 0], sizes = [2, 128], strides = [1, 1]} : vector<16x128xf32> to vector<2x128xf32>
    %cst_191 = arith.constant dense<0.000000e+00> : vector<2x128xf32>
    %807 = tpu.matmul %804, %772, %cst_191 {dimension_numbers = #tpu.dot_dimension_numbers<[1], [0], [0], [1], [0, 0, 1, 1], [], []>} : vector<2x32xf32>, vector<32x128xf32>, vector<2x128xf32> -> vector<2x128xf32>
    %808 = vector.extract_strided_slice %806 {offsets = [0, 0], sizes = [2, 32], strides = [1, 1]} : vector<2x128xf32> to vector<2x32xf32>
    %809 = vector.extract_strided_slice %807 {offsets = [0, 0], sizes = [2, 32], strides = [1, 1]} : vector<2x128xf32> to vector<2x32xf32>
    %810 = arith.addf %808, %809 : vector<2x32xf32>
    %811 = arith.negf %810 : vector<2x32xf32>
    %812 = math.exp %811 : vector<2x32xf32>
    %cst_192 = arith.constant 1.000000e+00 : f32
    %813 = vector.broadcast %cst_192 : f32 to vector<2x32xf32>
    %814 = arith.addf %813, %812 : vector<2x32xf32>
    %815 = arith.divf %813, %814 : vector<2x32xf32>
    %816 = vector.extract_strided_slice %806 {offsets = [0, 32], sizes = [2, 32], strides = [1, 1]} : vector<2x128xf32> to vector<2x32xf32>
    %817 = vector.extract_strided_slice %807 {offsets = [0, 32], sizes = [2, 32], strides = [1, 1]} : vector<2x128xf32> to vector<2x32xf32>
    %818 = arith.addf %816, %817 : vector<2x32xf32>
    %819 = arith.negf %818 : vector<2x32xf32>
    %820 = math.exp %819 : vector<2x32xf32>
    %cst_193 = arith.constant 1.000000e+00 : f32
    %821 = vector.broadcast %cst_193 : f32 to vector<2x32xf32>
    %822 = arith.addf %821, %820 : vector<2x32xf32>
    %823 = arith.divf %821, %822 : vector<2x32xf32>
    %824 = vector.extract_strided_slice %806 {offsets = [0, 64], sizes = [2, 32], strides = [1, 1]} : vector<2x128xf32> to vector<2x32xf32>
    %825 = vector.extract_strided_slice %807 {offsets = [0, 64], sizes = [2, 32], strides = [1, 1]} : vector<2x128xf32> to vector<2x32xf32>
    %826 = arith.addf %825, %775 : vector<2x32xf32>
    %827 = arith.mulf %815, %826 : vector<2x32xf32>
    %828 = arith.addf %824, %827 : vector<2x32xf32>
    %829 = math.tanh %828 : vector<2x32xf32>
    %cst_194 = arith.constant 1.000000e+00 : f32
    %830 = vector.broadcast %cst_194 : f32 to vector<2x32xf32>
    %831 = arith.subf %830, %823 : vector<2x32xf32>
    %832 = arith.mulf %831, %829 : vector<2x32xf32>
    %833 = arith.mulf %823, %804 : vector<2x32xf32>
    %834 = arith.addf %832, %833 : vector<2x32xf32>
    %c2_195 = arith.constant 2 : index
    %c0_196 = arith.constant 0 : index
    %835 = vector.load %arg30[%c2_195, %c0_196] : memref<16x32xf32, #tpu.memory_space<vmem>>, vector<2x32xf32>
    tpu.vector_store %arg30[%c2_195, %c0_196], %834 {strides = array<i32>} : memref<16x32xf32, #tpu.memory_space<vmem>>, vector<2x32xf32>,
    %836 = vector.extract_strided_slice %771 {offsets = [4, 0], sizes = [2, 128], strides = [1, 1]} : vector<16x128xf32> to vector<2x128xf32>
    %cst_197 = arith.constant dense<0.000000e+00> : vector<2x128xf32>
    %837 = tpu.matmul %834, %772, %cst_197 {dimension_numbers = #tpu.dot_dimension_numbers<[1], [0], [0], [1], [0, 0, 1, 1], [], []>} : vector<2x32xf32>, vector<32x128xf32>, vector<2x128xf32> -> vector<2x128xf32>
    %838 = vector.extract_strided_slice %836 {offsets = [0, 0], sizes = [2, 32], strides = [1, 1]} : vector<2x128xf32> to vector<2x32xf32>
    %839 = vector.extract_strided_slice %837 {offsets = [0, 0], sizes = [2, 32], strides = [1, 1]} : vector<2x128xf32> to vector<2x32xf32>
    %840 = arith.addf %838, %839 : vector<2x32xf32>
    %841 = arith.negf %840 : vector<2x32xf32>
    %842 = math.exp %841 : vector<2x32xf32>
    %cst_198 = arith.constant 1.000000e+00 : f32
    %843 = vector.broadcast %cst_198 : f32 to vector<2x32xf32>
    %844 = arith.addf %843, %842 : vector<2x32xf32>
    %845 = arith.divf %843, %844 : vector<2x32xf32>
    %846 = vector.extract_strided_slice %836 {offsets = [0, 32], sizes = [2, 32], strides = [1, 1]} : vector<2x128xf32> to vector<2x32xf32>
    %847 = vector.extract_strided_slice %837 {offsets = [0, 32], sizes = [2, 32], strides = [1, 1]} : vector<2x128xf32> to vector<2x32xf32>
    %848 = arith.addf %846, %847 : vector<2x32xf32>
    %849 = arith.negf %848 : vector<2x32xf32>
    %850 = math.exp %849 : vector<2x32xf32>
    %cst_199 = arith.constant 1.000000e+00 : f32
    %851 = vector.broadcast %cst_199 : f32 to vector<2x32xf32>
    %852 = arith.addf %851, %850 : vector<2x32xf32>
    %853 = arith.divf %851, %852 : vector<2x32xf32>
    %854 = vector.extract_strided_slice %836 {offsets = [0, 64], sizes = [2, 32], strides = [1, 1]} : vector<2x128xf32> to vector<2x32xf32>
    %855 = vector.extract_strided_slice %837 {offsets = [0, 64], sizes = [2, 32], strides = [1, 1]} : vector<2x128xf32> to vector<2x32xf32>
    %856 = arith.addf %855, %775 : vector<2x32xf32>
    %857 = arith.mulf %845, %856 : vector<2x32xf32>
    %858 = arith.addf %854, %857 : vector<2x32xf32>
    %859 = math.tanh %858 : vector<2x32xf32>
    %cst_200 = arith.constant 1.000000e+00 : f32
    %860 = vector.broadcast %cst_200 : f32 to vector<2x32xf32>
    %861 = arith.subf %860, %853 : vector<2x32xf32>
    %862 = arith.mulf %861, %859 : vector<2x32xf32>
    %863 = arith.mulf %853, %834 : vector<2x32xf32>
    %864 = arith.addf %862, %863 : vector<2x32xf32>
    %c4_201 = arith.constant 4 : index
    %c0_202 = arith.constant 0 : index
    %865 = vector.load %arg30[%c4_201, %c0_202] : memref<16x32xf32, #tpu.memory_space<vmem>>, vector<2x32xf32>
    tpu.vector_store %arg30[%c4_201, %c0_202], %864 {strides = array<i32>} : memref<16x32xf32, #tpu.memory_space<vmem>>, vector<2x32xf32>,
    %866 = vector.extract_strided_slice %771 {offsets = [6, 0], sizes = [2, 128], strides = [1, 1]} : vector<16x128xf32> to vector<2x128xf32>
    %cst_203 = arith.constant dense<0.000000e+00> : vector<2x128xf32>
    %867 = tpu.matmul %864, %772, %cst_203 {dimension_numbers = #tpu.dot_dimension_numbers<[1], [0], [0], [1], [0, 0, 1, 1], [], []>} : vector<2x32xf32>, vector<32x128xf32>, vector<2x128xf32> -> vector<2x128xf32>
    %868 = vector.extract_strided_slice %866 {offsets = [0, 0], sizes = [2, 32], strides = [1, 1]} : vector<2x128xf32> to vector<2x32xf32>
    %869 = vector.extract_strided_slice %867 {offsets = [0, 0], sizes = [2, 32], strides = [1, 1]} : vector<2x128xf32> to vector<2x32xf32>
    %870 = arith.addf %868, %869 : vector<2x32xf32>
    %871 = arith.negf %870 : vector<2x32xf32>
    %872 = math.exp %871 : vector<2x32xf32>
    %cst_204 = arith.constant 1.000000e+00 : f32
    %873 = vector.broadcast %cst_204 : f32 to vector<2x32xf32>
    %874 = arith.addf %873, %872 : vector<2x32xf32>
    %875 = arith.divf %873, %874 : vector<2x32xf32>
    %876 = vector.extract_strided_slice %866 {offsets = [0, 32], sizes = [2, 32], strides = [1, 1]} : vector<2x128xf32> to vector<2x32xf32>
    %877 = vector.extract_strided_slice %867 {offsets = [0, 32], sizes = [2, 32], strides = [1, 1]} : vector<2x128xf32> to vector<2x32xf32>
    %878 = arith.addf %876, %877 : vector<2x32xf32>
    %879 = arith.negf %878 : vector<2x32xf32>
    %880 = math.exp %879 : vector<2x32xf32>
    %cst_205 = arith.constant 1.000000e+00 : f32
    %881 = vector.broadcast %cst_205 : f32 to vector<2x32xf32>
    %882 = arith.addf %881, %880 : vector<2x32xf32>
    %883 = arith.divf %881, %882 : vector<2x32xf32>
    %884 = vector.extract_strided_slice %866 {offsets = [0, 64], sizes = [2, 32], strides = [1, 1]} : vector<2x128xf32> to vector<2x32xf32>
    %885 = vector.extract_strided_slice %867 {offsets = [0, 64], sizes = [2, 32], strides = [1, 1]} : vector<2x128xf32> to vector<2x32xf32>
    %886 = arith.addf %885, %775 : vector<2x32xf32>
    %887 = arith.mulf %875, %886 : vector<2x32xf32>
    %888 = arith.addf %884, %887 : vector<2x32xf32>
    %889 = math.tanh %888 : vector<2x32xf32>
    %cst_206 = arith.constant 1.000000e+00 : f32
    %890 = vector.broadcast %cst_206 : f32 to vector<2x32xf32>
    %891 = arith.subf %890, %883 : vector<2x32xf32>
    %892 = arith.mulf %891, %889 : vector<2x32xf32>
    %893 = arith.mulf %883, %864 : vector<2x32xf32>
    %894 = arith.addf %892, %893 : vector<2x32xf32>
    %c6_207 = arith.constant 6 : index
    %c0_208 = arith.constant 0 : index
    %895 = vector.load %arg30[%c6_207, %c0_208] : memref<16x32xf32, #tpu.memory_space<vmem>>, vector<2x32xf32>
    tpu.vector_store %arg30[%c6_207, %c0_208], %894 {strides = array<i32>} : memref<16x32xf32, #tpu.memory_space<vmem>>, vector<2x32xf32>,
    %896 = vector.extract_strided_slice %771 {offsets = [8, 0], sizes = [2, 128], strides = [1, 1]} : vector<16x128xf32> to vector<2x128xf32>
    %cst_209 = arith.constant dense<0.000000e+00> : vector<2x128xf32>
    %897 = tpu.matmul %894, %772, %cst_209 {dimension_numbers = #tpu.dot_dimension_numbers<[1], [0], [0], [1], [0, 0, 1, 1], [], []>} : vector<2x32xf32>, vector<32x128xf32>, vector<2x128xf32> -> vector<2x128xf32>
    %898 = vector.extract_strided_slice %896 {offsets = [0, 0], sizes = [2, 32], strides = [1, 1]} : vector<2x128xf32> to vector<2x32xf32>
    %899 = vector.extract_strided_slice %897 {offsets = [0, 0], sizes = [2, 32], strides = [1, 1]} : vector<2x128xf32> to vector<2x32xf32>
    %900 = arith.addf %898, %899 : vector<2x32xf32>
    %901 = arith.negf %900 : vector<2x32xf32>
    %902 = math.exp %901 : vector<2x32xf32>
    %cst_210 = arith.constant 1.000000e+00 : f32
    %903 = vector.broadcast %cst_210 : f32 to vector<2x32xf32>
    %904 = arith.addf %903, %902 : vector<2x32xf32>
    %905 = arith.divf %903, %904 : vector<2x32xf32>
    %906 = vector.extract_strided_slice %896 {offsets = [0, 32], sizes = [2, 32], strides = [1, 1]} : vector<2x128xf32> to vector<2x32xf32>
    %907 = vector.extract_strided_slice %897 {offsets = [0, 32], sizes = [2, 32], strides = [1, 1]} : vector<2x128xf32> to vector<2x32xf32>
    %908 = arith.addf %906, %907 : vector<2x32xf32>
    %909 = arith.negf %908 : vector<2x32xf32>
    %910 = math.exp %909 : vector<2x32xf32>
    %cst_211 = arith.constant 1.000000e+00 : f32
    %911 = vector.broadcast %cst_211 : f32 to vector<2x32xf32>
    %912 = arith.addf %911, %910 : vector<2x32xf32>
    %913 = arith.divf %911, %912 : vector<2x32xf32>
    %914 = vector.extract_strided_slice %896 {offsets = [0, 64], sizes = [2, 32], strides = [1, 1]} : vector<2x128xf32> to vector<2x32xf32>
    %915 = vector.extract_strided_slice %897 {offsets = [0, 64], sizes = [2, 32], strides = [1, 1]} : vector<2x128xf32> to vector<2x32xf32>
    %916 = arith.addf %915, %775 : vector<2x32xf32>
    %917 = arith.mulf %905, %916 : vector<2x32xf32>
    %918 = arith.addf %914, %917 : vector<2x32xf32>
    %919 = math.tanh %918 : vector<2x32xf32>
    %cst_212 = arith.constant 1.000000e+00 : f32
    %920 = vector.broadcast %cst_212 : f32 to vector<2x32xf32>
    %921 = arith.subf %920, %913 : vector<2x32xf32>
    %922 = arith.mulf %921, %919 : vector<2x32xf32>
    %923 = arith.mulf %913, %894 : vector<2x32xf32>
    %924 = arith.addf %922, %923 : vector<2x32xf32>
    %c8_213 = arith.constant 8 : index
    %c0_214 = arith.constant 0 : index
    %925 = vector.load %arg30[%c8_213, %c0_214] : memref<16x32xf32, #tpu.memory_space<vmem>>, vector<2x32xf32>
    tpu.vector_store %arg30[%c8_213, %c0_214], %924 {strides = array<i32>} : memref<16x32xf32, #tpu.memory_space<vmem>>, vector<2x32xf32>,
    %926 = vector.extract_strided_slice %771 {offsets = [10, 0], sizes = [2, 128], strides = [1, 1]} : vector<16x128xf32> to vector<2x128xf32>
    %cst_215 = arith.constant dense<0.000000e+00> : vector<2x128xf32>
    %927 = tpu.matmul %924, %772, %cst_215 {dimension_numbers = #tpu.dot_dimension_numbers<[1], [0], [0], [1], [0, 0, 1, 1], [], []>} : vector<2x32xf32>, vector<32x128xf32>, vector<2x128xf32> -> vector<2x128xf32>
    %928 = vector.extract_strided_slice %926 {offsets = [0, 0], sizes = [2, 32], strides = [1, 1]} : vector<2x128xf32> to vector<2x32xf32>
    %929 = vector.extract_strided_slice %927 {offsets = [0, 0], sizes = [2, 32], strides = [1, 1]} : vector<2x128xf32> to vector<2x32xf32>
    %930 = arith.addf %928, %929 : vector<2x32xf32>
    %931 = arith.negf %930 : vector<2x32xf32>
    %932 = math.exp %931 : vector<2x32xf32>
    %cst_216 = arith.constant 1.000000e+00 : f32
    %933 = vector.broadcast %cst_216 : f32 to vector<2x32xf32>
    %934 = arith.addf %933, %932 : vector<2x32xf32>
    %935 = arith.divf %933, %934 : vector<2x32xf32>
    %936 = vector.extract_strided_slice %926 {offsets = [0, 32], sizes = [2, 32], strides = [1, 1]} : vector<2x128xf32> to vector<2x32xf32>
    %937 = vector.extract_strided_slice %927 {offsets = [0, 32], sizes = [2, 32], strides = [1, 1]} : vector<2x128xf32> to vector<2x32xf32>
    %938 = arith.addf %936, %937 : vector<2x32xf32>
    %939 = arith.negf %938 : vector<2x32xf32>
    %940 = math.exp %939 : vector<2x32xf32>
    %cst_217 = arith.constant 1.000000e+00 : f32
    %941 = vector.broadcast %cst_217 : f32 to vector<2x32xf32>
    %942 = arith.addf %941, %940 : vector<2x32xf32>
    %943 = arith.divf %941, %942 : vector<2x32xf32>
    %944 = vector.extract_strided_slice %926 {offsets = [0, 64], sizes = [2, 32], strides = [1, 1]} : vector<2x128xf32> to vector<2x32xf32>
    %945 = vector.extract_strided_slice %927 {offsets = [0, 64], sizes = [2, 32], strides = [1, 1]} : vector<2x128xf32> to vector<2x32xf32>
    %946 = arith.addf %945, %775 : vector<2x32xf32>
    %947 = arith.mulf %935, %946 : vector<2x32xf32>
    %948 = arith.addf %944, %947 : vector<2x32xf32>
    %949 = math.tanh %948 : vector<2x32xf32>
    %cst_218 = arith.constant 1.000000e+00 : f32
    %950 = vector.broadcast %cst_218 : f32 to vector<2x32xf32>
    %951 = arith.subf %950, %943 : vector<2x32xf32>
    %952 = arith.mulf %951, %949 : vector<2x32xf32>
    %953 = arith.mulf %943, %924 : vector<2x32xf32>
    %954 = arith.addf %952, %953 : vector<2x32xf32>
    %c10_219 = arith.constant 10 : index
    %c0_220 = arith.constant 0 : index
    %955 = vector.load %arg30[%c10_219, %c0_220] : memref<16x32xf32, #tpu.memory_space<vmem>>, vector<2x32xf32>
    tpu.vector_store %arg30[%c10_219, %c0_220], %954 {strides = array<i32>} : memref<16x32xf32, #tpu.memory_space<vmem>>, vector<2x32xf32>,
    %956 = vector.extract_strided_slice %771 {offsets = [12, 0], sizes = [2, 128], strides = [1, 1]} : vector<16x128xf32> to vector<2x128xf32>
    %cst_221 = arith.constant dense<0.000000e+00> : vector<2x128xf32>
    %957 = tpu.matmul %954, %772, %cst_221 {dimension_numbers = #tpu.dot_dimension_numbers<[1], [0], [0], [1], [0, 0, 1, 1], [], []>} : vector<2x32xf32>, vector<32x128xf32>, vector<2x128xf32> -> vector<2x128xf32>
    %958 = vector.extract_strided_slice %956 {offsets = [0, 0], sizes = [2, 32], strides = [1, 1]} : vector<2x128xf32> to vector<2x32xf32>
    %959 = vector.extract_strided_slice %957 {offsets = [0, 0], sizes = [2, 32], strides = [1, 1]} : vector<2x128xf32> to vector<2x32xf32>
    %960 = arith.addf %958, %959 : vector<2x32xf32>
    %961 = arith.negf %960 : vector<2x32xf32>
    %962 = math.exp %961 : vector<2x32xf32>
    %cst_222 = arith.constant 1.000000e+00 : f32
    %963 = vector.broadcast %cst_222 : f32 to vector<2x32xf32>
    %964 = arith.addf %963, %962 : vector<2x32xf32>
    %965 = arith.divf %963, %964 : vector<2x32xf32>
    %966 = vector.extract_strided_slice %956 {offsets = [0, 32], sizes = [2, 32], strides = [1, 1]} : vector<2x128xf32> to vector<2x32xf32>
    %967 = vector.extract_strided_slice %957 {offsets = [0, 32], sizes = [2, 32], strides = [1, 1]} : vector<2x128xf32> to vector<2x32xf32>
    %968 = arith.addf %966, %967 : vector<2x32xf32>
    %969 = arith.negf %968 : vector<2x32xf32>
    %970 = math.exp %969 : vector<2x32xf32>
    %cst_223 = arith.constant 1.000000e+00 : f32
    %971 = vector.broadcast %cst_223 : f32 to vector<2x32xf32>
    %972 = arith.addf %971, %970 : vector<2x32xf32>
    %973 = arith.divf %971, %972 : vector<2x32xf32>
    %974 = vector.extract_strided_slice %956 {offsets = [0, 64], sizes = [2, 32], strides = [1, 1]} : vector<2x128xf32> to vector<2x32xf32>
    %975 = vector.extract_strided_slice %957 {offsets = [0, 64], sizes = [2, 32], strides = [1, 1]} : vector<2x128xf32> to vector<2x32xf32>
    %976 = arith.addf %975, %775 : vector<2x32xf32>
    %977 = arith.mulf %965, %976 : vector<2x32xf32>
    %978 = arith.addf %974, %977 : vector<2x32xf32>
    %979 = math.tanh %978 : vector<2x32xf32>
    %cst_224 = arith.constant 1.000000e+00 : f32
    %980 = vector.broadcast %cst_224 : f32 to vector<2x32xf32>
    %981 = arith.subf %980, %973 : vector<2x32xf32>
    %982 = arith.mulf %981, %979 : vector<2x32xf32>
    %983 = arith.mulf %973, %954 : vector<2x32xf32>
    %984 = arith.addf %982, %983 : vector<2x32xf32>
    %c12_225 = arith.constant 12 : index
    %c0_226 = arith.constant 0 : index
    %985 = vector.load %arg30[%c12_225, %c0_226] : memref<16x32xf32, #tpu.memory_space<vmem>>, vector<2x32xf32>
    tpu.vector_store %arg30[%c12_225, %c0_226], %984 {strides = array<i32>} : memref<16x32xf32, #tpu.memory_space<vmem>>, vector<2x32xf32>,
    %986 = vector.extract_strided_slice %771 {offsets = [14, 0], sizes = [2, 128], strides = [1, 1]} : vector<16x128xf32> to vector<2x128xf32>
    %cst_227 = arith.constant dense<0.000000e+00> : vector<2x128xf32>
    %987 = tpu.matmul %984, %772, %cst_227 {dimension_numbers = #tpu.dot_dimension_numbers<[1], [0], [0], [1], [0, 0, 1, 1], [], []>} : vector<2x32xf32>, vector<32x128xf32>, vector<2x128xf32> -> vector<2x128xf32>
    %988 = vector.extract_strided_slice %986 {offsets = [0, 0], sizes = [2, 32], strides = [1, 1]} : vector<2x128xf32> to vector<2x32xf32>
    %989 = vector.extract_strided_slice %987 {offsets = [0, 0], sizes = [2, 32], strides = [1, 1]} : vector<2x128xf32> to vector<2x32xf32>
    %990 = arith.addf %988, %989 : vector<2x32xf32>
    %991 = arith.negf %990 : vector<2x32xf32>
    %992 = math.exp %991 : vector<2x32xf32>
    %cst_228 = arith.constant 1.000000e+00 : f32
    %993 = vector.broadcast %cst_228 : f32 to vector<2x32xf32>
    %994 = arith.addf %993, %992 : vector<2x32xf32>
    %995 = arith.divf %993, %994 : vector<2x32xf32>
    %996 = vector.extract_strided_slice %986 {offsets = [0, 32], sizes = [2, 32], strides = [1, 1]} : vector<2x128xf32> to vector<2x32xf32>
    %997 = vector.extract_strided_slice %987 {offsets = [0, 32], sizes = [2, 32], strides = [1, 1]} : vector<2x128xf32> to vector<2x32xf32>
    %998 = arith.addf %996, %997 : vector<2x32xf32>
    %999 = arith.negf %998 : vector<2x32xf32>
    %1000 = math.exp %999 : vector<2x32xf32>
    %cst_229 = arith.constant 1.000000e+00 : f32
    %1001 = vector.broadcast %cst_229 : f32 to vector<2x32xf32>
    %1002 = arith.addf %1001, %1000 : vector<2x32xf32>
    %1003 = arith.divf %1001, %1002 : vector<2x32xf32>
    %1004 = vector.extract_strided_slice %986 {offsets = [0, 64], sizes = [2, 32], strides = [1, 1]} : vector<2x128xf32> to vector<2x32xf32>
    %1005 = vector.extract_strided_slice %987 {offsets = [0, 64], sizes = [2, 32], strides = [1, 1]} : vector<2x128xf32> to vector<2x32xf32>
    %1006 = arith.addf %1005, %775 : vector<2x32xf32>
    %1007 = arith.mulf %995, %1006 : vector<2x32xf32>
    %1008 = arith.addf %1004, %1007 : vector<2x32xf32>
    %1009 = math.tanh %1008 : vector<2x32xf32>
    %cst_230 = arith.constant 1.000000e+00 : f32
    %1010 = vector.broadcast %cst_230 : f32 to vector<2x32xf32>
    %1011 = arith.subf %1010, %1003 : vector<2x32xf32>
    %1012 = arith.mulf %1011, %1009 : vector<2x32xf32>
    %1013 = arith.mulf %1003, %984 : vector<2x32xf32>
    %1014 = arith.addf %1012, %1013 : vector<2x32xf32>
    %c14_231 = arith.constant 14 : index
    %c0_232 = arith.constant 0 : index
    %1015 = vector.load %arg30[%c14_231, %c0_232] : memref<16x32xf32, #tpu.memory_space<vmem>>, vector<2x32xf32>
    tpu.vector_store %arg30[%c14_231, %c0_232], %1014 {strides = array<i32>} : memref<16x32xf32, #tpu.memory_space<vmem>>, vector<2x32xf32>,
    %c0_233 = arith.constant 0 : index
    %c0_234 = arith.constant 0 : index
    %1016 = vector.load %arg30[%c0_233, %c0_234] : memref<16x32xf32, #tpu.memory_space<vmem>>, vector<16x32xf32>
    %c0_235 = arith.constant 0 : index
    %c0_236 = arith.constant 0 : index
    %1017 = vector.load %arg19[%c0_235, %c0_236] : memref<32x128xf32, #tpu.memory_space<vmem>>, vector<32x128xf32>
    %cst_237 = arith.constant dense<0.000000e+00> : vector<16x128xf32>
    %1018 = tpu.matmul %1016, %1017, %cst_237 {dimension_numbers = #tpu.dot_dimension_numbers<[1], [0], [0], [1], [0, 0, 1, 1], [], []>} : vector<16x32xf32>, vector<32x128xf32>, vector<16x128xf32> -> vector<16x128xf32>
    %c0_238 = arith.constant 0 : index
    %c0_239 = arith.constant 0 : index
    %1019 = vector.load %arg21[%c0_238, %c0_239] : memref<1x128xf32, #tpu.memory_space<vmem>>, vector<1x128xf32>
    %1020 = vector.broadcast %1019 : vector<1x128xf32> to vector<16x128xf32>
    %1021 = arith.addf %1018, %1020 : vector<16x128xf32>
    %c0_240 = arith.constant 0 : index
    %c0_241 = arith.constant 0 : index
    %1022 = vector.load %arg20[%c0_240, %c0_241] : memref<32x128xf32, #tpu.memory_space<vmem>>, vector<32x128xf32>
    %c0_242 = arith.constant 0 : index
    %c0_243 = arith.constant 0 : index
    %1023 = vector.load %arg22[%c0_242, %c0_243] : memref<1x32xf32, #tpu.memory_space<vmem>>, vector<1x32xf32>
    %1024 = vector.shape_cast %1023 : vector<1x32xf32> to vector<1x32xf32>
    %1025 = vector.broadcast %1024 : vector<1x32xf32> to vector<2x32xf32>
    %1026 = vector.extract_strided_slice %1021 {offsets = [0, 0], sizes = [2, 128], strides = [1, 1]} : vector<16x128xf32> to vector<2x128xf32>
    %cst_244 = arith.constant dense<0.000000e+00> : vector<2x128xf32>
    %1027 = tpu.matmul %506, %1022, %cst_244 {dimension_numbers = #tpu.dot_dimension_numbers<[1], [0], [0], [1], [0, 0, 1, 1], [], []>} : vector<2x32xf32>, vector<32x128xf32>, vector<2x128xf32> -> vector<2x128xf32>
    %1028 = vector.extract_strided_slice %1026 {offsets = [0, 0], sizes = [2, 32], strides = [1, 1]} : vector<2x128xf32> to vector<2x32xf32>
    %1029 = vector.extract_strided_slice %1027 {offsets = [0, 0], sizes = [2, 32], strides = [1, 1]} : vector<2x128xf32> to vector<2x32xf32>
    %1030 = arith.addf %1028, %1029 : vector<2x32xf32>
    %1031 = arith.negf %1030 : vector<2x32xf32>
    %1032 = math.exp %1031 : vector<2x32xf32>
    %cst_245 = arith.constant 1.000000e+00 : f32
    %1033 = vector.broadcast %cst_245 : f32 to vector<2x32xf32>
    %1034 = arith.addf %1033, %1032 : vector<2x32xf32>
    %1035 = arith.divf %1033, %1034 : vector<2x32xf32>
    %1036 = vector.extract_strided_slice %1026 {offsets = [0, 32], sizes = [2, 32], strides = [1, 1]} : vector<2x128xf32> to vector<2x32xf32>
    %1037 = vector.extract_strided_slice %1027 {offsets = [0, 32], sizes = [2, 32], strides = [1, 1]} : vector<2x128xf32> to vector<2x32xf32>
    %1038 = arith.addf %1036, %1037 : vector<2x32xf32>
    %1039 = arith.negf %1038 : vector<2x32xf32>
    %1040 = math.exp %1039 : vector<2x32xf32>
    %cst_246 = arith.constant 1.000000e+00 : f32
    %1041 = vector.broadcast %cst_246 : f32 to vector<2x32xf32>
    %1042 = arith.addf %1041, %1040 : vector<2x32xf32>
    %1043 = arith.divf %1041, %1042 : vector<2x32xf32>
    %1044 = vector.extract_strided_slice %1026 {offsets = [0, 64], sizes = [2, 32], strides = [1, 1]} : vector<2x128xf32> to vector<2x32xf32>
    %1045 = vector.extract_strided_slice %1027 {offsets = [0, 64], sizes = [2, 32], strides = [1, 1]} : vector<2x128xf32> to vector<2x32xf32>
    %1046 = arith.addf %1045, %1025 : vector<2x32xf32>
    %1047 = arith.mulf %1035, %1046 : vector<2x32xf32>
    %1048 = arith.addf %1044, %1047 : vector<2x32xf32>
    %1049 = math.tanh %1048 : vector<2x32xf32>
    %cst_247 = arith.constant 1.000000e+00 : f32
    %1050 = vector.broadcast %cst_247 : f32 to vector<2x32xf32>
    %1051 = arith.subf %1050, %1043 : vector<2x32xf32>
    %1052 = arith.mulf %1051, %1049 : vector<2x32xf32>
    %1053 = arith.mulf %1043, %506 : vector<2x32xf32>
    %1054 = arith.addf %1052, %1053 : vector<2x32xf32>
    %c0_248 = arith.constant 0 : index
    %c0_249 = arith.constant 0 : index
    %1055 = vector.load %arg30[%c0_248, %c0_249] : memref<16x32xf32, #tpu.memory_space<vmem>>, vector<2x32xf32>
    tpu.vector_store %arg30[%c0_248, %c0_249], %1054 {strides = array<i32>} : memref<16x32xf32, #tpu.memory_space<vmem>>, vector<2x32xf32>,
    %1056 = vector.extract_strided_slice %1021 {offsets = [2, 0], sizes = [2, 128], strides = [1, 1]} : vector<16x128xf32> to vector<2x128xf32>
    %cst_250 = arith.constant dense<0.000000e+00> : vector<2x128xf32>
    %1057 = tpu.matmul %1054, %1022, %cst_250 {dimension_numbers = #tpu.dot_dimension_numbers<[1], [0], [0], [1], [0, 0, 1, 1], [], []>} : vector<2x32xf32>, vector<32x128xf32>, vector<2x128xf32> -> vector<2x128xf32>
    %1058 = vector.extract_strided_slice %1056 {offsets = [0, 0], sizes = [2, 32], strides = [1, 1]} : vector<2x128xf32> to vector<2x32xf32>
    %1059 = vector.extract_strided_slice %1057 {offsets = [0, 0], sizes = [2, 32], strides = [1, 1]} : vector<2x128xf32> to vector<2x32xf32>
    %1060 = arith.addf %1058, %1059 : vector<2x32xf32>
    %1061 = arith.negf %1060 : vector<2x32xf32>
    %1062 = math.exp %1061 : vector<2x32xf32>
    %cst_251 = arith.constant 1.000000e+00 : f32
    %1063 = vector.broadcast %cst_251 : f32 to vector<2x32xf32>
    %1064 = arith.addf %1063, %1062 : vector<2x32xf32>
    %1065 = arith.divf %1063, %1064 : vector<2x32xf32>
    %1066 = vector.extract_strided_slice %1056 {offsets = [0, 32], sizes = [2, 32], strides = [1, 1]} : vector<2x128xf32> to vector<2x32xf32>
    %1067 = vector.extract_strided_slice %1057 {offsets = [0, 32], sizes = [2, 32], strides = [1, 1]} : vector<2x128xf32> to vector<2x32xf32>
    %1068 = arith.addf %1066, %1067 : vector<2x32xf32>
    %1069 = arith.negf %1068 : vector<2x32xf32>
    %1070 = math.exp %1069 : vector<2x32xf32>
    %cst_252 = arith.constant 1.000000e+00 : f32
    %1071 = vector.broadcast %cst_252 : f32 to vector<2x32xf32>
    %1072 = arith.addf %1071, %1070 : vector<2x32xf32>
    %1073 = arith.divf %1071, %1072 : vector<2x32xf32>
    %1074 = vector.extract_strided_slice %1056 {offsets = [0, 64], sizes = [2, 32], strides = [1, 1]} : vector<2x128xf32> to vector<2x32xf32>
    %1075 = vector.extract_strided_slice %1057 {offsets = [0, 64], sizes = [2, 32], strides = [1, 1]} : vector<2x128xf32> to vector<2x32xf32>
    %1076 = arith.addf %1075, %1025 : vector<2x32xf32>
    %1077 = arith.mulf %1065, %1076 : vector<2x32xf32>
    %1078 = arith.addf %1074, %1077 : vector<2x32xf32>
    %1079 = math.tanh %1078 : vector<2x32xf32>
    %cst_253 = arith.constant 1.000000e+00 : f32
    %1080 = vector.broadcast %cst_253 : f32 to vector<2x32xf32>
    %1081 = arith.subf %1080, %1073 : vector<2x32xf32>
    %1082 = arith.mulf %1081, %1079 : vector<2x32xf32>
    %1083 = arith.mulf %1073, %1054 : vector<2x32xf32>
    %1084 = arith.addf %1082, %1083 : vector<2x32xf32>
    %c2_254 = arith.constant 2 : index
    %c0_255 = arith.constant 0 : index
    %1085 = vector.load %arg30[%c2_254, %c0_255] : memref<16x32xf32, #tpu.memory_space<vmem>>, vector<2x32xf32>
    tpu.vector_store %arg30[%c2_254, %c0_255], %1084 {strides = array<i32>} : memref<16x32xf32, #tpu.memory_space<vmem>>, vector<2x32xf32>,
    %1086 = vector.extract_strided_slice %1021 {offsets = [4, 0], sizes = [2, 128], strides = [1, 1]} : vector<16x128xf32> to vector<2x128xf32>
    %cst_256 = arith.constant dense<0.000000e+00> : vector<2x128xf32>
    %1087 = tpu.matmul %1084, %1022, %cst_256 {dimension_numbers = #tpu.dot_dimension_numbers<[1], [0], [0], [1], [0, 0, 1, 1], [], []>} : vector<2x32xf32>, vector<32x128xf32>, vector<2x128xf32> -> vector<2x128xf32>
    %1088 = vector.extract_strided_slice %1086 {offsets = [0, 0], sizes = [2, 32], strides = [1, 1]} : vector<2x128xf32> to vector<2x32xf32>
    %1089 = vector.extract_strided_slice %1087 {offsets = [0, 0], sizes = [2, 32], strides = [1, 1]} : vector<2x128xf32> to vector<2x32xf32>
    %1090 = arith.addf %1088, %1089 : vector<2x32xf32>
    %1091 = arith.negf %1090 : vector<2x32xf32>
    %1092 = math.exp %1091 : vector<2x32xf32>
    %cst_257 = arith.constant 1.000000e+00 : f32
    %1093 = vector.broadcast %cst_257 : f32 to vector<2x32xf32>
    %1094 = arith.addf %1093, %1092 : vector<2x32xf32>
    %1095 = arith.divf %1093, %1094 : vector<2x32xf32>
    %1096 = vector.extract_strided_slice %1086 {offsets = [0, 32], sizes = [2, 32], strides = [1, 1]} : vector<2x128xf32> to vector<2x32xf32>
    %1097 = vector.extract_strided_slice %1087 {offsets = [0, 32], sizes = [2, 32], strides = [1, 1]} : vector<2x128xf32> to vector<2x32xf32>
    %1098 = arith.addf %1096, %1097 : vector<2x32xf32>
    %1099 = arith.negf %1098 : vector<2x32xf32>
    %1100 = math.exp %1099 : vector<2x32xf32>
    %cst_258 = arith.constant 1.000000e+00 : f32
    %1101 = vector.broadcast %cst_258 : f32 to vector<2x32xf32>
    %1102 = arith.addf %1101, %1100 : vector<2x32xf32>
    %1103 = arith.divf %1101, %1102 : vector<2x32xf32>
    %1104 = vector.extract_strided_slice %1086 {offsets = [0, 64], sizes = [2, 32], strides = [1, 1]} : vector<2x128xf32> to vector<2x32xf32>
    %1105 = vector.extract_strided_slice %1087 {offsets = [0, 64], sizes = [2, 32], strides = [1, 1]} : vector<2x128xf32> to vector<2x32xf32>
    %1106 = arith.addf %1105, %1025 : vector<2x32xf32>
    %1107 = arith.mulf %1095, %1106 : vector<2x32xf32>
    %1108 = arith.addf %1104, %1107 : vector<2x32xf32>
    %1109 = math.tanh %1108 : vector<2x32xf32>
    %cst_259 = arith.constant 1.000000e+00 : f32
    %1110 = vector.broadcast %cst_259 : f32 to vector<2x32xf32>
    %1111 = arith.subf %1110, %1103 : vector<2x32xf32>
    %1112 = arith.mulf %1111, %1109 : vector<2x32xf32>
    %1113 = arith.mulf %1103, %1084 : vector<2x32xf32>
    %1114 = arith.addf %1112, %1113 : vector<2x32xf32>
    %c4_260 = arith.constant 4 : index
    %c0_261 = arith.constant 0 : index
    %1115 = vector.load %arg30[%c4_260, %c0_261] : memref<16x32xf32, #tpu.memory_space<vmem>>, vector<2x32xf32>
    tpu.vector_store %arg30[%c4_260, %c0_261], %1114 {strides = array<i32>} : memref<16x32xf32, #tpu.memory_space<vmem>>, vector<2x32xf32>,
    %1116 = vector.extract_strided_slice %1021 {offsets = [6, 0], sizes = [2, 128], strides = [1, 1]} : vector<16x128xf32> to vector<2x128xf32>
    %cst_262 = arith.constant dense<0.000000e+00> : vector<2x128xf32>
    %1117 = tpu.matmul %1114, %1022, %cst_262 {dimension_numbers = #tpu.dot_dimension_numbers<[1], [0], [0], [1], [0, 0, 1, 1], [], []>} : vector<2x32xf32>, vector<32x128xf32>, vector<2x128xf32> -> vector<2x128xf32>
    %1118 = vector.extract_strided_slice %1116 {offsets = [0, 0], sizes = [2, 32], strides = [1, 1]} : vector<2x128xf32> to vector<2x32xf32>
    %1119 = vector.extract_strided_slice %1117 {offsets = [0, 0], sizes = [2, 32], strides = [1, 1]} : vector<2x128xf32> to vector<2x32xf32>
    %1120 = arith.addf %1118, %1119 : vector<2x32xf32>
    %1121 = arith.negf %1120 : vector<2x32xf32>
    %1122 = math.exp %1121 : vector<2x32xf32>
    %cst_263 = arith.constant 1.000000e+00 : f32
    %1123 = vector.broadcast %cst_263 : f32 to vector<2x32xf32>
    %1124 = arith.addf %1123, %1122 : vector<2x32xf32>
    %1125 = arith.divf %1123, %1124 : vector<2x32xf32>
    %1126 = vector.extract_strided_slice %1116 {offsets = [0, 32], sizes = [2, 32], strides = [1, 1]} : vector<2x128xf32> to vector<2x32xf32>
    %1127 = vector.extract_strided_slice %1117 {offsets = [0, 32], sizes = [2, 32], strides = [1, 1]} : vector<2x128xf32> to vector<2x32xf32>
    %1128 = arith.addf %1126, %1127 : vector<2x32xf32>
    %1129 = arith.negf %1128 : vector<2x32xf32>
    %1130 = math.exp %1129 : vector<2x32xf32>
    %cst_264 = arith.constant 1.000000e+00 : f32
    %1131 = vector.broadcast %cst_264 : f32 to vector<2x32xf32>
    %1132 = arith.addf %1131, %1130 : vector<2x32xf32>
    %1133 = arith.divf %1131, %1132 : vector<2x32xf32>
    %1134 = vector.extract_strided_slice %1116 {offsets = [0, 64], sizes = [2, 32], strides = [1, 1]} : vector<2x128xf32> to vector<2x32xf32>
    %1135 = vector.extract_strided_slice %1117 {offsets = [0, 64], sizes = [2, 32], strides = [1, 1]} : vector<2x128xf32> to vector<2x32xf32>
    %1136 = arith.addf %1135, %1025 : vector<2x32xf32>
    %1137 = arith.mulf %1125, %1136 : vector<2x32xf32>
    %1138 = arith.addf %1134, %1137 : vector<2x32xf32>
    %1139 = math.tanh %1138 : vector<2x32xf32>
    %cst_265 = arith.constant 1.000000e+00 : f32
    %1140 = vector.broadcast %cst_265 : f32 to vector<2x32xf32>
    %1141 = arith.subf %1140, %1133 : vector<2x32xf32>
    %1142 = arith.mulf %1141, %1139 : vector<2x32xf32>
    %1143 = arith.mulf %1133, %1114 : vector<2x32xf32>
    %1144 = arith.addf %1142, %1143 : vector<2x32xf32>
    %c6_266 = arith.constant 6 : index
    %c0_267 = arith.constant 0 : index
    %1145 = vector.load %arg30[%c6_266, %c0_267] : memref<16x32xf32, #tpu.memory_space<vmem>>, vector<2x32xf32>
    tpu.vector_store %arg30[%c6_266, %c0_267], %1144 {strides = array<i32>} : memref<16x32xf32, #tpu.memory_space<vmem>>, vector<2x32xf32>,
    %1146 = vector.extract_strided_slice %1021 {offsets = [8, 0], sizes = [2, 128], strides = [1, 1]} : vector<16x128xf32> to vector<2x128xf32>
    %cst_268 = arith.constant dense<0.000000e+00> : vector<2x128xf32>
    %1147 = tpu.matmul %1144, %1022, %cst_268 {dimension_numbers = #tpu.dot_dimension_numbers<[1], [0], [0], [1], [0, 0, 1, 1], [], []>} : vector<2x32xf32>, vector<32x128xf32>, vector<2x128xf32> -> vector<2x128xf32>
    %1148 = vector.extract_strided_slice %1146 {offsets = [0, 0], sizes = [2, 32], strides = [1, 1]} : vector<2x128xf32> to vector<2x32xf32>
    %1149 = vector.extract_strided_slice %1147 {offsets = [0, 0], sizes = [2, 32], strides = [1, 1]} : vector<2x128xf32> to vector<2x32xf32>
    %1150 = arith.addf %1148, %1149 : vector<2x32xf32>
    %1151 = arith.negf %1150 : vector<2x32xf32>
    %1152 = math.exp %1151 : vector<2x32xf32>
    %cst_269 = arith.constant 1.000000e+00 : f32
    %1153 = vector.broadcast %cst_269 : f32 to vector<2x32xf32>
    %1154 = arith.addf %1153, %1152 : vector<2x32xf32>
    %1155 = arith.divf %1153, %1154 : vector<2x32xf32>
    %1156 = vector.extract_strided_slice %1146 {offsets = [0, 32], sizes = [2, 32], strides = [1, 1]} : vector<2x128xf32> to vector<2x32xf32>
    %1157 = vector.extract_strided_slice %1147 {offsets = [0, 32], sizes = [2, 32], strides = [1, 1]} : vector<2x128xf32> to vector<2x32xf32>
    %1158 = arith.addf %1156, %1157 : vector<2x32xf32>
    %1159 = arith.negf %1158 : vector<2x32xf32>
    %1160 = math.exp %1159 : vector<2x32xf32>
    %cst_270 = arith.constant 1.000000e+00 : f32
    %1161 = vector.broadcast %cst_270 : f32 to vector<2x32xf32>
    %1162 = arith.addf %1161, %1160 : vector<2x32xf32>
    %1163 = arith.divf %1161, %1162 : vector<2x32xf32>
    %1164 = vector.extract_strided_slice %1146 {offsets = [0, 64], sizes = [2, 32], strides = [1, 1]} : vector<2x128xf32> to vector<2x32xf32>
    %1165 = vector.extract_strided_slice %1147 {offsets = [0, 64], sizes = [2, 32], strides = [1, 1]} : vector<2x128xf32> to vector<2x32xf32>
    %1166 = arith.addf %1165, %1025 : vector<2x32xf32>
    %1167 = arith.mulf %1155, %1166 : vector<2x32xf32>
    %1168 = arith.addf %1164, %1167 : vector<2x32xf32>
    %1169 = math.tanh %1168 : vector<2x32xf32>
    %cst_271 = arith.constant 1.000000e+00 : f32
    %1170 = vector.broadcast %cst_271 : f32 to vector<2x32xf32>
    %1171 = arith.subf %1170, %1163 : vector<2x32xf32>
    %1172 = arith.mulf %1171, %1169 : vector<2x32xf32>
    %1173 = arith.mulf %1163, %1144 : vector<2x32xf32>
    %1174 = arith.addf %1172, %1173 : vector<2x32xf32>
    %c8_272 = arith.constant 8 : index
    %c0_273 = arith.constant 0 : index
    %1175 = vector.load %arg30[%c8_272, %c0_273] : memref<16x32xf32, #tpu.memory_space<vmem>>, vector<2x32xf32>
    tpu.vector_store %arg30[%c8_272, %c0_273], %1174 {strides = array<i32>} : memref<16x32xf32, #tpu.memory_space<vmem>>, vector<2x32xf32>,
    %1176 = vector.extract_strided_slice %1021 {offsets = [10, 0], sizes = [2, 128], strides = [1, 1]} : vector<16x128xf32> to vector<2x128xf32>
    %cst_274 = arith.constant dense<0.000000e+00> : vector<2x128xf32>
    %1177 = tpu.matmul %1174, %1022, %cst_274 {dimension_numbers = #tpu.dot_dimension_numbers<[1], [0], [0], [1], [0, 0, 1, 1], [], []>} : vector<2x32xf32>, vector<32x128xf32>, vector<2x128xf32> -> vector<2x128xf32>
    %1178 = vector.extract_strided_slice %1176 {offsets = [0, 0], sizes = [2, 32], strides = [1, 1]} : vector<2x128xf32> to vector<2x32xf32>
    %1179 = vector.extract_strided_slice %1177 {offsets = [0, 0], sizes = [2, 32], strides = [1, 1]} : vector<2x128xf32> to vector<2x32xf32>
    %1180 = arith.addf %1178, %1179 : vector<2x32xf32>
    %1181 = arith.negf %1180 : vector<2x32xf32>
    %1182 = math.exp %1181 : vector<2x32xf32>
    %cst_275 = arith.constant 1.000000e+00 : f32
    %1183 = vector.broadcast %cst_275 : f32 to vector<2x32xf32>
    %1184 = arith.addf %1183, %1182 : vector<2x32xf32>
    %1185 = arith.divf %1183, %1184 : vector<2x32xf32>
    %1186 = vector.extract_strided_slice %1176 {offsets = [0, 32], sizes = [2, 32], strides = [1, 1]} : vector<2x128xf32> to vector<2x32xf32>
    %1187 = vector.extract_strided_slice %1177 {offsets = [0, 32], sizes = [2, 32], strides = [1, 1]} : vector<2x128xf32> to vector<2x32xf32>
    %1188 = arith.addf %1186, %1187 : vector<2x32xf32>
    %1189 = arith.negf %1188 : vector<2x32xf32>
    %1190 = math.exp %1189 : vector<2x32xf32>
    %cst_276 = arith.constant 1.000000e+00 : f32
    %1191 = vector.broadcast %cst_276 : f32 to vector<2x32xf32>
    %1192 = arith.addf %1191, %1190 : vector<2x32xf32>
    %1193 = arith.divf %1191, %1192 : vector<2x32xf32>
    %1194 = vector.extract_strided_slice %1176 {offsets = [0, 64], sizes = [2, 32], strides = [1, 1]} : vector<2x128xf32> to vector<2x32xf32>
    %1195 = vector.extract_strided_slice %1177 {offsets = [0, 64], sizes = [2, 32], strides = [1, 1]} : vector<2x128xf32> to vector<2x32xf32>
    %1196 = arith.addf %1195, %1025 : vector<2x32xf32>
    %1197 = arith.mulf %1185, %1196 : vector<2x32xf32>
    %1198 = arith.addf %1194, %1197 : vector<2x32xf32>
    %1199 = math.tanh %1198 : vector<2x32xf32>
    %cst_277 = arith.constant 1.000000e+00 : f32
    %1200 = vector.broadcast %cst_277 : f32 to vector<2x32xf32>
    %1201 = arith.subf %1200, %1193 : vector<2x32xf32>
    %1202 = arith.mulf %1201, %1199 : vector<2x32xf32>
    %1203 = arith.mulf %1193, %1174 : vector<2x32xf32>
    %1204 = arith.addf %1202, %1203 : vector<2x32xf32>
    %c10_278 = arith.constant 10 : index
    %c0_279 = arith.constant 0 : index
    %1205 = vector.load %arg30[%c10_278, %c0_279] : memref<16x32xf32, #tpu.memory_space<vmem>>, vector<2x32xf32>
    tpu.vector_store %arg30[%c10_278, %c0_279], %1204 {strides = array<i32>} : memref<16x32xf32, #tpu.memory_space<vmem>>, vector<2x32xf32>,
    %1206 = vector.extract_strided_slice %1021 {offsets = [12, 0], sizes = [2, 128], strides = [1, 1]} : vector<16x128xf32> to vector<2x128xf32>
    %cst_280 = arith.constant dense<0.000000e+00> : vector<2x128xf32>
    %1207 = tpu.matmul %1204, %1022, %cst_280 {dimension_numbers = #tpu.dot_dimension_numbers<[1], [0], [0], [1], [0, 0, 1, 1], [], []>} : vector<2x32xf32>, vector<32x128xf32>, vector<2x128xf32> -> vector<2x128xf32>
    %1208 = vector.extract_strided_slice %1206 {offsets = [0, 0], sizes = [2, 32], strides = [1, 1]} : vector<2x128xf32> to vector<2x32xf32>
    %1209 = vector.extract_strided_slice %1207 {offsets = [0, 0], sizes = [2, 32], strides = [1, 1]} : vector<2x128xf32> to vector<2x32xf32>
    %1210 = arith.addf %1208, %1209 : vector<2x32xf32>
    %1211 = arith.negf %1210 : vector<2x32xf32>
    %1212 = math.exp %1211 : vector<2x32xf32>
    %cst_281 = arith.constant 1.000000e+00 : f32
    %1213 = vector.broadcast %cst_281 : f32 to vector<2x32xf32>
    %1214 = arith.addf %1213, %1212 : vector<2x32xf32>
    %1215 = arith.divf %1213, %1214 : vector<2x32xf32>
    %1216 = vector.extract_strided_slice %1206 {offsets = [0, 32], sizes = [2, 32], strides = [1, 1]} : vector<2x128xf32> to vector<2x32xf32>
    %1217 = vector.extract_strided_slice %1207 {offsets = [0, 32], sizes = [2, 32], strides = [1, 1]} : vector<2x128xf32> to vector<2x32xf32>
    %1218 = arith.addf %1216, %1217 : vector<2x32xf32>
    %1219 = arith.negf %1218 : vector<2x32xf32>
    %1220 = math.exp %1219 : vector<2x32xf32>
    %cst_282 = arith.constant 1.000000e+00 : f32
    %1221 = vector.broadcast %cst_282 : f32 to vector<2x32xf32>
    %1222 = arith.addf %1221, %1220 : vector<2x32xf32>
    %1223 = arith.divf %1221, %1222 : vector<2x32xf32>
    %1224 = vector.extract_strided_slice %1206 {offsets = [0, 64], sizes = [2, 32], strides = [1, 1]} : vector<2x128xf32> to vector<2x32xf32>
    %1225 = vector.extract_strided_slice %1207 {offsets = [0, 64], sizes = [2, 32], strides = [1, 1]} : vector<2x128xf32> to vector<2x32xf32>
    %1226 = arith.addf %1225, %1025 : vector<2x32xf32>
    %1227 = arith.mulf %1215, %1226 : vector<2x32xf32>
    %1228 = arith.addf %1224, %1227 : vector<2x32xf32>
    %1229 = math.tanh %1228 : vector<2x32xf32>
    %cst_283 = arith.constant 1.000000e+00 : f32
    %1230 = vector.broadcast %cst_283 : f32 to vector<2x32xf32>
    %1231 = arith.subf %1230, %1223 : vector<2x32xf32>
    %1232 = arith.mulf %1231, %1229 : vector<2x32xf32>
    %1233 = arith.mulf %1223, %1204 : vector<2x32xf32>
    %1234 = arith.addf %1232, %1233 : vector<2x32xf32>
    %c12_284 = arith.constant 12 : index
    %c0_285 = arith.constant 0 : index
    %1235 = vector.load %arg30[%c12_284, %c0_285] : memref<16x32xf32, #tpu.memory_space<vmem>>, vector<2x32xf32>
    tpu.vector_store %arg30[%c12_284, %c0_285], %1234 {strides = array<i32>} : memref<16x32xf32, #tpu.memory_space<vmem>>, vector<2x32xf32>,
    %1236 = vector.extract_strided_slice %1021 {offsets = [14, 0], sizes = [2, 128], strides = [1, 1]} : vector<16x128xf32> to vector<2x128xf32>
    %cst_286 = arith.constant dense<0.000000e+00> : vector<2x128xf32>
    %1237 = tpu.matmul %1234, %1022, %cst_286 {dimension_numbers = #tpu.dot_dimension_numbers<[1], [0], [0], [1], [0, 0, 1, 1], [], []>} : vector<2x32xf32>, vector<32x128xf32>, vector<2x128xf32> -> vector<2x128xf32>
    %1238 = vector.extract_strided_slice %1236 {offsets = [0, 0], sizes = [2, 32], strides = [1, 1]} : vector<2x128xf32> to vector<2x32xf32>
    %1239 = vector.extract_strided_slice %1237 {offsets = [0, 0], sizes = [2, 32], strides = [1, 1]} : vector<2x128xf32> to vector<2x32xf32>
    %1240 = arith.addf %1238, %1239 : vector<2x32xf32>
    %1241 = arith.negf %1240 : vector<2x32xf32>
    %1242 = math.exp %1241 : vector<2x32xf32>
    %cst_287 = arith.constant 1.000000e+00 : f32
    %1243 = vector.broadcast %cst_287 : f32 to vector<2x32xf32>
    %1244 = arith.addf %1243, %1242 : vector<2x32xf32>
    %1245 = arith.divf %1243, %1244 : vector<2x32xf32>
    %1246 = vector.extract_strided_slice %1236 {offsets = [0, 32], sizes = [2, 32], strides = [1, 1]} : vector<2x128xf32> to vector<2x32xf32>
    %1247 = vector.extract_strided_slice %1237 {offsets = [0, 32], sizes = [2, 32], strides = [1, 1]} : vector<2x128xf32> to vector<2x32xf32>
    %1248 = arith.addf %1246, %1247 : vector<2x32xf32>
    %1249 = arith.negf %1248 : vector<2x32xf32>
    %1250 = math.exp %1249 : vector<2x32xf32>
    %cst_288 = arith.constant 1.000000e+00 : f32
    %1251 = vector.broadcast %cst_288 : f32 to vector<2x32xf32>
    %1252 = arith.addf %1251, %1250 : vector<2x32xf32>
    %1253 = arith.divf %1251, %1252 : vector<2x32xf32>
    %1254 = vector.extract_strided_slice %1236 {offsets = [0, 64], sizes = [2, 32], strides = [1, 1]} : vector<2x128xf32> to vector<2x32xf32>
    %1255 = vector.extract_strided_slice %1237 {offsets = [0, 64], sizes = [2, 32], strides = [1, 1]} : vector<2x128xf32> to vector<2x32xf32>
    %1256 = arith.addf %1255, %1025 : vector<2x32xf32>
    %1257 = arith.mulf %1245, %1256 : vector<2x32xf32>
    %1258 = arith.addf %1254, %1257 : vector<2x32xf32>
    %1259 = math.tanh %1258 : vector<2x32xf32>
    %cst_289 = arith.constant 1.000000e+00 : f32
    %1260 = vector.broadcast %cst_289 : f32 to vector<2x32xf32>
    %1261 = arith.subf %1260, %1253 : vector<2x32xf32>
    %1262 = arith.mulf %1261, %1259 : vector<2x32xf32>
    %1263 = arith.mulf %1253, %1234 : vector<2x32xf32>
    %1264 = arith.addf %1262, %1263 : vector<2x32xf32>
    %c14_290 = arith.constant 14 : index
    %c0_291 = arith.constant 0 : index
    %1265 = vector.load %arg30[%c14_290, %c0_291] : memref<16x32xf32, #tpu.memory_space<vmem>>, vector<2x32xf32>
    tpu.vector_store %arg30[%c14_290, %c0_291], %1264 {strides = array<i32>} : memref<16x32xf32, #tpu.memory_space<vmem>>, vector<2x32xf32>,
    %c0_292 = arith.constant 0 : index
    %c0_293 = arith.constant 0 : index
    %1266 = vector.load %arg30[%c0_292, %c0_293] : memref<16x32xf32, #tpu.memory_space<vmem>>, vector<16x32xf32>
    %c0_294 = arith.constant 0 : index
    %c0_295 = arith.constant 0 : index
    %1267 = vector.load %arg23[%c0_294, %c0_295] : memref<32x128xf32, #tpu.memory_space<vmem>>, vector<32x128xf32>
    %cst_296 = arith.constant dense<0.000000e+00> : vector<16x128xf32>
    %1268 = tpu.matmul %1266, %1267, %cst_296 {dimension_numbers = #tpu.dot_dimension_numbers<[1], [0], [0], [1], [0, 0, 1, 1], [], []>} : vector<16x32xf32>, vector<32x128xf32>, vector<16x128xf32> -> vector<16x128xf32>
    %c0_297 = arith.constant 0 : index
    %c0_298 = arith.constant 0 : index
    %1269 = vector.load %arg25[%c0_297, %c0_298] : memref<1x128xf32, #tpu.memory_space<vmem>>, vector<1x128xf32>
    %1270 = vector.broadcast %1269 : vector<1x128xf32> to vector<16x128xf32>
    %1271 = arith.addf %1268, %1270 : vector<16x128xf32>
    %c0_299 = arith.constant 0 : index
    %c0_300 = arith.constant 0 : index
    %1272 = vector.load %arg24[%c0_299, %c0_300] : memref<32x128xf32, #tpu.memory_space<vmem>>, vector<32x128xf32>
    %c0_301 = arith.constant 0 : index
    %c0_302 = arith.constant 0 : index
    %1273 = vector.load %arg26[%c0_301, %c0_302] : memref<1x32xf32, #tpu.memory_space<vmem>>, vector<1x32xf32>
    %1274 = vector.shape_cast %1273 : vector<1x32xf32> to vector<1x32xf32>
    %1275 = vector.broadcast %1274 : vector<1x32xf32> to vector<2x32xf32>
    %1276 = vector.extract_strided_slice %1271 {offsets = [0, 0], sizes = [2, 128], strides = [1, 1]} : vector<16x128xf32> to vector<2x128xf32>
    %cst_303 = arith.constant dense<0.000000e+00> : vector<2x128xf32>
    %1277 = tpu.matmul %756, %1272, %cst_303 {dimension_numbers = #tpu.dot_dimension_numbers<[1], [0], [0], [1], [0, 0, 1, 1], [], []>} : vector<2x32xf32>, vector<32x128xf32>, vector<2x128xf32> -> vector<2x128xf32>
    %1278 = vector.extract_strided_slice %1276 {offsets = [0, 0], sizes = [2, 32], strides = [1, 1]} : vector<2x128xf32> to vector<2x32xf32>
    %1279 = vector.extract_strided_slice %1277 {offsets = [0, 0], sizes = [2, 32], strides = [1, 1]} : vector<2x128xf32> to vector<2x32xf32>
    %1280 = arith.addf %1278, %1279 : vector<2x32xf32>
    %1281 = arith.negf %1280 : vector<2x32xf32>
    %1282 = math.exp %1281 : vector<2x32xf32>
    %cst_304 = arith.constant 1.000000e+00 : f32
    %1283 = vector.broadcast %cst_304 : f32 to vector<2x32xf32>
    %1284 = arith.addf %1283, %1282 : vector<2x32xf32>
    %1285 = arith.divf %1283, %1284 : vector<2x32xf32>
    %1286 = vector.extract_strided_slice %1276 {offsets = [0, 32], sizes = [2, 32], strides = [1, 1]} : vector<2x128xf32> to vector<2x32xf32>
    %1287 = vector.extract_strided_slice %1277 {offsets = [0, 32], sizes = [2, 32], strides = [1, 1]} : vector<2x128xf32> to vector<2x32xf32>
    %1288 = arith.addf %1286, %1287 : vector<2x32xf32>
    %1289 = arith.negf %1288 : vector<2x32xf32>
    %1290 = math.exp %1289 : vector<2x32xf32>
    %cst_305 = arith.constant 1.000000e+00 : f32
    %1291 = vector.broadcast %cst_305 : f32 to vector<2x32xf32>
    %1292 = arith.addf %1291, %1290 : vector<2x32xf32>
    %1293 = arith.divf %1291, %1292 : vector<2x32xf32>
    %1294 = vector.extract_strided_slice %1276 {offsets = [0, 64], sizes = [2, 32], strides = [1, 1]} : vector<2x128xf32> to vector<2x32xf32>
    %1295 = vector.extract_strided_slice %1277 {offsets = [0, 64], sizes = [2, 32], strides = [1, 1]} : vector<2x128xf32> to vector<2x32xf32>
    %1296 = arith.addf %1295, %1275 : vector<2x32xf32>
    %1297 = arith.mulf %1285, %1296 : vector<2x32xf32>
    %1298 = arith.addf %1294, %1297 : vector<2x32xf32>
    %1299 = math.tanh %1298 : vector<2x32xf32>
    %cst_306 = arith.constant 1.000000e+00 : f32
    %1300 = vector.broadcast %cst_306 : f32 to vector<2x32xf32>
    %1301 = arith.subf %1300, %1293 : vector<2x32xf32>
    %1302 = arith.mulf %1301, %1299 : vector<2x32xf32>
    %1303 = arith.mulf %1293, %756 : vector<2x32xf32>
    %1304 = arith.addf %1302, %1303 : vector<2x32xf32>
    %c0_307 = arith.constant 0 : index
    %c0_308 = arith.constant 0 : index
    %1305 = vector.load %arg30[%c0_307, %c0_308] : memref<16x32xf32, #tpu.memory_space<vmem>>, vector<2x32xf32>
    tpu.vector_store %arg30[%c0_307, %c0_308], %1304 {strides = array<i32>} : memref<16x32xf32, #tpu.memory_space<vmem>>, vector<2x32xf32>,
    %1306 = vector.extract_strided_slice %1271 {offsets = [2, 0], sizes = [2, 128], strides = [1, 1]} : vector<16x128xf32> to vector<2x128xf32>
    %cst_309 = arith.constant dense<0.000000e+00> : vector<2x128xf32>
    %1307 = tpu.matmul %1304, %1272, %cst_309 {dimension_numbers = #tpu.dot_dimension_numbers<[1], [0], [0], [1], [0, 0, 1, 1], [], []>} : vector<2x32xf32>, vector<32x128xf32>, vector<2x128xf32> -> vector<2x128xf32>
    %1308 = vector.extract_strided_slice %1306 {offsets = [0, 0], sizes = [2, 32], strides = [1, 1]} : vector<2x128xf32> to vector<2x32xf32>
    %1309 = vector.extract_strided_slice %1307 {offsets = [0, 0], sizes = [2, 32], strides = [1, 1]} : vector<2x128xf32> to vector<2x32xf32>
    %1310 = arith.addf %1308, %1309 : vector<2x32xf32>
    %1311 = arith.negf %1310 : vector<2x32xf32>
    %1312 = math.exp %1311 : vector<2x32xf32>
    %cst_310 = arith.constant 1.000000e+00 : f32
    %1313 = vector.broadcast %cst_310 : f32 to vector<2x32xf32>
    %1314 = arith.addf %1313, %1312 : vector<2x32xf32>
    %1315 = arith.divf %1313, %1314 : vector<2x32xf32>
    %1316 = vector.extract_strided_slice %1306 {offsets = [0, 32], sizes = [2, 32], strides = [1, 1]} : vector<2x128xf32> to vector<2x32xf32>
    %1317 = vector.extract_strided_slice %1307 {offsets = [0, 32], sizes = [2, 32], strides = [1, 1]} : vector<2x128xf32> to vector<2x32xf32>
    %1318 = arith.addf %1316, %1317 : vector<2x32xf32>
    %1319 = arith.negf %1318 : vector<2x32xf32>
    %1320 = math.exp %1319 : vector<2x32xf32>
    %cst_311 = arith.constant 1.000000e+00 : f32
    %1321 = vector.broadcast %cst_311 : f32 to vector<2x32xf32>
    %1322 = arith.addf %1321, %1320 : vector<2x32xf32>
    %1323 = arith.divf %1321, %1322 : vector<2x32xf32>
    %1324 = vector.extract_strided_slice %1306 {offsets = [0, 64], sizes = [2, 32], strides = [1, 1]} : vector<2x128xf32> to vector<2x32xf32>
    %1325 = vector.extract_strided_slice %1307 {offsets = [0, 64], sizes = [2, 32], strides = [1, 1]} : vector<2x128xf32> to vector<2x32xf32>
    %1326 = arith.addf %1325, %1275 : vector<2x32xf32>
    %1327 = arith.mulf %1315, %1326 : vector<2x32xf32>
    %1328 = arith.addf %1324, %1327 : vector<2x32xf32>
    %1329 = math.tanh %1328 : vector<2x32xf32>
    %cst_312 = arith.constant 1.000000e+00 : f32
    %1330 = vector.broadcast %cst_312 : f32 to vector<2x32xf32>
    %1331 = arith.subf %1330, %1323 : vector<2x32xf32>
    %1332 = arith.mulf %1331, %1329 : vector<2x32xf32>
    %1333 = arith.mulf %1323, %1304 : vector<2x32xf32>
    %1334 = arith.addf %1332, %1333 : vector<2x32xf32>
    %c2_313 = arith.constant 2 : index
    %c0_314 = arith.constant 0 : index
    %1335 = vector.load %arg30[%c2_313, %c0_314] : memref<16x32xf32, #tpu.memory_space<vmem>>, vector<2x32xf32>
    tpu.vector_store %arg30[%c2_313, %c0_314], %1334 {strides = array<i32>} : memref<16x32xf32, #tpu.memory_space<vmem>>, vector<2x32xf32>,
    %1336 = vector.extract_strided_slice %1271 {offsets = [4, 0], sizes = [2, 128], strides = [1, 1]} : vector<16x128xf32> to vector<2x128xf32>
    %cst_315 = arith.constant dense<0.000000e+00> : vector<2x128xf32>
    %1337 = tpu.matmul %1334, %1272, %cst_315 {dimension_numbers = #tpu.dot_dimension_numbers<[1], [0], [0], [1], [0, 0, 1, 1], [], []>} : vector<2x32xf32>, vector<32x128xf32>, vector<2x128xf32> -> vector<2x128xf32>
    %1338 = vector.extract_strided_slice %1336 {offsets = [0, 0], sizes = [2, 32], strides = [1, 1]} : vector<2x128xf32> to vector<2x32xf32>
    %1339 = vector.extract_strided_slice %1337 {offsets = [0, 0], sizes = [2, 32], strides = [1, 1]} : vector<2x128xf32> to vector<2x32xf32>
    %1340 = arith.addf %1338, %1339 : vector<2x32xf32>
    %1341 = arith.negf %1340 : vector<2x32xf32>
    %1342 = math.exp %1341 : vector<2x32xf32>
    %cst_316 = arith.constant 1.000000e+00 : f32
    %1343 = vector.broadcast %cst_316 : f32 to vector<2x32xf32>
    %1344 = arith.addf %1343, %1342 : vector<2x32xf32>
    %1345 = arith.divf %1343, %1344 : vector<2x32xf32>
    %1346 = vector.extract_strided_slice %1336 {offsets = [0, 32], sizes = [2, 32], strides = [1, 1]} : vector<2x128xf32> to vector<2x32xf32>
    %1347 = vector.extract_strided_slice %1337 {offsets = [0, 32], sizes = [2, 32], strides = [1, 1]} : vector<2x128xf32> to vector<2x32xf32>
    %1348 = arith.addf %1346, %1347 : vector<2x32xf32>
    %1349 = arith.negf %1348 : vector<2x32xf32>
    %1350 = math.exp %1349 : vector<2x32xf32>
    %cst_317 = arith.constant 1.000000e+00 : f32
    %1351 = vector.broadcast %cst_317 : f32 to vector<2x32xf32>
    %1352 = arith.addf %1351, %1350 : vector<2x32xf32>
    %1353 = arith.divf %1351, %1352 : vector<2x32xf32>
    %1354 = vector.extract_strided_slice %1336 {offsets = [0, 64], sizes = [2, 32], strides = [1, 1]} : vector<2x128xf32> to vector<2x32xf32>
    %1355 = vector.extract_strided_slice %1337 {offsets = [0, 64], sizes = [2, 32], strides = [1, 1]} : vector<2x128xf32> to vector<2x32xf32>
    %1356 = arith.addf %1355, %1275 : vector<2x32xf32>
    %1357 = arith.mulf %1345, %1356 : vector<2x32xf32>
    %1358 = arith.addf %1354, %1357 : vector<2x32xf32>
    %1359 = math.tanh %1358 : vector<2x32xf32>
    %cst_318 = arith.constant 1.000000e+00 : f32
    %1360 = vector.broadcast %cst_318 : f32 to vector<2x32xf32>
    %1361 = arith.subf %1360, %1353 : vector<2x32xf32>
    %1362 = arith.mulf %1361, %1359 : vector<2x32xf32>
    %1363 = arith.mulf %1353, %1334 : vector<2x32xf32>
    %1364 = arith.addf %1362, %1363 : vector<2x32xf32>
    %c4_319 = arith.constant 4 : index
    %c0_320 = arith.constant 0 : index
    %1365 = vector.load %arg30[%c4_319, %c0_320] : memref<16x32xf32, #tpu.memory_space<vmem>>, vector<2x32xf32>
    tpu.vector_store %arg30[%c4_319, %c0_320], %1364 {strides = array<i32>} : memref<16x32xf32, #tpu.memory_space<vmem>>, vector<2x32xf32>,
    %1366 = vector.extract_strided_slice %1271 {offsets = [6, 0], sizes = [2, 128], strides = [1, 1]} : vector<16x128xf32> to vector<2x128xf32>
    %cst_321 = arith.constant dense<0.000000e+00> : vector<2x128xf32>
    %1367 = tpu.matmul %1364, %1272, %cst_321 {dimension_numbers = #tpu.dot_dimension_numbers<[1], [0], [0], [1], [0, 0, 1, 1], [], []>} : vector<2x32xf32>, vector<32x128xf32>, vector<2x128xf32> -> vector<2x128xf32>
    %1368 = vector.extract_strided_slice %1366 {offsets = [0, 0], sizes = [2, 32], strides = [1, 1]} : vector<2x128xf32> to vector<2x32xf32>
    %1369 = vector.extract_strided_slice %1367 {offsets = [0, 0], sizes = [2, 32], strides = [1, 1]} : vector<2x128xf32> to vector<2x32xf32>
    %1370 = arith.addf %1368, %1369 : vector<2x32xf32>
    %1371 = arith.negf %1370 : vector<2x32xf32>
    %1372 = math.exp %1371 : vector<2x32xf32>
    %cst_322 = arith.constant 1.000000e+00 : f32
    %1373 = vector.broadcast %cst_322 : f32 to vector<2x32xf32>
    %1374 = arith.addf %1373, %1372 : vector<2x32xf32>
    %1375 = arith.divf %1373, %1374 : vector<2x32xf32>
    %1376 = vector.extract_strided_slice %1366 {offsets = [0, 32], sizes = [2, 32], strides = [1, 1]} : vector<2x128xf32> to vector<2x32xf32>
    %1377 = vector.extract_strided_slice %1367 {offsets = [0, 32], sizes = [2, 32], strides = [1, 1]} : vector<2x128xf32> to vector<2x32xf32>
    %1378 = arith.addf %1376, %1377 : vector<2x32xf32>
    %1379 = arith.negf %1378 : vector<2x32xf32>
    %1380 = math.exp %1379 : vector<2x32xf32>
    %cst_323 = arith.constant 1.000000e+00 : f32
    %1381 = vector.broadcast %cst_323 : f32 to vector<2x32xf32>
    %1382 = arith.addf %1381, %1380 : vector<2x32xf32>
    %1383 = arith.divf %1381, %1382 : vector<2x32xf32>
    %1384 = vector.extract_strided_slice %1366 {offsets = [0, 64], sizes = [2, 32], strides = [1, 1]} : vector<2x128xf32> to vector<2x32xf32>
    %1385 = vector.extract_strided_slice %1367 {offsets = [0, 64], sizes = [2, 32], strides = [1, 1]} : vector<2x128xf32> to vector<2x32xf32>
    %1386 = arith.addf %1385, %1275 : vector<2x32xf32>
    %1387 = arith.mulf %1375, %1386 : vector<2x32xf32>
    %1388 = arith.addf %1384, %1387 : vector<2x32xf32>
    %1389 = math.tanh %1388 : vector<2x32xf32>
    %cst_324 = arith.constant 1.000000e+00 : f32
    %1390 = vector.broadcast %cst_324 : f32 to vector<2x32xf32>
    %1391 = arith.subf %1390, %1383 : vector<2x32xf32>
    %1392 = arith.mulf %1391, %1389 : vector<2x32xf32>
    %1393 = arith.mulf %1383, %1364 : vector<2x32xf32>
    %1394 = arith.addf %1392, %1393 : vector<2x32xf32>
    %c6_325 = arith.constant 6 : index
    %c0_326 = arith.constant 0 : index
    %1395 = vector.load %arg30[%c6_325, %c0_326] : memref<16x32xf32, #tpu.memory_space<vmem>>, vector<2x32xf32>
    tpu.vector_store %arg30[%c6_325, %c0_326], %1394 {strides = array<i32>} : memref<16x32xf32, #tpu.memory_space<vmem>>, vector<2x32xf32>,
    %1396 = vector.extract_strided_slice %1271 {offsets = [8, 0], sizes = [2, 128], strides = [1, 1]} : vector<16x128xf32> to vector<2x128xf32>
    %cst_327 = arith.constant dense<0.000000e+00> : vector<2x128xf32>
    %1397 = tpu.matmul %1394, %1272, %cst_327 {dimension_numbers = #tpu.dot_dimension_numbers<[1], [0], [0], [1], [0, 0, 1, 1], [], []>} : vector<2x32xf32>, vector<32x128xf32>, vector<2x128xf32> -> vector<2x128xf32>
    %1398 = vector.extract_strided_slice %1396 {offsets = [0, 0], sizes = [2, 32], strides = [1, 1]} : vector<2x128xf32> to vector<2x32xf32>
    %1399 = vector.extract_strided_slice %1397 {offsets = [0, 0], sizes = [2, 32], strides = [1, 1]} : vector<2x128xf32> to vector<2x32xf32>
    %1400 = arith.addf %1398, %1399 : vector<2x32xf32>
    %1401 = arith.negf %1400 : vector<2x32xf32>
    %1402 = math.exp %1401 : vector<2x32xf32>
    %cst_328 = arith.constant 1.000000e+00 : f32
    %1403 = vector.broadcast %cst_328 : f32 to vector<2x32xf32>
    %1404 = arith.addf %1403, %1402 : vector<2x32xf32>
    %1405 = arith.divf %1403, %1404 : vector<2x32xf32>
    %1406 = vector.extract_strided_slice %1396 {offsets = [0, 32], sizes = [2, 32], strides = [1, 1]} : vector<2x128xf32> to vector<2x32xf32>
    %1407 = vector.extract_strided_slice %1397 {offsets = [0, 32], sizes = [2, 32], strides = [1, 1]} : vector<2x128xf32> to vector<2x32xf32>
    %1408 = arith.addf %1406, %1407 : vector<2x32xf32>
    %1409 = arith.negf %1408 : vector<2x32xf32>
    %1410 = math.exp %1409 : vector<2x32xf32>
    %cst_329 = arith.constant 1.000000e+00 : f32
    %1411 = vector.broadcast %cst_329 : f32 to vector<2x32xf32>
    %1412 = arith.addf %1411, %1410 : vector<2x32xf32>
    %1413 = arith.divf %1411, %1412 : vector<2x32xf32>
    %1414 = vector.extract_strided_slice %1396 {offsets = [0, 64], sizes = [2, 32], strides = [1, 1]} : vector<2x128xf32> to vector<2x32xf32>
    %1415 = vector.extract_strided_slice %1397 {offsets = [0, 64], sizes = [2, 32], strides = [1, 1]} : vector<2x128xf32> to vector<2x32xf32>
    %1416 = arith.addf %1415, %1275 : vector<2x32xf32>
    %1417 = arith.mulf %1405, %1416 : vector<2x32xf32>
    %1418 = arith.addf %1414, %1417 : vector<2x32xf32>
    %1419 = math.tanh %1418 : vector<2x32xf32>
    %cst_330 = arith.constant 1.000000e+00 : f32
    %1420 = vector.broadcast %cst_330 : f32 to vector<2x32xf32>
    %1421 = arith.subf %1420, %1413 : vector<2x32xf32>
    %1422 = arith.mulf %1421, %1419 : vector<2x32xf32>
    %1423 = arith.mulf %1413, %1394 : vector<2x32xf32>
    %1424 = arith.addf %1422, %1423 : vector<2x32xf32>
    %c8_331 = arith.constant 8 : index
    %c0_332 = arith.constant 0 : index
    %1425 = vector.load %arg30[%c8_331, %c0_332] : memref<16x32xf32, #tpu.memory_space<vmem>>, vector<2x32xf32>
    tpu.vector_store %arg30[%c8_331, %c0_332], %1424 {strides = array<i32>} : memref<16x32xf32, #tpu.memory_space<vmem>>, vector<2x32xf32>,
    %1426 = vector.extract_strided_slice %1271 {offsets = [10, 0], sizes = [2, 128], strides = [1, 1]} : vector<16x128xf32> to vector<2x128xf32>
    %cst_333 = arith.constant dense<0.000000e+00> : vector<2x128xf32>
    %1427 = tpu.matmul %1424, %1272, %cst_333 {dimension_numbers = #tpu.dot_dimension_numbers<[1], [0], [0], [1], [0, 0, 1, 1], [], []>} : vector<2x32xf32>, vector<32x128xf32>, vector<2x128xf32> -> vector<2x128xf32>
    %1428 = vector.extract_strided_slice %1426 {offsets = [0, 0], sizes = [2, 32], strides = [1, 1]} : vector<2x128xf32> to vector<2x32xf32>
    %1429 = vector.extract_strided_slice %1427 {offsets = [0, 0], sizes = [2, 32], strides = [1, 1]} : vector<2x128xf32> to vector<2x32xf32>
    %1430 = arith.addf %1428, %1429 : vector<2x32xf32>
    %1431 = arith.negf %1430 : vector<2x32xf32>
    %1432 = math.exp %1431 : vector<2x32xf32>
    %cst_334 = arith.constant 1.000000e+00 : f32
    %1433 = vector.broadcast %cst_334 : f32 to vector<2x32xf32>
    %1434 = arith.addf %1433, %1432 : vector<2x32xf32>
    %1435 = arith.divf %1433, %1434 : vector<2x32xf32>
    %1436 = vector.extract_strided_slice %1426 {offsets = [0, 32], sizes = [2, 32], strides = [1, 1]} : vector<2x128xf32> to vector<2x32xf32>
    %1437 = vector.extract_strided_slice %1427 {offsets = [0, 32], sizes = [2, 32], strides = [1, 1]} : vector<2x128xf32> to vector<2x32xf32>
    %1438 = arith.addf %1436, %1437 : vector<2x32xf32>
    %1439 = arith.negf %1438 : vector<2x32xf32>
    %1440 = math.exp %1439 : vector<2x32xf32>
    %cst_335 = arith.constant 1.000000e+00 : f32
    %1441 = vector.broadcast %cst_335 : f32 to vector<2x32xf32>
    %1442 = arith.addf %1441, %1440 : vector<2x32xf32>
    %1443 = arith.divf %1441, %1442 : vector<2x32xf32>
    %1444 = vector.extract_strided_slice %1426 {offsets = [0, 64], sizes = [2, 32], strides = [1, 1]} : vector<2x128xf32> to vector<2x32xf32>
    %1445 = vector.extract_strided_slice %1427 {offsets = [0, 64], sizes = [2, 32], strides = [1, 1]} : vector<2x128xf32> to vector<2x32xf32>
    %1446 = arith.addf %1445, %1275 : vector<2x32xf32>
    %1447 = arith.mulf %1435, %1446 : vector<2x32xf32>
    %1448 = arith.addf %1444, %1447 : vector<2x32xf32>
    %1449 = math.tanh %1448 : vector<2x32xf32>
    %cst_336 = arith.constant 1.000000e+00 : f32
    %1450 = vector.broadcast %cst_336 : f32 to vector<2x32xf32>
    %1451 = arith.subf %1450, %1443 : vector<2x32xf32>
    %1452 = arith.mulf %1451, %1449 : vector<2x32xf32>
    %1453 = arith.mulf %1443, %1424 : vector<2x32xf32>
    %1454 = arith.addf %1452, %1453 : vector<2x32xf32>
    %c10_337 = arith.constant 10 : index
    %c0_338 = arith.constant 0 : index
    %1455 = vector.load %arg30[%c10_337, %c0_338] : memref<16x32xf32, #tpu.memory_space<vmem>>, vector<2x32xf32>
    tpu.vector_store %arg30[%c10_337, %c0_338], %1454 {strides = array<i32>} : memref<16x32xf32, #tpu.memory_space<vmem>>, vector<2x32xf32>,
    %1456 = vector.extract_strided_slice %1271 {offsets = [12, 0], sizes = [2, 128], strides = [1, 1]} : vector<16x128xf32> to vector<2x128xf32>
    %cst_339 = arith.constant dense<0.000000e+00> : vector<2x128xf32>
    %1457 = tpu.matmul %1454, %1272, %cst_339 {dimension_numbers = #tpu.dot_dimension_numbers<[1], [0], [0], [1], [0, 0, 1, 1], [], []>} : vector<2x32xf32>, vector<32x128xf32>, vector<2x128xf32> -> vector<2x128xf32>
    %1458 = vector.extract_strided_slice %1456 {offsets = [0, 0], sizes = [2, 32], strides = [1, 1]} : vector<2x128xf32> to vector<2x32xf32>
    %1459 = vector.extract_strided_slice %1457 {offsets = [0, 0], sizes = [2, 32], strides = [1, 1]} : vector<2x128xf32> to vector<2x32xf32>
    %1460 = arith.addf %1458, %1459 : vector<2x32xf32>
    %1461 = arith.negf %1460 : vector<2x32xf32>
    %1462 = math.exp %1461 : vector<2x32xf32>
    %cst_340 = arith.constant 1.000000e+00 : f32
    %1463 = vector.broadcast %cst_340 : f32 to vector<2x32xf32>
    %1464 = arith.addf %1463, %1462 : vector<2x32xf32>
    %1465 = arith.divf %1463, %1464 : vector<2x32xf32>
    %1466 = vector.extract_strided_slice %1456 {offsets = [0, 32], sizes = [2, 32], strides = [1, 1]} : vector<2x128xf32> to vector<2x32xf32>
    %1467 = vector.extract_strided_slice %1457 {offsets = [0, 32], sizes = [2, 32], strides = [1, 1]} : vector<2x128xf32> to vector<2x32xf32>
    %1468 = arith.addf %1466, %1467 : vector<2x32xf32>
    %1469 = arith.negf %1468 : vector<2x32xf32>
    %1470 = math.exp %1469 : vector<2x32xf32>
    %cst_341 = arith.constant 1.000000e+00 : f32
    %1471 = vector.broadcast %cst_341 : f32 to vector<2x32xf32>
    %1472 = arith.addf %1471, %1470 : vector<2x32xf32>
    %1473 = arith.divf %1471, %1472 : vector<2x32xf32>
    %1474 = vector.extract_strided_slice %1456 {offsets = [0, 64], sizes = [2, 32], strides = [1, 1]} : vector<2x128xf32> to vector<2x32xf32>
    %1475 = vector.extract_strided_slice %1457 {offsets = [0, 64], sizes = [2, 32], strides = [1, 1]} : vector<2x128xf32> to vector<2x32xf32>
    %1476 = arith.addf %1475, %1275 : vector<2x32xf32>
    %1477 = arith.mulf %1465, %1476 : vector<2x32xf32>
    %1478 = arith.addf %1474, %1477 : vector<2x32xf32>
    %1479 = math.tanh %1478 : vector<2x32xf32>
    %cst_342 = arith.constant 1.000000e+00 : f32
    %1480 = vector.broadcast %cst_342 : f32 to vector<2x32xf32>
    %1481 = arith.subf %1480, %1473 : vector<2x32xf32>
    %1482 = arith.mulf %1481, %1479 : vector<2x32xf32>
    %1483 = arith.mulf %1473, %1454 : vector<2x32xf32>
    %1484 = arith.addf %1482, %1483 : vector<2x32xf32>
    %c12_343 = arith.constant 12 : index
    %c0_344 = arith.constant 0 : index
    %1485 = vector.load %arg30[%c12_343, %c0_344] : memref<16x32xf32, #tpu.memory_space<vmem>>, vector<2x32xf32>
    tpu.vector_store %arg30[%c12_343, %c0_344], %1484 {strides = array<i32>} : memref<16x32xf32, #tpu.memory_space<vmem>>, vector<2x32xf32>,
    %1486 = vector.extract_strided_slice %1271 {offsets = [14, 0], sizes = [2, 128], strides = [1, 1]} : vector<16x128xf32> to vector<2x128xf32>
    %cst_345 = arith.constant dense<0.000000e+00> : vector<2x128xf32>
    %1487 = tpu.matmul %1484, %1272, %cst_345 {dimension_numbers = #tpu.dot_dimension_numbers<[1], [0], [0], [1], [0, 0, 1, 1], [], []>} : vector<2x32xf32>, vector<32x128xf32>, vector<2x128xf32> -> vector<2x128xf32>
    %1488 = vector.extract_strided_slice %1486 {offsets = [0, 0], sizes = [2, 32], strides = [1, 1]} : vector<2x128xf32> to vector<2x32xf32>
    %1489 = vector.extract_strided_slice %1487 {offsets = [0, 0], sizes = [2, 32], strides = [1, 1]} : vector<2x128xf32> to vector<2x32xf32>
    %1490 = arith.addf %1488, %1489 : vector<2x32xf32>
    %1491 = arith.negf %1490 : vector<2x32xf32>
    %1492 = math.exp %1491 : vector<2x32xf32>
    %cst_346 = arith.constant 1.000000e+00 : f32
    %1493 = vector.broadcast %cst_346 : f32 to vector<2x32xf32>
    %1494 = arith.addf %1493, %1492 : vector<2x32xf32>
    %1495 = arith.divf %1493, %1494 : vector<2x32xf32>
    %1496 = vector.extract_strided_slice %1486 {offsets = [0, 32], sizes = [2, 32], strides = [1, 1]} : vector<2x128xf32> to vector<2x32xf32>
    %1497 = vector.extract_strided_slice %1487 {offsets = [0, 32], sizes = [2, 32], strides = [1, 1]} : vector<2x128xf32> to vector<2x32xf32>
    %1498 = arith.addf %1496, %1497 : vector<2x32xf32>
    %1499 = arith.negf %1498 : vector<2x32xf32>
    %1500 = math.exp %1499 : vector<2x32xf32>
    %cst_347 = arith.constant 1.000000e+00 : f32
    %1501 = vector.broadcast %cst_347 : f32 to vector<2x32xf32>
    %1502 = arith.addf %1501, %1500 : vector<2x32xf32>
    %1503 = arith.divf %1501, %1502 : vector<2x32xf32>
    %1504 = vector.extract_strided_slice %1486 {offsets = [0, 64], sizes = [2, 32], strides = [1, 1]} : vector<2x128xf32> to vector<2x32xf32>
    %1505 = vector.extract_strided_slice %1487 {offsets = [0, 64], sizes = [2, 32], strides = [1, 1]} : vector<2x128xf32> to vector<2x32xf32>
    %1506 = arith.addf %1505, %1275 : vector<2x32xf32>
    %1507 = arith.mulf %1495, %1506 : vector<2x32xf32>
    %1508 = arith.addf %1504, %1507 : vector<2x32xf32>
    %1509 = math.tanh %1508 : vector<2x32xf32>
    %cst_348 = arith.constant 1.000000e+00 : f32
    %1510 = vector.broadcast %cst_348 : f32 to vector<2x32xf32>
    %1511 = arith.subf %1510, %1503 : vector<2x32xf32>
    %1512 = arith.mulf %1511, %1509 : vector<2x32xf32>
    %1513 = arith.mulf %1503, %1484 : vector<2x32xf32>
    %1514 = arith.addf %1512, %1513 : vector<2x32xf32>
    %c14_349 = arith.constant 14 : index
    %c0_350 = arith.constant 0 : index
    %1515 = vector.load %arg30[%c14_349, %c0_350] : memref<16x32xf32, #tpu.memory_space<vmem>>, vector<2x32xf32>
    tpu.vector_store %arg30[%c14_349, %c0_350], %1514 {strides = array<i32>} : memref<16x32xf32, #tpu.memory_space<vmem>>, vector<2x32xf32>,
    %c0_351 = arith.constant 0 : index
    %c0_352 = arith.constant 0 : index
    %1516 = vector.load %arg30[%c0_351, %c0_352] : memref<16x32xf32, #tpu.memory_space<vmem>>, vector<16x32xf32>
    %c0_353 = arith.constant 0 : index
    %c0_354 = arith.constant 0 : index
    %1517 = vector.load %arg27[%c0_353, %c0_354] : memref<32x128xf32, #tpu.memory_space<vmem>>, vector<32x128xf32>
    %cst_355 = arith.constant dense<0.000000e+00> : vector<16x128xf32>
    %1518 = tpu.matmul %1516, %1517, %cst_355 {dimension_numbers = #tpu.dot_dimension_numbers<[1], [0], [0], [1], [0, 0, 1, 1], [], []>} : vector<16x32xf32>, vector<32x128xf32>, vector<16x128xf32> -> vector<16x128xf32>
    %c0_356 = arith.constant 0 : index
    %c0_357 = arith.constant 0 : index
    %1519 = vector.load %arg28[%c0_356, %c0_357] : memref<1x128xf32, #tpu.memory_space<vmem>>, vector<1x128xf32>
    %1520 = vector.broadcast %1519 : vector<1x128xf32> to vector<16x128xf32>
    %1521 = arith.addf %1518, %1520 : vector<16x128xf32>
    %c0_358 = arith.constant 0 : index
    %c0_359 = arith.constant 0 : index
    %1522 = vector.load %arg29[%c0_358, %c0_359] : memref<16x128xf32, #tpu.memory_space<vmem>>, vector<16x128xf32>
    tpu.vector_store %arg29[%c0_358, %c0_359], %1521 {strides = array<i32>} : memref<16x128xf32, #tpu.memory_space<vmem>>, vector<16x128xf32>,
    return
  }
}

</mosaic_0001>

<bundles_post_ra>
// kernel: _lambda_.1
= control target key start
LH: loop header
LB: loop body
LE: loop exit
PB: predicated region body
PF: predicated region fallthrough
CT: control target
= control target key end

     0   :  { %s8381_s6 = smov 1   ;;  %s8382_s10 = smov 2   ;;  %s9918_s0 = inlined_call_operand.smem [shape: u32[30], index: -1, kind: input, shape index: {}] }
   0x1   :  { %s8441_s5 = sld [smem:[%s9918_s0]]   ;;  %s8383_s14 = smov 3  }
   0x2   :  { %s8446_s9 = sld [smem:[%s9918_s0 + %s8381_s6]]   ;;  %s8384_s18 = smov 4  }
   0x3   :  { %s8451_s13 = sld [smem:[%s9918_s0 + %s8382_s10]]   ;;  %s8385_s22 = smov 5  }
   0x4   :  { %s8456_s17 = sld [smem:[%s9918_s0 + %s8383_s14]]   ;;  %s8386_s26 = smov 6  }
   0x5   :  { %s8461_s21 = sld [smem:[%s9918_s0 + %s8384_s18]]   ;;  %s8387_s30 = smov 7  }
   0x6   :  { %s8466_s25 = sld [smem:[%s9918_s0 + %s8385_s22]]   ;;  %s8388_s4 = smov 8  }
   0x7   :  { %9927 = sst [smem:[#allocation37_spill]] %s8441_s5  ;;  %s8389_s10 = smov 9  }
   0x8   :  { %9928 = sst [smem:[#allocation38_spill]] %s8446_s9  ;;  %s8390_s15 = smov 10  }
   0x9   :  { %9929 = sst [smem:[#allocation39_spill]] %s8451_s13  ;;  %s8391_s20 = smov 11  }
   0xa   :  { %9930 = sst [smem:[#allocation40_spill]] %s8456_s17  ;;  %s8393_s1 = smov 13  }
   0xb   :  { %9931 = sst [smem:[#allocation41_spill]] %s8461_s21  ;;  %s8394_s7 = smov 14  }
   0xc   :  { %s8471_s29 = sld [smem:[%s9918_s0 + %s8386_s26]]   ;;  %s8392_s26 = smov 12  }
   0xd   :  { %s8476_s3 = sld [smem:[%s9918_s0 + %s8387_s30]]   ;;  %s8396_s22 = smov 16  }
   0xe   :  { %s8481_s8 = sld [smem:[%s9918_s0 + %s8388_s4]]   ;;  %s8397_s28 = smov 17  }
   0xf   :  { %s8486_s14 = sld [smem:[%s9918_s0 + %s8389_s10]]  }
  0x10   :  { %s8491_s19 = sld [smem:[%s9918_s0 + %s8390_s15]]   ;;  %s8395_s15 = smov 15  }
  0x11   :  { %s8496_s24 = sld [smem:[%s9918_s0 + %s8391_s20]]  }
  0x12   :  { %s8501_s30 = sld [smem:[%s9918_s0 + %s8392_s26]]  }
  0x13   :  { %9932 = sst [smem:[#allocation42_spill]] %s8476_s3 }
  0x14   :  { %9933 = sst [smem:[#allocation43_spill]] %s8481_s8 }
  0x15   :  { %s8506_s6 = sld [smem:[%s9918_s0 + %s8393_s1]]  }
  0x16   :  { %s8511_s12 = sld [smem:[%s9918_s0 + %s8394_s7]]   ;;  %s8398_s7 = smov 18  }
  0x17   :  { %s8516_s20 = sld [smem:[%s9918_s0 + %s8395_s15]]   ;;  %s8399_s15 = smov 19  }
  0x18   :  { %s8521_s27 = sld [smem:[%s9918_s0 + %s8396_s22]]   ;;  %s8400_s22 = smov 20  }
  0x19   :  { %s8526_s4 = sld [smem:[%s9918_s0 + %s8397_s28]]   ;;  %s8401_s28 = smov 21  }
  0x1a   :  { %s8531_s9 = sld [smem:[%s9918_s0 + %s8398_s7]]   ;;  %s8402_s7 = smov 22  }
  0x1b   :  { %s8536_s3 = sld [smem:[%s9918_s0 + %s8399_s15]]   ;;  %s8403_s15 = smov 23  }
  0x1c   :  { %s8546_s8 = sld [smem:[%s9918_s0 + %s8401_s28]]   ;;  %s8405_s28 = smov 25  }
  0x1d   :  { %s8551_s21 = sld [smem:[%s9918_s0 + %s8402_s7]]   ;;  %s8406_s7 = smov 26  }
  0x1e   :  { %9934 = sst [smem:[#allocation44_spill]] %s8521_s27 }
  0x1f   :  { %s8541_s27 = sld [smem:[%s9918_s0 + %s8400_s22]]   ;;  %s8404_s22 = smov 24  }
  0x20   :  { %s8556_s17 = sld [smem:[%s9918_s0 + %s8403_s15]]   ;;  %s8407_s15 = smov 27  }
  0x21   :  { %s8561_s13 = sld [smem:[%s9918_s0 + %s8404_s22]]   ;;  %s8408_s22 = smov 28  }
  0x22   :  { %9935 = sst [smem:[#allocation45_spill]] %s8546_s8 }
  0x23   :  { %9936 = sst [smem:[#allocation46_spill]] %s8551_s21 }
  0x24   :  { %s8566_s8 = sld [smem:[%s9918_s0 + %s8405_s28]]   ;;  %s8409_s28 = smov 29  }
  0x25   :  { %s8571_s21 = sld [smem:[%s9918_s0 + %s8406_s7]]  }
  0x26   :  { %s8576_s5 = sld [smem:[%s9918_s0 + %s8407_s15]]  }
  0x27   :  { %9937 = sst [smem:[#allocation47_spill]] %s8561_s13 }
  0x28   :  { %s8581_s13 = sld [smem:[%s9918_s0 + %s8408_s22]]  }
  0x2a   :  { %9938 = sst [smem:[#allocation48_spill]] %s8566_s8 }
  0x2b   :  { %s8586_s8 = sld [smem:[%s9918_s0 + %s8409_s28]]  }
  0x2c   :  { %64 = vsyncpa [#allocation4], 0 }
  0x2d   :  { %65 = vsyncpa [#allocation6], 0 }
  0x2e   :  { %66 = vsyncpa [#allocation9], 0 }
  0x2f   :  { %67 = vsyncpa [#allocation12], 0 }
  0x30   :  { %68 = vsyncpa [#allocation15], 0 }
  0x31   :  { %69 = vsyncpa [#allocation18], 0 }
  0x32   :  { %70 = vsyncpa [#allocation21], 0 }
  0x33   :  { %71 = vsyncpa [#allocation24], 0 }
  0x34   :  { %72 = vsyncpa [#allocation27], 0  ;;  %s8410_s7 = smov [#allocation5]   ;;  %s8411_s11 = smov [#allocation8]  }
  0x35   :  { %s99_s10 = sshll.u32 %s8410_s7, 4  ;;  %s123_s15 = sshll.u32 %s8411_s11, 4  ;;  %s100_s10 = int_to_ptr.vmem [resolvable:$true] %s99_s10  ;;  %s124_s15 = int_to_ptr.vmem [resolvable:$true] %s123_s15 }
  0x36   :  { %s8051_s16 = scalar_lea.vmem %s100_s10, 16  ;;  %s8055_s18 = scalar_lea.vmem %s100_s10, 32 }
  0x37   :  { %p8052_p0 = scmp.ne.s32.totalorder %s100_s10, %s8051_s16  ;;  %p8056_p1 = scmp.lt.s32.totalorder %s100_s10, %s100_s10 }
  0x38   :  { %p8057_p2 = scmp.lt.s32.totalorder %s8055_s18, %s8051_s16 }
  0x3a   :  { %p8058_p3 = por %p8057_p2, %p8056_p1 }
  0x3c   :  { %p8059_p4 = pnand %p8058_p3, %p8052_p0 }
  0x3e   :  { %8062 = shalt.err (!%p8059_p4)
}
  0x3f   :  { %102 = dma.hbm_to_vmem [thread:$0]  %s8471_s29, 16, %s100_s10, [#allocation6]  }
  0x40   :  { %s8071_s0 = scalar_lea.vmem %s124_s15, 16  ;;  %s8075_s22 = scalar_lea.vmem %s124_s15, 32 }
  0x41   :  { %p8072_p5 = scmp.ne.s32.totalorder %s124_s15, %s8071_s0  ;;  %p8076_p6 = scmp.lt.s32.totalorder %s124_s15, %s124_s15 }
  0x42   :  { %p8077_p7 = scmp.lt.s32.totalorder %s8075_s22, %s8071_s0 }
  0x44   :  { %p8078_p8 = por %p8077_p7, %p8076_p6 }
  0x46   :  { %p8079_p9 = pnand %p8078_p8, %p8072_p5 }
  0x48   :  { %8082 = shalt.err (!%p8079_p9)
}
  0x49   :  { %126 = dma.hbm_to_vmem [thread:$0]  %s8491_s19, 16, %s124_s15, [#allocation9]  }
  0x4a   :  { %s8412_s23 = smov [#allocation11]   ;;  %s8413_s28 = smov [#allocation14]  }
  0x4b   :  { %s144_s26 = sshll.u32 %s8412_s23, 4  ;;  %s167_s1 = sshll.u32 %s8413_s28, 4  ;;  %s145_s26 = int_to_ptr.vmem [resolvable:$true] %s144_s26  ;;  %s168_s1 = int_to_ptr.vmem [resolvable:$true] %s167_s1 }
  0x4c   :  { %s8091_s2 = scalar_lea.vmem %s145_s26, 512  ;;  %p8096_p11 = scmp.lt.s32.totalorder %s145_s26, %s145_s26 }
  0x4d   :  { %p8092_p10 = scmp.ne.s32.totalorder %s145_s26, %s8091_s2  ;;  %p8097_p12 = scmp.lt.s32.totalorder %s8091_s2, %s8091_s2 }
  0x4f   :  { %p8098_p13 = por %p8097_p12, %p8096_p11 }
  0x51   :  { %p8099_p0 = pnand %p8098_p13, %p8092_p10 }
  0x53   :  { %8102 = shalt.err (!%p8099_p0)
}
  0x54   :  { %s8414_s29 = smov 128   ;;  %s8415_s7 = smov 8  }
  0x55   :  { %150 = dma.hbm_to_vmem [thread:$0]  %s8501_s30, 512, %s145_s26, [#allocation12], %s8414_s29, %s8414_s29, %s8415_s7  }
  0x56   :  { %s8111_s19 = scalar_lea.vmem %s168_s1, 16  ;;  %s8115_s10 = scalar_lea.vmem %s168_s1, 32 }
  0x57   :  { %p8112_p1 = scmp.ne.s32.totalorder %s168_s1, %s8111_s19  ;;  %p8116_p2 = scmp.lt.s32.totalorder %s168_s1, %s168_s1 }
  0x58   :  { %p8117_p3 = scmp.lt.s32.totalorder %s8115_s10, %s8111_s19 }
  0x5a   :  { %p8118_p4 = por %p8117_p3, %p8116_p2 }
  0x5c   :  { %p8119_p5 = pnand %p8118_p4, %p8112_p1 }
  0x5e   :  { %8122 = shalt.err (!%p8119_p5)
}
  0x5f   :  { %170 = dma.hbm_to_vmem [thread:$0]  %s8511_s12, 16, %s168_s1, [#allocation15]  }
  0x60   :  { %s8416_s11 = smov [#allocation17]   ;;  %s8417_s16 = smov [#allocation20]  }
  0x61   :  { %s191_s15 = sshll.u32 %s8416_s11, 4  ;;  %s210_s18 = sshll.u32 %s8417_s16, 4  ;;  %s192_s15 = int_to_ptr.vmem [resolvable:$true] %s191_s15  ;;  %s211_s18 = int_to_ptr.vmem [resolvable:$true] %s210_s18 }
  0x62   :  { %s8131_s0 = scalar_lea.vmem %s192_s15, 16  ;;  %s8135_s22 = scalar_lea.vmem %s192_s15, 32 }
  0x63   :  { %p8132_p6 = scmp.ne.s32.totalorder %s192_s15, %s8131_s0  ;;  %p8136_p7 = scmp.lt.s32.totalorder %s192_s15, %s192_s15 }
  0x64   :  { %p8137_p8 = scmp.lt.s32.totalorder %s8135_s22, %s8131_s0 }
  0x66   :  { %p8138_p9 = por %p8137_p8, %p8136_p7 }
  0x68   :  { %p8139_p10 = pnand %p8138_p9, %p8132_p6 }
  0x6a   :  { %8142 = shalt.err (!%p8139_p10)
}
  0x6b   :  { %194 = dma.hbm_to_vmem [thread:$0]  %s8526_s4, 16, %s192_s15, [#allocation18]  }
  0x6c   :  { %s8151_s30 = scalar_lea.vmem %s211_s18, 512  ;;  %p8156_p12 = scmp.lt.s32.totalorder %s211_s18, %s211_s18 }
  0x6d   :  { %p8152_p11 = scmp.ne.s32.totalorder %s211_s18, %s8151_s30  ;;  %p8157_p13 = scmp.lt.s32.totalorder %s8151_s30, %s8151_s30 }
  0x6f   :  { %p8158_p0 = por %p8157_p13, %p8156_p12 }
  0x71   :  { %p8159_p1 = pnand %p8158_p0, %p8152_p11 }
  0x73   :  { %8162 = shalt.err (!%p8159_p1)
}
  0x74   :  { %216 = dma.hbm_to_vmem [thread:$0]  %s8536_s3, 512, %s211_s18, [#allocation21], %s8414_s29, %s8414_s29, %s8415_s7  }
  0x75   :  { %s8418_s12 = smov [#allocation23]   ;;  %s8419_s26 = smov [#allocation3]  }
  0x76   :  { %s238_s23 = sshll.u32 %s8418_s12, 4  ;;  %s89_s28 = sshll.u32 %s8419_s26, 4  ;;  %s239_s23 = int_to_ptr.vmem [resolvable:$true] %s238_s23  ;;  %s90_s28 = int_to_ptr.vmem [resolvable:$true] %s89_s28 }
  0x77   :  { %s8171_s1 = scalar_lea.vmem %s239_s23, 512  ;;  %p8176_p3 = scmp.lt.s32.totalorder %s239_s23, %s239_s23 }
  0x78   :  { %p8172_p2 = scmp.ne.s32.totalorder %s239_s23, %s8171_s1  ;;  %p8177_p4 = scmp.lt.s32.totalorder %s8171_s1, %s8171_s1 }
  0x7a   :  { %p8178_p5 = por %p8177_p4, %p8176_p3 }
  0x7c   :  { %p8179_p6 = pnand %p8178_p5, %p8172_p2 }
  0x7e   :  { %8182 = shalt.err (!%p8179_p6)
}
  0x7f   :  { %244 = dma.hbm_to_vmem [thread:$0]  %s8556_s17, 512, %s239_s23, [#allocation24], %s8414_s29, %s8414_s29, %s8415_s7  }
  0x80   :  { %s8191_s4 = scalar_lea.vmem %s90_s28, 16  ;;  %s8195_s3 = scalar_lea.vmem %s90_s28, 32 }
  0x81   :  { %p8192_p7 = scmp.ne.s32.totalorder %s90_s28, %s8191_s4  ;;  %p8196_p8 = scmp.lt.s32.totalorder %s90_s28, %s90_s28 }
  0x82   :  { %p8197_p9 = scmp.lt.s32.totalorder %s8195_s3, %s8191_s4 }
  0x84   :  { %p8198_p10 = por %p8197_p9, %p8196_p8 }
  0x86   :  { %p8199_p11 = pnand %p8198_p10, %p8192_p7 }
  0x88   :  { %8202 = shalt.err (!%p8199_p11)
}
  0x89   :  { %92 = dma.hbm_to_vmem [thread:$0]  %s8466_s25, 16, %s90_s28, [#allocation4]  }
  0x8a   :  { %s8420_s2 = smov [#allocation7]   ;;  %s8421_s10 = smov [#allocation10]  }
  0x8b   :  { %s113_s19 = sshll.u32 %s8420_s2, 4  ;;  %s132_s11 = sshll.u32 %s8421_s10, 4  ;;  %s114_s19 = int_to_ptr.vmem [resolvable:$true] %s113_s19  ;;  %s133_s11 = int_to_ptr.vmem [resolvable:$true] %s132_s11 }
  0x8c   :  { %s8211_s15 = scalar_lea.vmem %s114_s19, 16  ;;  %s8215_s16 = scalar_lea.vmem %s114_s19, 32 }
  0x8d   :  { %p8212_p12 = scmp.ne.s32.totalorder %s114_s19, %s8211_s15  ;;  %p8216_p13 = scmp.lt.s32.totalorder %s114_s19, %s114_s19 }
  0x8e   :  { %p8217_p0 = scmp.lt.s32.totalorder %s8215_s16, %s8211_s15 }
  0x90   :  { %p8218_p1 = por %p8217_p0, %p8216_p13 }
  0x92   :  { %p8219_p2 = pnand %p8218_p1, %p8212_p12 }
  0x94   :  { %8222 = shalt.err (!%p8219_p2)
}
  0x95   :  { %116 = dma.hbm_to_vmem [thread:$0]  %s8486_s14, 16, %s114_s19, [#allocation6]  }
  0x96   :  { %s8231_s17 = scalar_lea.vmem %s133_s11, 512  ;;  %p8236_p4 = scmp.lt.s32.totalorder %s133_s11, %s133_s11 }
  0x97   :  { %p8232_p3 = scmp.ne.s32.totalorder %s133_s11, %s8231_s17  ;;  %p8237_p5 = scmp.lt.s32.totalorder %s8231_s17, %s8231_s17 }
  0x99   :  { %p8238_p6 = por %p8237_p5, %p8236_p4 }
  0x9b   :  { %p8239_p7 = pnand %p8238_p6, %p8232_p3 }
  0x9d   :  { %8242 = shalt.err (!%p8239_p7)
}
  0x9e   :  { %138 = dma.hbm_to_vmem [thread:$0]  %s8496_s24, 512, %s133_s11, [#allocation9], %s8414_s29, %s8414_s29, %s8415_s7  }
  0x9f   :  { %s8422_s25 = smov [#allocation13]   ;;  %s8423_s0 = smov [#allocation16]  }
  0xa0   :  { %s157_s18 = sshll.u32 %s8422_s25, 4  ;;  %s176_s22 = sshll.u32 %s8423_s0, 4  ;;  %s158_s18 = int_to_ptr.vmem [resolvable:$true] %s157_s18  ;;  %s177_s22 = int_to_ptr.vmem [resolvable:$true] %s176_s22 }
  0xa1   :  { %s8251_s30 = scalar_lea.vmem %s158_s18, 16  ;;  %s8255_s14 = scalar_lea.vmem %s158_s18, 32 }
  0xa2   :  { %p8252_p8 = scmp.ne.s32.totalorder %s158_s18, %s8251_s30  ;;  %p8256_p9 = scmp.lt.s32.totalorder %s158_s18, %s158_s18 }
  0xa3   :  { %p8257_p10 = scmp.lt.s32.totalorder %s8255_s14, %s8251_s30 }
  0xa5   :  { %p8258_p11 = por %p8257_p10, %p8256_p9 }
  0xa7   :  { %p8259_p12 = pnand %p8258_p11, %p8252_p8 }
  0xa9   :  { %8262 = shalt.err (!%p8259_p12)
}
  0xaa   :  { %160 = dma.hbm_to_vmem [thread:$0]  %s8506_s6, 16, %s158_s18, [#allocation12]  }
  0xab   :  { %s8271_s12 = scalar_lea.vmem %s177_s22, 512  ;;  %p8276_p0 = scmp.lt.s32.totalorder %s177_s22, %s177_s22 }
  0xac   :  { %p8272_p13 = scmp.ne.s32.totalorder %s177_s22, %s8271_s12  ;;  %p8277_p1 = scmp.lt.s32.totalorder %s8271_s12, %s8271_s12 }
  0xae   :  { %p8278_p2 = por %p8277_p1, %p8276_p0 }
  0xb0   :  { %p8279_p3 = pnand %p8278_p2, %p8272_p13 }
  0xb2   :  { %8282 = shalt.err (!%p8279_p3)
}
  0xb3   :  { %182 = dma.hbm_to_vmem [thread:$0]  %s8516_s20, 512, %s177_s22, [#allocation15], %s8414_s29, %s8414_s29, %s8415_s7  }
  0xb4   :  { %s8424_s24 = smov [#allocation19]   ;;  %s8425_s26 = smov [#allocation22]  }
  0xb5   :  { %s201_s23 = sshll.u32 %s8424_s24, 4  ;;  %s222_s28 = sshll.u32 %s8425_s26, 4  ;;  %s202_s23 = int_to_ptr.vmem [resolvable:$true] %s201_s23  ;;  %s223_s28 = int_to_ptr.vmem [resolvable:$true] %s222_s28 }
  0xb6   :  { %s8291_s1 = scalar_lea.vmem %s202_s23, 16  ;;  %s8295_s6 = scalar_lea.vmem %s202_s23, 32 }
  0xb7   :  { %p8292_p4 = scmp.ne.s32.totalorder %s202_s23, %s8291_s1  ;;  %p8296_p5 = scmp.lt.s32.totalorder %s202_s23, %s202_s23 }
  0xb8   :  { %p8297_p6 = scmp.lt.s32.totalorder %s8295_s6, %s8291_s1 }
  0xba   :  { %p8298_p7 = por %p8297_p6, %p8296_p5 }
  0xbc   :  { %p8299_p8 = pnand %p8298_p7, %p8292_p4 }
  0xbe   :  { %8302 = shalt.err (!%p8299_p8)
}
  0xbf   :  { %204 = dma.hbm_to_vmem [thread:$0]  %s8531_s9, 16, %s202_s23, [#allocation18]  }
  0xc0   :  { %s8311_s4 = scalar_lea.vmem %s223_s28, 512  ;;  %p8316_p10 = scmp.lt.s32.totalorder %s223_s28, %s223_s28 }
  0xc1   :  { %p8312_p9 = scmp.ne.s32.totalorder %s223_s28, %s8311_s4  ;;  %p8317_p11 = scmp.lt.s32.totalorder %s8311_s4, %s8311_s4 }
  0xc3   :  { %p8318_p12 = por %p8317_p11, %p8316_p10 }
  0xc5   :  { %p8319_p13 = pnand %p8318_p12, %p8312_p9 }
  0xc7   :  { %8322 = shalt.err (!%p8319_p13)
}
  0xc8   :  { %228 = dma.hbm_to_vmem [thread:$0]  %s8541_s27, 512, %s223_s28, [#allocation21], %s8414_s29, %s8414_s29, %s8415_s7  }
  0xc9   :  { %s8426_s20 = smov [#allocation25]   ;;  %s8427_s2 = smov [#allocation26]  }
  0xca   :  { %s250_s3 = sshll.u32 %s8426_s20, 4  ;;  %s266_s19 = sshll.u32 %s8427_s2, 4  ;;  %s251_s3 = int_to_ptr.vmem [resolvable:$true] %s250_s3  ;;  %s267_s19 = int_to_ptr.vmem [resolvable:$true] %s266_s19 }
  0xcb   :  { %s8331_s10 = scalar_lea.vmem %s251_s3, 512  ;;  %p8336_p1 = scmp.lt.s32.totalorder %s251_s3, %s251_s3 }
  0xcc   :  { %p8332_p0 = scmp.ne.s32.totalorder %s251_s3, %s8331_s10  ;;  %p8337_p2 = scmp.lt.s32.totalorder %s8331_s10, %s8331_s10 }
  0xce   :  { %p8338_p3 = por %p8337_p2, %p8336_p1 }
  0xd0   :  { %p8339_p4 = pnand %p8338_p3, %p8332_p0 }
  0xd2   :  { %8342 = shalt.err (!%p8339_p4)
}
  0xd3   :  { %s9939_s9 = sld [smem:[#allocation47_spill]]  ;;  %s8351_s11 = scalar_lea.vmem %s267_s19, 512 }
  0xd4   :  { %p8352_p5 = scmp.ne.s32.totalorder %s267_s19, %s8351_s11  ;;  %p8356_p6 = scmp.lt.s32.totalorder %s267_s19, %s267_s19 }
  0xd5   :  { %p8357_p7 = scmp.lt.s32.totalorder %s8351_s11, %s8351_s11 }
  0xd7   :  { %p8358_p8 = por %p8357_p7, %p8356_p6 }
  0xd9   :  { %256 = dma.hbm_to_vmem [thread:$0]  %s9939_s9, 512, %s251_s3, [#allocation24], %s8414_s29, %s8414_s29, %s8415_s7  }
  0xda   :  { %p8359_p9 = pnand %p8358_p8, %p8352_p5 }
  0xdc   :  { %8362 = shalt.err (!%p8359_p9)
}
  0xdd   :  { %272 = dma.hbm_to_vmem [thread:$0]  %s8576_s5, 512, %s267_s19, [#allocation27], %s8414_s29, %s8414_s29, %s8415_s7  }
  0xde   :  { %8363 = dma.done.wait [#allocation4], 16  }
  0xdf   :  { %8364 = vsyncadd [#allocation4], 4294967280 }
  0xe0   :  { %8365 = dma.done.wait [#allocation6], 32  }
  0xe1   :  { %8366 = vsyncadd [#allocation6], 4294967264 }
  0xe2   :  { %8367 = dma.done.wait [#allocation9], 528  }
  0xe3   :  { %8368 = vsyncadd [#allocation9], 4294966768 }
  0xe4   :  { %8369 = dma.done.wait [#allocation12], 528  }
  0xe5   :  { %8370 = vsyncadd [#allocation12], 4294966768 }
  0xe6   :  { %8371 = dma.done.wait [#allocation15], 528  }
  0xe7   :  { %8372 = vsyncadd [#allocation15], 4294966768 }
  0xe8   :  { %8373 = dma.done.wait [#allocation18], 32  }
  0xe9   :  { %8374 = vsyncadd [#allocation18], 4294967264 }
  0xea   :  { %8375 = dma.done.wait [#allocation21], 1024  }
  0xeb   :  { %8376 = vsyncadd [#allocation21], 4294966272 }
  0xec   :  { %8377 = dma.done.wait [#allocation24], 1024  }
  0xed   :  { %8378 = vsyncadd [#allocation24], 4294966272 }
  0xee   :  { %8379 = dma.done.wait [#allocation27], 512  }
  0xef   :  { %8380 = vsyncadd [#allocation27], 4294966784  ;;  %s9940_s27 = sld [smem:[#allocation37_spill]]  ;;  %v8428_v0 = vmov 0   ;;  %v8429_v14 = vmov 0.0   ;;  %v333_v15 = vlaneseq  ;;  %vm347_vm0 = vcmask 523264  }
  0xf0   :  { %s9941_s5 = sld [smem:[#allocation39_spill]]  ;;  %7745 = vset.pattern.permute.xlu0 %v8428_v0  ;;  %7746 = vset.pattern.permute.xlu1 %v8428_v0  ;;  %vm8430_vm3 = vmmov 0   ;;  %v6627_v26 = vld [vmem:[#allocation5] ss:$0 sm:$0xff]  ;;  %s8431_s15 = smov 64   ;;  %vm440_vm4 = vcmask 261120  }
  0xf1   :  { %s9942_s29 = sld [smem:[#allocation40_spill]]  ;;  %v8642_v16 = vand.u32 127, %v333_v15  ;;  %612 = vrot.lane.b32.xlu1 %v6627_v26, %s8431_s15  ;;  %v6624_v29 = vld [vmem:[#allocation3] ss:$0 sm:$0xff]  ;;  %s8432_s16 = smov 96   ;;  %vm639_vm5 = vcmask 254976  }
  0xf2   :  { %s9943_s7 = sld [smem:[#allocation41_spill]]  ;;  %vm750_vm6 = vcmask 257026   ;;  %vm978_vm7 = vcmask 261126   ;;  %vm864_vm8 = vcmask 259076  }
  0xf3   :  { %s9944_s17 = sld [smem:[#allocation43_spill]] }
  0xf4   :  { %s9945_s25 = sld [smem:[#allocation42_spill]] }
  0xf5   :  { %v331_v1 = vld [vmem:[%s9940_s27] sm:$0xff]  ;;  %v332_v4 = vld [vmem:[%s9940_s27 + $0x8] sm:$0xff]  ;;  %s9946_s18 = sld [smem:[#allocation38_spill]] }
  0xf6   :  { %v330_v2 = vld [vmem:[%s9941_s5 + $0x38] sm:$0xff]  ;;  %336 = vperm.xlu0 %7745, %v331_v1   ;;  %v329_v3 = vld [vmem:[%s9941_s5 + $0x30] sm:$0xff]  ;;  %v328_v5 = vld [vmem:[%s9941_s5 + $0x28] sm:$0xff]  ;;  %s9947_s0 = sld [smem:[#allocation44_spill]] }
  0xf7   :  { %7050 = vmatprep.subr.mxu0 %v330_v2  ;;  %v432_v6 = vld [vmem:[%s9942_s29 + $0x18] sm:$0xff]  ;;  %v327_v7 = vld [vmem:[%s9941_s5 + $0x20] sm:$0xff]  ;;  %v431_v8 = vld [vmem:[%s9942_s29 + $0x10] sm:$0xff]  ;;  %s9948_s22 = sld [smem:[#allocation46_spill]] }
  0xf8   :  { %7051 = vmatpush3.msra.mxu0 %v330_v2  ;;  %7069 = vmatprep.subr.mxu1 %v432_v6  ;;  %v326_v9 = vld [vmem:[%s9941_s5 + $0x18] sm:$0xff]  ;;  %v430_v10 = vld [vmem:[%s9942_s29 + $0x8] sm:$0xff]  ;;  %v325_v11 = vld [vmem:[%s9941_s5 + $0x10] sm:$0xff]  ;;  %s9949_s30 = sld [smem:[#allocation45_spill]] }
  0xf9   :  { %7052 = vmatprep.subr.mxu0 %v329_v3  ;;  %7070 = vmatpush3.msra.mxu1 %v432_v6  ;;  %v324_v12 = vld [vmem:[%s9941_s5 + $0x8] sm:$0xff]  ;;  %v323_v13 = vld [vmem:[%s9941_s5] sm:$0xff]  ;;  %v8653_v22 = vld [vmem:[%s9943_s7 + $0x18] sm:$0xff] }
  0xfa   :  { %7053 = vmatpush3.msra.mxu0 %v329_v3  ;;  %339 = vperm.xlu0 %7745, %v332_v4   ;;  %v429_v21 = vld [vmem:[%s9942_s29] sm:$0xff]  ;;  %v8658_v23 = vld [vmem:[%s9943_s7 + $0x10] sm:$0xff]  ;;  %v8662_v24 = vld [vmem:[%s9943_s7 + $0x8] sm:$0xff] }
  0xfb   :  { %7054 = vmatprep.subr.mxu0 %v328_v5  ;;  %7071 = vmatprep.subr.mxu1 %v431_v8  ;;  %v8667_v25 = vld [vmem:[%s9943_s7] sm:$0xff] }
  0xfc   :  { %7055 = vmatpush3.msra.mxu0 %v328_v5  ;;  %7072 = vmatpush3.msra.mxu1 %v431_v8 }
  0xfd   :  { %7056 = vmatprep.subr.mxu0 %v327_v7  ;;  %7073 = vmatprep.subr.mxu1 %v430_v10 }
  0xfe   :  { %7057 = vmatpush3.msra.mxu0 %v327_v7  ;;  %7074 = vmatpush3.msra.mxu1 %v430_v10 }
  0xff   :  { %7058 = vmatprep.subr.mxu0 %v326_v9  ;;  %7075 = vmatprep.subr.mxu1 %v429_v21 }
 0x100   :  { %7059 = vmatpush3.msra.mxu0 %v326_v9  ;;  %7076 = vmatpush3.msra.mxu1 %v429_v21 }
 0x101   :  { %7060 = vmatprep.subr.mxu0 %v325_v11  ;;  %7080 = vmatprep.subr.mxu1 %v8429_v14 }
 0x102   :  { %7061 = vmatpush3.msra.mxu0 %v325_v11 }
 0x103   :  { %7062 = vmatprep.subr.mxu0 %v324_v12 }
 0x104   :  { %7063 = vmatpush3.msra.mxu0 %v324_v12 }
 0x105   :  { %7064 = vmatprep.subr.mxu0 %v323_v13 }
 0x106   :  { %7065 = vmatpush3.msra.mxu0 %v323_v13 }
 0x107   :  { %7091 = vmatprep.subr.mxu0 %v8429_v14 }
 0x163   :  { %v8700_v33 = vpop.permute.xlu1 %612 }
 0x171   :  { %v337_v17 = vpop.permute.xlu0 %336 }
 0x172   :  { %vm341_vm1 = vcmp.eq.s32.totalorder %v337_v17, %v8642_v16 }
 0x173   :  { %v6620_v18 = vsel %vm341_vm1, 1.0, %v8429_v14 }
 0x174   :  { %7066 = vmatprep.mubr.msk.f32.mxu0 %vm347_vm0, %v6620_v18 }
 0x175   :  { %v340_v19 = vpop.permute.xlu0 %339 }
 0x176   :  { %vm342_vm2 = vcmp.eq.s32.totalorder %v340_v19, %v8642_v16 }
 0x177   :  { %v6621_v20 = vsel %vm342_vm2, 1.0, %v8429_v14 }
 0x178   :  { %7067 = vmatmul.mubr.msk.f32.vlgmr.msra.gmra.mxu0 %vm347_vm0, %v6621_v20 }
 0x179   :  { %7092 = vmatpush3.msra.mxu0 %v8653_v22  ;;  %7099 = vmatprep.mubr.msk.f32.mxu0 %vm8430_vm3, %v8429_v14 }
 0x17a   :  { %7093 = vmatprep.subr.mxu0 %v8429_v14 }
 0x17b   :  { %7094 = vmatpush3.msra.mxu0 %v8658_v23 }
 0x17c   :  { %7095 = vmatprep.subr.mxu0 %v8429_v14 }
 0x17d   :  { %7096 = vmatpush3.msra.mxu0 %v8662_v24 }
 0x17e   :  { %7097 = vmatprep.subr.mxu0 %v8429_v14 }
 0x17f   :  { %7098 = vmatpush3.msra.mxu0 %v8667_v25 }
 0x180   :  { %7113 = vmatprep.subr.mxu0 %v8429_v14 }
 0x238   :  { %v7068_v27 = vpop.f32.mrf.mxu0 }
 0x23a   :  { %v420_v28 = vpop.f32.mrf.mxu0 }
 0x23b   :  { %7077 = vmatprep.mubr.msk.f32.mxu1 %vm440_vm4, %v420_v28 }
 0x23c   :  { %7078 = vmatmul.mubr.msk.f32.vlgmr.msra.gmra.mxu1 %vm440_vm4, %v7068_v27 }
 0x23d   :  { %7081 = vmatpush3.msra.mxu1 %v8653_v22  ;;  %7088 = vmatprep.mubr.msk.f32.mxu1 %vm8430_vm3, %v8429_v14 }
 0x23e   :  { %7082 = vmatprep.subr.mxu1 %v8429_v14 }
 0x23f   :  { %7083 = vmatpush3.msra.mxu1 %v8658_v23 }
 0x240   :  { %7084 = vmatprep.subr.mxu1 %v8429_v14 }
 0x241   :  { %7085 = vmatpush3.msra.mxu1 %v8662_v24 }
 0x242   :  { %7086 = vmatprep.subr.mxu1 %v8429_v14 }
 0x243   :  { %7087 = vmatpush3.msra.mxu1 %v8667_v25 }
 0x244   :  { %7089 = vmatmul.mubr.f32.vlgmr.msra.gmra.mxu1 %v8429_v14  ;;  %7102 = vmatprep.subr.mxu1 %v8429_v14 }
 0x245   :  { %7103 = vmatpush3.msra.mxu1 %v8653_v22  ;;  %7110 = vmatprep.mubr.msk.f32.mxu1 %vm8430_vm3, %v8429_v14 }
 0x246   :  { %7104 = vmatprep.subr.mxu1 %v8429_v14 }
 0x247   :  { %7105 = vmatpush3.msra.mxu1 %v8658_v23 }
 0x248   :  { %7106 = vmatprep.subr.mxu1 %v8429_v14 }
 0x249   :  { %7107 = vmatpush3.msra.mxu1 %v8662_v24 }
 0x24a   :  { %7108 = vmatprep.subr.mxu1 %v8429_v14 }
 0x24b   :  { %7109 = vmatpush3.msra.mxu1 %v8667_v25 }
 0x24c   :  { %7124 = vmatprep.subr.mxu1 %v8429_v14 }
 0x2fc   :  { %v7079_v30 = vpop.f32.mrf.mxu1 }
 0x2fd   :  { %v8698_v31 = vadd.f32 %v7079_v30, %v6624_v29 }
 0x2fe   :  { %v513_v32 = vpop.f32.mrf.mxu1 }
 0x2ff   :  { %v8704_v37 = vadd.f32 %v6624_v29, %v513_v32 }
 0x304   :  { %v601_v34 = vpop.f32.mrf.mxu1 }
 0x305   :  { %v615_v35 = vadd.f32 %v8700_v33, %v601_v34  ;;  %v605_v38 = vadd.f32 %v601_v34, %v8704_v37 }
 0x306   :  { %v7090_v36 = vpop.f32.mrf.mxu1 }
 0x307   :  { %617 = vrot.lane.b32.xlu1 %v615_v35, %s8431_s15  ;;  %v6628_v39 = vmul.f32 -1.442695, %v605_v38 }
 0x309   :  { %7747 = vpow2.f32 %v6628_v39 }
 0x316   :  { %v7748_v40 = vpop.eup %7747 }
 0x317   :  { %v609_v41 = vadd.f32 1.0, %v7748_v40 }
 0x319   :  { %7749 = vrcp.f32 %v609_v41 }
 0x326   :  { %v7750_v42 = vpop.eup %7749 }
 0x327   :  { %v627_v48 = vsub.f32 1.0, %v7750_v42  ;;  %v633_v50 = vmul.f32 0.0, %v7750_v42 }
 0x379   :  { %v618_v43 = vpop.permute.xlu1 %617 }
 0x37a   :  { %v620_v44 = vmul.f32 %v7750_v42, %v618_v43 }
 0x37c   :  { %622 = vrot.lane.b32.xlu0 %v620_v44, %s8431_s15 }
 0x3ee   :  { %v623_v45 = vpop.permute.xlu0 %622 }
 0x3ef   :  { %v625_v46 = vadd.f32 %v623_v45, %v8704_v37 }
 0x3f1   :  { %7751 = vtanh.f32 %v625_v46 }
 0x3fe   :  { %v7752_v47 = vpop.eup %7751 }
 0x3ff   :  { %629 = vrot.lane.b32.xlu1 %v7752_v47, %s8432_s16 }
 0x471   :  { %v630_v49 = vpop.permute.xlu1 %629 }
 0x472   :  { %v632_v51 = vmul.f32 %v630_v49, %v627_v48 }
 0x474   :  { %v634_v52 = vadd.f32 %v633_v50, %v632_v51 }
 0x476   :  { %636 = vrot.lane.b32.xlu0 %v634_v52, %s8432_s16  ;;  %v742_v5 = vrot.slane %v634_v52, 6 }
 0x4e8   :  { %v637_v53 = vpop.permute.xlu0 %636 }
 0x4e9   :  { %640 = vst.msk [vmem:[#allocation2] sm:$0x3] %vm639_vm5, %v637_v53  ;;  %7100 = vmatmul.mubr.msk.f32.vlgmr.msra.gmra.mxu0 %vm440_vm4, %v637_v53 }
 0x4ea   :  { %7114 = vmatpush3.msra.mxu0 %v8653_v22  ;;  %7121 = vmatprep.mubr.msk.f32.mxu0 %vm8430_vm3, %v8429_v14 }
 0x4eb   :  { %7115 = vmatprep.subr.mxu0 %v8429_v14 }
 0x4ec   :  { %7116 = vmatpush3.msra.mxu0 %v8658_v23 }
 0x4ed   :  { %7117 = vmatprep.subr.mxu0 %v8429_v14 }
 0x4ee   :  { %7118 = vmatpush3.msra.mxu0 %v8662_v24 }
 0x4ef   :  { %7119 = vmatprep.subr.mxu0 %v8429_v14 }
 0x4f0   :  { %7120 = vmatpush3.msra.mxu0 %v8667_v25 }
 0x4f1   :  { %7135 = vmatprep.subr.mxu0 %v8429_v14 }
 0x5a9   :  { %v709_v54 = vpop.f32.mrf.mxu0 }
 0x5aa   :  { %v723_v55 = vadd.f32 %v709_v54, %v8700_v33  ;;  %v714_v58 = vrot.slane %v709_v54, 6 }
 0x5ab   :  { %v7101_v56 = vpop.f32.mrf.mxu0 }
 0x5ac   :  { %v725_v57 = vrot.slane %v723_v55, 6  ;;  %v716_v59 = vadd.f32 %v714_v58, %v8704_v37 }
 0x5ae   :  { %726 = vrot.lane.b32.xlu1 %v725_v57, %s8431_s15  ;;  %v6630_v60 = vmul.f32 -1.442695, %v716_v59 }
 0x5b0   :  { %7753 = vpow2.f32 %v6630_v60 }
 0x5bd   :  { %v7754_v61 = vpop.eup %7753 }
 0x5be   :  { %v720_v62 = vadd.f32 1.0, %v7754_v61 }
 0x5c0   :  { %7755 = vrcp.f32 %v720_v62 }
 0x5cd   :  { %v7756_v63 = vpop.eup %7755 }
 0x5ce   :  { %v736_v6 = vsub.f32 1.0, %v7756_v63  ;;  %v744_v9 = vmul.f32 %v7756_v63, %v742_v5 }
 0x620   :  { %v727_v0 = vpop.permute.xlu1 %726 }
 0x621   :  { %v729_v1 = vmul.f32 %v7756_v63, %v727_v0 }
 0x623   :  { %731 = vrot.lane.b32.xlu0 %v729_v1, %s8431_s15 }
 0x695   :  { %v732_v2 = vpop.permute.xlu0 %731 }
 0x696   :  { %v734_v3 = vadd.f32 %v732_v2, %v8704_v37 }
 0x698   :  { %7757 = vtanh.f32 %v734_v3 }
 0x6a5   :  { %v7758_v4 = vpop.eup %7757 }
 0x6a6   :  { %738 = vrot.lane.b32.xlu1 %v7758_v4, %s8432_s16 }
 0x718   :  { %v739_v7 = vpop.permute.xlu1 %738 }
 0x719   :  { %v741_v8 = vmul.f32 %v739_v7, %v736_v6 }
 0x71b   :  { %v8729_v10 = vadd.f32 %v744_v9, %v741_v8 }
 0x71d   :  { %v752_v11 = vrot.slane %v8729_v10, 2  ;;  %v856_v38 = vrot.slane %v8729_v10, 6 }
 0x71f   :  { %753 = vrot.lane.b32.xlu0 %v752_v11, %s8432_s16 }
 0x791   :  { %v754_v12 = vpop.permute.xlu0 %753 }
 0x792   :  { %7111 = vmatmul.mubr.msk.f32.vlgmr.msra.gmra.mxu1 %vm440_vm4, %v754_v12 }
 0x793   :  { %7125 = vmatpush3.msra.mxu1 %v8653_v22  ;;  %7132 = vmatprep.mubr.msk.f32.mxu1 %vm8430_vm3, %v8429_v14 }
 0x794   :  { %7126 = vmatprep.subr.mxu1 %v8429_v14 }
 0x795   :  { %7127 = vmatpush3.msra.mxu1 %v8658_v23 }
 0x796   :  { %7128 = vmatprep.subr.mxu1 %v8429_v14 }
 0x797   :  { %7129 = vmatpush3.msra.mxu1 %v8662_v24 }
 0x798   :  { %7130 = vmatprep.subr.mxu1 %v8429_v14 }
 0x799   :  { %7131 = vmatpush3.msra.mxu1 %v8667_v25 }
 0x79a   :  { %7146 = vmatprep.subr.mxu1 %v8429_v14 }
 0x852   :  { %v823_v13 = vpop.f32.mrf.mxu1 }
 0x853   :  { %v837_v15 = vadd.f32 %v823_v13, %v8700_v33  ;;  %v828_v19 = vrot.slane %v823_v13, 4 }
 0x854   :  { %v7112_v17 = vpop.f32.mrf.mxu1 }
 0x855   :  { %v839_v18 = vrot.slane %v837_v15, 4  ;;  %v830_v20 = vadd.f32 %v828_v19, %v8704_v37 }
 0x857   :  { %840 = vrot.lane.b32.xlu1 %v839_v18, %s8431_s15  ;;  %v6632_v21 = vmul.f32 -1.442695, %v830_v20 }
 0x859   :  { %7759 = vpow2.f32 %v6632_v21 }
 0x866   :  { %v7760_v26 = vpop.eup %7759 }
 0x867   :  { %v834_v27 = vadd.f32 1.0, %v7760_v26 }
 0x869   :  { %7761 = vrcp.f32 %v834_v27 }
 0x876   :  { %v7762_v28 = vpop.eup %7761 }
 0x877   :  { %v850_v36 = vsub.f32 1.0, %v7762_v28  ;;  %v858_v40 = vmul.f32 %v7762_v28, %v856_v38 }
 0x8c9   :  { %v841_v29 = vpop.permute.xlu1 %840 }
 0x8ca   :  { %v843_v30 = vmul.f32 %v7762_v28, %v841_v29 }
 0x8cc   :  { %845 = vrot.lane.b32.xlu0 %v843_v30, %s8431_s15 }
 0x93e   :  { %v846_v32 = vpop.permute.xlu0 %845 }
 0x93f   :  { %v848_v34 = vadd.f32 %v846_v32, %v8704_v37 }
 0x941   :  { %7763 = vtanh.f32 %v848_v34 }
 0x94e   :  { %v7764_v35 = vpop.eup %7763 }
 0x94f   :  { %852 = vrot.lane.b32.xlu1 %v7764_v35, %s8432_s16 }
 0x9c1   :  { %v853_v39 = vpop.permute.xlu1 %852 }
 0x9c2   :  { %v855_v41 = vmul.f32 %v853_v39, %v850_v36 }
 0x9c4   :  { %v8751_v42 = vadd.f32 %v858_v40, %v855_v41 }
 0x9c6   :  { %v866_v43 = vrot.slane %v8751_v42, 4  ;;  %v970_v61 = vrot.slane %v8751_v42, 6 }
 0x9c8   :  { %867 = vrot.lane.b32.xlu0 %v866_v43, %s8432_s16 }
 0xa3a   :  { %v868_v44 = vpop.permute.xlu0 %867 }
 0xa3b   :  { %7122 = vmatmul.mubr.msk.f32.vlgmr.msra.gmra.mxu0 %vm440_vm4, %v868_v44 }
 0xa3c   :  { %7136 = vmatpush3.msra.mxu0 %v8653_v22  ;;  %7143 = vmatprep.mubr.msk.f32.mxu0 %vm8430_vm3, %v8429_v14 }
 0xa3d   :  { %7137 = vmatprep.subr.mxu0 %v8429_v14 }
 0xa3e   :  { %7138 = vmatpush3.msra.mxu0 %v8658_v23 }
 0xa3f   :  { %7139 = vmatprep.subr.mxu0 %v8429_v14 }
 0xa40   :  { %7140 = vmatpush3.msra.mxu0 %v8662_v24 }
 0xa41   :  { %7141 = vmatprep.subr.mxu0 %v8429_v14 }
 0xa42   :  { %7142 = vmatpush3.msra.mxu0 %v8667_v25 }
 0xa43   :  { %7157 = vmatprep.subr.mxu0 %v8429_v14 }
 0xafb   :  { %v937_v45 = vpop.f32.mrf.mxu0 }
 0xafc   :  { %v951_v46 = vadd.f32 %v937_v45, %v8700_v33  ;;  %v942_v49 = vrot.slane %v937_v45, 2 }
 0xafd   :  { %v7123_v47 = vpop.f32.mrf.mxu0 }
 0xafe   :  { %v953_v48 = vrot.slane %v951_v46, 2  ;;  %v944_v50 = vadd.f32 %v942_v49, %v8704_v37 }
 0xb00   :  { %954 = vrot.lane.b32.xlu1 %v953_v48, %s8431_s15  ;;  %v6634_v51 = vmul.f32 -1.442695, %v944_v50 }
 0xb02   :  { %7765 = vpow2.f32 %v6634_v51 }
 0xb0f   :  { %v7766_v52 = vpop.eup %7765 }
 0xb10   :  { %v948_v53 = vadd.f32 1.0, %v7766_v52 }
 0xb12   :  { %7767 = vrcp.f32 %v948_v53 }
 0xb1f   :  { %v7768_v54 = vpop.eup %7767 }
 0xb20   :  { %v964_v60 = vsub.f32 1.0, %v7768_v54  ;;  %v972_v63 = vmul.f32 %v7768_v54, %v970_v61 }
 0xb72   :  { %v955_v55 = vpop.permute.xlu1 %954 }
 0xb73   :  { %v957_v56 = vmul.f32 %v7768_v54, %v955_v55 }
 0xb75   :  { %959 = vrot.lane.b32.xlu0 %v957_v56, %s8431_s15 }
 0xbe7   :  { %v960_v57 = vpop.permute.xlu0 %959 }
 0xbe8   :  { %v962_v58 = vadd.f32 %v960_v57, %v8704_v37 }
 0xbea   :  { %7769 = vtanh.f32 %v962_v58 }
 0xbf7   :  { %v7770_v59 = vpop.eup %7769 }
 0xbf8   :  { %966 = vrot.lane.b32.xlu1 %v7770_v59, %s8432_s16 }
 0xc6a   :  { %v967_v62 = vpop.permute.xlu1 %966 }
 0xc6b   :  { %v969_v0 = vmul.f32 %v967_v62, %v964_v60 }
 0xc6d   :  { %v8773_v1 = vadd.f32 %v972_v63, %v969_v0 }
 0xc6f   :  { %v980_v2 = vrot.slane %v8773_v1, 6 }
 0xc71   :  { %981 = vrot.lane.b32.xlu0 %v980_v2, %s8432_s16 }
 0xce3   :  { %v982_v3 = vpop.permute.xlu0 %981 }
 0xce4   :  { %7133 = vmatmul.mubr.msk.f32.vlgmr.msra.gmra.mxu1 %vm440_vm4, %v982_v3 }
 0xce5   :  { %7147 = vmatpush3.msra.mxu1 %v8653_v22  ;;  %7154 = vmatprep.mubr.msk.f32.mxu1 %vm8430_vm3, %v8429_v14 }
 0xce6   :  { %7148 = vmatprep.subr.mxu1 %v8429_v14 }
 0xce7   :  { %7149 = vmatpush3.msra.mxu1 %v8658_v23 }
 0xce8   :  { %7150 = vmatprep.subr.mxu1 %v8429_v14 }
 0xce9   :  { %7151 = vmatpush3.msra.mxu1 %v8662_v24 }
 0xcea   :  { %7152 = vmatprep.subr.mxu1 %v8429_v14 }
 0xceb   :  { %7153 = vmatpush3.msra.mxu1 %v8667_v25 }
 0xda4   :  { %v1051_v37 = vpop.f32.mrf.mxu1 }
 0xda5   :  { %v1062_v4 = vadd.f32 %v1051_v37, %v8700_v33  ;;  %v1055_v6 = vadd.f32 %v1051_v37, %v8698_v31 }
 0xda6   :  { %v7134_v5 = vpop.f32.mrf.mxu1 }
 0xda7   :  { %1064 = vrot.lane.b32.xlu1 %v1062_v4, %s8431_s15  ;;  %v6636_v7 = vmul.f32 -1.442695, %v1055_v6 }
 0xda9   :  { %7771 = vpow2.f32 %v6636_v7 }
 0xdb6   :  { %v7772_v8 = vpop.eup %7771 }
 0xdb7   :  { %v1059_v9 = vadd.f32 1.0, %v7772_v8 }
 0xdb9   :  { %7773 = vrcp.f32 %v1059_v9 }
 0xdc6   :  { %v7774_v11 = vpop.eup %7773 }
 0xdc7   :  { %v1074_v19 = vsub.f32 1.0, %v7774_v11  ;;  %v1081_v21 = vmul.f32 %v7774_v11, %v980_v2 }
 0xe19   :  { %v1065_v12 = vpop.permute.xlu1 %1064 }
 0xe1a   :  { %v1067_v13 = vmul.f32 %v7774_v11, %v1065_v12 }
 0xe1c   :  { %1069 = vrot.lane.b32.xlu0 %v1067_v13, %s8431_s15 }
 0xe8e   :  { %v1070_v15 = vpop.permute.xlu0 %1069 }
 0xe8f   :  { %v1072_v17 = vadd.f32 %v1070_v15, %v8698_v31 }
 0xe91   :  { %7775 = vtanh.f32 %v1072_v17 }
 0xe9e   :  { %v7776_v18 = vpop.eup %7775 }
 0xe9f   :  { %1076 = vrot.lane.b32.xlu1 %v7776_v18, %s8432_s16 }
 0xf11   :  { %v1077_v20 = vpop.permute.xlu1 %1076 }
 0xf12   :  { %v1079_v26 = vmul.f32 %v1077_v20, %v1074_v19 }
 0xf14   :  { %v1082_v27 = vadd.f32 %v1081_v21, %v1079_v26 }
 0xf16   :  { %1084 = vrot.lane.b32.xlu0 %v1082_v27, %s8432_s16  ;;  %v1189_v44 = vrot.slane %v1082_v27, 6 }
 0xf88   :  { %v1085_v28 = vpop.permute.xlu0 %1084 }
 0xf89   :  { %1087 = vst.msk [vmem:[#allocation2 + $0x8] sm:$0x3] %vm639_vm5, %v1085_v28  ;;  %7144 = vmatmul.mubr.msk.f32.vlgmr.msra.gmra.mxu0 %vm440_vm4, %v1085_v28 }
 0xf8a   :  { %7158 = vmatpush3.msra.mxu0 %v8653_v22  ;;  %7165 = vmatprep.mubr.msk.f32.mxu0 %vm8430_vm3, %v8429_v14 }
 0xf8b   :  { %7159 = vmatprep.subr.mxu0 %v8429_v14 }
 0xf8c   :  { %7160 = vmatpush3.msra.mxu0 %v8658_v23 }
 0xf8d   :  { %7161 = vmatprep.subr.mxu0 %v8429_v14 }
 0xf8e   :  { %7162 = vmatpush3.msra.mxu0 %v8662_v24 }
 0xf8f   :  { %7163 = vmatprep.subr.mxu0 %v8429_v14 }
 0xf90   :  { %7164 = vmatpush3.msra.mxu0 %v8667_v25 }
 0xf91   :  { %7179 = vmatprep.subr.mxu0 %v8429_v14 }
0x1049   :  { %v1156_v29 = vpop.f32.mrf.mxu0 }
0x104a   :  { %v1170_v22 = vadd.f32 %v1156_v29, %v8700_v33  ;;  %v1161_v34 = vrot.slane %v1156_v29, 6 }
0x104b   :  { %v7145_v30 = vpop.f32.mrf.mxu0 }
0x104c   :  { %v1172_v32 = vrot.slane %v1170_v22, 6  ;;  %v1163_v23 = vadd.f32 %v1161_v34, %v8698_v31  ;;  %v8849_v34 = vld [vmem:[%s9944_s17 + $0x18] sm:$0xff] }
0x104e   :  { %1173 = vrot.lane.b32.xlu1 %v1172_v32, %s8431_s15  ;;  %v6638_v35 = vmul.f32 -1.442695, %v1163_v23  ;;  %v8852_v23 = vld [vmem:[%s9944_s17 + $0x10] sm:$0xff] }
0x1050   :  { %7777 = vpow2.f32 %v6638_v35  ;;  %v8863_v35 = vld [vmem:[%s9944_s17] sm:$0xff] }
0x105d   :  { %v7778_v36 = vpop.eup %7777 }
0x105e   :  { %v1167_v24 = vadd.f32 1.0, %v7778_v36  ;;  %v1428_v36 = vld [vmem:[%s9945_s25 + $0x10] sm:$0xff] }
0x1060   :  { %7779 = vrcp.f32 %v1167_v24  ;;  %v1427_v24 = vld [vmem:[%s9945_s25 + $0x8] sm:$0xff] }
0x106d   :  { %v7780_v38 = vpop.eup %7779 }
0x106e   :  { %v1183_v45 = vsub.f32 1.0, %v7780_v38  ;;  %v1191_v48 = vmul.f32 %v7780_v38, %v1189_v44 }
0x10c0   :  { %v1174_v39 = vpop.permute.xlu1 %1173 }
0x10c1   :  { %v1176_v25 = vmul.f32 %v7780_v38, %v1174_v39  ;;  %v1426_v38 = vld [vmem:[%s9945_s25] sm:$0xff]  ;;  %v6646_v39 = vld [vmem:[#allocation8] ss:$0 sm:$0xff] }
0x10c3   :  { %1178 = vrot.lane.b32.xlu0 %v1176_v25, %s8431_s15 }
0x1135   :  { %v1179_v40 = vpop.permute.xlu0 %1178 }
0x1136   :  { %v1181_v41 = vadd.f32 %v1179_v40, %v8698_v31 }
0x1138   :  { %7781 = vtanh.f32 %v1181_v41 }
0x1145   :  { %v7782_v43 = vpop.eup %7781 }
0x1146   :  { %1185 = vrot.lane.b32.xlu1 %v7782_v43, %s8432_s16 }
0x11b8   :  { %v1186_v46 = vpop.permute.xlu1 %1185 }
0x11b9   :  { %v1188_v47 = vmul.f32 %v1186_v46, %v1183_v45 }
0x11bb   :  { %v8812_v49 = vadd.f32 %v1191_v48, %v1188_v47 }
0x11bd   :  { %v1198_v50 = vrot.slane %v8812_v49, 2  ;;  %v1302_v4 = vrot.slane %v8812_v49, 6 }
0x11bf   :  { %1199 = vrot.lane.b32.xlu0 %v1198_v50, %s8432_s16 }
0x1231   :  { %v1200_v51 = vpop.permute.xlu0 %1199 }
0x1232   :  { %7155 = vmatmul.mubr.msk.f32.vlgmr.msra.gmra.mxu1 %vm440_vm4, %v1200_v51 }
0x12f2   :  { %v1269_v52 = vpop.f32.mrf.mxu1 }
0x12f3   :  { %v1283_v53 = vadd.f32 %v1269_v52, %v8700_v33  ;;  %v1274_v56 = vrot.slane %v1269_v52, 4 }
0x12f4   :  { %v7156_v54 = vpop.f32.mrf.mxu1 }
0x12f5   :  { %v1285_v55 = vrot.slane %v1283_v53, 4  ;;  %v1276_v57 = vadd.f32 %v1274_v56, %v8698_v31 }
0x12f7   :  { %1286 = vrot.lane.b32.xlu1 %v1285_v55, %s8431_s15  ;;  %v6640_v58 = vmul.f32 -1.442695, %v1276_v57  ;;  %v6643_v55 = vld [vmem:[#allocation7] ss:$0 sm:$0xff] }
0x12f9   :  { %7783 = vpow2.f32 %v6640_v58 }
0x1306   :  { %v7784_v59 = vpop.eup %7783 }
0x1307   :  { %v1280_v60 = vadd.f32 1.0, %v7784_v59 }
0x1309   :  { %7785 = vrcp.f32 %v1280_v60 }
0x1316   :  { %v7786_v61 = vpop.eup %7785 }
0x1317   :  { %v1296_v37 = vsub.f32 1.0, %v7786_v61  ;;  %v1304_v6 = vmul.f32 %v7786_v61, %v1302_v4 }
0x1369   :  { %v1287_v62 = vpop.permute.xlu1 %1286 }
0x136a   :  { %v1289_v63 = vmul.f32 %v7786_v61, %v1287_v62 }
0x136c   :  { %1291 = vrot.lane.b32.xlu0 %v1289_v63, %s8431_s15 }
0x13de   :  { %v1292_v0 = vpop.permute.xlu0 %1291 }
0x13df   :  { %v1294_v2 = vadd.f32 %v1292_v0, %v8698_v31 }
0x13e1   :  { %7787 = vtanh.f32 %v1294_v2 }
0x13ee   :  { %v7788_v3 = vpop.eup %7787 }
0x13ef   :  { %1298 = vrot.lane.b32.xlu1 %v7788_v3, %s8432_s16 }
0x1461   :  { %v1299_v5 = vpop.permute.xlu1 %1298 }
0x1462   :  { %v1301_v7 = vmul.f32 %v1299_v5, %v1296_v37 }
0x1464   :  { %v8824_v8 = vadd.f32 %v1304_v6, %v1301_v7 }
0x1466   :  { %v1311_v9 = vrot.slane %v8824_v8, 4  ;;  %v1415_v40 = vrot.slane %v8824_v8, 6 }
0x1468   :  { %1312 = vrot.lane.b32.xlu0 %v1311_v9, %s8432_s16 }
0x14da   :  { %v1313_v11 = vpop.permute.xlu0 %1312 }
0x14db   :  { %7166 = vmatmul.mubr.msk.f32.vlgmr.msra.gmra.mxu0 %vm440_vm4, %v1313_v11 }
0x14dc   :  { %7187 = vmatprep.mubr.msk.f32.mxu0 %vm8430_vm3, %v8429_v14  ;;  %7180 = vmatpush3.msra.mxu0 %v8849_v34 }
0x14dd   :  { %7181 = vmatprep.subr.mxu0 %v8429_v14 }
0x14de   :  { %7182 = vmatpush3.msra.mxu0 %v8852_v23 }
0x14df   :  { %7183 = vmatprep.subr.mxu0 %v8429_v14 }
0x159b   :  { %v1382_v12 = vpop.f32.mrf.mxu0 }
0x159c   :  { %v1396_v13 = vadd.f32 %v1382_v12, %v8700_v33  ;;  %v1387_v18 = vrot.slane %v1382_v12, 2 }
0x159d   :  { %v7167_v15 = vpop.f32.mrf.mxu0 }
0x159e   :  { %v1398_v17 = vrot.slane %v1396_v13, 2  ;;  %v1389_v19 = vadd.f32 %v1387_v18, %v8698_v31 }
0x15a0   :  { %1399 = vrot.lane.b32.xlu1 %v1398_v17, %s8431_s15  ;;  %v6642_v20 = vmul.f32 -1.442695, %v1389_v19 }
0x15a2   :  { %7789 = vpow2.f32 %v6642_v20 }
0x15af   :  { %v7790_v21 = vpop.eup %7789 }
0x15b0   :  { %v1393_v26 = vadd.f32 1.0, %v7790_v21 }
0x15b2   :  { %7791 = vrcp.f32 %v1393_v26 }
0x15bf   :  { %v8834_v27 = vpop.eup %7791 }
0x15c0   :  { %v1409_v25 = vsub.f32 1.0, %v8834_v27  ;;  %v1417_v43 = vmul.f32 %v8834_v27, %v1415_v40 }
0x1612   :  { %v1400_v28 = vpop.permute.xlu1 %1399 }
0x1613   :  { %v1402_v29 = vmul.f32 %v8834_v27, %v1400_v28 }
0x1615   :  { %1404 = vrot.lane.b32.xlu0 %v1402_v29, %s8431_s15 }
0x1619   :  { %747 = vrot.lane.b32.xlu0 %v8729_v10, %s8432_s16 }
0x161d   :  { %975 = vrot.lane.b32.xlu0 %v8773_v1, %s8432_s16 }
0x1621   :  { %1307 = vrot.lane.b32.xlu0 %v8824_v8, %s8432_s16 }
0x1625   :  { %1605 = vrot.lane.b32.xlu0 %v6646_v39, %s8431_s15 }
0x1687   :  { %v1405_v33 = vpop.permute.xlu0 %1404 }
0x1688   :  { %v1407_v22 = vadd.f32 %v1405_v33, %v8698_v31  ;;  %v8858_v31 = vld [vmem:[%s9944_s17 + $0x8] sm:$0xff] }
0x1689   :  { %7184 = vmatpush3.msra.mxu0 %v8858_v31 }
0x168a   :  { %7793 = vtanh.f32 %v1407_v22  ;;  %7185 = vmatprep.subr.mxu0 %v8429_v14 }
0x168b   :  { %v748_v30 = vpop.permute.xlu0 %747  ;;  %7186 = vmatpush3.msra.mxu0 %v8863_v35 }
0x168c   :  { %751 = vst.msk [vmem:[#allocation2] sm:$0xc] %vm750_vm6, %v748_v30  ;;  %7188 = vmatmul.mubr.f32.vlgmr.msra.gmra.mxu0 %v8429_v14  ;;  %7201 = vmatprep.subr.mxu0 %v8429_v14 }
0x168d   :  { %7202 = vmatpush3.msra.mxu0 %v8849_v34  ;;  %7209 = vmatprep.mubr.msk.f32.mxu0 %vm8430_vm3, %v8429_v14 }
0x168e   :  { %7203 = vmatprep.subr.mxu0 %v8429_v14 }
0x168f   :  { %v976_v10 = vpop.permute.xlu0 %975  ;;  %7204 = vmatpush3.msra.mxu0 %v8852_v23 }
0x1690   :  { %979 = vst.msk [vmem:[#allocation2] sm:$0xc0] %vm978_vm7, %v976_v10  ;;  %7205 = vmatprep.subr.mxu0 %v8429_v14 }
0x1691   :  { %7206 = vmatpush3.msra.mxu0 %v8858_v31 }
0x1692   :  { %7207 = vmatprep.subr.mxu0 %v8429_v14 }
0x1693   :  { %v1308_v1 = vpop.permute.xlu0 %1307  ;;  %7208 = vmatpush3.msra.mxu0 %v8863_v35 }
0x1694   :  { %1310 = vst.msk [vmem:[#allocation2 + $0x8] sm:$0x30] %vm864_vm8, %v1308_v1  ;;  %7223 = vmatprep.subr.mxu0 %v8429_v14 }
0x1697   :  { %v7794_v32 = vpop.eup %7793  ;;  %v8900_v51 = vpop.permute.xlu0 %1605 }
0x1698   :  { %1411 = vrot.lane.b32.xlu1 %v7794_v32, %s8432_s16 }
0x169c   :  { %861 = vrot.lane.b32.xlu1 %v8751_v42, %s8432_s16  ;;  %v1429_v42 = vld [vmem:[%s9945_s25 + $0x18] sm:$0xff] }
0x169d   :  { %7168 = vmatprep.subr.mxu1 %v1429_v42 }
0x169e   :  { %7169 = vmatpush3.msra.mxu1 %v1429_v42 }
0x169f   :  { %7170 = vmatprep.subr.mxu1 %v1428_v36 }
0x16a0   :  { %1194 = vrot.lane.b32.xlu1 %v8812_v49, %s8432_s16  ;;  %7171 = vmatpush3.msra.mxu1 %v1428_v36 }
0x16a1   :  { %7172 = vmatprep.subr.mxu1 %v1427_v24 }
0x16a2   :  { %7173 = vmatpush3.msra.mxu1 %v1427_v24 }
0x16a3   :  { %7174 = vmatprep.subr.mxu1 %v1426_v38 }
0x16a4   :  { %7175 = vmatpush3.msra.mxu1 %v1426_v38 }
0x16a5   :  { %7190 = vmatprep.subr.mxu1 %v8429_v14 }
0x170a   :  { %v1412_v41 = vpop.permute.xlu1 %1411 }
0x170b   :  { %v1414_v44 = vmul.f32 %v1412_v41, %v1409_v25 }
0x170d   :  { %v8893_v45 = vadd.f32 %v1417_v43, %v1414_v44 }
0x170e   :  { %v862_v46 = vpop.permute.xlu1 %861 }
0x170f   :  { %865 = vst.msk [vmem:[#allocation2] sm:$0x30] %vm864_vm8, %v862_v46  ;;  %1420 = vrot.lane.b32.xlu1 %v8893_v45, %s8432_s16 }
0x1712   :  { %v1195_v47 = vpop.permute.xlu1 %1194 }
0x1713   :  { %1197 = vst.msk [vmem:[#allocation2 + $0x8] sm:$0xc] %vm750_vm6, %v1195_v47 }
0x1716   :  { %v1424_v48 = vld [vmem:[#allocation2] sm:$0xff] }
0x1717   :  { %7176 = vmatprep.mubr.msk.f32.mxu1 %vm440_vm4, %v1424_v48 }
0x174c   :  { %v1594_v49 = vpop.f32.mrf.mxu0 }
0x174d   :  { %v1608_v52 = vadd.f32 %v8900_v51, %v1594_v49 }
0x174e   :  { %v7189_v50 = vpop.f32.mrf.mxu0 }
0x174f   :  { %1610 = vrot.lane.b32.xlu1 %v1608_v52, %s8431_s15 }
0x1781   :  { %v1421_v53 = vpop.permute.xlu1 %1420 }
0x1782   :  { %1423 = vst.msk [vmem:[#allocation2 + $0x8] sm:$0xc0] %vm978_vm7, %v1421_v53 }
0x1789   :  { %v1425_v54 = vld [vmem:[#allocation2 + $0x8] sm:$0xff] }
0x178a   :  { %7177 = vmatmul.mubr.msk.f32.vlgmr.msra.gmra.mxu1 %vm440_vm4, %v1425_v54 }
0x178b   :  { %7191 = vmatpush3.msra.mxu1 %v8849_v34  ;;  %7198 = vmatprep.mubr.msk.f32.mxu1 %vm8430_vm3, %v8429_v14 }
0x178c   :  { %7192 = vmatprep.subr.mxu1 %v8429_v14 }
0x178d   :  { %7193 = vmatpush3.msra.mxu1 %v8852_v23 }
0x178e   :  { %7194 = vmatprep.subr.mxu1 %v8429_v14 }
0x178f   :  { %7195 = vmatpush3.msra.mxu1 %v8858_v31 }
0x1790   :  { %7196 = vmatprep.subr.mxu1 %v8429_v14 }
0x1791   :  { %7197 = vmatpush3.msra.mxu1 %v8863_v35 }
0x1792   :  { %7212 = vmatprep.subr.mxu1 %v8429_v14 }
0x17c1   :  { %v1611_v0 = vpop.permute.xlu1 %1610 }
0x184a   :  { %v7178_v56 = vpop.f32.mrf.mxu1 }
0x184b   :  { %v8916_v57 = vadd.f32 %v7178_v56, %v6643_v55 }
0x184c   :  { %v1509_v58 = vpop.f32.mrf.mxu1 }
0x184d   :  { %v8918_v59 = vadd.f32 %v6643_v55, %v1509_v58 }
0x184f   :  { %v1598_v60 = vadd.f32 %v1594_v49, %v8918_v59 }
0x1851   :  { %v6647_v61 = vmul.f32 -1.442695, %v1598_v60 }
0x1853   :  { %7795 = vpow2.f32 %v6647_v61 }
0x1860   :  { %v7796_v62 = vpop.eup %7795 }
0x1861   :  { %v1602_v63 = vadd.f32 1.0, %v7796_v62 }
0x1863   :  { %7797 = vrcp.f32 %v1602_v63 }
0x1870   :  { %v7798_v2 = vpop.eup %7797 }
0x1871   :  { %v1613_v3 = vmul.f32 %v7798_v2, %v1611_v0  ;;  %v1620_v6 = vsub.f32 1.0, %v7798_v2  ;;  %v1626_v8 = vmul.f32 0.0, %v7798_v2 }
0x1873   :  { %1615 = vrot.lane.b32.xlu0 %v1613_v3, %s8431_s15 }
0x18e5   :  { %v1616_v37 = vpop.permute.xlu0 %1615 }
0x18e6   :  { %v1618_v4 = vadd.f32 %v1616_v37, %v8918_v59 }
0x18e8   :  { %7799 = vtanh.f32 %v1618_v4 }
0x18f5   :  { %v7800_v5 = vpop.eup %7799 }
0x18f6   :  { %1622 = vrot.lane.b32.xlu1 %v7800_v5, %s8432_s16 }
0x1968   :  { %v1623_v7 = vpop.permute.xlu1 %1622 }
0x1969   :  { %v1625_v9 = vmul.f32 %v1623_v7, %v1620_v6 }
0x196b   :  { %v1627_v11 = vadd.f32 %v1626_v8, %v1625_v9 }
0x196d   :  { %1629 = vrot.lane.b32.xlu0 %v1627_v11, %s8432_s16  ;;  %v1734_v1 = vrot.slane %v1627_v11, 6 }
0x19df   :  { %v1630_v12 = vpop.permute.xlu0 %1629 }
0x19e0   :  { %1632 = vst.msk [vmem:[#allocation2] sm:$0x3] %vm639_vm5, %v1630_v12  ;;  %7199 = vmatmul.mubr.msk.f32.vlgmr.msra.gmra.mxu1 %vm440_vm4, %v1630_v12 }
0x19e1   :  { %7213 = vmatpush3.msra.mxu1 %v8849_v34  ;;  %7220 = vmatprep.mubr.msk.f32.mxu1 %vm8430_vm3, %v8429_v14 }
0x19e2   :  { %7214 = vmatprep.subr.mxu1 %v8429_v14 }
0x19e3   :  { %7215 = vmatpush3.msra.mxu1 %v8852_v23 }
0x19e4   :  { %7216 = vmatprep.subr.mxu1 %v8429_v14 }
0x19e5   :  { %7217 = vmatpush3.msra.mxu1 %v8858_v31 }
0x19e6   :  { %7218 = vmatprep.subr.mxu1 %v8429_v14 }
0x19e7   :  { %7219 = vmatpush3.msra.mxu1 %v8863_v35 }
0x19e8   :  { %7234 = vmatprep.subr.mxu1 %v8429_v14 }
0x1aa0   :  { %v1701_v13 = vpop.f32.mrf.mxu1 }
0x1aa1   :  { %v1715_v15 = vadd.f32 %v1701_v13, %v8900_v51  ;;  %v1706_v19 = vrot.slane %v1701_v13, 6 }
0x1aa2   :  { %v7200_v17 = vpop.f32.mrf.mxu1 }
0x1aa3   :  { %v1717_v18 = vrot.slane %v1715_v15, 6  ;;  %v1708_v20 = vadd.f32 %v1706_v19, %v8918_v59 }
0x1aa5   :  { %1718 = vrot.lane.b32.xlu1 %v1717_v18, %s8431_s15  ;;  %v6649_v21 = vmul.f32 -1.442695, %v1708_v20 }
0x1aa7   :  { %7801 = vpow2.f32 %v6649_v21 }
0x1ab4   :  { %v7802_v26 = vpop.eup %7801 }
0x1ab5   :  { %v1712_v27 = vadd.f32 1.0, %v7802_v26 }
0x1ab7   :  { %7803 = vrcp.f32 %v1712_v27 }
0x1ac4   :  { %v7804_v28 = vpop.eup %7803 }
0x1ac5   :  { %v1728_v32 = vsub.f32 1.0, %v7804_v28  ;;  %v1736_v24 = vmul.f32 %v7804_v28, %v1734_v1 }
0x1b17   :  { %v1719_v29 = vpop.permute.xlu1 %1718 }
0x1b18   :  { %v1721_v33 = vmul.f32 %v7804_v28, %v1719_v29 }
0x1b1a   :  { %1723 = vrot.lane.b32.xlu0 %v1721_v33, %s8431_s15 }
0x1b8c   :  { %v1724_v22 = vpop.permute.xlu0 %1723 }
0x1b8d   :  { %v1726_v30 = vadd.f32 %v1724_v22, %v8918_v59 }
0x1b8f   :  { %7805 = vtanh.f32 %v1726_v30 }
0x1b9c   :  { %v7806_v10 = vpop.eup %7805 }
0x1b9d   :  { %1730 = vrot.lane.b32.xlu1 %v7806_v10, %s8432_s16 }
0x1c0f   :  { %v1731_v42 = vpop.permute.xlu1 %1730 }
0x1c10   :  { %v1733_v36 = vmul.f32 %v1731_v42, %v1728_v32 }
0x1c12   :  { %v8943_v38 = vadd.f32 %v1736_v24, %v1733_v36 }
0x1c14   :  { %v1743_v39 = vrot.slane %v8943_v38, 2  ;;  %v1847_v61 = vrot.slane %v8943_v38, 6 }
0x1c16   :  { %1744 = vrot.lane.b32.xlu0 %v1743_v39, %s8432_s16 }
0x1c88   :  { %v1745_v25 = vpop.permute.xlu0 %1744 }
0x1c89   :  { %7210 = vmatmul.mubr.msk.f32.vlgmr.msra.gmra.mxu0 %vm440_vm4, %v1745_v25 }
0x1c8a   :  { %7224 = vmatpush3.msra.mxu0 %v8849_v34  ;;  %7231 = vmatprep.mubr.msk.f32.mxu0 %vm8430_vm3, %v8429_v14 }
0x1c8b   :  { %7225 = vmatprep.subr.mxu0 %v8429_v14 }
0x1c8c   :  { %7226 = vmatpush3.msra.mxu0 %v8852_v23 }
0x1c8d   :  { %7227 = vmatprep.subr.mxu0 %v8429_v14 }
0x1c8e   :  { %7228 = vmatpush3.msra.mxu0 %v8858_v31 }
0x1c8f   :  { %7229 = vmatprep.subr.mxu0 %v8429_v14 }
0x1c90   :  { %7230 = vmatpush3.msra.mxu0 %v8863_v35 }
0x1c91   :  { %7245 = vmatprep.subr.mxu0 %v8429_v14 }
0x1d49   :  { %v1814_v40 = vpop.f32.mrf.mxu0 }
0x1d4a   :  { %v1828_v41 = vadd.f32 %v1814_v40, %v8900_v51  ;;  %v1819_v46 = vrot.slane %v1814_v40, 4 }
0x1d4b   :  { %v7211_v43 = vpop.f32.mrf.mxu0 }
0x1d4c   :  { %v1830_v44 = vrot.slane %v1828_v41, 4  ;;  %v1821_v47 = vadd.f32 %v1819_v46, %v8918_v59 }
0x1d4e   :  { %1831 = vrot.lane.b32.xlu1 %v1830_v44, %s8431_s15  ;;  %v6651_v48 = vmul.f32 -1.442695, %v1821_v47 }
0x1d50   :  { %7807 = vpow2.f32 %v6651_v48 }
0x1d5d   :  { %v7808_v49 = vpop.eup %7807 }
0x1d5e   :  { %v1825_v50 = vadd.f32 1.0, %v7808_v49 }
0x1d60   :  { %7809 = vrcp.f32 %v1825_v50 }
0x1d6d   :  { %v7810_v52 = vpop.eup %7809 }
0x1d6e   :  { %v1841_v60 = vsub.f32 1.0, %v7810_v52  ;;  %v1849_v63 = vmul.f32 %v7810_v52, %v1847_v61 }
0x1dc0   :  { %v1832_v53 = vpop.permute.xlu1 %1831 }
0x1dc1   :  { %v1834_v54 = vmul.f32 %v7810_v52, %v1832_v53 }
0x1dc3   :  { %1836 = vrot.lane.b32.xlu0 %v1834_v54, %s8431_s15 }
0x1e35   :  { %v1837_v55 = vpop.permute.xlu0 %1836 }
0x1e36   :  { %v1839_v56 = vadd.f32 %v1837_v55, %v8918_v59 }
0x1e38   :  { %7811 = vtanh.f32 %v1839_v56 }
0x1e45   :  { %v7812_v58 = vpop.eup %7811 }
0x1e46   :  { %1843 = vrot.lane.b32.xlu1 %v7812_v58, %s8432_s16 }
0x1eb8   :  { %v1844_v62 = vpop.permute.xlu1 %1843 }
0x1eb9   :  { %v1846_v0 = vmul.f32 %v1844_v62, %v1841_v60 }
0x1ebb   :  { %v8965_v2 = vadd.f32 %v1849_v63, %v1846_v0 }
0x1ebd   :  { %v1856_v3 = vrot.slane %v8965_v2, 4  ;;  %v1960_v27 = vrot.slane %v8965_v2, 6 }
0x1ebf   :  { %1857 = vrot.lane.b32.xlu0 %v1856_v3, %s8432_s16 }
0x1f31   :  { %v1858_v37 = vpop.permute.xlu0 %1857 }
0x1f32   :  { %7221 = vmatmul.mubr.msk.f32.vlgmr.msra.gmra.mxu1 %vm440_vm4, %v1858_v37 }
0x1f33   :  { %7235 = vmatpush3.msra.mxu1 %v8849_v34  ;;  %7242 = vmatprep.mubr.msk.f32.mxu1 %vm8430_vm3, %v8429_v14 }
0x1f34   :  { %7236 = vmatprep.subr.mxu1 %v8429_v14 }
0x1f35   :  { %7237 = vmatpush3.msra.mxu1 %v8852_v23 }
0x1f36   :  { %7238 = vmatprep.subr.mxu1 %v8429_v14 }
0x1f37   :  { %7239 = vmatpush3.msra.mxu1 %v8858_v31 }
0x1f38   :  { %7240 = vmatprep.subr.mxu1 %v8429_v14 }
0x1f39   :  { %7241 = vmatpush3.msra.mxu1 %v8863_v35 }
0x1f3a   :  { %7256 = vmatprep.subr.mxu1 %v8429_v14 }
0x1ff2   :  { %v1927_v4 = vpop.f32.mrf.mxu1 }
0x1ff3   :  { %v1941_v5 = vadd.f32 %v1927_v4, %v8900_v51  ;;  %v1932_v8 = vrot.slane %v1927_v4, 2 }
0x1ff4   :  { %v7222_v6 = vpop.f32.mrf.mxu1 }
0x1ff5   :  { %v1943_v7 = vrot.slane %v1941_v5, 2  ;;  %v1934_v9 = vadd.f32 %v1932_v8, %v8918_v59 }
0x1ff7   :  { %1944 = vrot.lane.b32.xlu1 %v1943_v7, %s8431_s15  ;;  %v6653_v11 = vmul.f32 -1.442695, %v1934_v9 }
0x1ff9   :  { %7813 = vpow2.f32 %v6653_v11 }
0x2006   :  { %v7814_v12 = vpop.eup %7813 }
0x2007   :  { %v1938_v13 = vadd.f32 1.0, %v7814_v12 }
0x2009   :  { %7815 = vrcp.f32 %v1938_v13 }
0x2016   :  { %v7816_v15 = vpop.eup %7815 }
0x2017   :  { %v1954_v26 = vsub.f32 1.0, %v7816_v15  ;;  %v1962_v29 = vmul.f32 %v7816_v15, %v1960_v27 }
0x2069   :  { %v1945_v17 = vpop.permute.xlu1 %1944 }
0x206a   :  { %v1947_v18 = vmul.f32 %v7816_v15, %v1945_v17 }
0x206c   :  { %1949 = vrot.lane.b32.xlu0 %v1947_v18, %s8431_s15 }
0x20de   :  { %v1950_v19 = vpop.permute.xlu0 %1949 }
0x20df   :  { %v1952_v20 = vadd.f32 %v1950_v19, %v8918_v59 }
0x20e1   :  { %7817 = vtanh.f32 %v1952_v20 }
0x20ee   :  { %v7818_v21 = vpop.eup %7817 }
0x20ef   :  { %1956 = vrot.lane.b32.xlu1 %v7818_v21, %s8432_s16 }
0x2161   :  { %v1957_v28 = vpop.permute.xlu1 %1956 }
0x2162   :  { %v1959_v33 = vmul.f32 %v1957_v28, %v1954_v26 }
0x2164   :  { %v8987_v22 = vadd.f32 %v1962_v29, %v1959_v33 }
0x2166   :  { %v1969_v30 = vrot.slane %v8987_v22, 6 }
0x2168   :  { %1970 = vrot.lane.b32.xlu0 %v1969_v30, %s8432_s16 }
0x21da   :  { %v1971_v10 = vpop.permute.xlu0 %1970 }
0x21db   :  { %7232 = vmatmul.mubr.msk.f32.vlgmr.msra.gmra.mxu0 %vm440_vm4, %v1971_v10 }
0x21dc   :  { %7246 = vmatpush3.msra.mxu0 %v8849_v34  ;;  %7253 = vmatprep.mubr.msk.f32.mxu0 %vm8430_vm3, %v8429_v14 }
0x21dd   :  { %7247 = vmatprep.subr.mxu0 %v8429_v14 }
0x21de   :  { %7248 = vmatpush3.msra.mxu0 %v8852_v23 }
0x21df   :  { %7249 = vmatprep.subr.mxu0 %v8429_v14 }
0x21e0   :  { %7250 = vmatpush3.msra.mxu0 %v8858_v31 }
0x21e1   :  { %7251 = vmatprep.subr.mxu0 %v8429_v14 }
0x21e2   :  { %7252 = vmatpush3.msra.mxu0 %v8863_v35 }
0x229b   :  { %v2040_v59 = vpop.f32.mrf.mxu0 }
0x229c   :  { %v2051_v1 = vadd.f32 %v2040_v59, %v8900_v51  ;;  %v2044_v42 = vadd.f32 %v2040_v59, %v8916_v57 }
0x229d   :  { %v7233_v32 = vpop.f32.mrf.mxu0 }
0x229e   :  { %2053 = vrot.lane.b32.xlu1 %v2051_v1, %s8431_s15  ;;  %v6655_v36 = vmul.f32 -1.442695, %v2044_v42 }
0x22a0   :  { %7819 = vpow2.f32 %v6655_v36 }
0x22ad   :  { %v7820_v24 = vpop.eup %7819 }
0x22ae   :  { %v2048_v39 = vadd.f32 1.0, %v7820_v24 }
0x22b0   :  { %7821 = vrcp.f32 %v2048_v39 }
0x22bd   :  { %v7822_v25 = vpop.eup %7821 }
0x22be   :  { %v2063_v47 = vsub.f32 1.0, %v7822_v25  ;;  %v2070_v49 = vmul.f32 %v7822_v25, %v1969_v30 }
0x2310   :  { %v2054_v40 = vpop.permute.xlu1 %2053 }
0x2311   :  { %v2056_v41 = vmul.f32 %v7822_v25, %v2054_v40 }
0x2313   :  { %2058 = vrot.lane.b32.xlu0 %v2056_v41, %s8431_s15 }
0x2385   :  { %v2059_v43 = vpop.permute.xlu0 %2058 }
0x2386   :  { %v2061_v44 = vadd.f32 %v2059_v43, %v8916_v57 }
0x2388   :  { %7823 = vtanh.f32 %v2061_v44 }
0x2395   :  { %v7824_v46 = vpop.eup %7823 }
0x2396   :  { %2065 = vrot.lane.b32.xlu1 %v7824_v46, %s8432_s16 }
0x2408   :  { %v2066_v48 = vpop.permute.xlu1 %2065 }
0x2409   :  { %v2068_v50 = vmul.f32 %v2066_v48, %v2063_v47 }
0x240b   :  { %v2071_v52 = vadd.f32 %v2070_v49, %v2068_v50 }
0x240d   :  { %2073 = vrot.lane.b32.xlu0 %v2071_v52, %s8432_s16  ;;  %v2178_v4 = vrot.slane %v2071_v52, 6 }
0x247f   :  { %v2074_v53 = vpop.permute.xlu0 %2073 }
0x2480   :  { %2076 = vst.msk [vmem:[#allocation2 + $0x8] sm:$0x3] %vm639_vm5, %v2074_v53  ;;  %7243 = vmatmul.mubr.msk.f32.vlgmr.msra.gmra.mxu1 %vm440_vm4, %v2074_v53 }
0x2481   :  { %7257 = vmatpush3.msra.mxu1 %v8849_v34  ;;  %7264 = vmatprep.mubr.msk.f32.mxu1 %vm8430_vm3, %v8429_v14 }
0x2482   :  { %7258 = vmatprep.subr.mxu1 %v8429_v14 }
0x2483   :  { %7259 = vmatpush3.msra.mxu1 %v8852_v23 }
0x2484   :  { %7260 = vmatprep.subr.mxu1 %v8429_v14 }
0x2485   :  { %7261 = vmatpush3.msra.mxu1 %v8858_v31 }
0x2486   :  { %7262 = vmatprep.subr.mxu1 %v8429_v14 }
0x2487   :  { %7263 = vmatpush3.msra.mxu1 %v8863_v35 }
0x2488   :  { %7278 = vmatprep.subr.mxu1 %v8429_v14 }
0x2540   :  { %v2145_v54 = vpop.f32.mrf.mxu1 }
0x2541   :  { %v2159_v34 = vadd.f32 %v2145_v54, %v8900_v51  ;;  %v2150_v58 = vrot.slane %v2145_v54, 6 }
0x2542   :  { %v7244_v55 = vpop.f32.mrf.mxu1 }
0x2543   :  { %v2161_v56 = vrot.slane %v2159_v34, 6  ;;  %v2152_v23 = vadd.f32 %v2150_v58, %v8916_v57 }
0x2545   :  { %2162 = vrot.lane.b32.xlu1 %v2161_v56, %s8431_s15  ;;  %v6657_v60 = vmul.f32 -1.442695, %v2152_v23 }
0x2547   :  { %7825 = vpow2.f32 %v6657_v60  ;;  %v9059_v60 = vld [vmem:[#allocation11 + $0x18] sm:$0xff] }
0x2554   :  { %v7826_v61 = vpop.eup %7825 }
0x2555   :  { %v2156_v31 = vadd.f32 1.0, %v7826_v61  ;;  %v9070_v61 = vld [vmem:[#allocation11] sm:$0xff] }
0x2557   :  { %7827 = vrcp.f32 %v2156_v31  ;;  %v2417_v31 = vld [vmem:[#allocation10 + $0x10] sm:$0xff] }
0x2564   :  { %v7828_v62 = vpop.eup %7827 }
0x2565   :  { %v2172_v5 = vsub.f32 1.0, %v7828_v62  ;;  %v2180_v8 = vmul.f32 %v7828_v62, %v2178_v4 }
0x25b7   :  { %v2163_v63 = vpop.permute.xlu1 %2162 }
0x25b8   :  { %v2165_v35 = vmul.f32 %v7828_v62, %v2163_v63  ;;  %v2416_v62 = vld [vmem:[#allocation10 + $0x8] sm:$0xff]  ;;  %v2415_v63 = vld [vmem:[#allocation10] sm:$0xff] }
0x25ba   :  { %2167 = vrot.lane.b32.xlu0 %v2165_v35, %s8431_s15  ;;  %v6665_v35 = vld [vmem:[#allocation14] ss:$0 sm:$0xff] }
0x262c   :  { %v2168_v0 = vpop.permute.xlu0 %2167 }
0x262d   :  { %v2170_v3 = vadd.f32 %v2168_v0, %v8916_v57 }
0x262f   :  { %7829 = vtanh.f32 %v2170_v3 }
0x263c   :  { %v7830_v37 = vpop.eup %7829 }
0x263d   :  { %2174 = vrot.lane.b32.xlu1 %v7830_v37, %s8432_s16 }
0x26af   :  { %v2175_v6 = vpop.permute.xlu1 %2174 }
0x26b0   :  { %v2177_v7 = vmul.f32 %v2175_v6, %v2172_v5 }
0x26b2   :  { %v9026_v9 = vadd.f32 %v2180_v8, %v2177_v7 }
0x26b4   :  { %v2187_v11 = vrot.slane %v9026_v9, 2  ;;  %v2291_v32 = vrot.slane %v9026_v9, 6 }
0x26b6   :  { %2188 = vrot.lane.b32.xlu0 %v2187_v11, %s8432_s16 }
0x2728   :  { %v2189_v12 = vpop.permute.xlu0 %2188 }
0x2729   :  { %7254 = vmatmul.mubr.msk.f32.vlgmr.msra.gmra.mxu0 %vm440_vm4, %v2189_v12 }
0x27e9   :  { %v2258_v13 = vpop.f32.mrf.mxu0 }
0x27ea   :  { %v2272_v15 = vadd.f32 %v2258_v13, %v8900_v51  ;;  %v2263_v19 = vrot.slane %v2258_v13, 4 }
0x27eb   :  { %v7255_v17 = vpop.f32.mrf.mxu0 }
0x27ec   :  { %v2274_v18 = vrot.slane %v2272_v15, 4  ;;  %v2265_v20 = vadd.f32 %v2263_v19, %v8916_v57  ;;  %v6662_v19 = vld [vmem:[#allocation13] ss:$0 sm:$0xff] }
0x27ee   :  { %2275 = vrot.lane.b32.xlu1 %v2274_v18, %s8431_s15  ;;  %v6659_v21 = vmul.f32 -1.442695, %v2265_v20 }
0x27f0   :  { %7831 = vpow2.f32 %v6659_v21 }
0x27fd   :  { %v7832_v26 = vpop.eup %7831 }
0x27fe   :  { %v2269_v27 = vadd.f32 1.0, %v7832_v26 }
0x2800   :  { %7833 = vrcp.f32 %v2269_v27 }
0x280d   :  { %v7834_v28 = vpop.eup %7833 }
0x280e   :  { %v2285_v1 = vsub.f32 1.0, %v7834_v28  ;;  %v2293_v36 = vmul.f32 %v7834_v28, %v2291_v32 }
0x2860   :  { %v2276_v29 = vpop.permute.xlu1 %2275 }
0x2861   :  { %v2278_v33 = vmul.f32 %v7834_v28, %v2276_v29 }
0x2863   :  { %2280 = vrot.lane.b32.xlu0 %v2278_v33, %s8431_s15 }
0x28d5   :  { %v2281_v30 = vpop.permute.xlu0 %2280 }
0x28d6   :  { %v2283_v10 = vadd.f32 %v2281_v30, %v8916_v57 }
0x28d8   :  { %7835 = vtanh.f32 %v2283_v10 }
0x28e5   :  { %v7836_v59 = vpop.eup %7835 }
0x28e6   :  { %2287 = vrot.lane.b32.xlu1 %v7836_v59, %s8432_s16 }
0x2958   :  { %v2288_v42 = vpop.permute.xlu1 %2287 }
0x2959   :  { %v2290_v24 = vmul.f32 %v2288_v42, %v2285_v1 }
0x295b   :  { %v9038_v39 = vadd.f32 %v2293_v36, %v2290_v24 }
0x295d   :  { %v2300_v25 = vrot.slane %v9038_v39, 4  ;;  %v2404_v3 = vrot.slane %v9038_v39, 6 }
0x295f   :  { %2301 = vrot.lane.b32.xlu0 %v2300_v25, %s8432_s16 }
0x29d1   :  { %v2302_v40 = vpop.permute.xlu0 %2301 }
0x29d2   :  { %7265 = vmatmul.mubr.msk.f32.vlgmr.msra.gmra.mxu1 %vm440_vm4, %v2302_v40 }
0x29d3   :  { %7286 = vmatprep.mubr.msk.f32.mxu1 %vm8430_vm3, %v8429_v14  ;;  %7279 = vmatpush3.msra.mxu1 %v9059_v60 }
0x29d4   :  { %7280 = vmatprep.subr.mxu1 %v8429_v14 }
0x2a92   :  { %v2371_v41 = vpop.f32.mrf.mxu1 }
0x2a93   :  { %v2385_v43 = vadd.f32 %v2371_v41, %v8900_v51  ;;  %v2376_v47 = vrot.slane %v2371_v41, 2 }
0x2a94   :  { %v7266_v44 = vpop.f32.mrf.mxu1 }
0x2a95   :  { %v2387_v46 = vrot.slane %v2385_v43, 2  ;;  %v2378_v48 = vadd.f32 %v2376_v47, %v8916_v57 }
0x2a97   :  { %2388 = vrot.lane.b32.xlu1 %v2387_v46, %s8431_s15  ;;  %v6661_v49 = vmul.f32 -1.442695, %v2378_v48 }
0x2a99   :  { %7837 = vpow2.f32 %v6661_v49 }
0x2aa6   :  { %v7838_v50 = vpop.eup %7837 }
0x2aa7   :  { %v2382_v52 = vadd.f32 1.0, %v7838_v50 }
0x2aa9   :  { %7839 = vrcp.f32 %v2382_v52 }
0x2ab6   :  { %v7840_v53 = vpop.eup %7839 }
0x2ab7   :  { %v2398_v0 = vsub.f32 1.0, %v7840_v53  ;;  %v2406_v4 = vmul.f32 %v7840_v53, %v2404_v3 }
0x2b09   :  { %v2389_v54 = vpop.permute.xlu1 %2388 }
0x2b0a   :  { %v2391_v34 = vmul.f32 %v7840_v53, %v2389_v54 }
0x2b0c   :  { %2393 = vrot.lane.b32.xlu0 %v2391_v34, %s8431_s15 }
0x2b10   :  { %1739 = vrot.lane.b32.xlu0 %v8943_v38, %s8432_s16 }
0x2b14   :  { %1965 = vrot.lane.b32.xlu0 %v8987_v22, %s8432_s16  ;;  %v9061_v22 = vld [vmem:[#allocation11 + $0x10] sm:$0xff] }
0x2b15   :  { %7281 = vmatpush3.msra.mxu1 %v9061_v22 }
0x2b16   :  { %7282 = vmatprep.subr.mxu1 %v8429_v14 }
0x2b18   :  { %2296 = vrot.lane.b32.xlu0 %v9038_v39, %s8432_s16 }
0x2b1c   :  { %2594 = vrot.lane.b32.xlu0 %v6665_v35, %s8431_s15 }
0x2b7e   :  { %v2394_v51 = vpop.permute.xlu0 %2393 }
0x2b7f   :  { %v2396_v55 = vadd.f32 %v2394_v51, %v8916_v57  ;;  %v9066_v57 = vld [vmem:[#allocation11 + $0x8] sm:$0xff] }
0x2b80   :  { %7283 = vmatpush3.msra.mxu1 %v9066_v57 }
0x2b81   :  { %7841 = vtanh.f32 %v2396_v55  ;;  %7284 = vmatprep.subr.mxu1 %v8429_v14 }
0x2b82   :  { %v1740_v56 = vpop.permute.xlu0 %1739  ;;  %7285 = vmatpush3.msra.mxu1 %v9070_v61 }
0x2b83   :  { %1742 = vst.msk [vmem:[#allocation2] sm:$0xc] %vm750_vm6, %v1740_v56  ;;  %7287 = vmatmul.mubr.f32.vlgmr.msra.gmra.mxu1 %v8429_v14  ;;  %7300 = vmatprep.subr.mxu1 %v8429_v14 }
0x2b84   :  { %7301 = vmatpush3.msra.mxu1 %v9059_v60  ;;  %7308 = vmatprep.mubr.msk.f32.mxu1 %vm8430_vm3, %v8429_v14 }
0x2b85   :  { %7302 = vmatprep.subr.mxu1 %v8429_v14 }
0x2b86   :  { %v1966_v58 = vpop.permute.xlu0 %1965  ;;  %7303 = vmatpush3.msra.mxu1 %v9061_v22 }
0x2b87   :  { %1968 = vst.msk [vmem:[#allocation2] sm:$0xc0] %vm978_vm7, %v1966_v58  ;;  %7304 = vmatprep.subr.mxu1 %v8429_v14 }
0x2b88   :  { %7305 = vmatpush3.msra.mxu1 %v9066_v57 }
0x2b89   :  { %7306 = vmatprep.subr.mxu1 %v8429_v14 }
0x2b8a   :  { %v2297_v23 = vpop.permute.xlu0 %2296  ;;  %7307 = vmatpush3.msra.mxu1 %v9070_v61 }
0x2b8b   :  { %2299 = vst.msk [vmem:[#allocation2 + $0x8] sm:$0x30] %vm864_vm8, %v2297_v23  ;;  %7322 = vmatprep.subr.mxu1 %v8429_v14 }
0x2b8e   :  { %v7842_v38 = vpop.eup %7841  ;;  %v9101_v13 = vpop.permute.xlu0 %2594 }
0x2b8f   :  { %2400 = vrot.lane.b32.xlu1 %v7842_v38, %s8432_s16 }
0x2b93   :  { %1852 = vrot.lane.b32.xlu1 %v8965_v2, %s8432_s16  ;;  %v2418_v2 = vld [vmem:[#allocation10 + $0x18] sm:$0xff] }
0x2b94   :  { %7267 = vmatprep.subr.mxu0 %v2418_v2 }
0x2b95   :  { %7268 = vmatpush3.msra.mxu0 %v2418_v2 }
0x2b96   :  { %7269 = vmatprep.subr.mxu0 %v2417_v31 }
0x2b97   :  { %2183 = vrot.lane.b32.xlu1 %v9026_v9, %s8432_s16  ;;  %7270 = vmatpush3.msra.mxu0 %v2417_v31 }
0x2b98   :  { %7271 = vmatprep.subr.mxu0 %v2416_v62 }
0x2b99   :  { %7272 = vmatpush3.msra.mxu0 %v2416_v62 }
0x2b9a   :  { %7273 = vmatprep.subr.mxu0 %v2415_v63 }
0x2b9b   :  { %7274 = vmatpush3.msra.mxu0 %v2415_v63 }
0x2b9c   :  { %7289 = vmatprep.subr.mxu0 %v8429_v14 }
0x2c01   :  { %v2401_v37 = vpop.permute.xlu1 %2400 }
0x2c02   :  { %v2403_v5 = vmul.f32 %v2401_v37, %v2398_v0 }
0x2c04   :  { %v9094_v6 = vadd.f32 %v2406_v4, %v2403_v5 }
0x2c05   :  { %v1853_v7 = vpop.permute.xlu1 %1852 }
0x2c06   :  { %1855 = vst.msk [vmem:[#allocation2] sm:$0x30] %vm864_vm8, %v1853_v7  ;;  %2409 = vrot.lane.b32.xlu1 %v9094_v6, %s8432_s16 }
0x2c09   :  { %v2184_v8 = vpop.permute.xlu1 %2183 }
0x2c0a   :  { %2186 = vst.msk [vmem:[#allocation2 + $0x8] sm:$0xc] %vm750_vm6, %v2184_v8 }
0x2c0d   :  { %v2413_v9 = vld [vmem:[#allocation2] sm:$0xff] }
0x2c0e   :  { %7275 = vmatprep.mubr.msk.f32.mxu0 %vm440_vm4, %v2413_v9 }
0x2c43   :  { %v2583_v11 = vpop.f32.mrf.mxu1 }
0x2c44   :  { %v2597_v15 = vadd.f32 %v9101_v13, %v2583_v11 }
0x2c45   :  { %v7288_v12 = vpop.f32.mrf.mxu1 }
0x2c46   :  { %2599 = vrot.lane.b32.xlu1 %v2597_v15, %s8431_s15 }
0x2c78   :  { %v2410_v17 = vpop.permute.xlu1 %2409 }
0x2c79   :  { %2412 = vst.msk [vmem:[#allocation2 + $0x8] sm:$0xc0] %vm978_vm7, %v2410_v17 }
0x2c80   :  { %v2414_v18 = vld [vmem:[#allocation2 + $0x8] sm:$0xff] }
0x2c81   :  { %7276 = vmatmul.mubr.msk.f32.vlgmr.msra.gmra.mxu0 %vm440_vm4, %v2414_v18 }
0x2c82   :  { %7290 = vmatpush3.msra.mxu0 %v9059_v60  ;;  %7297 = vmatprep.mubr.msk.f32.mxu0 %vm8430_vm3, %v8429_v14 }
0x2c83   :  { %7291 = vmatprep.subr.mxu0 %v8429_v14 }
0x2c84   :  { %7292 = vmatpush3.msra.mxu0 %v9061_v22 }
0x2c85   :  { %7293 = vmatprep.subr.mxu0 %v8429_v14 }
0x2c86   :  { %7294 = vmatpush3.msra.mxu0 %v9066_v57 }
0x2c87   :  { %7295 = vmatprep.subr.mxu0 %v8429_v14 }
0x2c88   :  { %7296 = vmatpush3.msra.mxu0 %v9070_v61 }
0x2c89   :  { %7311 = vmatprep.subr.mxu0 %v8429_v14 }
0x2cb8   :  { %v2600_v10 = vpop.permute.xlu1 %2599 }
0x2d41   :  { %v7277_v20 = vpop.f32.mrf.mxu0 }
0x2d42   :  { %v9117_v21 = vadd.f32 %v7277_v20, %v6662_v19 }
0x2d43   :  { %v2498_v26 = vpop.f32.mrf.mxu0 }
0x2d44   :  { %v9119_v27 = vadd.f32 %v6662_v19, %v2498_v26 }
0x2d46   :  { %v2587_v28 = vadd.f32 %v2583_v11, %v9119_v27 }
0x2d48   :  { %v6666_v29 = vmul.f32 -1.442695, %v2587_v28 }
0x2d4a   :  { %7843 = vpow2.f32 %v6666_v29 }
0x2d57   :  { %v7844_v33 = vpop.eup %7843 }
0x2d58   :  { %v2591_v30 = vadd.f32 1.0, %v7844_v33 }
0x2d5a   :  { %7845 = vrcp.f32 %v2591_v30 }
0x2d67   :  { %v7846_v59 = vpop.eup %7845 }
0x2d68   :  { %v2602_v1 = vmul.f32 %v7846_v59, %v2600_v10  ;;  %v2609_v24 = vsub.f32 1.0, %v7846_v59  ;;  %v2615_v25 = vmul.f32 0.0, %v7846_v59 }
0x2d6a   :  { %2604 = vrot.lane.b32.xlu0 %v2602_v1, %s8431_s15 }
0x2ddc   :  { %v2605_v32 = vpop.permute.xlu0 %2604 }
0x2ddd   :  { %v2607_v42 = vadd.f32 %v2605_v32, %v9119_v27 }
0x2ddf   :  { %7847 = vtanh.f32 %v2607_v42 }
0x2dec   :  { %v7848_v36 = vpop.eup %7847 }
0x2ded   :  { %2611 = vrot.lane.b32.xlu1 %v7848_v36, %s8432_s16 }
0x2e5f   :  { %v2612_v39 = vpop.permute.xlu1 %2611 }
0x2e60   :  { %v2614_v40 = vmul.f32 %v2612_v39, %v2609_v24 }
0x2e62   :  { %v2616_v41 = vadd.f32 %v2615_v25, %v2614_v40 }
0x2e64   :  { %2618 = vrot.lane.b32.xlu0 %v2616_v41, %s8432_s16  ;;  %v2723_v38 = vrot.slane %v2616_v41, 6 }
0x2ed6   :  { %v2619_v43 = vpop.permute.xlu0 %2618 }
0x2ed7   :  { %2621 = vst.msk [vmem:[#allocation2] sm:$0x3] %vm639_vm5, %v2619_v43  ;;  %7298 = vmatmul.mubr.msk.f32.vlgmr.msra.gmra.mxu0 %vm440_vm4, %v2619_v43 }
0x2ed8   :  { %7312 = vmatpush3.msra.mxu0 %v9059_v60  ;;  %7319 = vmatprep.mubr.msk.f32.mxu0 %vm8430_vm3, %v8429_v14 }
0x2ed9   :  { %7313 = vmatprep.subr.mxu0 %v8429_v14 }
0x2eda   :  { %7314 = vmatpush3.msra.mxu0 %v9061_v22 }
0x2edb   :  { %7315 = vmatprep.subr.mxu0 %v8429_v14 }
0x2edc   :  { %7316 = vmatpush3.msra.mxu0 %v9066_v57 }
0x2edd   :  { %7317 = vmatprep.subr.mxu0 %v8429_v14 }
0x2ede   :  { %7318 = vmatpush3.msra.mxu0 %v9070_v61 }
0x2edf   :  { %7333 = vmatprep.subr.mxu0 %v8429_v14 }
0x2f97   :  { %v2690_v44 = vpop.f32.mrf.mxu0 }
0x2f98   :  { %v2704_v46 = vadd.f32 %v2690_v44, %v9101_v13  ;;  %v2695_v49 = vrot.slane %v2690_v44, 6 }
0x2f99   :  { %v7299_v47 = vpop.f32.mrf.mxu0 }
0x2f9a   :  { %v2706_v48 = vrot.slane %v2704_v46, 6  ;;  %v2697_v50 = vadd.f32 %v2695_v49, %v9119_v27 }
0x2f9c   :  { %2707 = vrot.lane.b32.xlu1 %v2706_v48, %s8431_s15  ;;  %v6668_v52 = vmul.f32 -1.442695, %v2697_v50 }
0x2f9e   :  { %7849 = vpow2.f32 %v6668_v52 }
0x2fab   :  { %v7850_v53 = vpop.eup %7849 }
0x2fac   :  { %v2701_v54 = vadd.f32 1.0, %v7850_v53 }
0x2fae   :  { %7851 = vrcp.f32 %v2701_v54 }
0x2fbb   :  { %v7852_v34 = vpop.eup %7851 }
0x2fbc   :  { %v2717_v2 = vsub.f32 1.0, %v7852_v34  ;;  %v2725_v63 = vmul.f32 %v7852_v34, %v2723_v38 }
0x300e   :  { %v2708_v51 = vpop.permute.xlu1 %2707 }
0x300f   :  { %v2710_v55 = vmul.f32 %v7852_v34, %v2708_v51 }
0x3011   :  { %2712 = vrot.lane.b32.xlu0 %v2710_v55, %s8431_s15 }
0x3083   :  { %v2713_v56 = vpop.permute.xlu0 %2712 }
0x3084   :  { %v2715_v58 = vadd.f32 %v2713_v56, %v9119_v27 }
0x3086   :  { %7853 = vtanh.f32 %v2715_v58 }
0x3093   :  { %v7854_v23 = vpop.eup %7853 }
0x3094   :  { %2719 = vrot.lane.b32.xlu1 %v7854_v23, %s8432_s16 }
0x3106   :  { %v2720_v31 = vpop.permute.xlu1 %2719 }
0x3107   :  { %v2722_v62 = vmul.f32 %v2720_v31, %v2717_v2 }
0x3109   :  { %v9144_v35 = vadd.f32 %v2725_v63, %v2722_v62 }
0x310b   :  { %v2732_v0 = vrot.slane %v9144_v35, 2  ;;  %v2836_v33 = vrot.slane %v9144_v35, 6 }
0x310d   :  { %2733 = vrot.lane.b32.xlu0 %v2732_v0, %s8432_s16 }
0x317f   :  { %v2734_v3 = vpop.permute.xlu0 %2733 }
0x3180   :  { %7309 = vmatmul.mubr.msk.f32.vlgmr.msra.gmra.mxu1 %vm440_vm4, %v2734_v3 }
0x3181   :  { %7323 = vmatpush3.msra.mxu1 %v9059_v60  ;;  %7330 = vmatprep.mubr.msk.f32.mxu1 %vm8430_vm3, %v8429_v14 }
0x3182   :  { %7324 = vmatprep.subr.mxu1 %v8429_v14 }
0x3183   :  { %7325 = vmatpush3.msra.mxu1 %v9061_v22 }
0x3184   :  { %7326 = vmatprep.subr.mxu1 %v8429_v14 }
0x3185   :  { %7327 = vmatpush3.msra.mxu1 %v9066_v57 }
0x3186   :  { %7328 = vmatprep.subr.mxu1 %v8429_v14 }
0x3187   :  { %7329 = vmatpush3.msra.mxu1 %v9070_v61 }
0x3188   :  { %7344 = vmatprep.subr.mxu1 %v8429_v14 }
0x3240   :  { %v2803_v37 = vpop.f32.mrf.mxu1 }
0x3241   :  { %v2817_v4 = vadd.f32 %v2803_v37, %v9101_v13  ;;  %v2808_v8 = vrot.slane %v2803_v37, 4 }
0x3242   :  { %v7310_v5 = vpop.f32.mrf.mxu1 }
0x3243   :  { %v2819_v7 = vrot.slane %v2817_v4, 4  ;;  %v2810_v9 = vadd.f32 %v2808_v8, %v9119_v27 }
0x3245   :  { %2820 = vrot.lane.b32.xlu1 %v2819_v7, %s8431_s15  ;;  %v6670_v11 = vmul.f32 -1.442695, %v2810_v9 }
0x3247   :  { %7855 = vpow2.f32 %v6670_v11 }
0x3254   :  { %v7856_v12 = vpop.eup %7855 }
0x3255   :  { %v2814_v15 = vadd.f32 1.0, %v7856_v12 }
0x3257   :  { %7857 = vrcp.f32 %v2814_v15 }
0x3264   :  { %v7858_v17 = vpop.eup %7857 }
0x3265   :  { %v2830_v29 = vsub.f32 1.0, %v7858_v17  ;;  %v2838_v10 = vmul.f32 %v7858_v17, %v2836_v33 }
0x32b7   :  { %v2821_v18 = vpop.permute.xlu1 %2820 }
0x32b8   :  { %v2823_v19 = vmul.f32 %v7858_v17, %v2821_v18 }
0x32ba   :  { %2825 = vrot.lane.b32.xlu0 %v2823_v19, %s8431_s15 }
0x332c   :  { %v2826_v20 = vpop.permute.xlu0 %2825 }
0x332d   :  { %v2828_v26 = vadd.f32 %v2826_v20, %v9119_v27 }
0x332f   :  { %7859 = vtanh.f32 %v2828_v26 }
0x333c   :  { %v7860_v28 = vpop.eup %7859 }
0x333d   :  { %2832 = vrot.lane.b32.xlu1 %v7860_v28, %s8432_s16 }
0x33af   :  { %v2833_v30 = vpop.permute.xlu1 %2832 }
0x33b0   :  { %v2835_v59 = vmul.f32 %v2833_v30, %v2830_v29 }
0x33b2   :  { %v9166_v1 = vadd.f32 %v2838_v10, %v2835_v59 }
0x33b4   :  { %v2845_v32 = vrot.slane %v9166_v1, 4  ;;  %v2949_v34 = vrot.slane %v9166_v1, 6 }
0x33b6   :  { %2846 = vrot.lane.b32.xlu0 %v2845_v32, %s8432_s16 }
0x3428   :  { %v2847_v42 = vpop.permute.xlu0 %2846 }
0x3429   :  { %7320 = vmatmul.mubr.msk.f32.vlgmr.msra.gmra.mxu0 %vm440_vm4, %v2847_v42 }
0x342a   :  { %7334 = vmatpush3.msra.mxu0 %v9059_v60  ;;  %7341 = vmatprep.mubr.msk.f32.mxu0 %vm8430_vm3, %v8429_v14 }
0x342b   :  { %7335 = vmatprep.subr.mxu0 %v8429_v14 }
0x342c   :  { %7336 = vmatpush3.msra.mxu0 %v9061_v22 }
0x342d   :  { %7337 = vmatprep.subr.mxu0 %v8429_v14 }
0x342e   :  { %7338 = vmatpush3.msra.mxu0 %v9066_v57 }
0x342f   :  { %7339 = vmatprep.subr.mxu0 %v8429_v14 }
0x3430   :  { %7340 = vmatpush3.msra.mxu0 %v9070_v61 }
0x3431   :  { %7355 = vmatprep.subr.mxu0 %v8429_v14 }
0x34e9   :  { %v2916_v36 = vpop.f32.mrf.mxu0 }
0x34ea   :  { %v2930_v24 = vadd.f32 %v2916_v36, %v9101_v13  ;;  %v2921_v40 = vrot.slane %v2916_v36, 2 }
0x34eb   :  { %v7321_v39 = vpop.f32.mrf.mxu0 }
0x34ec   :  { %v2932_v25 = vrot.slane %v2930_v24, 2  ;;  %v2923_v41 = vadd.f32 %v2921_v40, %v9119_v27 }
0x34ee   :  { %2933 = vrot.lane.b32.xlu1 %v2932_v25, %s8431_s15  ;;  %v6672_v43 = vmul.f32 -1.442695, %v2923_v41 }
0x34f0   :  { %7861 = vpow2.f32 %v6672_v43 }
0x34fd   :  { %v7862_v44 = vpop.eup %7861 }
0x34fe   :  { %v2927_v46 = vadd.f32 1.0, %v7862_v44 }
0x3500   :  { %7863 = vrcp.f32 %v2927_v46 }
0x350d   :  { %v7864_v47 = vpop.eup %7863 }
0x350e   :  { %v2943_v54 = vsub.f32 1.0, %v7864_v47  ;;  %v2951_v55 = vmul.f32 %v7864_v47, %v2949_v34 }
0x3560   :  { %v2934_v48 = vpop.permute.xlu1 %2933 }
0x3561   :  { %v2936_v49 = vmul.f32 %v7864_v47, %v2934_v48  ;;  %v3402_v47 = vld [vmem:[%s9946_s18] sm:$0xff] }
0x3563   :  { %2938 = vrot.lane.b32.xlu0 %v2936_v49, %s8431_s15  ;;  %v8036_v49 = vld [vmem:[%s9941_s5 + $0x30] sm:$0xff] }
0x35d5   :  { %v2939_v50 = vpop.permute.xlu0 %2938 }
0x35d6   :  { %v2941_v52 = vadd.f32 %v2939_v50, %v9119_v27  ;;  %v9203_v27 = vld [vmem:[%s9941_s5 + $0x38] sm:$0xff]  ;;  %v8037_v50 = vld [vmem:[%s9941_s5 + $0x28] sm:$0xff] }
0x35d8   :  { %7865 = vtanh.f32 %v2941_v52  ;;  %v8038_v52 = vld [vmem:[%s9941_s5 + $0x20] sm:$0xff] }
0x35e5   :  { %v7866_v53 = vpop.eup %7865 }
0x35e6   :  { %2945 = vrot.lane.b32.xlu1 %v7866_v53, %s8432_s16  ;;  %v8039_v53 = vld [vmem:[%s9941_s5 + $0x18] sm:$0xff] }
0x3658   :  { %v2946_v51 = vpop.permute.xlu1 %2945 }
0x3659   :  { %v2948_v56 = vmul.f32 %v2946_v51, %v2943_v54  ;;  %v8040_v54 = vld [vmem:[%s9941_s5 + $0x10] sm:$0xff]  ;;  %v8041_v51 = vld [vmem:[%s9941_s5 + $0x8] sm:$0xff] }
0x365b   :  { %v9188_v58 = vadd.f32 %v2951_v55, %v2948_v56  ;;  %v8042_v56 = vld [vmem:[%s9941_s5] sm:$0xff] }
0x365d   :  { %v2958_v23 = vrot.slane %v9188_v58, 6 }
0x365f   :  { %2959 = vrot.lane.b32.xlu0 %v2958_v23, %s8432_s16 }
0x36d1   :  { %v2960_v38 = vpop.permute.xlu0 %2959 }
0x36d2   :  { %7331 = vmatmul.mubr.msk.f32.vlgmr.msra.gmra.mxu1 %vm440_vm4, %v2960_v38 }
0x36d3   :  { %7345 = vmatpush3.msra.mxu1 %v9059_v60  ;;  %7352 = vmatprep.mubr.msk.f32.mxu1 %vm8430_vm3, %v8429_v14 }
0x36d4   :  { %7346 = vmatprep.subr.mxu1 %v8429_v14 }
0x36d5   :  { %7347 = vmatpush3.msra.mxu1 %v9061_v22 }
0x36d6   :  { %7348 = vmatprep.subr.mxu1 %v8429_v14 }
0x36d7   :  { %7349 = vmatpush3.msra.mxu1 %v9066_v57 }
0x36d8   :  { %7350 = vmatprep.subr.mxu1 %v8429_v14 }
0x36d9   :  { %7351 = vmatpush3.msra.mxu1 %v9070_v61 }
0x36da   :  { %7366 = vmatprep.subr.mxu1 %v9203_v27 }
0x3792   :  { %v3029_v2 = vpop.f32.mrf.mxu1 }
0x3793   :  { %v3040_v31 = vadd.f32 %v3029_v2, %v9101_v13  ;;  %v3033_v63 = vadd.f32 %v3029_v2, %v9117_v21 }
0x3794   :  { %v7332_v62 = vpop.f32.mrf.mxu1 }
0x3795   :  { %3042 = vrot.lane.b32.xlu1 %v3040_v31, %s8431_s15  ;;  %v6674_v0 = vmul.f32 -1.442695, %v3033_v63  ;;  %v3403_v31 = vld [vmem:[%s9946_s18 + $0x8] sm:$0xff] }
0x3797   :  { %7867 = vpow2.f32 %v6674_v0 }
0x37a4   :  { %v7868_v3 = vpop.eup %7867 }
0x37a5   :  { %v3037_v37 = vadd.f32 1.0, %v7868_v3 }
0x37a7   :  { %7869 = vrcp.f32 %v3037_v37 }
0x37b4   :  { %v7870_v4 = vpop.eup %7869 }
0x37b5   :  { %v3052_v12 = vsub.f32 1.0, %v7870_v4  ;;  %v3059_v17 = vmul.f32 %v7870_v4, %v2958_v23 }
0x3807   :  { %v3043_v5 = vpop.permute.xlu1 %3042 }
0x3808   :  { %v3045_v7 = vmul.f32 %v7870_v4, %v3043_v5 }
0x380a   :  { %3047 = vrot.lane.b32.xlu0 %v3045_v7, %s8431_s15 }
0x387c   :  { %v3048_v8 = vpop.permute.xlu0 %3047 }
0x387d   :  { %v3050_v9 = vadd.f32 %v3048_v8, %v9117_v21 }
0x387f   :  { %7871 = vtanh.f32 %v3050_v9 }
0x388c   :  { %v7872_v11 = vpop.eup %7871 }
0x388d   :  { %3054 = vrot.lane.b32.xlu1 %v7872_v11, %s8432_s16 }
0x38ff   :  { %v3055_v15 = vpop.permute.xlu1 %3054 }
0x3900   :  { %v3057_v18 = vmul.f32 %v3055_v15, %v3052_v12  ;;  %v3502_v15 = vld [vmem:[#allocation16 + $0x18] sm:$0xff] }
0x3902   :  { %v3060_v19 = vadd.f32 %v3059_v17, %v3057_v18 }
0x3904   :  { %3062 = vrot.lane.b32.xlu0 %v3060_v19, %s8432_s16  ;;  %v3167_v39 = vrot.slane %v3060_v19, 6 }
0x3976   :  { %v3063_v20 = vpop.permute.xlu0 %3062 }
0x3977   :  { %3065 = vst.msk [vmem:[#allocation2 + $0x8] sm:$0x3] %vm639_vm5, %v3063_v20  ;;  %7342 = vmatmul.mubr.msk.f32.vlgmr.msra.gmra.mxu0 %vm440_vm4, %v3063_v20 }
0x3978   :  { %7356 = vmatpush3.msra.mxu0 %v9059_v60  ;;  %7363 = vmatprep.mubr.msk.f32.mxu0 %vm8430_vm3, %v8429_v14 }
0x3979   :  { %7357 = vmatprep.subr.mxu0 %v8429_v14 }
0x397a   :  { %7358 = vmatpush3.msra.mxu0 %v9061_v22 }
0x397b   :  { %7359 = vmatprep.subr.mxu0 %v8429_v14 }
0x397c   :  { %7360 = vmatpush3.msra.mxu0 %v9066_v57 }
0x397d   :  { %7361 = vmatprep.subr.mxu0 %v8429_v14 }
0x397e   :  { %7362 = vmatpush3.msra.mxu0 %v9070_v61 }
0x397f   :  { %7385 = vmatprep.subr.mxu0 %v3502_v15 }
0x3a37   :  { %v3134_v26 = vpop.f32.mrf.mxu0 }
0x3a38   :  { %v3148_v28 = vadd.f32 %v3134_v26, %v9101_v13  ;;  %v3139_v33 = vrot.slane %v3134_v26, 6 }
0x3a39   :  { %v7343_v29 = vpop.f32.mrf.mxu0 }
0x3a3a   :  { %v3150_v60 = vrot.slane %v3148_v28, 6  ;;  %v3141_v30 = vadd.f32 %v3139_v33, %v9117_v21  ;;  %v9266_v29 = vld [vmem:[%s9947_s0 + $0x18] sm:$0xff]  ;;  %v9272_v33 = vld [vmem:[%s9947_s0 + $0x10] sm:$0xff] }
0x3a3c   :  { %3151 = vrot.lane.b32.xlu1 %v3150_v60, %s8431_s15  ;;  %v6676_v10 = vmul.f32 -1.442695, %v3141_v30 }
0x3a3e   :  { %7873 = vpow2.f32 %v6676_v10  ;;  %v9278_v10 = vld [vmem:[%s9947_s0 + $0x8] sm:$0xff] }
0x3a4b   :  { %v7874_v22 = vpop.eup %7873 }
0x3a4c   :  { %v3145_v59 = vadd.f32 1.0, %v7874_v22  ;;  %v9284_v22 = vld [vmem:[%s9947_s0] sm:$0xff] }
0x3a4e   :  { %7875 = vrcp.f32 %v3145_v59  ;;  %v6688_v59 = vld [vmem:[#allocation19] ss:$0 sm:$0xff] }
0x3a5b   :  { %v7876_v57 = vpop.eup %7875 }
0x3a5c   :  { %v3161_v25 = vsub.f32 1.0, %v7876_v57  ;;  %v3169_v43 = vmul.f32 %v7876_v57, %v3167_v39  ;;  %v3499_v39 = vld [vmem:[#allocation16] sm:$0xff] }
0x3aae   :  { %v3152_v32 = vpop.permute.xlu1 %3151 }
0x3aaf   :  { %v3154_v42 = vmul.f32 %v7876_v57, %v3152_v32 }
0x3ab1   :  { %3156 = vrot.lane.b32.xlu0 %v3154_v42, %s8431_s15 }
0x3b23   :  { %v3157_v61 = vpop.permute.xlu0 %3156 }
0x3b24   :  { %v3159_v36 = vadd.f32 %v3157_v61, %v9117_v21 }
0x3b26   :  { %7877 = vtanh.f32 %v3159_v36  ;;  %v3501_v36 = vld [vmem:[#allocation16 + $0x10] sm:$0xff] }
0x3b33   :  { %v7878_v24 = vpop.eup %7877 }
0x3b34   :  { %3163 = vrot.lane.b32.xlu1 %v7878_v24, %s8432_s16  ;;  %v3500_v24 = vld [vmem:[#allocation16 + $0x8] sm:$0xff] }
0x3ba6   :  { %v3164_v40 = vpop.permute.xlu1 %3163 }
0x3ba7   :  { %v3166_v41 = vmul.f32 %v3164_v40, %v3161_v25 }
0x3ba9   :  { %v9230_v44 = vadd.f32 %v3169_v43, %v3166_v41 }
0x3bab   :  { %v3176_v46 = vrot.slane %v9230_v44, 2  ;;  %v3280_v19 = vrot.slane %v9230_v44, 6 }
0x3bad   :  { %3177 = vrot.lane.b32.xlu0 %v3176_v46, %s8432_s16  ;;  %v6685_v46 = vld [vmem:[#allocation17] ss:$0 sm:$0xff] }
0x3bb1   :  { %3405 = vperm.xlu0 %7745, %v3402_v47  }
0x3c1f   :  { %v3178_v48 = vpop.permute.xlu0 %3177 }
0x3c20   :  { %7353 = vmatmul.mubr.msk.f32.vlgmr.msra.gmra.mxu1 %vm440_vm4, %v3178_v48 }
0x3c21   :  { %7367 = vmatpush3.msra.mxu1 %v9203_v27 }
0x3c22   :  { %7368 = vmatprep.subr.mxu1 %v8036_v49 }
0x3c23   :  { %7369 = vmatpush3.msra.mxu1 %v8036_v49 }
0x3c24   :  { %7370 = vmatprep.subr.mxu1 %v8037_v50 }
0x3c25   :  { %7371 = vmatpush3.msra.mxu1 %v8037_v50 }
0x3c26   :  { %7372 = vmatprep.subr.mxu1 %v8038_v52 }
0x3c27   :  { %7373 = vmatpush3.msra.mxu1 %v8038_v52 }
0x3c28   :  { %7374 = vmatprep.subr.mxu1 %v8039_v53 }
0x3c29   :  { %7375 = vmatpush3.msra.mxu1 %v8039_v53 }
0x3c2a   :  { %7376 = vmatprep.subr.mxu1 %v8040_v54 }
0x3c2b   :  { %7377 = vmatpush3.msra.mxu1 %v8040_v54 }
0x3c2c   :  { %v3406_v34 = vpop.permute.xlu0 %3405  ;;  %7378 = vmatprep.subr.mxu1 %v8041_v51 }
0x3c2d   :  { %vm3410_vm9 = vcmp.eq.s32.totalorder %v3406_v34, %v8642_v16  ;;  %7379 = vmatpush3.msra.mxu1 %v8041_v51 }
0x3c2e   :  { %v6681_v55 = vsel %vm3410_vm9, 1.0, %v8429_v14  ;;  %7380 = vmatprep.subr.mxu1 %v8042_v56 }
0x3c2f   :  { %7382 = vmatprep.mubr.msk.f32.mxu1 %vm347_vm0, %v6681_v55  ;;  %7381 = vmatpush3.msra.mxu1 %v8042_v56 }
0x3c30   :  { %7407 = vmatprep.subr.mxu1 %v8429_v14 }
0x3ce0   :  { %v3247_v23 = vpop.f32.mrf.mxu1 }
0x3ce1   :  { %v3261_v38 = vadd.f32 %v3247_v23, %v9101_v13  ;;  %v3252_v62 = vrot.slane %v3247_v23, 4 }
0x3ce2   :  { %v7354_v27 = vpop.f32.mrf.mxu1 }
0x3ce3   :  { %v3263_v2 = vrot.slane %v3261_v38, 4  ;;  %v3254_v63 = vadd.f32 %v3252_v62, %v9117_v21 }
0x3ce5   :  { %3264 = vrot.lane.b32.xlu1 %v3263_v2, %s8431_s15  ;;  %v6678_v0 = vmul.f32 -1.442695, %v3254_v63 }
0x3ce7   :  { %7879 = vpow2.f32 %v6678_v0 }
0x3ce9   :  { %3408 = vperm.xlu1 %7746, %v3403_v31  }
0x3cf4   :  { %v7880_v3 = vpop.eup %7879 }
0x3cf5   :  { %v3258_v37 = vadd.f32 1.0, %v7880_v3 }
0x3cf7   :  { %7881 = vrcp.f32 %v3258_v37 }
0x3d04   :  { %v7882_v4 = vpop.eup %7881 }
0x3d05   :  { %v3274_v18 = vsub.f32 1.0, %v7882_v4  ;;  %v3282_v26 = vmul.f32 %v7882_v4, %v3280_v19 }
0x3d57   :  { %v3265_v5 = vpop.permute.xlu1 %3264 }
0x3d58   :  { %v3267_v7 = vmul.f32 %v7882_v4, %v3265_v5 }
0x3d5a   :  { %3269 = vrot.lane.b32.xlu0 %v3267_v7, %s8431_s15 }
0x3d64   :  { %v3409_v8 = vpop.permute.xlu1 %3408 }
0x3d65   :  { %vm3411_vm10 = vcmp.eq.s32.totalorder %v3409_v8, %v8642_v16  ;;  %v3601_v16 = vrot.slane %v8893_v45, 6 }
0x3d66   :  { %v6682_v9 = vsel %vm3411_vm10, 1.0, %v8429_v14 }
0x3d67   :  { %7383 = vmatmul.mubr.msk.f32.vlgmr.msra.gmra.mxu1 %vm347_vm0, %v6682_v9 }
0x3d68   :  { %7415 = vmatprep.mubr.msk.f32.mxu1 %vm8430_vm3, %v8429_v14  ;;  %7408 = vmatpush3.msra.mxu1 %v9266_v29 }
0x3d69   :  { %7409 = vmatprep.subr.mxu1 %v8429_v14 }
0x3d6a   :  { %7410 = vmatpush3.msra.mxu1 %v9272_v33 }
0x3d6b   :  { %7411 = vmatprep.subr.mxu1 %v8429_v14 }
0x3d6c   :  { %7412 = vmatpush3.msra.mxu1 %v9278_v10 }
0x3d6d   :  { %7413 = vmatprep.subr.mxu1 %v8429_v14 }
0x3d6e   :  { %7414 = vmatpush3.msra.mxu1 %v9284_v22 }
0x3d6f   :  { %7429 = vmatprep.subr.mxu1 %v8429_v14 }
0x3dcc   :  { %v3270_v11 = vpop.permute.xlu0 %3269 }
0x3dcd   :  { %v3272_v12 = vadd.f32 %v3270_v11, %v9117_v21 }
0x3dcf   :  { %7883 = vtanh.f32 %v3272_v12 }
0x3ddc   :  { %v7884_v17 = vpop.eup %7883 }
0x3ddd   :  { %3276 = vrot.lane.b32.xlu1 %v7884_v17, %s8432_s16 }
0x3de1   :  { %3602 = vrot.lane.b32.xlu1 %v3601_v16, %s8432_s16 }
0x3e27   :  { %v7384_v57 = vpop.f32.mrf.mxu1 }
0x3e28   :  { %v3498_v25 = vmax.f32 %v7384_v57, 0.0 }
0x3e29   :  { %v3488_v32 = vpop.f32.mrf.mxu1 }
0x3e2a   :  { %v3497_v42 = vmax.f32 %v3488_v32, 0.0 }
0x3e4f   :  { %v3277_v20 = vpop.permute.xlu1 %3276 }
0x3e50   :  { %v3279_v28 = vmul.f32 %v3277_v20, %v3274_v18 }
0x3e52   :  { %v9268_v60 = vadd.f32 %v3282_v26, %v3279_v28 }
0x3e53   :  { %v3603_v40 = vpop.permute.xlu1 %3602 }
0x3e54   :  { %v3289_v30 = vrot.slane %v9268_v60, 4 }
0x3e56   :  { %3290 = vrot.lane.b32.xlu0 %v3289_v30, %s8432_s16 }
0x3e5a   :  { %3683 = vrot.lane.b32.xlu0 %v6688_v59, %s8431_s15 }
0x3ec8   :  { %v3291_v61 = vpop.permute.xlu0 %3290 }
0x3ec9   :  { %7364 = vmatmul.mubr.msk.f32.vlgmr.msra.gmra.mxu0 %vm440_vm4, %v3291_v61 }
0x3eca   :  { %7386 = vmatpush3.msra.mxu0 %v3502_v15  ;;  %7393 = vmatprep.mubr.msk.f32.mxu0 %vm440_vm4, %v3497_v42 }
0x3ecb   :  { %7387 = vmatprep.subr.mxu0 %v3501_v36 }
0x3ecc   :  { %7388 = vmatpush3.msra.mxu0 %v3501_v36  ;;  %v9319_v50 = vpop.permute.xlu0 %3683 }
0x3ecd   :  { %7389 = vmatprep.subr.mxu0 %v3500_v24 }
0x3ece   :  { %7390 = vmatpush3.msra.mxu0 %v3500_v24 }
0x3ecf   :  { %7391 = vmatprep.subr.mxu0 %v3499_v39 }
0x3ed0   :  { %7392 = vmatpush3.msra.mxu0 %v3499_v39 }
0x3ed1   :  { %7394 = vmatmul.mubr.msk.f32.vlgmr.msra.gmra.mxu0 %vm440_vm4, %v3498_v25  ;;  %7396 = vmatprep.subr.mxu0 %v8429_v14 }
0x3ed2   :  { %7397 = vmatpush3.msra.mxu0 %v9266_v29  ;;  %7404 = vmatprep.mubr.msk.f32.mxu0 %vm8430_vm3, %v8429_v14 }
0x3ed3   :  { %7398 = vmatprep.subr.mxu0 %v8429_v14 }
0x3ed4   :  { %7399 = vmatpush3.msra.mxu0 %v9272_v33 }
0x3ed5   :  { %7400 = vmatprep.subr.mxu0 %v8429_v14 }
0x3ed6   :  { %7401 = vmatpush3.msra.mxu0 %v9278_v10 }
0x3ed7   :  { %7402 = vmatprep.subr.mxu0 %v8429_v14 }
0x3ed8   :  { %7403 = vmatpush3.msra.mxu0 %v9284_v22 }
0x3ed9   :  { %7405 = vmatmul.mubr.msk.f32.vlgmr.msra.gmra.mxu0 %vm440_vm4, %v3603_v40  ;;  %7418 = vmatprep.subr.mxu0 %v8429_v14 }
0x3eda   :  { %7419 = vmatpush3.msra.mxu0 %v9266_v29  ;;  %7426 = vmatprep.mubr.msk.f32.mxu0 %vm8430_vm3, %v8429_v14 }
0x3edb   :  { %7420 = vmatprep.subr.mxu0 %v8429_v14 }
0x3edc   :  { %7421 = vmatpush3.msra.mxu0 %v9272_v33 }
0x3edd   :  { %7422 = vmatprep.subr.mxu0 %v8429_v14 }
0x3ede   :  { %7423 = vmatpush3.msra.mxu0 %v9278_v10 }
0x3edf   :  { %7424 = vmatprep.subr.mxu0 %v8429_v14 }
0x3ee0   :  { %7425 = vmatpush3.msra.mxu0 %v9284_v22 }
0x3ee1   :  { %7440 = vmatprep.subr.mxu0 %v8429_v14 }
0x3f89   :  { %v9315_v41 = vpop.f32.mrf.mxu0 }
0x3f8b   :  { %v7365_v43 = vpop.f32.mrf.mxu0 }
0x3f91   :  { %v7395_v47 = vpop.f32.mrf.mxu0 }
0x3f92   :  { %v9317_v48 = vadd.f32 %v7395_v47, %v6685_v46 }
0x3f93   :  { %v3582_v49 = vpop.f32.mrf.mxu0 }
0x3f94   :  { %v9323_v34 = vadd.f32 %v6685_v46, %v3582_v49 }
0x3f99   :  { %v3672_v52 = vpop.f32.mrf.mxu0 }
0x3f9a   :  { %v3686_v53 = vadd.f32 %v9319_v50, %v3672_v52  ;;  %v3676_v51 = vadd.f32 %v3672_v52, %v9323_v34 }
0x3f9b   :  { %v7406_v54 = vpop.f32.mrf.mxu0 }
0x3f9c   :  { %3688 = vrot.lane.b32.xlu1 %v3686_v53, %s8431_s15  ;;  %v6690_v55 = vmul.f32 -1.442695, %v3676_v51 }
0x3f9e   :  { %7885 = vpow2.f32 %v6690_v55 }
0x3fab   :  { %v7886_v56 = vpop.eup %7885 }
0x3fac   :  { %v3680_v23 = vadd.f32 1.0, %v7886_v56 }
0x3fae   :  { %7887 = vrcp.f32 %v3680_v23 }
0x3fbb   :  { %v7888_v38 = vpop.eup %7887 }
0x3fbc   :  { %v3698_v0 = vsub.f32 1.0, %v7888_v38  ;;  %v3705_v37 = vmul.f32 %v7888_v38, %v3601_v16 }
0x400e   :  { %v3689_v27 = vpop.permute.xlu1 %3688 }
0x400f   :  { %v3691_v2 = vmul.f32 %v7888_v38, %v3689_v27 }
0x4011   :  { %3693 = vrot.lane.b32.xlu0 %v3691_v2, %s8431_s15 }
0x4083   :  { %v3694_v31 = vpop.permute.xlu0 %3693 }
0x4084   :  { %v3696_v62 = vadd.f32 %v3694_v31, %v9323_v34 }
0x4086   :  { %7889 = vtanh.f32 %v3696_v62 }
0x4093   :  { %v7890_v63 = vpop.eup %7889 }
0x4094   :  { %3700 = vrot.lane.b32.xlu1 %v7890_v63, %s8432_s16 }
0x4106   :  { %v3701_v3 = vpop.permute.xlu1 %3700 }
0x4107   :  { %v3703_v4 = vmul.f32 %v3701_v3, %v3698_v0 }
0x4109   :  { %v3706_v5 = vadd.f32 %v3705_v37, %v3703_v4 }
0x410b   :  { %3708 = vrot.lane.b32.xlu0 %v3706_v5, %s8432_s16  ;;  %v3813_v57 = vrot.slane %v3706_v5, 6 }
0x417d   :  { %v3709_v7 = vpop.permute.xlu0 %3708 }
0x417e   :  { %3711 = vst.msk [vmem:[#allocation2] sm:$0x3] %vm639_vm5, %v3709_v7  ;;  %7416 = vmatmul.mubr.msk.f32.vlgmr.msra.gmra.mxu1 %vm440_vm4, %v3709_v7 }
0x417f   :  { %7430 = vmatpush3.msra.mxu1 %v9266_v29  ;;  %7437 = vmatprep.mubr.msk.f32.mxu1 %vm8430_vm3, %v8429_v14 }
0x4180   :  { %7431 = vmatprep.subr.mxu1 %v8429_v14 }
0x4181   :  { %7432 = vmatpush3.msra.mxu1 %v9272_v33 }
0x4182   :  { %7433 = vmatprep.subr.mxu1 %v8429_v14 }
0x4183   :  { %7434 = vmatpush3.msra.mxu1 %v9278_v10 }
0x4184   :  { %7435 = vmatprep.subr.mxu1 %v8429_v14 }
0x4185   :  { %7436 = vmatpush3.msra.mxu1 %v9284_v22 }
0x4186   :  { %7451 = vmatprep.subr.mxu1 %v8429_v14 }
0x423e   :  { %v3780_v45 = vpop.f32.mrf.mxu1 }
0x423f   :  { %v3794_v8 = vadd.f32 %v3780_v45, %v9319_v50  ;;  %v3785_v12 = vrot.slane %v3780_v45, 6 }
0x4240   :  { %v7417_v9 = vpop.f32.mrf.mxu1 }
0x4241   :  { %v3796_v11 = vrot.slane %v3794_v8, 6  ;;  %v3787_v15 = vadd.f32 %v3785_v12, %v9323_v34 }
0x4243   :  { %3797 = vrot.lane.b32.xlu1 %v3796_v11, %s8431_s15  ;;  %v6692_v17 = vmul.f32 -1.442695, %v3787_v15 }
0x4245   :  { %7891 = vpow2.f32 %v6692_v17 }
0x4252   :  { %v7892_v16 = vpop.eup %7891 }
0x4253   :  { %v3791_v18 = vadd.f32 1.0, %v7892_v16 }
0x4255   :  { %7893 = vrcp.f32 %v3791_v18 }
0x4262   :  { %v7894_v19 = vpop.eup %7893 }
0x4263   :  { %v3807_v32 = vsub.f32 1.0, %v7894_v19  ;;  %v3815_v36 = vmul.f32 %v7894_v19, %v3813_v57 }
0x42b5   :  { %v3798_v20 = vpop.permute.xlu1 %3797 }
0x42b6   :  { %v3800_v26 = vmul.f32 %v7894_v19, %v3798_v20 }
0x42b8   :  { %3802 = vrot.lane.b32.xlu0 %v3800_v26, %s8431_s15 }
0x432a   :  { %v3803_v28 = vpop.permute.xlu0 %3802 }
0x432b   :  { %v3805_v30 = vadd.f32 %v3803_v28, %v9323_v34 }
0x432d   :  { %7895 = vtanh.f32 %v3805_v30 }
0x433a   :  { %v7896_v59 = vpop.eup %7895 }
0x433b   :  { %3809 = vrot.lane.b32.xlu1 %v7896_v59, %s8432_s16 }
0x43ad   :  { %v3810_v42 = vpop.permute.xlu1 %3809 }
0x43ae   :  { %v3812_v61 = vmul.f32 %v3810_v42, %v3807_v32 }
0x43b0   :  { %v9350_v24 = vadd.f32 %v3815_v36, %v3812_v61 }
0x43b2   :  { %v3822_v39 = vrot.slane %v9350_v24, 2  ;;  %v3926_v62 = vrot.slane %v9350_v24, 6 }
0x43b4   :  { %3823 = vrot.lane.b32.xlu0 %v3822_v39, %s8432_s16 }
0x4426   :  { %v3824_v25 = vpop.permute.xlu0 %3823 }
0x4427   :  { %7427 = vmatmul.mubr.msk.f32.vlgmr.msra.gmra.mxu0 %vm440_vm4, %v3824_v25 }
0x4428   :  { %7441 = vmatpush3.msra.mxu0 %v9266_v29  ;;  %7448 = vmatprep.mubr.msk.f32.mxu0 %vm8430_vm3, %v8429_v14 }
0x4429   :  { %7442 = vmatprep.subr.mxu0 %v8429_v14 }
0x442a   :  { %7443 = vmatpush3.msra.mxu0 %v9272_v33 }
0x442b   :  { %7444 = vmatprep.subr.mxu0 %v8429_v14 }
0x442c   :  { %7445 = vmatpush3.msra.mxu0 %v9278_v10 }
0x442d   :  { %7446 = vmatprep.subr.mxu0 %v8429_v14 }
0x442e   :  { %7447 = vmatpush3.msra.mxu0 %v9284_v22 }
0x442f   :  { %7462 = vmatprep.subr.mxu0 %v8429_v14 }
0x44e7   :  { %v3893_v40 = vpop.f32.mrf.mxu0 }
0x44e8   :  { %v3907_v43 = vadd.f32 %v3893_v40, %v9319_v50  ;;  %v3898_v49 = vrot.slane %v3893_v40, 4 }
0x44e9   :  { %v7428_v46 = vpop.f32.mrf.mxu0 }
0x44ea   :  { %v3909_v47 = vrot.slane %v3907_v43, 4  ;;  %v3900_v52 = vadd.f32 %v3898_v49, %v9323_v34 }
0x44ec   :  { %3910 = vrot.lane.b32.xlu1 %v3909_v47, %s8431_s15  ;;  %v6694_v53 = vmul.f32 -1.442695, %v3900_v52 }
0x44ee   :  { %7897 = vpow2.f32 %v6694_v53 }
0x44fb   :  { %v7898_v54 = vpop.eup %7897 }
0x44fc   :  { %v3904_v51 = vadd.f32 1.0, %v7898_v54 }
0x44fe   :  { %7899 = vrcp.f32 %v3904_v51 }
0x450b   :  { %v7900_v55 = vpop.eup %7899 }
0x450c   :  { %v3920_v31 = vsub.f32 1.0, %v7900_v55  ;;  %v3928_v0 = vmul.f32 %v7900_v55, %v3926_v62 }
0x455e   :  { %v3911_v56 = vpop.permute.xlu1 %3910 }
0x455f   :  { %v3913_v23 = vmul.f32 %v7900_v55, %v3911_v56 }
0x4561   :  { %3915 = vrot.lane.b32.xlu0 %v3913_v23, %s8431_s15 }
0x45d3   :  { %v3916_v38 = vpop.permute.xlu0 %3915 }
0x45d4   :  { %v3918_v27 = vadd.f32 %v3916_v38, %v9323_v34 }
0x45d6   :  { %7901 = vtanh.f32 %v3918_v27 }
0x45e3   :  { %v7902_v2 = vpop.eup %7901 }
0x45e4   :  { %3922 = vrot.lane.b32.xlu1 %v7902_v2, %s8432_s16 }
0x4656   :  { %v3923_v63 = vpop.permute.xlu1 %3922 }
0x4657   :  { %v3925_v3 = vmul.f32 %v3923_v63, %v3920_v31 }
0x4659   :  { %v9372_v37 = vadd.f32 %v3928_v0, %v3925_v3 }
0x465b   :  { %v3935_v4 = vrot.slane %v9372_v37, 4  ;;  %v4039_v57 = vrot.slane %v9372_v37, 6 }
0x465d   :  { %3936 = vrot.lane.b32.xlu0 %v3935_v4, %s8432_s16 }
0x46cf   :  { %v3937_v5 = vpop.permute.xlu0 %3936 }
0x46d0   :  { %7438 = vmatmul.mubr.msk.f32.vlgmr.msra.gmra.mxu1 %vm440_vm4, %v3937_v5 }
0x46d1   :  { %7452 = vmatpush3.msra.mxu1 %v9266_v29  ;;  %7459 = vmatprep.mubr.msk.f32.mxu1 %vm8430_vm3, %v8429_v14 }
0x46d2   :  { %7453 = vmatprep.subr.mxu1 %v8429_v14 }
0x46d3   :  { %7454 = vmatpush3.msra.mxu1 %v9272_v33 }
0x46d4   :  { %7455 = vmatprep.subr.mxu1 %v8429_v14 }
0x46d5   :  { %7456 = vmatpush3.msra.mxu1 %v9278_v10 }
0x46d6   :  { %7457 = vmatprep.subr.mxu1 %v8429_v14 }
0x46d7   :  { %7458 = vmatpush3.msra.mxu1 %v9284_v22 }
0x46d8   :  { %7473 = vmatprep.subr.mxu1 %v8429_v14 }
0x4790   :  { %v4006_v7 = vpop.f32.mrf.mxu1 }
0x4791   :  { %v4020_v45 = vadd.f32 %v4006_v7, %v9319_v50  ;;  %v4011_v11 = vrot.slane %v4006_v7, 2 }
0x4792   :  { %v7439_v8 = vpop.f32.mrf.mxu1 }
0x4793   :  { %v4022_v9 = vrot.slane %v4020_v45, 2  ;;  %v4013_v12 = vadd.f32 %v4011_v11, %v9323_v34 }
0x4795   :  { %4023 = vrot.lane.b32.xlu1 %v4022_v9, %s8431_s15  ;;  %v6696_v15 = vmul.f32 -1.442695, %v4013_v12 }
0x4797   :  { %7903 = vpow2.f32 %v6696_v15 }
0x47a4   :  { %v7904_v17 = vpop.eup %7903 }
0x47a5   :  { %v4017_v16 = vadd.f32 1.0, %v7904_v17 }
0x47a7   :  { %7905 = vrcp.f32 %v4017_v16 }
0x47b4   :  { %v7906_v18 = vpop.eup %7905 }
0x47b5   :  { %v4033_v59 = vsub.f32 1.0, %v7906_v18  ;;  %v4041_v42 = vmul.f32 %v7906_v18, %v4039_v57 }
0x4807   :  { %v4024_v19 = vpop.permute.xlu1 %4023 }
0x4808   :  { %v4026_v20 = vmul.f32 %v7906_v18, %v4024_v19 }
0x480a   :  { %4028 = vrot.lane.b32.xlu0 %v4026_v20, %s8431_s15 }
0x487c   :  { %v4029_v26 = vpop.permute.xlu0 %4028 }
0x487d   :  { %v4031_v28 = vadd.f32 %v4029_v26, %v9323_v34 }
0x487f   :  { %7907 = vtanh.f32 %v4031_v28 }
0x488c   :  { %v7908_v30 = vpop.eup %7907 }
0x488d   :  { %4035 = vrot.lane.b32.xlu1 %v7908_v30, %s8432_s16 }
0x48ff   :  { %v4036_v32 = vpop.permute.xlu1 %4035 }
0x4900   :  { %v4038_v61 = vmul.f32 %v4036_v32, %v4033_v59 }
0x4902   :  { %v9394_v36 = vadd.f32 %v4041_v42, %v4038_v61 }
0x4904   :  { %v4048_v39 = vrot.slane %v9394_v36, 6 }
0x4906   :  { %4049 = vrot.lane.b32.xlu0 %v4048_v39, %s8432_s16 }
0x4978   :  { %v4050_v25 = vpop.permute.xlu0 %4049 }
0x4979   :  { %7449 = vmatmul.mubr.msk.f32.vlgmr.msra.gmra.mxu0 %vm440_vm4, %v4050_v25 }
0x497a   :  { %7463 = vmatpush3.msra.mxu0 %v9266_v29  ;;  %7470 = vmatprep.mubr.msk.f32.mxu0 %vm8430_vm3, %v8429_v14 }
0x497b   :  { %7464 = vmatprep.subr.mxu0 %v8429_v14 }
0x497c   :  { %7465 = vmatpush3.msra.mxu0 %v9272_v33 }
0x497d   :  { %7466 = vmatprep.subr.mxu0 %v8429_v14 }
0x497e   :  { %7467 = vmatpush3.msra.mxu0 %v9278_v10 }
0x497f   :  { %7468 = vmatprep.subr.mxu0 %v8429_v14 }
0x4980   :  { %7469 = vmatpush3.msra.mxu0 %v9284_v22 }
0x4a39   :  { %v4119_v34 = vpop.f32.mrf.mxu0 }
0x4a3a   :  { %v4130_v40 = vadd.f32 %v4119_v34, %v9319_v50  ;;  %v4123_v46 = vadd.f32 %v4119_v34, %v9317_v48 }
0x4a3b   :  { %v7450_v43 = vpop.f32.mrf.mxu0 }
0x4a3c   :  { %4132 = vrot.lane.b32.xlu1 %v4130_v40, %s8431_s15  ;;  %v6698_v47 = vmul.f32 -1.442695, %v4123_v46 }
0x4a3e   :  { %7909 = vpow2.f32 %v6698_v47 }
0x4a4b   :  { %v7910_v49 = vpop.eup %7909 }
0x4a4c   :  { %v4127_v52 = vadd.f32 1.0, %v7910_v49 }
0x4a4e   :  { %7911 = vrcp.f32 %v4127_v52 }
0x4a5b   :  { %v7912_v53 = vpop.eup %7911 }
0x4a5c   :  { %v4142_v38 = vsub.f32 1.0, %v7912_v53  ;;  %v4149_v2 = vmul.f32 %v7912_v53, %v4048_v39 }
0x4aae   :  { %v4133_v54 = vpop.permute.xlu1 %4132 }
0x4aaf   :  { %v4135_v51 = vmul.f32 %v7912_v53, %v4133_v54  ;;  %v3374_v53 = vadd.f32 %v9315_v41, %v9101_v13 }
0x4ab1   :  { %4137 = vrot.lane.b32.xlu0 %v4135_v51, %s8431_s15  ;;  %v3376_v51 = vrot.slane %v3374_v53, 2  ;;  %v4497_v53 = vld [vmem:[#allocation20 + $0x18] sm:$0xff] }
0x4ab2   :  { %7484 = vmatprep.subr.mxu0 %v4497_v53 }
0x4b23   :  { %v4138_v55 = vpop.permute.xlu0 %4137 }
0x4b24   :  { %v4140_v56 = vadd.f32 %v4138_v55, %v9317_v48  ;;  %v3365_v55 = vrot.slane %v9315_v41, 2 }
0x4b26   :  { %7913 = vtanh.f32 %v4140_v56  ;;  %v3367_v56 = vadd.f32 %v3365_v55, %v9117_v21 }
0x4b33   :  { %v7914_v23 = vpop.eup %7913 }
0x4b34   :  { %4144 = vrot.lane.b32.xlu1 %v7914_v23, %s8432_s16  ;;  %v6680_v23 = vmul.f32 -1.442695, %v3367_v56 }
0x4ba6   :  { %v4145_v27 = vpop.permute.xlu1 %4144 }
0x4ba7   :  { %v4147_v31 = vmul.f32 %v4145_v27, %v4142_v38 }
0x4ba9   :  { %v4150_v62 = vadd.f32 %v4149_v2, %v4147_v31 }
0x4bab   :  { %4152 = vrot.lane.b32.xlu0 %v4150_v62, %s8432_s16  ;;  %v4257_v17 = vrot.slane %v4150_v62, 6 }
0x4c1d   :  { %v4153_v63 = vpop.permute.xlu0 %4152 }
0x4c1e   :  { %4155 = vst.msk [vmem:[#allocation2 + $0x8] sm:$0x3] %vm639_vm5, %v4153_v63  ;;  %7460 = vmatmul.mubr.msk.f32.vlgmr.msra.gmra.mxu1 %vm440_vm4, %v4153_v63 }
0x4c1f   :  { %7474 = vmatpush3.msra.mxu1 %v9266_v29  ;;  %7481 = vmatprep.mubr.msk.f32.mxu1 %vm8430_vm3, %v8429_v14 }
0x4c20   :  { %7475 = vmatprep.subr.mxu1 %v8429_v14 }
0x4c21   :  { %7476 = vmatpush3.msra.mxu1 %v9272_v33 }
0x4c22   :  { %7477 = vmatprep.subr.mxu1 %v8429_v14 }
0x4c23   :  { %7478 = vmatpush3.msra.mxu1 %v9278_v10 }
0x4c24   :  { %7479 = vmatprep.subr.mxu1 %v8429_v14 }
0x4c25   :  { %7480 = vmatpush3.msra.mxu1 %v9284_v22 }
0x4c26   :  { %7495 = vmatprep.subr.mxu1 %v8429_v14 }
0x4cde   :  { %v4224_v0 = vpop.f32.mrf.mxu1 }
0x4cdf   :  { %v4238_v29 = vadd.f32 %v4224_v0, %v9319_v50  ;;  %v4229_v5 = vrot.slane %v4224_v0, 6 }
0x4ce0   :  { %v7461_v3 = vpop.f32.mrf.mxu1 }
0x4ce1   :  { %v4240_v4 = vrot.slane %v4238_v29, 6  ;;  %v4231_v33 = vadd.f32 %v4229_v5, %v9317_v48  ;;  %v9455_v5 = vld [vmem:[#allocation22 + $0x18] sm:$0xff] }
0x4ce3   :  { %4241 = vrot.lane.b32.xlu1 %v4240_v4, %s8431_s15  ;;  %v6700_v7 = vmul.f32 -1.442695, %v4231_v33 }
0x4ce5   :  { %7915 = vpow2.f32 %v6700_v7 }
0x4cf2   :  { %v7916_v45 = vpop.eup %7915 }
0x4cf3   :  { %v4235_v10 = vadd.f32 1.0, %v7916_v45 }
0x4cf5   :  { %7917 = vrcp.f32 %v4235_v10  ;;  %v9459_v10 = vld [vmem:[#allocation22 + $0x10] sm:$0xff] }
0x4d02   :  { %v7918_v8 = vpop.eup %7917 }
0x4d03   :  { %v4251_v16 = vsub.f32 1.0, %v7918_v8  ;;  %v4259_v20 = vmul.f32 %v7918_v8, %v4257_v17 }
0x4d55   :  { %v4242_v9 = vpop.permute.xlu1 %4241 }
0x4d56   :  { %v4244_v22 = vmul.f32 %v7918_v8, %v4242_v9  ;;  %v9466_v8 = vld [vmem:[#allocation22 + $0x8] sm:$0xff] }
0x4d58   :  { %4246 = vrot.lane.b32.xlu0 %v4244_v22, %s8431_s15  ;;  %v4596_v22 = vrot.slane %v9094_v6, 6 }
0x4dca   :  { %v4247_v11 = vpop.permute.xlu0 %4246 }
0x4dcb   :  { %v4249_v12 = vadd.f32 %v4247_v11, %v9317_v48 }
0x4dcd   :  { %7919 = vtanh.f32 %v4249_v12  ;;  %v3393_v12 = vrot.slane %v9268_v60, 6 }
0x4dda   :  { %v7920_v15 = vpop.eup %7919 }
0x4ddb   :  { %4253 = vrot.lane.b32.xlu1 %v7920_v15, %s8432_s16 }
0x4e4d   :  { %v4254_v18 = vpop.permute.xlu1 %4253 }
0x4e4e   :  { %v4256_v19 = vmul.f32 %v4254_v18, %v4251_v16 }
0x4e50   :  { %v9433_v26 = vadd.f32 %v4259_v20, %v4256_v19 }
0x4e52   :  { %v4266_v28 = vrot.slane %v9433_v26, 2  ;;  %v4370_v31 = vrot.slane %v9433_v26, 6 }
0x4e54   :  { %4267 = vrot.lane.b32.xlu0 %v4266_v28, %s8432_s16 }
0x4ec6   :  { %v4268_v30 = vpop.permute.xlu0 %4267 }
0x4ec7   :  { %7471 = vmatmul.mubr.msk.f32.vlgmr.msra.gmra.mxu0 %vm440_vm4, %v4268_v30 }
0x4ec8   :  { %7485 = vmatpush3.msra.mxu0 %v4497_v53 }
0x4f87   :  { %v4337_v59 = vpop.f32.mrf.mxu0 }
0x4f88   :  { %v4351_v57 = vadd.f32 %v4337_v59, %v9319_v50  ;;  %v4342_v61 = vrot.slane %v4337_v59, 4 }
0x4f89   :  { %v7472_v32 = vpop.f32.mrf.mxu0 }
0x4f8a   :  { %v4353_v42 = vrot.slane %v4351_v57, 4  ;;  %v4344_v39 = vadd.f32 %v4342_v61, %v9317_v48 }
0x4f8c   :  { %4354 = vrot.lane.b32.xlu1 %v4353_v42, %s8431_s15  ;;  %v6702_v25 = vmul.f32 -1.442695, %v4344_v39 }
0x4f8e   :  { %7921 = vpow2.f32 %v6702_v25 }
0x4f9b   :  { %v7922_v34 = vpop.eup %7921 }
0x4f9c   :  { %v4348_v40 = vadd.f32 1.0, %v7922_v34 }
0x4f9e   :  { %7923 = vrcp.f32 %v4348_v40 }
0x4fab   :  { %v7924_v43 = vpop.eup %7923 }
0x4fac   :  { %v4364_v2 = vsub.f32 1.0, %v7924_v43  ;;  %v4372_v13 = vmul.f32 %v7924_v43, %v4370_v31 }
0x4ffe   :  { %v4355_v46 = vpop.permute.xlu1 %4354 }
0x4fff   :  { %v4357_v47 = vmul.f32 %v7924_v43, %v4355_v46 }
0x5001   :  { %4359 = vrot.lane.b32.xlu0 %v4357_v47, %s8431_s15 }
0x5073   :  { %v4360_v49 = vpop.permute.xlu0 %4359 }
0x5074   :  { %v4362_v52 = vadd.f32 %v4360_v49, %v9317_v48 }
0x5076   :  { %7925 = vtanh.f32 %v4362_v52 }
0x5077   :  { %7927 = vpow2.f32 %v6680_v23 }
0x5083   :  { %v7926_v54 = vpop.eup %7925 }
0x5084   :  { %4366 = vrot.lane.b32.xlu1 %v7926_v54, %s8432_s16  ;;  %v7928_v38 = vpop.eup %7927 }
0x5085   :  { %v3371_v27 = vadd.f32 1.0, %v7928_v38 }
0x5087   :  { %7929 = vrcp.f32 %v3371_v27 }
0x5088   :  { %3377 = vrot.lane.b32.xlu1 %v3376_v51, %s8431_s15 }
0x5094   :  { %v7930_v29 = vpop.eup %7929 }
0x5095   :  { %v3387_v11 = vsub.f32 1.0, %v7930_v29  ;;  %v3395_v17 = vmul.f32 %v7930_v29, %v3393_v12 }
0x50f6   :  { %v4367_v62 = vpop.permute.xlu1 %4366 }
0x50f7   :  { %v4369_v63 = vmul.f32 %v4367_v62, %v4364_v2 }
0x50f9   :  { %v9450_v0 = vadd.f32 %v4372_v13, %v4369_v63 }
0x50fa   :  { %v3378_v3 = vpop.permute.xlu1 %3377 }
0x50fb   :  { %v4379_v4 = vrot.slane %v9450_v0, 4  ;;  %v3380_v41 = vmul.f32 %v7930_v29, %v3378_v3 }
0x50fd   :  { %4380 = vrot.lane.b32.xlu0 %v4379_v4, %s8432_s16  ;;  %3382 = vrot.lane.b32.xlu1 %v3380_v41, %s8431_s15  ;;  %v6705_v4 = vld [vmem:[%s9949_s30] ss:$0 sm:$0xff] }
0x516f   :  { %v4381_v33 = vpop.permute.xlu0 %4380  ;;  %v3383_v7 = vpop.permute.xlu1 %3382 }
0x5170   :  { %v3385_v45 = vadd.f32 %v3383_v7, %v9117_v21  ;;  %7482 = vmatmul.mubr.msk.f32.vlgmr.msra.gmra.mxu1 %vm440_vm4, %v4381_v33  ;;  %v9470_v21 = vld [vmem:[#allocation22] sm:$0xff] }
0x5171   :  { %7496 = vmatpush3.msra.mxu1 %v9455_v5  ;;  %7503 = vmatprep.mubr.msk.f32.mxu1 %vm8430_vm3, %v8429_v14 }
0x5172   :  { %7931 = vtanh.f32 %v3385_v45  ;;  %7497 = vmatprep.subr.mxu1 %v8429_v14 }
0x5173   :  { %7498 = vmatpush3.msra.mxu1 %v9459_v10 }
0x5174   :  { %7499 = vmatprep.subr.mxu1 %v8429_v14 }
0x5175   :  { %7500 = vmatpush3.msra.mxu1 %v9466_v8 }
0x5176   :  { %7501 = vmatprep.subr.mxu1 %v8429_v14 }
0x5177   :  { %7502 = vmatpush3.msra.mxu1 %v9470_v21 }
0x5178   :  { %7517 = vmatprep.subr.mxu1 %v8429_v14 }
0x517f   :  { %v7932_v9 = vpop.eup %7931 }
0x5180   :  { %3389 = vrot.lane.b32.xlu1 %v7932_v9, %s8432_s16 }
0x5184   :  { %4597 = vrot.lane.b32.xlu1 %v4596_v22, %s8432_s16 }
0x5188   :  { %2841 = vrot.lane.b32.xlu1 %v9166_v1, %s8432_s16 }
0x518c   :  { %3172 = vrot.lane.b32.xlu1 %v9230_v44, %s8432_s16 }
0x51f2   :  { %v3390_v15 = vpop.permute.xlu1 %3389 }
0x51f3   :  { %v3392_v16 = vmul.f32 %v3390_v15, %v3387_v11 }
0x51f5   :  { %v9485_v18 = vadd.f32 %v3395_v17, %v3392_v16 }
0x51f6   :  { %v4598_v19 = vpop.permute.xlu1 %4597 }
0x51f7   :  { %3398 = vrot.lane.b32.xlu1 %v9485_v18, %s8432_s16  ;;  %7504 = vmatmul.mubr.msk.f32.vlgmr.msra.gmra.mxu1 %vm440_vm4, %v4598_v19 }
0x51f8   :  { %7518 = vmatpush3.msra.mxu1 %v9455_v5  ;;  %7525 = vmatprep.mubr.msk.f32.mxu1 %vm8430_vm3, %v8429_v14 }
0x51f9   :  { %7519 = vmatprep.subr.mxu1 %v8429_v14 }
0x51fa   :  { %v2842_v1 = vpop.permute.xlu1 %2841  ;;  %7520 = vmatpush3.msra.mxu1 %v9459_v10 }
0x51fb   :  { %2844 = vst.msk [vmem:[#allocation2] sm:$0x30] %vm864_vm8, %v2842_v1  ;;  %3931 = vrot.lane.b32.xlu1 %v9372_v37, %s8432_s16  ;;  %7521 = vmatprep.subr.mxu1 %v8429_v14 }
0x51fc   :  { %7522 = vmatpush3.msra.mxu1 %v9466_v8 }
0x51fd   :  { %7523 = vmatprep.subr.mxu1 %v8429_v14 }
0x51fe   :  { %v3173_v44 = vpop.permute.xlu1 %3172  ;;  %7524 = vmatpush3.msra.mxu1 %v9470_v21 }
0x51ff   :  { %3175 = vst.msk [vmem:[#allocation2 + $0x8] sm:$0xc] %vm750_vm6, %v3173_v44  ;;  %4262 = vrot.lane.b32.xlu1 %v9433_v26, %s8432_s16  ;;  %7539 = vmatprep.subr.mxu1 %v8429_v14 }
0x5230   :  { %v4450_v20 = vpop.f32.mrf.mxu1 }
0x5231   :  { %v4464_v28 = vadd.f32 %v4450_v20, %v9319_v50  ;;  %v4455_v42 = vrot.slane %v4450_v20, 2 }
0x5232   :  { %v7483_v37 = vpop.f32.mrf.mxu1 }
0x5233   :  { %v4466_v30 = vrot.slane %v4464_v28, 2  ;;  %v4457_v26 = vadd.f32 %v4455_v42, %v9317_v48 }
0x5235   :  { %4467 = vrot.lane.b32.xlu0 %v4466_v30, %s8431_s15  ;;  %v6704_v61 = vmul.f32 -1.442695, %v4457_v26 }
0x5237   :  { %7933 = vpow2.f32 %v6704_v61 }
0x5244   :  { %v7934_v39 = vpop.eup %7933 }
0x5245   :  { %v4461_v50 = vadd.f32 1.0, %v7934_v39 }
0x5247   :  { %7935 = vrcp.f32 %v4461_v50 }
0x5254   :  { %v7936_v25 = vpop.eup %7935 }
0x5269   :  { %v3399_v59 = vpop.permute.xlu1 %3398 }
0x526a   :  { %3401 = vst.msk [vmem:[#allocation2 + $0x8] sm:$0xc0] %vm978_vm7, %v3399_v59 }
0x526d   :  { %v3932_v57 = vpop.permute.xlu1 %3931 }
0x526e   :  { %3934 = vst.msk [vmem:[#allocation2] sm:$0x30] %vm864_vm8, %v3932_v57 }
0x5271   :  { %v4263_v32 = vpop.permute.xlu1 %4262 }
0x5272   :  { %4265 = vst.msk [vmem:[#allocation2 + $0x8] sm:$0xc] %vm750_vm6, %v4263_v32 }
0x52a7   :  { %v4468_v34 = vpop.permute.xlu0 %4467 }
0x52a8   :  { %v4470_v40 = vmul.f32 %v7936_v25, %v4468_v34 }
0x52aa   :  { %4472 = vrot.lane.b32.xlu0 %v4470_v40, %s8431_s15 }
0x52b7   :  { %v9513_v43 = vpop.f32.mrf.mxu1 }
0x52b9   :  { %v7505_v46 = vpop.f32.mrf.mxu1 }
0x531c   :  { %v4473_v47 = vpop.permute.xlu0 %4472 }
0x531d   :  { %v4475_v49 = vadd.f32 %v4473_v47, %v9317_v48  ;;  %v6708_v48 = vld [vmem:[%s9948_s22] ss:$0 sm:$0xff] }
0x531f   :  { %7937 = vtanh.f32 %v4475_v49 }
0x532c   :  { %v7938_v52 = vpop.eup %7937 }
0x532d   :  { %4479 = vrot.lane.b32.xlu0 %v7938_v52, %s8432_s16 }
0x5331   :  { %2728 = vrot.lane.b32.xlu0 %v9144_v35, %s8432_s16  ;;  %v4496_v35 = vld [vmem:[#allocation20 + $0x10] sm:$0xff] }
0x5332   :  { %7486 = vmatprep.subr.mxu0 %v4496_v35 }
0x5333   :  { %7487 = vmatpush3.msra.mxu0 %v4496_v35 }
0x5335   :  { %2954 = vrot.lane.b32.xlu0 %v9188_v58, %s8432_s16  ;;  %v4495_v58 = vld [vmem:[#allocation20 + $0x8] sm:$0xff] }
0x5336   :  { %7488 = vmatprep.subr.mxu0 %v4495_v58 }
0x5337   :  { %7489 = vmatpush3.msra.mxu0 %v4495_v58 }
0x5339   :  { %3285 = vrot.lane.b32.xlu0 %v9268_v60, %s8432_s16  ;;  %v4494_v60 = vld [vmem:[#allocation20] sm:$0xff] }
0x533a   :  { %7490 = vmatprep.subr.mxu0 %v4494_v60 }
0x533b   :  { %7491 = vmatpush3.msra.mxu0 %v4494_v60 }
0x533c   :  { %7506 = vmatprep.subr.mxu0 %v8429_v14 }
0x533d   :  { %3818 = vrot.lane.b32.xlu0 %v9350_v24, %s8432_s16  ;;  %v4477_v24 = vsub.f32 1.0, %v7936_v25 }
0x5341   :  { %4044 = vrot.lane.b32.xlu0 %v9394_v36, %s8432_s16  ;;  %v4483_v36 = vrot.slane %v9450_v0, 6 }
0x5343   :  { %v4485_v51 = vmul.f32 %v7936_v25, %v4483_v36 }
0x5345   :  { %4375 = vrot.lane.b32.xlu0 %v9450_v0, %s8432_s16 }
0x5349   :  { %4678 = vrot.lane.b32.xlu0 %v6708_v48, %s8431_s15 }
0x539f   :  { %v4480_v54 = vpop.permute.xlu0 %4479 }
0x53a0   :  { %v4482_v55 = vmul.f32 %v4480_v54, %v4477_v24 }
0x53a2   :  { %v4486_v56 = vadd.f32 %v4485_v51, %v4482_v55 }
0x53a3   :  { %v2729_v23 = vpop.permute.xlu0 %2728 }
0x53a4   :  { %2731 = vst.msk [vmem:[#allocation2] sm:$0xc] %vm750_vm6, %v2729_v23  ;;  %4488 = vrot.lane.b32.xlu1 %v4486_v56, %s8432_s16 }
0x53a7   :  { %v2955_v38 = vpop.permute.xlu0 %2954 }
0x53a8   :  { %2957 = vst.msk [vmem:[#allocation2] sm:$0xc0] %vm978_vm7, %v2955_v38 }
0x53ab   :  { %v3286_v27 = vpop.permute.xlu0 %3285 }
0x53ac   :  { %3288 = vst.msk [vmem:[#allocation2 + $0x8] sm:$0x30] %vm864_vm8, %v3286_v27 }
0x53af   :  { %v3819_v2 = vpop.permute.xlu0 %3818 }
0x53b0   :  { %3821 = vst.msk [vmem:[#allocation2] sm:$0xc] %vm750_vm6, %v3819_v2 }
0x53b3   :  { %v4045_v31 = vpop.permute.xlu0 %4044 }
0x53b4   :  { %4047 = vst.msk [vmem:[#allocation2] sm:$0xc0] %vm978_vm7, %v4045_v31 }
0x53b7   :  { %v4376_v62 = vpop.permute.xlu0 %4375 }
0x53b8   :  { %4378 = vst.msk [vmem:[#allocation2 + $0x8] sm:$0x30] %vm864_vm8, %v4376_v62 }
0x53bb   :  { %v9540_v13 = vpop.permute.xlu0 %4678  ;;  %v4492_v63 = vld [vmem:[#allocation2] sm:$0xff] }
0x53bc   :  { %7492 = vmatprep.mubr.msk.f32.mxu0 %vm440_vm4, %v4492_v63  ;;  %v4681_v0 = vadd.f32 %v9540_v13, %v9513_v43 }
0x53be   :  { %4683 = vrot.lane.b32.xlu1 %v4681_v0, %s8431_s15 }
0x5416   :  { %v4489_v29 = vpop.permute.xlu1 %4488 }
0x5417   :  { %4491 = vst.msk [vmem:[#allocation2 + $0x8] sm:$0xc0] %vm978_vm7, %v4489_v29 }
0x541e   :  { %v4493_v3 = vld [vmem:[#allocation2 + $0x8] sm:$0xff] }
0x541f   :  { %7493 = vmatmul.mubr.msk.f32.vlgmr.msra.gmra.mxu0 %vm440_vm4, %v4493_v3 }
0x5420   :  { %7507 = vmatpush3.msra.mxu0 %v9455_v5  ;;  %7514 = vmatprep.mubr.msk.f32.mxu0 %vm8430_vm3, %v8429_v14 }
0x5421   :  { %7508 = vmatprep.subr.mxu0 %v8429_v14 }
0x5422   :  { %7509 = vmatpush3.msra.mxu0 %v9459_v10 }
0x5423   :  { %7510 = vmatprep.subr.mxu0 %v8429_v14 }
0x5424   :  { %7511 = vmatpush3.msra.mxu0 %v9466_v8 }
0x5425   :  { %7512 = vmatprep.subr.mxu0 %v8429_v14 }
0x5426   :  { %7513 = vmatpush3.msra.mxu0 %v9470_v21 }
0x5427   :  { %7528 = vmatprep.subr.mxu0 %v8429_v14 }
0x5430   :  { %v4684_v16 = vpop.permute.xlu1 %4683 }
0x54df   :  { %v7494_v41 = vpop.f32.mrf.mxu0 }
0x54e0   :  { %v9559_v33 = vadd.f32 %v7494_v41, %v6705_v4 }
0x54e1   :  { %v4577_v7 = vpop.f32.mrf.mxu0 }
0x54e2   :  { %v9561_v45 = vadd.f32 %v6705_v4, %v4577_v7 }
0x54e4   :  { %v4671_v9 = vadd.f32 %v9513_v43, %v9561_v45 }
0x54e6   :  { %v6710_v11 = vmul.f32 -1.442695, %v4671_v9 }
0x54e8   :  { %7939 = vpow2.f32 %v6710_v11 }
0x54f5   :  { %v7940_v12 = vpop.eup %7939 }
0x54f6   :  { %v4675_v15 = vadd.f32 1.0, %v7940_v12 }
0x54f8   :  { %7941 = vrcp.f32 %v4675_v15 }
0x5505   :  { %v7942_v17 = vpop.eup %7941 }
0x5506   :  { %v4686_v19 = vmul.f32 %v7942_v17, %v4684_v16  ;;  %v4693_v28 = vsub.f32 1.0, %v7942_v17  ;;  %v4700_v30 = vmul.f32 %v7942_v17, %v4596_v22 }
0x5508   :  { %4688 = vrot.lane.b32.xlu0 %v4686_v19, %s8431_s15 }
0x557a   :  { %v4689_v1 = vpop.permute.xlu0 %4688 }
0x557b   :  { %v4691_v44 = vadd.f32 %v4689_v1, %v9561_v45 }
0x557d   :  { %7943 = vtanh.f32 %v4691_v44 }
0x558a   :  { %v7944_v20 = vpop.eup %7943 }
0x558b   :  { %4695 = vrot.lane.b32.xlu1 %v7944_v20, %s8432_s16 }
0x55fd   :  { %v4696_v37 = vpop.permute.xlu1 %4695 }
0x55fe   :  { %v4698_v59 = vmul.f32 %v4696_v37, %v4693_v28 }
0x5600   :  { %v4701_v57 = vadd.f32 %v4700_v30, %v4698_v59 }
0x5602   :  { %4703 = vrot.lane.b32.xlu0 %v4701_v57, %s8432_s16  ;;  %v4808_v48 = vrot.slane %v4701_v57, 6 }
0x5674   :  { %v4704_v32 = vpop.permute.xlu0 %4703 }
0x5675   :  { %4706 = vst.msk [vmem:[#allocation2] sm:$0x3] %vm639_vm5, %v4704_v32  ;;  %7515 = vmatmul.mubr.msk.f32.vlgmr.msra.gmra.mxu0 %vm440_vm4, %v4704_v32 }
0x5676   :  { %7529 = vmatpush3.msra.mxu0 %v9455_v5  ;;  %7536 = vmatprep.mubr.msk.f32.mxu0 %vm8430_vm3, %v8429_v14 }
0x5677   :  { %7530 = vmatprep.subr.mxu0 %v8429_v14 }
0x5678   :  { %7531 = vmatpush3.msra.mxu0 %v9459_v10 }
0x5679   :  { %7532 = vmatprep.subr.mxu0 %v8429_v14 }
0x567a   :  { %7533 = vmatpush3.msra.mxu0 %v9466_v8 }
0x567b   :  { %7534 = vmatprep.subr.mxu0 %v8429_v14 }
0x567c   :  { %7535 = vmatpush3.msra.mxu0 %v9470_v21 }
0x567d   :  { %7550 = vmatprep.subr.mxu0 %v8429_v14 }
0x5735   :  { %v4775_v6 = vpop.f32.mrf.mxu0 }
0x5736   :  { %v4789_v22 = vadd.f32 %v4775_v6, %v9540_v13  ;;  %v4780_v61 = vrot.slane %v4775_v6, 6 }
0x5737   :  { %v7516_v42 = vpop.f32.mrf.mxu0 }
0x5738   :  { %v4791_v26 = vrot.slane %v4789_v22, 6  ;;  %v4782_v39 = vadd.f32 %v4780_v61, %v9561_v45 }
0x573a   :  { %4792 = vrot.lane.b32.xlu1 %v4791_v26, %s8431_s15  ;;  %v6712_v50 = vmul.f32 -1.442695, %v4782_v39 }
0x573c   :  { %7945 = vpow2.f32 %v6712_v50 }
0x5749   :  { %v7946_v25 = vpop.eup %7945 }
0x574a   :  { %v4786_v34 = vadd.f32 1.0, %v7946_v25 }
0x574c   :  { %7947 = vrcp.f32 %v4786_v34 }
0x5759   :  { %v7948_v40 = vpop.eup %7947 }
0x575a   :  { %v4802_v53 = vsub.f32 1.0, %v7948_v40  ;;  %v4810_v60 = vmul.f32 %v7948_v40, %v4808_v48 }
0x57ac   :  { %v4793_v43 = vpop.permute.xlu1 %4792 }
0x57ad   :  { %v4795_v46 = vmul.f32 %v7948_v40, %v4793_v43 }
0x57af   :  { %4797 = vrot.lane.b32.xlu0 %v4795_v46, %s8431_s15 }
0x5821   :  { %v4798_v47 = vpop.permute.xlu0 %4797 }
0x5822   :  { %v4800_v49 = vadd.f32 %v4798_v47, %v9561_v45 }
0x5824   :  { %7949 = vtanh.f32 %v4800_v49 }
0x5831   :  { %v7950_v52 = vpop.eup %7949 }
0x5832   :  { %4804 = vrot.lane.b32.xlu1 %v7950_v52, %s8432_s16 }
0x58a4   :  { %v4805_v35 = vpop.permute.xlu1 %4804 }
0x58a5   :  { %v4807_v58 = vmul.f32 %v4805_v35, %v4802_v53 }
0x58a7   :  { %v9589_v24 = vadd.f32 %v4810_v60, %v4807_v58 }
0x58a9   :  { %v4817_v36 = vrot.slane %v9589_v24, 2  ;;  %v4921_v9 = vrot.slane %v9589_v24, 6 }
0x58ab   :  { %4818 = vrot.lane.b32.xlu0 %v4817_v36, %s8432_s16 }
0x591d   :  { %v4819_v54 = vpop.permute.xlu0 %4818 }
0x591e   :  { %7526 = vmatmul.mubr.msk.f32.vlgmr.msra.gmra.mxu1 %vm440_vm4, %v4819_v54 }
0x591f   :  { %7540 = vmatpush3.msra.mxu1 %v9455_v5  ;;  %7547 = vmatprep.mubr.msk.f32.mxu1 %vm8430_vm3, %v8429_v14 }
0x5920   :  { %7541 = vmatprep.subr.mxu1 %v8429_v14 }
0x5921   :  { %7542 = vmatpush3.msra.mxu1 %v9459_v10 }
0x5922   :  { %7543 = vmatprep.subr.mxu1 %v8429_v14 }
0x5923   :  { %7544 = vmatpush3.msra.mxu1 %v9466_v8 }
0x5924   :  { %7545 = vmatprep.subr.mxu1 %v8429_v14 }
0x5925   :  { %7546 = vmatpush3.msra.mxu1 %v9470_v21 }
0x5926   :  { %7561 = vmatprep.subr.mxu1 %v8429_v14 }
0x59de   :  { %v4888_v51 = vpop.f32.mrf.mxu1 }
0x59df   :  { %v4902_v55 = vadd.f32 %v4888_v51, %v9540_v13  ;;  %v4893_v38 = vrot.slane %v4888_v51, 4 }
0x59e0   :  { %v7527_v56 = vpop.f32.mrf.mxu1 }
0x59e1   :  { %v4904_v23 = vrot.slane %v4902_v55, 4  ;;  %v4895_v27 = vadd.f32 %v4893_v38, %v9561_v45 }
0x59e3   :  { %4905 = vrot.lane.b32.xlu1 %v4904_v23, %s8431_s15  ;;  %v6714_v2 = vmul.f32 -1.442695, %v4895_v27 }
0x59e5   :  { %7951 = vpow2.f32 %v6714_v2 }
0x59f2   :  { %v7952_v31 = vpop.eup %7951 }
0x59f3   :  { %v4899_v62 = vadd.f32 1.0, %v7952_v31 }
0x59f5   :  { %7953 = vrcp.f32 %v4899_v62 }
0x5a02   :  { %v7954_v63 = vpop.eup %7953 }
0x5a03   :  { %v4915_v7 = vsub.f32 1.0, %v7954_v63  ;;  %v4923_v12 = vmul.f32 %v7954_v63, %v4921_v9 }
0x5a55   :  { %v4906_v0 = vpop.permute.xlu1 %4905 }
0x5a56   :  { %v4908_v29 = vmul.f32 %v7954_v63, %v4906_v0 }
0x5a58   :  { %4910 = vrot.lane.b32.xlu0 %v4908_v29, %s8431_s15 }
0x5aca   :  { %v4911_v3 = vpop.permute.xlu0 %4910 }
0x5acb   :  { %v4913_v4 = vadd.f32 %v4911_v3, %v9561_v45 }
0x5acd   :  { %7955 = vtanh.f32 %v4913_v4 }
0x5ada   :  { %v7956_v41 = vpop.eup %7955 }
0x5adb   :  { %4917 = vrot.lane.b32.xlu1 %v7956_v41, %s8432_s16 }
0x5b4d   :  { %v4918_v11 = vpop.permute.xlu1 %4917 }
0x5b4e   :  { %v4920_v15 = vmul.f32 %v4918_v11, %v4915_v7 }
0x5b50   :  { %v9611_v17 = vadd.f32 %v4923_v12, %v4920_v15 }
0x5b52   :  { %v4930_v16 = vrot.slane %v9611_v17, 4  ;;  %v5034_v25 = vrot.slane %v9611_v17, 6 }
0x5b54   :  { %4931 = vrot.lane.b32.xlu0 %v4930_v16, %s8432_s16 }
0x5bc6   :  { %v4932_v19 = vpop.permute.xlu0 %4931 }
0x5bc7   :  { %7537 = vmatmul.mubr.msk.f32.vlgmr.msra.gmra.mxu0 %vm440_vm4, %v4932_v19 }
0x5bc8   :  { %7551 = vmatpush3.msra.mxu0 %v9455_v5  ;;  %7558 = vmatprep.mubr.msk.f32.mxu0 %vm8430_vm3, %v8429_v14 }
0x5bc9   :  { %7552 = vmatprep.subr.mxu0 %v8429_v14 }
0x5bca   :  { %7553 = vmatpush3.msra.mxu0 %v9459_v10 }
0x5bcb   :  { %7554 = vmatprep.subr.mxu0 %v8429_v14 }
0x5bcc   :  { %7555 = vmatpush3.msra.mxu0 %v9466_v8 }
0x5bcd   :  { %7556 = vmatprep.subr.mxu0 %v8429_v14 }
0x5bce   :  { %7557 = vmatpush3.msra.mxu0 %v9470_v21 }
0x5bcf   :  { %7572 = vmatprep.subr.mxu0 %v8429_v14 }
0x5c87   :  { %v5001_v1 = vpop.f32.mrf.mxu0 }
0x5c88   :  { %v5015_v44 = vadd.f32 %v5001_v1, %v9540_v13  ;;  %v5006_v37 = vrot.slane %v5001_v1, 2 }
0x5c89   :  { %v7538_v20 = vpop.f32.mrf.mxu0 }
0x5c8a   :  { %v5017_v28 = vrot.slane %v5015_v44, 2  ;;  %v5008_v30 = vadd.f32 %v5006_v37, %v9561_v45 }
0x5c8c   :  { %5018 = vrot.lane.b32.xlu1 %v5017_v28, %s8431_s15  ;;  %v6716_v59 = vmul.f32 -1.442695, %v5008_v30 }
0x5c8e   :  { %7957 = vpow2.f32 %v6716_v59 }
0x5c9b   :  { %v7958_v57 = vpop.eup %7957 }
0x5c9c   :  { %v5012_v32 = vadd.f32 1.0, %v7958_v57 }
0x5c9e   :  { %7959 = vrcp.f32 %v5012_v32 }
0x5cab   :  { %v7960_v6 = vpop.eup %7959 }
0x5cac   :  { %v5028_v50 = vsub.f32 1.0, %v7960_v6  ;;  %v5036_v40 = vmul.f32 %v7960_v6, %v5034_v25 }
0x5cfe   :  { %v5019_v22 = vpop.permute.xlu1 %5018 }
0x5cff   :  { %v5021_v42 = vmul.f32 %v7960_v6, %v5019_v22 }
0x5d01   :  { %5023 = vrot.lane.b32.xlu0 %v5021_v42, %s8431_s15 }
0x5d73   :  { %v5024_v26 = vpop.permute.xlu0 %5023 }
0x5d74   :  { %v5026_v61 = vadd.f32 %v5024_v26, %v9561_v45 }
0x5d76   :  { %7961 = vtanh.f32 %v5026_v61 }
0x5d83   :  { %v7962_v39 = vpop.eup %7961 }
0x5d84   :  { %5030 = vrot.lane.b32.xlu1 %v7962_v39, %s8432_s16 }
0x5df6   :  { %v5031_v34 = vpop.permute.xlu1 %5030 }
0x5df7   :  { %v5033_v43 = vmul.f32 %v5031_v34, %v5028_v50 }
0x5df9   :  { %v9633_v46 = vadd.f32 %v5036_v40, %v5033_v43 }
0x5dfb   :  { %v5043_v47 = vrot.slane %v9633_v46, 6 }
0x5dfd   :  { %5044 = vrot.lane.b32.xlu0 %v5043_v47, %s8432_s16 }
0x5e6f   :  { %v5045_v49 = vpop.permute.xlu0 %5044 }
0x5e70   :  { %7548 = vmatmul.mubr.msk.f32.vlgmr.msra.gmra.mxu1 %vm440_vm4, %v5045_v49 }
0x5e71   :  { %7562 = vmatpush3.msra.mxu1 %v9455_v5  ;;  %7569 = vmatprep.mubr.msk.f32.mxu1 %vm8430_vm3, %v8429_v14 }
0x5e72   :  { %7563 = vmatprep.subr.mxu1 %v8429_v14 }
0x5e73   :  { %7564 = vmatpush3.msra.mxu1 %v9459_v10 }
0x5e74   :  { %7565 = vmatprep.subr.mxu1 %v8429_v14 }
0x5e75   :  { %7566 = vmatpush3.msra.mxu1 %v9466_v8 }
0x5e76   :  { %7567 = vmatprep.subr.mxu1 %v8429_v14 }
0x5e77   :  { %7568 = vmatpush3.msra.mxu1 %v9470_v21 }
0x5f30   :  { %v5114_v45 = vpop.f32.mrf.mxu1 }
0x5f31   :  { %v5125_v52 = vadd.f32 %v5114_v45, %v9540_v13  ;;  %v5118_v53 = vadd.f32 %v5114_v45, %v9559_v33 }
0x5f32   :  { %v7549_v48 = vpop.f32.mrf.mxu1 }
0x5f33   :  { %5127 = vrot.lane.b32.xlu1 %v5125_v52, %s8431_s15  ;;  %v6718_v35 = vmul.f32 -1.442695, %v5118_v53 }
0x5f35   :  { %7963 = vpow2.f32 %v6718_v35 }
0x5f42   :  { %v7964_v58 = vpop.eup %7963 }
0x5f43   :  { %v5122_v60 = vadd.f32 1.0, %v7964_v58 }
0x5f45   :  { %7965 = vrcp.f32 %v5122_v60 }
0x5f52   :  { %v7966_v36 = vpop.eup %7965 }
0x5f53   :  { %v5137_v38 = vsub.f32 1.0, %v7966_v36  ;;  %v5144_v2 = vmul.f32 %v7966_v36, %v5043_v47 }
0x5fa5   :  { %v5128_v54 = vpop.permute.xlu1 %5127 }
0x5fa6   :  { %v5130_v51 = vmul.f32 %v7966_v36, %v5128_v54 }
0x5fa8   :  { %5132 = vrot.lane.b32.xlu0 %v5130_v51, %s8431_s15 }
0x601a   :  { %v5133_v55 = vpop.permute.xlu0 %5132 }
0x601b   :  { %v5135_v56 = vadd.f32 %v5133_v55, %v9559_v33 }
0x601d   :  { %7967 = vtanh.f32 %v5135_v56 }
0x602a   :  { %v7968_v23 = vpop.eup %7967 }
0x602b   :  { %5139 = vrot.lane.b32.xlu1 %v7968_v23, %s8432_s16  ;;  %v9693_v23 = vld [vmem:[#allocation25 + $0x18] sm:$0xff] }
0x609d   :  { %v5140_v27 = vpop.permute.xlu1 %5139 }
0x609e   :  { %v5142_v31 = vmul.f32 %v5140_v27, %v5137_v38  ;;  %v9695_v38 = vld [vmem:[#allocation25 + $0x10] sm:$0xff] }
0x60a0   :  { %v5145_v62 = vadd.f32 %v5144_v2, %v5142_v31 }
0x60a2   :  { %5147 = vrot.lane.b32.xlu0 %v5145_v62, %s8432_s16  ;;  %v5252_v19 = vrot.slane %v5145_v62, 6 }
0x6114   :  { %v5148_v63 = vpop.permute.xlu0 %5147 }
0x6115   :  { %5150 = vst.msk [vmem:[#allocation2 + $0x8] sm:$0x3] %vm639_vm5, %v5148_v63  ;;  %7559 = vmatmul.mubr.msk.f32.vlgmr.msra.gmra.mxu0 %vm440_vm4, %v5148_v63  ;;  %v9702_v63 = vld [vmem:[#allocation25 + $0x8] sm:$0xff] }
0x6116   :  { %7573 = vmatpush3.msra.mxu0 %v9455_v5  ;;  %7580 = vmatprep.mubr.msk.f32.mxu0 %vm8430_vm3, %v8429_v14 }
0x6117   :  { %7574 = vmatprep.subr.mxu0 %v8429_v14 }
0x6118   :  { %7575 = vmatpush3.msra.mxu0 %v9459_v10 }
0x6119   :  { %7576 = vmatprep.subr.mxu0 %v8429_v14 }
0x611a   :  { %7577 = vmatpush3.msra.mxu0 %v9466_v8 }
0x611b   :  { %7578 = vmatprep.subr.mxu0 %v8429_v14 }
0x611c   :  { %7579 = vmatpush3.msra.mxu0 %v9470_v21 }
0x611d   :  { %7594 = vmatprep.subr.mxu0 %v8429_v14 }
0x61d5   :  { %v5219_v0 = vpop.f32.mrf.mxu0 }
0x61d6   :  { %v5233_v5 = vadd.f32 %v5219_v0, %v9540_v13  ;;  %v5224_v4 = vrot.slane %v5219_v0, 6  ;;  %v9706_v0 = vld [vmem:[#allocation25] sm:$0xff] }
0x61d7   :  { %v7560_v29 = vpop.f32.mrf.mxu0 }
0x61d8   :  { %v5235_v3 = vrot.slane %v5233_v5, 6  ;;  %v5226_v10 = vadd.f32 %v5224_v4, %v9559_v33  ;;  %v5591_v4 = vrot.slane %v9485_v18, 6 }
0x61da   :  { %5236 = vrot.lane.b32.xlu1 %v5235_v3, %s8431_s15  ;;  %v6720_v41 = vmul.f32 -1.442695, %v5226_v10 }
0x61dc   :  { %7969 = vpow2.f32 %v6720_v41 }
0x61e9   :  { %v7970_v7 = vpop.eup %7969 }
0x61ea   :  { %v5230_v8 = vadd.f32 1.0, %v7970_v7 }
0x61ec   :  { %7971 = vrcp.f32 %v5230_v8 }
0x61f9   :  { %v7972_v9 = vpop.eup %7971 }
0x61fa   :  { %v5246_v1 = vsub.f32 1.0, %v7972_v9  ;;  %v5254_v28 = vmul.f32 %v7972_v9, %v5252_v19 }
0x624c   :  { %v5237_v11 = vpop.permute.xlu1 %5236 }
0x624d   :  { %v5239_v21 = vmul.f32 %v7972_v9, %v5237_v11  ;;  %v6728_v9 = vld [vmem:[%s8571_s21] ss:$0 sm:$0xff]  ;;  %v5492_v11 = vld [vmem:[#allocation23 + $0x18] sm:$0xff]  ;;  %s9950_s21 = sld [smem:[#allocation48_spill]] }
0x624e   :  { %7583 = vmatprep.subr.mxu1 %v5492_v11 }
0x624f   :  { %5241 = vrot.lane.b32.xlu0 %v5239_v21, %s8431_s15  ;;  %v5491_v21 = vld [vmem:[#allocation23 + $0x10] sm:$0xff] }
0x62c1   :  { %v5242_v12 = vpop.permute.xlu0 %5241 }
0x62c2   :  { %v5244_v15 = vadd.f32 %v5242_v12, %v9559_v33  ;;  %v5490_v12 = vld [vmem:[#allocation23 + $0x8] sm:$0xff] }
0x62c4   :  { %7973 = vtanh.f32 %v5244_v15  ;;  %v5489_v15 = vld [vmem:[#allocation23] sm:$0xff] }
0x62d1   :  { %v7974_v16 = vpop.eup %7973 }
0x62d2   :  { %5248 = vrot.lane.b32.xlu1 %v7974_v16, %s8432_s16 }
0x6344   :  { %v5249_v44 = vpop.permute.xlu1 %5248 }
0x6345   :  { %v5251_v20 = vmul.f32 %v5249_v44, %v5246_v1 }
0x6347   :  { %v9672_v37 = vadd.f32 %v5254_v28, %v5251_v20 }
0x6349   :  { %v5261_v30 = vrot.slane %v9672_v37, 2  ;;  %v5365_v52 = vrot.slane %v9672_v37, 6 }
0x634b   :  { %5262 = vrot.lane.b32.xlu0 %v5261_v30, %s8432_s16 }
0x63bd   :  { %v5263_v59 = vpop.permute.xlu0 %5262 }
0x63be   :  { %7570 = vmatmul.mubr.msk.f32.vlgmr.msra.gmra.mxu1 %vm440_vm4, %v5263_v59 }
0x63bf   :  { %7584 = vmatpush3.msra.mxu1 %v5492_v11 }
0x63c0   :  { %7585 = vmatprep.subr.mxu1 %v5491_v21 }
0x63c1   :  { %7586 = vmatpush3.msra.mxu1 %v5491_v21 }
0x63c2   :  { %7587 = vmatprep.subr.mxu1 %v5490_v12 }
0x63c3   :  { %7588 = vmatpush3.msra.mxu1 %v5490_v12 }
0x63c4   :  { %7589 = vmatprep.subr.mxu1 %v5489_v15 }
0x63c5   :  { %7590 = vmatpush3.msra.mxu1 %v5489_v15 }
0x63c6   :  { %7605 = vmatprep.subr.mxu1 %v8429_v14 }
0x647e   :  { %v5332_v57 = vpop.f32.mrf.mxu1 }
0x647f   :  { %v5346_v32 = vadd.f32 %v5332_v57, %v9540_v13  ;;  %v5337_v42 = vrot.slane %v5332_v57, 4 }
0x6480   :  { %v7571_v6 = vpop.f32.mrf.mxu1 }
0x6481   :  { %v5348_v22 = vrot.slane %v5346_v32, 4  ;;  %v5339_v26 = vadd.f32 %v5337_v42, %v9559_v33 }
0x6483   :  { %5349 = vrot.lane.b32.xlu1 %v5348_v22, %s8431_s15  ;;  %v6722_v61 = vmul.f32 -1.442695, %v5339_v26  ;;  %v6725_v26 = vld [vmem:[%s9950_s21] ss:$0 sm:$0xff] }
0x6485   :  { %7975 = vpow2.f32 %v6722_v61 }
0x6492   :  { %v7976_v39 = vpop.eup %7975 }
0x6493   :  { %v5343_v50 = vadd.f32 1.0, %v7976_v39 }
0x6495   :  { %7977 = vrcp.f32 %v5343_v50 }
0x64a2   :  { %v7978_v25 = vpop.eup %7977 }
0x64a3   :  { %v5359_v45 = vsub.f32 1.0, %v7978_v25  ;;  %v5367_v53 = vmul.f32 %v7978_v25, %v5365_v52 }
0x64f5   :  { %v5350_v34 = vpop.permute.xlu1 %5349 }
0x64f6   :  { %v5352_v40 = vmul.f32 %v7978_v25, %v5350_v34 }
0x64f8   :  { %5354 = vrot.lane.b32.xlu0 %v5352_v40, %s8431_s15 }
0x656a   :  { %v5355_v43 = vpop.permute.xlu0 %5354 }
0x656b   :  { %v5357_v47 = vadd.f32 %v5355_v43, %v9559_v33 }
0x656d   :  { %7979 = vtanh.f32 %v5357_v47 }
0x657a   :  { %v7980_v49 = vpop.eup %7979 }
0x657b   :  { %5361 = vrot.lane.b32.xlu1 %v7980_v49, %s8432_s16 }
0x65ed   :  { %v5362_v48 = vpop.permute.xlu1 %5361 }
0x65ee   :  { %v5364_v35 = vmul.f32 %v5362_v48, %v5359_v45 }
0x65f0   :  { %v9684_v58 = vadd.f32 %v5367_v53, %v5364_v35 }
0x65f2   :  { %v5374_v60 = vrot.slane %v9684_v58, 4 }
0x65f4   :  { %5375 = vrot.lane.b32.xlu0 %v5374_v60, %s8432_s16 }
0x6666   :  { %v5376_v36 = vpop.permute.xlu0 %5375 }
0x6667   :  { %7581 = vmatmul.mubr.msk.f32.vlgmr.msra.gmra.mxu0 %vm440_vm4, %v5376_v36 }
0x6668   :  { %7602 = vmatprep.mubr.msk.f32.mxu0 %vm8430_vm3, %v8429_v14  ;;  %7595 = vmatpush3.msra.mxu0 %v9693_v23 }
0x6669   :  { %7596 = vmatprep.subr.mxu0 %v8429_v14 }
0x666a   :  { %7597 = vmatpush3.msra.mxu0 %v9695_v38 }
0x666b   :  { %7598 = vmatprep.subr.mxu0 %v8429_v14 }
0x666c   :  { %7599 = vmatpush3.msra.mxu0 %v9702_v63 }
0x666d   :  { %7600 = vmatprep.subr.mxu0 %v8429_v14 }
0x666e   :  { %7601 = vmatpush3.msra.mxu0 %v9706_v0 }
0x666f   :  { %7616 = vmatprep.subr.mxu0 %v8429_v14 }
0x6727   :  { %v5445_v54 = vpop.f32.mrf.mxu0 }
0x6728   :  { %v5459_v51 = vadd.f32 %v5445_v54, %v9540_v13  ;;  %v5450_v27 = vrot.slane %v5445_v54, 2 }
0x6729   :  { %v7582_v55 = vpop.f32.mrf.mxu0 }
0x672a   :  { %v5461_v56 = vrot.slane %v5459_v51, 2  ;;  %v5452_v2 = vadd.f32 %v5450_v27, %v9559_v33 }
0x672c   :  { %5462 = vrot.lane.b32.xlu1 %v5461_v56, %s8431_s15  ;;  %v6724_v13 = vmul.f32 -1.442695, %v5452_v2 }
0x672e   :  { %7981 = vpow2.f32 %v6724_v13 }
0x673b   :  { %v7982_v31 = vpop.eup %7981 }
0x673c   :  { %v5456_v62 = vadd.f32 1.0, %v7982_v31 }
0x673e   :  { %7983 = vrcp.f32 %v5456_v62 }
0x674b   :  { %v7984_v5 = vpop.eup %7983 }
0x679e   :  { %v5463_v29 = vpop.permute.xlu1 %5462 }
0x679f   :  { %v5465_v3 = vmul.f32 %v7984_v5, %v5463_v29 }
0x67a1   :  { %5467 = vrot.lane.b32.xlu0 %v5465_v3, %s8431_s15 }
0x67a5   :  { %5592 = vrot.lane.b32.xlu0 %v5591_v4, %s8432_s16 }
0x67a9   :  { %4926 = vrot.lane.b32.xlu0 %v9611_v17, %s8432_s16 }
0x67ad   :  { %5257 = vrot.lane.b32.xlu0 %v9672_v37, %s8432_s16 }
0x6813   :  { %v5468_v10 = vpop.permute.xlu0 %5467 }
0x6814   :  { %v5470_v41 = vadd.f32 %v5468_v10, %v9559_v33 }
0x6816   :  { %7985 = vtanh.f32 %v5470_v41 }
0x6817   :  { %v5593_v7 = vpop.permute.xlu0 %5592 }
0x6818   :  { %7603 = vmatmul.mubr.msk.f32.vlgmr.msra.gmra.mxu0 %vm440_vm4, %v5593_v7 }
0x6819   :  { %7617 = vmatpush3.msra.mxu0 %v9693_v23  ;;  %7624 = vmatprep.mubr.msk.f32.mxu0 %vm8430_vm3, %v8429_v14 }
0x681a   :  { %7618 = vmatprep.subr.mxu0 %v8429_v14 }
0x681b   :  { %v4927_v8 = vpop.permute.xlu0 %4926  ;;  %7619 = vmatpush3.msra.mxu0 %v9695_v38 }
0x681c   :  { %4929 = vst.msk [vmem:[#allocation2] sm:$0x30] %vm864_vm8, %v4927_v8  ;;  %7620 = vmatprep.subr.mxu0 %v8429_v14 }
0x681d   :  { %7621 = vmatpush3.msra.mxu0 %v9702_v63 }
0x681e   :  { %7622 = vmatprep.subr.mxu0 %v8429_v14 }
0x681f   :  { %v5258_v33 = vpop.permute.xlu0 %5257  ;;  %7623 = vmatpush3.msra.mxu0 %v9706_v0 }
0x6820   :  { %5260 = vst.msk [vmem:[#allocation2 + $0x8] sm:$0xc] %vm750_vm6, %v5258_v33  ;;  %7638 = vmatprep.subr.mxu0 %v8429_v14 }
0x6823   :  { %v7986_v17 = vpop.eup %7985 }
0x6824   :  { %5474 = vrot.lane.b32.xlu1 %v7986_v17, %s8432_s16 }
0x6828   :  { %4813 = vrot.lane.b32.xlu1 %v9589_v24, %s8432_s16  ;;  %v5472_v24 = vsub.f32 1.0, %v7984_v5 }
0x682c   :  { %5039 = vrot.lane.b32.xlu1 %v9633_v46, %s8432_s16  ;;  %v5478_v46 = vrot.slane %v9684_v58, 6 }
0x682e   :  { %v5480_v19 = vmul.f32 %v7984_v5, %v5478_v46 }
0x6830   :  { %5370 = vrot.lane.b32.xlu1 %v9684_v58, %s8432_s16 }
0x6834   :  { %5673 = vrot.lane.b32.xlu1 %v6728_v9, %s8431_s15 }
0x6896   :  { %v5475_v16 = vpop.permute.xlu1 %5474 }
0x6897   :  { %v5477_v1 = vmul.f32 %v5475_v16, %v5472_v24 }
0x6899   :  { %v5481_v44 = vadd.f32 %v5480_v19, %v5477_v1 }
0x689a   :  { %v4814_v20 = vpop.permute.xlu1 %4813 }
0x689b   :  { %4816 = vst.msk [vmem:[#allocation2] sm:$0xc] %vm750_vm6, %v4814_v20  ;;  %5483 = vrot.lane.b32.xlu0 %v5481_v44, %s8432_s16 }
0x689e   :  { %v5040_v28 = vpop.permute.xlu1 %5039 }
0x689f   :  { %5042 = vst.msk [vmem:[#allocation2] sm:$0xc0] %vm978_vm7, %v5040_v28 }
0x68a2   :  { %v5371_v37 = vpop.permute.xlu1 %5370 }
0x68a3   :  { %5373 = vst.msk [vmem:[#allocation2 + $0x8] sm:$0x30] %vm864_vm8, %v5371_v37 }
0x68a6   :  { %v5487_v30 = vld [vmem:[#allocation2] sm:$0xff]  ;;  %v9749_v59 = vpop.permute.xlu1 %5673 }
0x68a7   :  { %7591 = vmatprep.mubr.msk.f32.mxu1 %vm440_vm4, %v5487_v30 }
0x68d8   :  { %v5662_v57 = vpop.f32.mrf.mxu0 }
0x68d9   :  { %v5676_v32 = vadd.f32 %v9749_v59, %v5662_v57 }
0x68da   :  { %v7604_v6 = vpop.f32.mrf.mxu0 }
0x68db   :  { %5678 = vrot.lane.b32.xlu0 %v5676_v32, %s8431_s15 }
0x690d   :  { %v5484_v22 = vpop.permute.xlu0 %5483 }
0x690e   :  { %5486 = vst.msk [vmem:[#allocation2 + $0x8] sm:$0xc0] %vm978_vm7, %v5484_v22 }
0x6915   :  { %v5488_v42 = vld [vmem:[#allocation2 + $0x8] sm:$0xff] }
0x6916   :  { %7592 = vmatmul.mubr.msk.f32.vlgmr.msra.gmra.mxu1 %vm440_vm4, %v5488_v42 }
0x6917   :  { %7606 = vmatpush3.msra.mxu1 %v9693_v23  ;;  %7613 = vmatprep.mubr.msk.f32.mxu1 %vm8430_vm3, %v8429_v14 }
0x6918   :  { %7607 = vmatprep.subr.mxu1 %v8429_v14 }
0x6919   :  { %7608 = vmatpush3.msra.mxu1 %v9695_v38 }
0x691a   :  { %7609 = vmatprep.subr.mxu1 %v8429_v14 }
0x691b   :  { %7610 = vmatpush3.msra.mxu1 %v9702_v63 }
0x691c   :  { %7611 = vmatprep.subr.mxu1 %v8429_v14 }
0x691d   :  { %7612 = vmatpush3.msra.mxu1 %v9706_v0 }
0x691e   :  { %7627 = vmatprep.subr.mxu1 %v8429_v14 }
0x694d   :  { %v5679_v45 = vpop.permute.xlu0 %5678 }
0x69d6   :  { %v7593_v61 = vpop.f32.mrf.mxu1 }
0x69d7   :  { %v9766_v39 = vadd.f32 %v7593_v61, %v6725_v26 }
0x69d8   :  { %v5572_v50 = vpop.f32.mrf.mxu1 }
0x69d9   :  { %v9768_v25 = vadd.f32 %v6725_v26, %v5572_v50 }
0x69db   :  { %v5666_v34 = vadd.f32 %v5662_v57, %v9768_v25 }
0x69dd   :  { %v6730_v40 = vmul.f32 -1.442695, %v5666_v34 }
0x69df   :  { %7987 = vpow2.f32 %v6730_v40 }
0x69ec   :  { %v7988_v43 = vpop.eup %7987 }
0x69ed   :  { %v5670_v47 = vadd.f32 1.0, %v7988_v43 }
0x69ef   :  { %7989 = vrcp.f32 %v5670_v47 }
0x69fc   :  { %v7990_v49 = vpop.eup %7989 }
0x69fd   :  { %v5681_v52 = vmul.f32 %v7990_v49, %v5679_v45  ;;  %v5688_v58 = vsub.f32 1.0, %v7990_v49  ;;  %v5695_v36 = vmul.f32 %v7990_v49, %v5591_v4 }
0x69ff   :  { %5683 = vrot.lane.b32.xlu1 %v5681_v52, %s8431_s15 }
0x6a71   :  { %v5684_v48 = vpop.permute.xlu1 %5683 }
0x6a72   :  { %v5686_v53 = vadd.f32 %v5684_v48, %v9768_v25 }
0x6a74   :  { %7991 = vtanh.f32 %v5686_v53 }
0x6a81   :  { %v7992_v35 = vpop.eup %7991 }
0x6a82   :  { %5690 = vrot.lane.b32.xlu0 %v7992_v35, %s8432_s16 }
0x6af4   :  { %v5691_v60 = vpop.permute.xlu0 %5690 }
0x6af5   :  { %v5693_v54 = vmul.f32 %v5691_v60, %v5688_v58 }
0x6af7   :  { %v5696_v51 = vadd.f32 %v5695_v36, %v5693_v54 }
0x6af9   :  { %5698 = vrot.lane.b32.xlu1 %v5696_v51, %s8432_s16  ;;  %v5803_v33 = vrot.slane %v5696_v51, 6 }
0x6b6b   :  { %v5699_v55 = vpop.permute.xlu1 %5698 }
0x6b6c   :  { %5701 = vst.msk [vmem:[#allocation2] sm:$0x3] %vm639_vm5, %v5699_v55  ;;  %7614 = vmatmul.mubr.msk.f32.vlgmr.msra.gmra.mxu1 %vm440_vm4, %v5699_v55 }
0x6b6d   :  { %7628 = vmatpush3.msra.mxu1 %v9693_v23  ;;  %7635 = vmatprep.mubr.msk.f32.mxu1 %vm8430_vm3, %v8429_v14 }
0x6b6e   :  { %7629 = vmatprep.subr.mxu1 %v8429_v14 }
0x6b6f   :  { %7630 = vmatpush3.msra.mxu1 %v9695_v38 }
0x6b70   :  { %7631 = vmatprep.subr.mxu1 %v8429_v14 }
0x6b71   :  { %7632 = vmatpush3.msra.mxu1 %v9702_v63 }
0x6b72   :  { %7633 = vmatprep.subr.mxu1 %v8429_v14 }
0x6b73   :  { %7634 = vmatpush3.msra.mxu1 %v9706_v0 }
0x6b74   :  { %7649 = vmatprep.subr.mxu1 %v8429_v14 }
0x6c2c   :  { %v5770_v18 = vpop.f32.mrf.mxu1 }
0x6c2d   :  { %v5784_v56 = vadd.f32 %v5770_v18, %v9749_v59  ;;  %v5775_v13 = vrot.slane %v5770_v18, 6 }
0x6c2e   :  { %v7615_v27 = vpop.f32.mrf.mxu1 }
0x6c2f   :  { %v5786_v2 = vrot.slane %v5784_v56, 6  ;;  %v5777_v31 = vadd.f32 %v5775_v13, %v9768_v25 }
0x6c31   :  { %5787 = vrot.lane.b32.xlu0 %v5786_v2, %s8431_s15  ;;  %v6732_v62 = vmul.f32 -1.442695, %v5777_v31 }
0x6c33   :  { %7993 = vpow2.f32 %v6732_v62 }
0x6c40   :  { %v7994_v5 = vpop.eup %7993 }
0x6c41   :  { %v5781_v29 = vadd.f32 1.0, %v7994_v5 }
0x6c43   :  { %7995 = vrcp.f32 %v5781_v29 }
0x6c50   :  { %v7996_v3 = vpop.eup %7995 }
0x6c51   :  { %v5797_v17 = vsub.f32 1.0, %v7996_v3  ;;  %v5805_v21 = vmul.f32 %v7996_v3, %v5803_v33 }
0x6ca3   :  { %v5788_v4 = vpop.permute.xlu0 %5787 }
0x6ca4   :  { %v5790_v10 = vmul.f32 %v7996_v3, %v5788_v4 }
0x6ca6   :  { %5792 = vrot.lane.b32.xlu1 %v5790_v10, %s8431_s15 }
0x6d18   :  { %v5793_v41 = vpop.permute.xlu1 %5792 }
0x6d19   :  { %v5795_v7 = vadd.f32 %v5793_v41, %v9768_v25 }
0x6d1b   :  { %7997 = vtanh.f32 %v5795_v7 }
0x6d28   :  { %v7998_v8 = vpop.eup %7997 }
0x6d29   :  { %5799 = vrot.lane.b32.xlu0 %v7998_v8, %s8432_s16 }
0x6d9b   :  { %v5800_v9 = vpop.permute.xlu0 %5799 }
0x6d9c   :  { %v5802_v11 = vmul.f32 %v5800_v9, %v5797_v17 }
0x6d9e   :  { %v9795_v12 = vadd.f32 %v5805_v21, %v5802_v11 }
0x6da0   :  { %v5812_v15 = vrot.slane %v9795_v12, 2  ;;  %v5916_v50 = vrot.slane %v9795_v12, 6 }
0x6da2   :  { %5813 = vrot.lane.b32.xlu1 %v5812_v15, %s8432_s16 }
0x6e14   :  { %v5814_v24 = vpop.permute.xlu1 %5813 }
0x6e15   :  { %7625 = vmatmul.mubr.msk.f32.vlgmr.msra.gmra.mxu0 %vm440_vm4, %v5814_v24 }
0x6e16   :  { %7639 = vmatpush3.msra.mxu0 %v9693_v23  ;;  %7646 = vmatprep.mubr.msk.f32.mxu0 %vm8430_vm3, %v8429_v14 }
0x6e17   :  { %7640 = vmatprep.subr.mxu0 %v8429_v14 }
0x6e18   :  { %7641 = vmatpush3.msra.mxu0 %v9695_v38 }
0x6e19   :  { %7642 = vmatprep.subr.mxu0 %v8429_v14 }
0x6e1a   :  { %7643 = vmatpush3.msra.mxu0 %v9702_v63 }
0x6e1b   :  { %7644 = vmatprep.subr.mxu0 %v8429_v14 }
0x6e1c   :  { %7645 = vmatpush3.msra.mxu0 %v9706_v0 }
0x6e1d   :  { %7660 = vmatprep.subr.mxu0 %v8429_v14 }
0x6ed5   :  { %v5883_v46 = vpop.f32.mrf.mxu0 }
0x6ed6   :  { %v5897_v16 = vadd.f32 %v5883_v46, %v9749_v59  ;;  %v5888_v44 = vrot.slane %v5883_v46, 4 }
0x6ed7   :  { %v7626_v19 = vpop.f32.mrf.mxu0 }
0x6ed8   :  { %v5899_v1 = vrot.slane %v5897_v16, 4  ;;  %v5890_v20 = vadd.f32 %v5888_v44, %v9768_v25 }
0x6eda   :  { %5900 = vrot.lane.b32.xlu0 %v5899_v1, %s8431_s15  ;;  %v6734_v28 = vmul.f32 -1.442695, %v5890_v20 }
0x6edc   :  { %7999 = vpow2.f32 %v6734_v28 }
0x6ee9   :  { %v8000_v37 = vpop.eup %7999 }
0x6eea   :  { %v5894_v30 = vadd.f32 1.0, %v8000_v37 }
0x6eec   :  { %8001 = vrcp.f32 %v5894_v30 }
0x6ef9   :  { %v8002_v57 = vpop.eup %8001 }
0x6efa   :  { %v5910_v61 = vsub.f32 1.0, %v8002_v57  ;;  %v5918_v40 = vmul.f32 %v8002_v57, %v5916_v50 }
0x6f4c   :  { %v5901_v32 = vpop.permute.xlu0 %5900 }
0x6f4d   :  { %v5903_v6 = vmul.f32 %v8002_v57, %v5901_v32 }
0x6f4f   :  { %5905 = vrot.lane.b32.xlu1 %v5903_v6, %s8431_s15 }
0x6fc1   :  { %v5906_v22 = vpop.permute.xlu1 %5905 }
0x6fc2   :  { %v5908_v42 = vadd.f32 %v5906_v22, %v9768_v25 }
0x6fc4   :  { %8003 = vtanh.f32 %v5908_v42 }
0x6fd1   :  { %v8004_v26 = vpop.eup %8003 }
0x6fd2   :  { %5912 = vrot.lane.b32.xlu0 %v8004_v26, %s8432_s16 }
0x7044   :  { %v5913_v34 = vpop.permute.xlu0 %5912 }
0x7045   :  { %v5915_v43 = vmul.f32 %v5913_v34, %v5910_v61 }
0x7047   :  { %v9817_v47 = vadd.f32 %v5918_v40, %v5915_v43 }
0x7049   :  { %v5925_v49 = vrot.slane %v9817_v47, 4  ;;  %v6029_v62 = vrot.slane %v9817_v47, 6 }
0x704b   :  { %5926 = vrot.lane.b32.xlu1 %v5925_v49, %s8432_s16 }
0x70bd   :  { %v5927_v45 = vpop.permute.xlu1 %5926 }
0x70be   :  { %7636 = vmatmul.mubr.msk.f32.vlgmr.msra.gmra.mxu1 %vm440_vm4, %v5927_v45 }
0x70bf   :  { %7650 = vmatpush3.msra.mxu1 %v9693_v23  ;;  %7657 = vmatprep.mubr.msk.f32.mxu1 %vm8430_vm3, %v8429_v14 }
0x70c0   :  { %7651 = vmatprep.subr.mxu1 %v8429_v14 }
0x70c1   :  { %7652 = vmatpush3.msra.mxu1 %v9695_v38 }
0x70c2   :  { %7653 = vmatprep.subr.mxu1 %v8429_v14 }
0x70c3   :  { %7654 = vmatpush3.msra.mxu1 %v9702_v63 }
0x70c4   :  { %7655 = vmatprep.subr.mxu1 %v8429_v14 }
0x70c5   :  { %7656 = vmatpush3.msra.mxu1 %v9706_v0 }
0x70c6   :  { %7671 = vmatprep.subr.mxu1 %v8429_v14 }
0x717e   :  { %v5996_v52 = vpop.f32.mrf.mxu1 }
0x717f   :  { %v6010_v48 = vadd.f32 %v5996_v52, %v9749_v59  ;;  %v6001_v58 = vrot.slane %v5996_v52, 2 }
0x7180   :  { %v7637_v53 = vpop.f32.mrf.mxu1 }
0x7181   :  { %v6012_v35 = vrot.slane %v6010_v48, 2  ;;  %v6003_v60 = vadd.f32 %v6001_v58, %v9768_v25 }
0x7183   :  { %6013 = vrot.lane.b32.xlu0 %v6012_v35, %s8431_s15  ;;  %v6736_v36 = vmul.f32 -1.442695, %v6003_v60 }
0x7185   :  { %8005 = vpow2.f32 %v6736_v36 }
0x7192   :  { %v8006_v54 = vpop.eup %8005 }
0x7193   :  { %v6007_v51 = vadd.f32 1.0, %v8006_v54 }
0x7195   :  { %8007 = vrcp.f32 %v6007_v51 }
0x71a2   :  { %v8008_v55 = vpop.eup %8007 }
0x71a3   :  { %v6023_v31 = vsub.f32 1.0, %v8008_v55  ;;  %v6031_v29 = vmul.f32 %v8008_v55, %v6029_v62 }
0x71f5   :  { %v6014_v18 = vpop.permute.xlu0 %6013 }
0x71f6   :  { %v6016_v56 = vmul.f32 %v8008_v55, %v6014_v18 }
0x71f8   :  { %6018 = vrot.lane.b32.xlu1 %v6016_v56, %s8431_s15 }
0x726a   :  { %v6019_v27 = vpop.permute.xlu1 %6018 }
0x726b   :  { %v6021_v2 = vadd.f32 %v6019_v27, %v9768_v25 }
0x726d   :  { %8009 = vtanh.f32 %v6021_v2 }
0x727a   :  { %v8010_v13 = vpop.eup %8009 }
0x727b   :  { %6025 = vrot.lane.b32.xlu0 %v8010_v13, %s8432_s16 }
0x72ed   :  { %v6026_v5 = vpop.permute.xlu0 %6025 }
0x72ee   :  { %v6028_v3 = vmul.f32 %v6026_v5, %v6023_v31 }
0x72f0   :  { %v9839_v4 = vadd.f32 %v6031_v29, %v6028_v3 }
0x72f2   :  { %v6038_v10 = vrot.slane %v9839_v4, 6 }
0x72f4   :  { %6039 = vrot.lane.b32.xlu1 %v6038_v10, %s8432_s16 }
0x7366   :  { %v6040_v41 = vpop.permute.xlu1 %6039 }
0x7367   :  { %7647 = vmatmul.mubr.msk.f32.vlgmr.msra.gmra.mxu0 %vm440_vm4, %v6040_v41 }
0x7368   :  { %7661 = vmatpush3.msra.mxu0 %v9693_v23  ;;  %7668 = vmatprep.mubr.msk.f32.mxu0 %vm8430_vm3, %v8429_v14 }
0x7369   :  { %7662 = vmatprep.subr.mxu0 %v8429_v14 }
0x736a   :  { %7663 = vmatpush3.msra.mxu0 %v9695_v38 }
0x736b   :  { %7664 = vmatprep.subr.mxu0 %v8429_v14 }
0x736c   :  { %7665 = vmatpush3.msra.mxu0 %v9702_v63 }
0x736d   :  { %7666 = vmatprep.subr.mxu0 %v8429_v14 }
0x736e   :  { %7667 = vmatpush3.msra.mxu0 %v9706_v0 }
0x7427   :  { %v6109_v25 = vpop.f32.mrf.mxu0 }
0x7428   :  { %v6120_v7 = vadd.f32 %v6109_v25, %v9749_v59  ;;  %v6113_v33 = vadd.f32 %v6109_v25, %v9766_v39 }
0x7429   :  { %v7648_v8 = vpop.f32.mrf.mxu0 }
0x742a   :  { %6122 = vrot.lane.b32.xlu0 %v6120_v7, %s8431_s15  ;;  %v6738_v17 = vmul.f32 -1.442695, %v6113_v33 }
0x742c   :  { %8011 = vpow2.f32 %v6738_v17 }
0x7439   :  { %v8012_v9 = vpop.eup %8011 }
0x743a   :  { %v6117_v11 = vadd.f32 1.0, %v8012_v9 }
0x743c   :  { %8013 = vrcp.f32 %v6117_v11 }
0x7449   :  { %v8014_v21 = vpop.eup %8013 }
0x744a   :  { %v6132_v1 = vsub.f32 1.0, %v8014_v21  ;;  %v6139_v20 = vmul.f32 %v8014_v21, %v6038_v10 }
0x749c   :  { %v6123_v15 = vpop.permute.xlu0 %6122 }
0x749d   :  { %v6125_v24 = vmul.f32 %v8014_v21, %v6123_v15 }
0x749f   :  { %6127 = vrot.lane.b32.xlu1 %v6125_v24, %s8431_s15 }
0x7511   :  { %v6128_v46 = vpop.permute.xlu1 %6127 }
0x7512   :  { %v6130_v16 = vadd.f32 %v6128_v46, %v9766_v39 }
0x7514   :  { %8015 = vtanh.f32 %v6130_v16 }
0x7521   :  { %v8016_v19 = vpop.eup %8015 }
0x7522   :  { %6134 = vrot.lane.b32.xlu0 %v8016_v19, %s8432_s16 }
0x7594   :  { %v6135_v44 = vpop.permute.xlu0 %6134 }
0x7595   :  { %v6137_v28 = vmul.f32 %v6135_v44, %v6132_v1 }
0x7597   :  { %v6140_v37 = vadd.f32 %v6139_v20, %v6137_v28 }
0x7599   :  { %6142 = vrot.lane.b32.xlu1 %v6140_v37, %s8432_s16  ;;  %v6247_v43 = vrot.slane %v6140_v37, 6 }
0x760b   :  { %v6143_v30 = vpop.permute.xlu1 %6142 }
0x760c   :  { %6145 = vst.msk [vmem:[#allocation2 + $0x8] sm:$0x3] %vm639_vm5, %v6143_v30  ;;  %7658 = vmatmul.mubr.msk.f32.vlgmr.msra.gmra.mxu1 %vm440_vm4, %v6143_v30 }
0x760d   :  { %7672 = vmatpush3.msra.mxu1 %v9693_v23  ;;  %7679 = vmatprep.mubr.msk.f32.mxu1 %vm8430_vm3, %v8429_v14 }
0x760e   :  { %7673 = vmatprep.subr.mxu1 %v8429_v14 }
0x760f   :  { %7674 = vmatpush3.msra.mxu1 %v9695_v38 }
0x7610   :  { %7675 = vmatprep.subr.mxu1 %v8429_v14 }
0x7611   :  { %7676 = vmatpush3.msra.mxu1 %v9702_v63 }
0x7612   :  { %7677 = vmatprep.subr.mxu1 %v8429_v14 }
0x7613   :  { %7678 = vmatpush3.msra.mxu1 %v9706_v0 }
0x76cc   :  { %v6214_v57 = vpop.f32.mrf.mxu1 }
0x76cd   :  { %v6228_v32 = vadd.f32 %v6214_v57, %v9749_v59  ;;  %v6219_v22 = vrot.slane %v6214_v57, 6 }
0x76ce   :  { %v7659_v6 = vpop.f32.mrf.mxu1 }
0x76cf   :  { %v6230_v23 = vrot.slane %v6228_v32, 6  ;;  %v6221_v42 = vadd.f32 %v6219_v22, %v9766_v39  ;;  %v6484_v22 = vld [vmem:[#allocation26] sm:$0xff] }
0x76d1   :  { %6231 = vrot.lane.b32.xlu0 %v6230_v23, %s8431_s15  ;;  %v6740_v26 = vmul.f32 -1.442695, %v6221_v42 }
0x76d3   :  { %8017 = vpow2.f32 %v6740_v26 }
0x76e0   :  { %v8018_v38 = vpop.eup %8017 }
0x76e1   :  { %v6225_v61 = vadd.f32 1.0, %v8018_v38 }
0x76e3   :  { %8019 = vrcp.f32 %v6225_v61 }
0x76f0   :  { %v8020_v63 = vpop.eup %8019 }
0x76f1   :  { %v6241_v49 = vsub.f32 1.0, %v8020_v63  ;;  %v6249_v48 = vmul.f32 %v8020_v63, %v6247_v43  ;;  %v6745_v43 = vld [vmem:[%s8581_s13] ss:$0 sm:$0xff] }
0x7743   :  { %v6232_v50 = vpop.permute.xlu0 %6231 }
0x7744   :  { %v6234_v14 = vmul.f32 %v8020_v63, %v6232_v50 }
0x7746   :  { %6236 = vrot.lane.b32.xlu1 %v6234_v14, %s8431_s15 }
0x77b8   :  { %v6237_v0 = vpop.permute.xlu1 %6236 }
0x77b9   :  { %v6239_v34 = vadd.f32 %v6237_v0, %v9766_v39 }
0x77bb   :  { %8021 = vtanh.f32 %v6239_v34 }
0x77c8   :  { %v8022_v40 = vpop.eup %8021 }
0x77c9   :  { %6243 = vrot.lane.b32.xlu0 %v8022_v40, %s8432_s16 }
0x783b   :  { %v6244_v45 = vpop.permute.xlu0 %6243 }
0x783c   :  { %v6246_v52 = vmul.f32 %v6244_v45, %v6241_v49 }
0x783e   :  { %v9877_v53 = vadd.f32 %v6249_v48, %v6246_v52 }
0x7840   :  { %v6256_v35 = vrot.slane %v9877_v53, 2  ;;  %v6360_v41 = vrot.slane %v9877_v53, 6 }
0x7842   :  { %6257 = vrot.lane.b32.xlu1 %v6256_v35, %s8432_s16 }
0x78b4   :  { %v6258_v58 = vpop.permute.xlu1 %6257 }
0x78b5   :  { %7669 = vmatmul.mubr.msk.f32.vlgmr.msra.gmra.mxu0 %vm440_vm4, %v6258_v58 }
0x7975   :  { %v6327_v60 = vpop.f32.mrf.mxu0 }
0x7976   :  { %v6341_v36 = vadd.f32 %v6327_v60, %v9749_v59  ;;  %v6332_v55 = vrot.slane %v6327_v60, 4 }
0x7977   :  { %v7670_v54 = vpop.f32.mrf.mxu0 }
0x7978   :  { %v6343_v51 = vrot.slane %v6341_v36, 4  ;;  %v6334_v18 = vadd.f32 %v6332_v55, %v9766_v39 }
0x797a   :  { %6344 = vrot.lane.b32.xlu0 %v6343_v51, %s8431_s15  ;;  %v6742_v56 = vmul.f32 -1.442695, %v6334_v18 }
0x797c   :  { %8023 = vpow2.f32 %v6742_v56 }
0x7989   :  { %v8024_v27 = vpop.eup %8023 }
0x798a   :  { %v6338_v2 = vadd.f32 1.0, %v8024_v27 }
0x798c   :  { %8025 = vrcp.f32 %v6338_v2 }
0x7999   :  { %v8026_v13 = vpop.eup %8025 }
0x799a   :  { %v6354_v10 = vsub.f32 1.0, %v8026_v13  ;;  %v6362_v7 = vmul.f32 %v8026_v13, %v6360_v41 }
0x79ec   :  { %v6345_v31 = vpop.permute.xlu0 %6344 }
0x79ed   :  { %v6347_v62 = vmul.f32 %v8026_v13, %v6345_v31 }
0x79ef   :  { %6349 = vrot.lane.b32.xlu1 %v6347_v62, %s8431_s15 }
0x7a61   :  { %v6350_v5 = vpop.permute.xlu1 %6349 }
0x7a62   :  { %v6352_v29 = vadd.f32 %v6350_v5, %v9766_v39 }
0x7a64   :  { %8027 = vtanh.f32 %v6352_v29 }
0x7a71   :  { %v8028_v3 = vpop.eup %8027 }
0x7a72   :  { %6356 = vrot.lane.b32.xlu0 %v8028_v3, %s8432_s16 }
0x7ae4   :  { %v6357_v25 = vpop.permute.xlu0 %6356 }
0x7ae5   :  { %v6359_v8 = vmul.f32 %v6357_v25, %v6354_v10 }
0x7ae7   :  { %v6363_v33 = vadd.f32 %v6362_v7, %v6359_v8 }
0x7ae9   :  { %v6369_v17 = vrot.slane %v6363_v33, 4  ;;  %v6473_v26 = vrot.slane %v6363_v33, 6 }
0x7aeb   :  { %6370 = vrot.lane.b32.xlu1 %v6369_v17, %s8432_s16 }
0x7b5d   :  { %v6371_v9 = vpop.permute.xlu1 %6370 }
0x7b5e   :  { %7680 = vmatmul.mubr.msk.f32.vlgmr.msra.gmra.mxu1 %vm440_vm4, %v6371_v9 }
0x7c1e   :  { %v6440_v11 = vpop.f32.mrf.mxu1 }
0x7c1f   :  { %v6454_v21 = vadd.f32 %v6440_v11, %v9749_v59  ;;  %v6445_v46 = vrot.slane %v6440_v11, 2 }
0x7c20   :  { %v7681_v15 = vpop.f32.mrf.mxu1 }
0x7c21   :  { %v6456_v24 = vrot.slane %v6454_v21, 2  ;;  %v6447_v16 = vadd.f32 %v6445_v46, %v9766_v39 }
0x7c23   :  { %6457 = vrot.lane.b32.xlu0 %v6456_v24, %s8431_s15  ;;  %v6744_v19 = vmul.f32 -1.442695, %v6447_v16 }
0x7c25   :  { %8029 = vpow2.f32 %v6744_v19 }
0x7c32   :  { %v8030_v1 = vpop.eup %8029 }
0x7c33   :  { %v6451_v44 = vadd.f32 1.0, %v8030_v1 }
0x7c35   :  { %8031 = vrcp.f32 %v6451_v44 }
0x7c42   :  { %v8032_v20 = vpop.eup %8031 }
0x7c43   :  { %v6467_v42 = vsub.f32 1.0, %v8032_v20 }
0x7c95   :  { %v6458_v28 = vpop.permute.xlu0 %6457 }
0x7c96   :  { %v6460_v37 = vmul.f32 %v8032_v20, %v6458_v28 }
0x7c98   :  { %6462 = vrot.lane.b32.xlu1 %v6460_v37, %s8431_s15 }
0x7c9c   :  { %5808 = vrot.lane.b32.xlu1 %v9795_v12, %s8432_s16  ;;  %v6486_v12 = vld [vmem:[#allocation26 + $0x10] sm:$0xff] }
0x7ca0   :  { %6034 = vrot.lane.b32.xlu1 %v9839_v4, %s8432_s16  ;;  %v6485_v4 = vld [vmem:[#allocation26 + $0x8] sm:$0xff] }
0x7ca4   :  { %6365 = vrot.lane.b32.xlu1 %v6363_v33, %s8432_s16 }
0x7d0a   :  { %v6463_v59 = vpop.permute.xlu1 %6462 }
0x7d0b   :  { %v6465_v30 = vadd.f32 %v6463_v59, %v9766_v39  ;;  %v6487_v39 = vld [vmem:[#allocation26 + $0x18] sm:$0xff] }
0x7d0c   :  { %7682 = vmatprep.subr.mxu0 %v6487_v39 }
0x7d0d   :  { %8033 = vtanh.f32 %v6465_v30  ;;  %7683 = vmatpush3.msra.mxu0 %v6487_v39 }
0x7d0e   :  { %v5809_v57 = vpop.permute.xlu1 %5808  ;;  %7684 = vmatprep.subr.mxu0 %v6486_v12 }
0x7d0f   :  { %5811 = vst.msk [vmem:[#allocation2] sm:$0xc] %vm750_vm6, %v5809_v57  ;;  %7685 = vmatpush3.msra.mxu0 %v6486_v12 }
0x7d10   :  { %7686 = vmatprep.subr.mxu0 %v6485_v4 }
0x7d11   :  { %7687 = vmatpush3.msra.mxu0 %v6485_v4 }
0x7d12   :  { %v6035_v32 = vpop.permute.xlu1 %6034  ;;  %7688 = vmatprep.subr.mxu0 %v6484_v22 }
0x7d13   :  { %6037 = vst.msk [vmem:[#allocation2] sm:$0xc0] %vm978_vm7, %v6035_v32  ;;  %7689 = vmatpush3.msra.mxu0 %v6484_v22 }
0x7d16   :  { %v6366_v6 = vpop.permute.xlu1 %6365 }
0x7d17   :  { %6368 = vst.msk [vmem:[#allocation2 + $0x8] sm:$0x30] %vm864_vm8, %v6366_v6 }
0x7d1a   :  { %v8034_v23 = vpop.eup %8033 }
0x7d1b   :  { %6469 = vrot.lane.b32.xlu0 %v8034_v23, %s8432_s16 }
0x7d1f   :  { %5921 = vrot.lane.b32.xlu0 %v9817_v47, %s8432_s16  ;;  %v6475_v47 = vmul.f32 %v8032_v20, %v6473_v26 }
0x7d23   :  { %6252 = vrot.lane.b32.xlu0 %v9877_v53, %s8432_s16 }
0x7d8d   :  { %v6470_v38 = vpop.permute.xlu0 %6469 }
0x7d8e   :  { %v6472_v61 = vmul.f32 %v6470_v38, %v6467_v42 }
0x7d90   :  { %v6476_v63 = vadd.f32 %v6475_v47, %v6472_v61 }
0x7d91   :  { %v5922_v50 = vpop.permute.xlu0 %5921 }
0x7d92   :  { %5924 = vst.msk [vmem:[#allocation2] sm:$0x30] %vm864_vm8, %v5922_v50  ;;  %6478 = vrot.lane.b32.xlu0 %v6476_v63, %s8432_s16 }
0x7d95   :  { %v6253_v14 = vpop.permute.xlu0 %6252 }
0x7d96   :  { %6255 = vst.msk [vmem:[#allocation2 + $0x8] sm:$0xc] %vm750_vm6, %v6253_v14 }
0x7d99   :  { %v6482_v0 = vld [vmem:[#allocation2] sm:$0xff] }
0x7d9a   :  { %7690 = vmatprep.mubr.msk.f32.mxu0 %vm440_vm4, %v6482_v0 }
0x7e04   :  { %v6479_v34 = vpop.permute.xlu0 %6478 }
0x7e05   :  { %6481 = vst.msk [vmem:[#allocation2 + $0x8] sm:$0xc0] %vm978_vm7, %v6479_v34 }
0x7e0c   :  { %v6483_v40 = vld [vmem:[#allocation2 + $0x8] sm:$0xff] }
0x7e0d   :  { %7691 = vmatmul.mubr.msk.f32.vlgmr.msra.gmra.mxu0 %vm440_vm4, %v6483_v40 }
0x7ecd   :  { %v7692_v49 = vpop.f32.mrf.mxu0 }
0x7ece   :  { %v6573_v45 = vadd.f32 %v7692_v49, %v6745_v43 }
0x7ecf   :  { %v6567_v52 = vpop.f32.mrf.mxu0 }
0x7ed0   :  { %6577 = vst [vmem:[%s8586_s8 + $0x8] sm:$0xff] %v6573_v45  ;;  %v6568_v48 = vadd.f32 %v6745_v43, %v6567_v52 }
0x7ed2   :  { %6576 = vst [vmem:[%s8586_s8] sm:$0xff] %v6568_v48 }
0x7ed3   :  { %6582 = vsyncpa [#allocation4], 1 }
0x7ed4   :  { %6583 = vsyncpa [#allocation6], 1 }
0x7ed5   :  { %6584 = vsyncpa [#allocation9], 1 }
0x7ed6   :  { %6585 = vsyncpa [#allocation12], 1 }
0x7ed7   :  { %6586 = vsyncpa [#allocation15], 1 }
0x7ed8   :  { %6587 = vsyncpa [#allocation18], 1 }
0x7ed9   :  { %6588 = vsyncpa [#allocation21], 1 }
0x7eda   :  { %6589 = vsyncpa [#allocation24], 1 }
0x7edb   :  { %6590 = vsyncpa [#allocation27], 1 }

</bundles_post_ra>
